<compile_context>
chip_gen: v6e
topology: v6e:2x2x1
jax: 0.10.0
libtpu: 0.0.40
codegen_flags: <defaults>
</compile_context>

<pallas_src>
import jax
import jax.numpy as jnp
from jax.experimental import pallas as pl
from jax.experimental.pallas import tpu as pltpu

Lc = 16
Lq = 41
CTX = 2048          # ctx_dim
D = 512             # ctx_dim_m == D in the PyTorch module
NEG_INF = -1e30


# --------------------------------- kernel ----------------------------------
def vq_attention_kernel(vid_ref, ques_ref, vmask_ref, qmask_ref, scnt_ref,
                        wt_ref, bt_ref, w4v_ref, w4q_ref, w4mlu_ref, bias_ref,
                        fca_w_ref, fca_b_ref, fcb_w_ref, fcb_b_ref,
                        out_ref, vid_out_ref, out_cnt_ref):
    Bsz = ques_ref.shape[0]
    BLc = Bsz * Lc

    # trans(Vid_enc): weight-normed linear, batch folded into M, bf16 weights.
    V_flat = (jnp.dot(vid_ref[...].astype(jnp.bfloat16), wt_ref[...],
                      preferred_element_type=jnp.float32)
              + bt_ref[...])                                      # (B*Lc, D) f32
    V3 = V_flat.reshape(Bsz, Lc, D)                               # (B, Lc, D)
    Q = ques_ref[...]                                             # (B, Lq, D)

    # trilinear attention logits (dropout is a no-op in eval mode).
    # rank-1 terms as VPU multiply + lane reduce (no output-width-1 matmuls).
    sub0 = jnp.sum(V3 * w4v_ref[...], axis=-1, keepdims=True)     # (B, Lc, 1)
    sub1 = jnp.sum(Q * w4q_ref[...], axis=-1)                     # (B, Lq)
    sub2 = jnp.einsum('bld,bqd->blq', V3 * w4mlu_ref[...], Q,
                      preferred_element_type=jnp.float32)         # (B, Lc, Lq)
    S = sub0 + sub1[:, None, :] + sub2 + bias_ref[0]

    # fuse normal + counter branches along sublanes: (B, 2*Lc, Lq)
    S_both = jnp.concatenate([S, scnt_ref[...]], axis=1)
    qm = qmask_ref[...]                                           # (B, 1, Lq)
    vm = vmask_ref[...]                                           # (B, Lc, 1)
    vm_both = jnp.concatenate([vm, vm], axis=1)                   # (B, 2Lc, 1)

    # softmax over Lq (rows): one masked/exp/normalize stream for both branches
    mq = S_both * qm + (1.0 - qm) * NEG_INF
    e_q = jnp.exp(mq - jnp.max(mq, axis=2, keepdims=True))
    S1_both = e_q * pl.reciprocal(jnp.sum(e_q, axis=2, keepdims=True),
                                  approx=True)                    # (B, 2Lc, Lq)

    # softmax over Lc (columns), per-branch halves (sublane slices at 16)
    mv = S_both * vm_both + (1.0 - vm_both) * NEG_INF

    def _col_softmax(x):
        ex = jnp.exp(x - jnp.max(x, axis=1, keepdims=True))
        return ex * pl.reciprocal(jnp.sum(ex, axis=1, keepdims=True),
                                  approx=True)

    S2_n = _col_softmax(mv[:, :Lc])                               # (B, Lc, Lq)
    S2_c = _col_softmax(mv[:, Lc:])                               # (B, Lc, Lq)

    # A / A_counter in a single (2Lc, Lq)@(Lq, D) matmul per batch
    A_both = jnp.einsum('blq,bqd->bld', S1_both, Q,
                        preferred_element_type=jnp.float32)       # (B, 2Lc, D)
    # B / B_counter: per-half S1@S2^T stacked, then one (2Lc, Lc)@(Lc, D) matmul
    M_n = jnp.einsum('blq,bmq->blm', S1_both[:, :Lc], S2_n,
                     preferred_element_type=jnp.float32)          # (B, Lc, Lc)
    M_c = jnp.einsum('blq,bmq->blm', S1_both[:, Lc:], S2_c,
                     preferred_element_type=jnp.float32)          # (B, Lc, Lc)
    B_both = jnp.einsum('blm,bmd->bld',
                        jnp.concatenate([M_n, M_c], axis=1), V3,
                        preferred_element_type=jnp.float32)       # (B, 2Lc, D)

    A_f = A_both[:, :Lc].reshape(BLc, D)
    Ac_f = A_both[:, Lc:].reshape(BLc, D)
    B_f = B_both[:, :Lc].reshape(BLc, D)
    Bc_f = B_both[:, Lc:].reshape(BLc, D)

    # fcA / fcB: 3-way concat folded algebraically to (B*Lc, 2D)@(2D, D), bf16
    A_cnt = (jnp.dot(jnp.concatenate([A_f, Ac_f], axis=1).astype(jnp.bfloat16),
                     fca_w_ref[...], preferred_element_type=jnp.float32)
             + fca_b_ref[...])                                    # (B*Lc, D)
    B_cnt = (jnp.dot(jnp.concatenate([B_f, Bc_f], axis=1).astype(jnp.bfloat16),
                     fcb_w_ref[...], preferred_element_type=jnp.float32)
             + fcb_b_ref[...])                                    # (B*Lc, D)

    # concat([V, X, V*X, V*Y]) written directly into 512-aligned lane slices
    vid_out_ref[...] = V_flat
    out_ref[:, 0:D] = V_flat
    out_ref[:, D:2 * D] = A_f
    out_ref[:, 2 * D:3 * D] = V_flat * A_f
    out_ref[:, 3 * D:4 * D] = V_flat * B_f
    out_cnt_ref[:, 0:D] = V_flat
    out_cnt_ref[:, D:2 * D] = A_cnt
    out_cnt_ref[:, 2 * D:3 * D] = V_flat * A_cnt
    out_cnt_ref[:, 3 * D:4 * D] = V_flat * B_cnt


# --------------------------------- wrapper ---------------------------------
def vq_attention_counter_concat(vid_enc, ques_enc, v_mask, q_mask, s_counter, p):
    Bsz = vid_enc.shape[0]
    vid_flat = vid_enc.reshape(Bsz * Lc, CTX)
    ques_t = jnp.transpose(ques_enc, (0, 2, 1))          # (B, Lq, D)
    vmask = v_mask.reshape(Bsz, Lc, 1).astype(jnp.float32)
    qmask = q_mask.reshape(Bsz, 1, Lq).astype(jnp.float32)

    wt = p["trans_w"].astype(jnp.bfloat16)               # (CTX, D) bf16
    bt = p["trans_b"].reshape(1, D)
    w4v = p["w4V"].reshape(1, 1, D)
    w4q = p["w4Q"].reshape(1, 1, D)
    w4mlu = p["w4mlu"].reshape(1, 1, D)
    bias = p["bias"].reshape(1)                          # scalar -> SMEM

    def fold_fc(w):
        # cat([X - Xc, X, Xc]) @ [W0; W1; W2] == cat([X, Xc]) @ [W0+W1; W2-W0]
        w0, w1, w2 = w[0:D], w[D:2 * D], w[2 * D:3 * D]
        return jnp.concatenate([w0 + w1, w2 - w0], axis=0).astype(jnp.bfloat16)

    fca_w = fold_fc(p["fcA_w"])
    fca_b = p["fcA_b"].reshape(1, D)
    fcb_w = fold_fc(p["fcB_w"])
    fcb_b = p["fcB_b"].reshape(1, D)

    vspec = pl.BlockSpec(memory_space=pltpu.MemorySpace.VMEM)
    sspec = pl.BlockSpec(memory_space=pltpu.MemorySpace.SMEM)

    out_flat, vid_flat_out, out_cnt_flat = pl.pallas_call(
        vq_attention_kernel,
        out_shape=(
            jax.ShapeDtypeStruct((Bsz * Lc, 4 * D), jnp.float32),
            jax.ShapeDtypeStruct((Bsz * Lc, D), jnp.float32),
            jax.ShapeDtypeStruct((Bsz * Lc, 4 * D), jnp.float32),
        ),
        in_specs=[
            vspec,      # Vid_enc (flattened to (B*Lc, CTX))
            vspec,      # Ques_enc (transposed, (B, Lq, D))
            vspec,      # V_mask (B, Lc, 1)
            vspec,      # Q_mask (B, 1, Lq)
            vspec,      # S_counter (B, Lc, Lq)
            vspec,      # trans weight (effective weight-normed, bf16)
            vspec,      # trans bias (1, D)
            vspec,      # w4V (1, 1, D)
            vspec,      # w4Q (1, 1, D)
            vspec,      # w4mlu (1, 1, D)
            sspec,      # trilinear bias scalar (SMEM)
            vspec,      # fcA weight (folded, 2D x D, bf16)
            vspec,      # fcA bias
            vspec,      # fcB weight (folded, 2D x D, bf16)
            vspec,      # fcB bias
        ],
        out_specs=(vspec, vspec, vspec),
        compiler_params=pltpu.CompilerParams(
            vmem_limit_bytes=32 * 1024 * 1024),
    )(vid_flat, ques_t, vmask, qmask, s_counter,
      wt, bt, w4v, w4q, w4mlu, bias, fca_w, fca_b, fcb_w, fcb_b)

    out = out_flat.reshape(Bsz, Lc, 4 * D)
    vid_out = vid_flat_out.reshape(Bsz, Lc, D)
    out_cnt = out_cnt_flat.reshape(Bsz, Lc, 4 * D)
    # match PyTorch return: (out.transpose(1,2), Vid_enc, out_counter.transpose(1,2))
    return jnp.transpose(out, (0, 2, 1)), vid_out, jnp.transpose(out_cnt, (0, 2, 1))


# ----------------------------- parameter init ------------------------------
def init_params(key):
    ks = jax.random.split(key, 6)

    def xavier(k, shape):
        fan_out, fan_in = shape[-2], shape[-1]
        bound = (6.0 / (fan_in + fan_out)) ** 0.5
        return jax.random.uniform(k, shape, jnp.float32, -bound, bound)

    def linear(k, fin, fout):
        kw, kb = jax.random.split(k)
        bound = (1.0 / fin) ** 0.5
        w = jax.random.uniform(kw, (fin, fout), jnp.float32, -bound, bound)
        b = jax.random.uniform(kb, (fout,), jnp.float32, -bound, bound)
        return w, b

    w4V = xavier(ks[0], (D, 1))
    w4Q = xavier(ks[1], (D, 1))
    w4mlu = xavier(ks[2], (1, 1, D))

    # weight_norm(nn.Linear(CTX, D)): g initialised to the column norm of v, so
    # the effective weight equals v at init; compute it explicitly anyway.
    v, trans_b = linear(ks[3], CTX, D)                      # (in, out) layout
    col_norm = jnp.linalg.norm(v, axis=0, keepdims=True)
    g = col_norm
    trans_w = g * v / col_norm

    fcA_w, fcA_b = linear(ks[4], 3 * D, D)
    fcB_w, fcB_b = linear(ks[5], 3 * D, D)
    bias = jnp.zeros((1,), jnp.float32)

    return dict(w4V=w4V, w4Q=w4Q, w4mlu=w4mlu, trans_w=trans_w, trans_b=trans_b,
                fcA_w=fcA_w, fcA_b=fcA_b, fcB_w=fcB_w, fcB_b=fcB_b, bias=bias)


# ------------------------------ pure-JAX ref -------------------------------
def reference(vid_enc, ques_enc, v_mask, q_mask, s_counter, p):
    V = jnp.einsum("blc,cd->bld", vid_enc, p["trans_w"]) + p["trans_b"]
    Q = jnp.transpose(ques_enc, (0, 2, 1))
    vmask = v_mask.reshape(-1, Lc, 1)
    qmask = q_mask.reshape(-1, 1, Lq)
    sub0 = jnp.einsum("bld,do->blo", V, p["w4V"])
    sub1 = jnp.transpose(jnp.einsum("bqd,do->bqo", Q, p["w4Q"]), (0, 2, 1))
    sub2 = jnp.einsum("bld,bqd->blq", V * p["w4mlu"].reshape(1, 1, D), Q)
    S = sub0 + sub1 + sub2 + p["bias"][0]

    def mk(t, m):
        return t * m + (1.0 - m) * NEG_INF

    def branch(Sx):
        S1 = jax.nn.softmax(mk(Sx, qmask), axis=2)
        S2 = jax.nn.softmax(mk(Sx, vmask), axis=1)
        A = jnp.einsum("blq,bqd->bld", S1, Q)
        Bm = jnp.einsum("blm,bmd->bld", jnp.einsum("blq,bmq->blm", S1, S2), V)
        return A, Bm

    A, Bm = branch(S)
    Ac, Bc = branch(s_counter)
    A_cnt = jnp.concatenate([A - Ac, A, Ac], -1) @ p["fcA_w"] + p["fcA_b"]
    B_cnt = jnp.concatenate([Bm - Bc, Bm, Bc], -1) @ p["fcB_w"] + p["fcB_b"]
    out = jnp.concatenate([V, A, V * A, V * Bm], -1)
    out_cnt = jnp.concatenate([V, A_cnt, V * A_cnt, V * B_cnt], -1)
    return jnp.transpose(out, (0, 2, 1)), V, jnp.transpose(out_cnt, (0, 2, 1))


# ---------------------------------- main -----------------------------------
if __name__ == "__main__":
    key = jax.random.PRNGKey(0)
    k1, k2, k3, kp = jax.random.split(key, 4)
    Bsz = 2

    vid_enc = 0.1 * jax.random.normal(k1, (Bsz, Lc, CTX), jnp.float32)
    ques_enc = 0.1 * jax.random.normal(k2, (Bsz, D, Lq), jnp.float32)
    v_mask = (jnp.arange(Lc)[None, :] < jnp.array([Lc, 12])[:, None]).astype(jnp.float32)
    q_mask = (jnp.arange(Lq)[None, :] < jnp.array([Lq, 30])[:, None]).astype(jnp.float32)
    # TODO(synk): torch draws S_counter = zeros_like(S).uniform_(0,1) inside the
    # forward; we pass an equivalent uniform tensor in explicitly (stream differs).
    s_counter = jax.random.uniform(k3, (Bsz, Lc, Lq), jnp.float32)

    params = init_params(kp)

    fwd = jax.jit(vq_attention_counter_concat)
    out, vid_out, out_cnt = fwd(vid_enc, ques_enc, v_mask, q_mask, s_counter, params)
    jax.block_until_ready((out, vid_out, out_cnt))

    ref_out, ref_vid, ref_cnt = reference(vid_enc, ques_enc, v_mask, q_mask,
                                          s_counter, params)
    assert out.shape == (Bsz, 4 * D, Lc)
    assert vid_out.shape == (Bsz, Lc, D)
    assert out_cnt.shape == (Bsz, 4 * D, Lc)
    assert jnp.allclose(out, ref_out, atol=2e-2, rtol=2e-2)
    assert jnp.allclose(vid_out, ref_vid, atol=2e-2, rtol=2e-2)
    assert jnp.allclose(out_cnt, ref_cnt, atol=2e-2, rtol=2e-2)

    print("KERNEL_OK")
</pallas_src>

<mosaic_0001>
module attributes {stable_mosaic.version = 11 : i64} {
  func.func @vq_attention_kernel(%arg0: memref<32x2048xf32, #tpu.memory_space<vmem>>, %arg1: memref<2x41x512xf32, #tpu.memory_space<vmem>>, %arg2: memref<2x16x1xf32, #tpu.memory_space<vmem>>, %arg3: memref<2x1x41xf32, #tpu.memory_space<vmem>>, %arg4: memref<2x16x41xf32, #tpu.memory_space<vmem>>, %arg5: memref<2048x512xbf16, #tpu.memory_space<vmem>>, %arg6: memref<1x512xf32, #tpu.memory_space<vmem>>, %arg7: memref<1x1x512xf32, #tpu.memory_space<vmem>>, %arg8: memref<1x1x512xf32, #tpu.memory_space<vmem>>, %arg9: memref<1x1x512xf32, #tpu.memory_space<vmem>>, %arg10: memref<1xf32, #tpu.memory_space<smem>>, %arg11: memref<1024x512xbf16, #tpu.memory_space<vmem>>, %arg12: memref<1x512xf32, #tpu.memory_space<vmem>>, %arg13: memref<1024x512xbf16, #tpu.memory_space<vmem>>, %arg14: memref<1x512xf32, #tpu.memory_space<vmem>>, %arg15: memref<32x2048xf32, #tpu.memory_space<vmem>>, %arg16: memref<32x512xf32, #tpu.memory_space<vmem>>, %arg17: memref<32x2048xf32, #tpu.memory_space<vmem>>) attributes {dimension_semantics = [], scalar_prefetch = 0 : i64, scratch_operands = 0 : i64, tpu.core_type = #tpu.core_type<tc>} {
    %c0 = arith.constant 0 : index
    %c0_0 = arith.constant 0 : index
    %0 = vector.load %arg0[%c0, %c0_0] : memref<32x2048xf32, #tpu.memory_space<vmem>>, vector<32x2048xf32>
    %1 = arith.truncf %0 : vector<32x2048xf32> to vector<32x2048xbf16>
    %c0_1 = arith.constant 0 : index
    %c0_2 = arith.constant 0 : index
    %2 = vector.load %arg5[%c0_1, %c0_2] : memref<2048x512xbf16, #tpu.memory_space<vmem>>, vector<2048x512xbf16>
    %cst = arith.constant dense<0.000000e+00> : vector<32x512xf32>
    %3 = tpu.matmul %1, %2, %cst {dimension_numbers = #tpu.dot_dimension_numbers<[1], [0], [0], [1], [0, 0, 1, 1], [], []>} : vector<32x2048xbf16>, vector<2048x512xbf16>, vector<32x512xf32> -> vector<32x512xf32>
    %c0_3 = arith.constant 0 : index
    %c0_4 = arith.constant 0 : index
    %4 = vector.load %arg6[%c0_3, %c0_4] : memref<1x512xf32, #tpu.memory_space<vmem>>, vector<1x512xf32>
    %5 = vector.broadcast %4 : vector<1x512xf32> to vector<32x512xf32>
    %6 = arith.addf %3, %5 : vector<32x512xf32>
    %7 = vector.shape_cast %6 : vector<32x512xf32> to vector<2x16x512xf32>
    %c0_5 = arith.constant 0 : index
    %c0_6 = arith.constant 0 : index
    %c0_7 = arith.constant 0 : index
    %8 = vector.load %arg1[%c0_5, %c0_6, %c0_7] : memref<2x41x512xf32, #tpu.memory_space<vmem>>, vector<2x41x512xf32>
    %c0_8 = arith.constant 0 : index
    %c0_9 = arith.constant 0 : index
    %c0_10 = arith.constant 0 : index
    %9 = vector.load %arg7[%c0_8, %c0_9, %c0_10] : memref<1x1x512xf32, #tpu.memory_space<vmem>>, vector<1x1x512xf32>
    %10 = vector.broadcast %9 : vector<1x1x512xf32> to vector<2x16x512xf32>
    %11 = arith.mulf %7, %10 : vector<2x16x512xf32>
    %cst_11 = arith.constant dense<0.000000e+00> : vector<2x16xf32>
    %12 = vector.multi_reduction <add>, %11, %cst_11 [2] : vector<2x16x512xf32> to vector<2x16xf32>
    %13 = vector.shape_cast %12 : vector<2x16xf32> to vector<2x16x1xf32>
    %c0_12 = arith.constant 0 : index
    %c0_13 = arith.constant 0 : index
    %c0_14 = arith.constant 0 : index
    %14 = vector.load %arg8[%c0_12, %c0_13, %c0_14] : memref<1x1x512xf32, #tpu.memory_space<vmem>>, vector<1x1x512xf32>
    %15 = vector.broadcast %14 : vector<1x1x512xf32> to vector<2x41x512xf32>
    %16 = arith.mulf %8, %15 : vector<2x41x512xf32>
    %cst_15 = arith.constant dense<0.000000e+00> : vector<2x41xf32>
    %17 = vector.multi_reduction <add>, %16, %cst_15 [2] : vector<2x41x512xf32> to vector<2x41xf32>
    %c0_16 = arith.constant 0 : index
    %c0_17 = arith.constant 0 : index
    %c0_18 = arith.constant 0 : index
    %18 = vector.load %arg9[%c0_16, %c0_17, %c0_18] : memref<1x1x512xf32, #tpu.memory_space<vmem>>, vector<1x1x512xf32>
    %19 = vector.broadcast %18 : vector<1x1x512xf32> to vector<2x16x512xf32>
    %20 = arith.mulf %7, %19 : vector<2x16x512xf32>
    "tpu.trace_start"() <{level = 10 : i32, message = "bld,bqd->blq"}> : () -> ()
    %cst_19 = arith.constant dense<0.000000e+00> : vector<2x16x41xf32>
    %21 = tpu.matmul %20, %8, %cst_19 {dimension_numbers = #tpu.dot_dimension_numbers<[2], [2], [1], [1], [0, 0, 0, 1, 1, 1], [0], [0]>} : vector<2x16x512xf32>, vector<2x41x512xf32>, vector<2x16x41xf32> -> vector<2x16x41xf32>
    "tpu.trace_stop"() : () -> ()
    %22 = vector.shape_cast %17 : vector<2x41xf32> to vector<2x1x41xf32>
    %23 = vector.broadcast %13 : vector<2x16x1xf32> to vector<2x16x41xf32>
    %24 = vector.broadcast %22 : vector<2x1x41xf32> to vector<2x16x41xf32>
    %25 = arith.addf %23, %24 : vector<2x16x41xf32>
    %26 = arith.addf %25, %21 : vector<2x16x41xf32>
    %c0_20 = arith.constant 0 : index
    %27 = memref.load %arg10[%c0_20] : memref<1xf32, #tpu.memory_space<smem>>
    %28 = vector.broadcast %27 : f32 to vector<2x16x41xf32>
    %29 = arith.addf %26, %28 : vector<2x16x41xf32>
    %c0_21 = arith.constant 0 : index
    %c0_22 = arith.constant 0 : index
    %c0_23 = arith.constant 0 : index
    %30 = vector.load %arg4[%c0_21, %c0_22, %c0_23] : memref<2x16x41xf32, #tpu.memory_space<vmem>>, vector<2x16x41xf32>
    %31 = tpu.concatenate %29, %30 in 1 : vector<2x16x41xf32>, vector<2x16x41xf32> -> vector<2x32x41xf32>
    %c0_24 = arith.constant 0 : index
    %c0_25 = arith.constant 0 : index
    %c0_26 = arith.constant 0 : index
    %32 = vector.load %arg3[%c0_24, %c0_25, %c0_26] : memref<2x1x41xf32, #tpu.memory_space<vmem>>, vector<2x1x41xf32>
    %c0_27 = arith.constant 0 : index
    %c0_28 = arith.constant 0 : index
    %c0_29 = arith.constant 0 : index
    %33 = vector.load %arg2[%c0_27, %c0_28, %c0_29] : memref<2x16x1xf32, #tpu.memory_space<vmem>>, vector<2x16x1xf32>
    %34 = tpu.concatenate %33, %33 in 1 : vector<2x16x1xf32>, vector<2x16x1xf32> -> vector<2x32x1xf32>
    %35 = vector.broadcast %32 : vector<2x1x41xf32> to vector<2x32x41xf32>
    %36 = arith.mulf %31, %35 : vector<2x32x41xf32>
    %cst_30 = arith.constant 1.000000e+00 : f32
    %37 = vector.broadcast %cst_30 : f32 to vector<2x1x41xf32>
    %38 = arith.subf %37, %32 : vector<2x1x41xf32>
    %cst_31 = arith.constant -1.000000e+30 : f32
    %39 = vector.broadcast %cst_31 : f32 to vector<2x1x41xf32>
    %40 = arith.mulf %38, %39 : vector<2x1x41xf32>
    %41 = vector.broadcast %40 : vector<2x1x41xf32> to vector<2x32x41xf32>
    %42 = arith.addf %36, %41 : vector<2x32x41xf32>
    %cst_32 = arith.constant dense<0xFF800000> : vector<2x32xf32>
    %43 = vector.multi_reduction <maximumf>, %42, %cst_32 [2] : vector<2x32x41xf32> to vector<2x32xf32>
    %44 = vector.shape_cast %43 : vector<2x32xf32> to vector<2x32x1xf32>
    %45 = vector.broadcast %44 : vector<2x32x1xf32> to vector<2x32x41xf32>
    %46 = arith.subf %42, %45 : vector<2x32x41xf32>
    %47 = math.exp %46 : vector<2x32x41xf32>
    %cst_33 = arith.constant dense<0.000000e+00> : vector<2x32xf32>
    %48 = vector.multi_reduction <add>, %47, %cst_33 [2] : vector<2x32x41xf32> to vector<2x32xf32>
    %49 = vector.shape_cast %48 : vector<2x32xf32> to vector<2x32x1xf32>
    %50 = tpu.reciprocal %49 {approx = true} : vector<2x32x1xf32> -> vector<2x32x1xf32>
    %51 = vector.broadcast %50 : vector<2x32x1xf32> to vector<2x32x41xf32>
    %52 = arith.mulf %47, %51 : vector<2x32x41xf32>
    %53 = vector.broadcast %34 : vector<2x32x1xf32> to vector<2x32x41xf32>
    %54 = arith.mulf %31, %53 : vector<2x32x41xf32>
    %cst_34 = arith.constant 1.000000e+00 : f32
    %55 = vector.broadcast %cst_34 : f32 to vector<2x32x1xf32>
    %56 = arith.subf %55, %34 : vector<2x32x1xf32>
    %cst_35 = arith.constant -1.000000e+30 : f32
    %57 = vector.broadcast %cst_35 : f32 to vector<2x32x1xf32>
    %58 = arith.mulf %56, %57 : vector<2x32x1xf32>
    %59 = vector.broadcast %58 : vector<2x32x1xf32> to vector<2x32x41xf32>
    %60 = arith.addf %54, %59 : vector<2x32x41xf32>
    %61 = vector.extract_strided_slice %60 {offsets = [0, 0, 0], sizes = [2, 16, 41], strides = [1, 1, 1]} : vector<2x32x41xf32> to vector<2x16x41xf32>
    %cst_36 = arith.constant dense<0xFF800000> : vector<2x41xf32>
    %62 = vector.multi_reduction <maximumf>, %61, %cst_36 [1] : vector<2x16x41xf32> to vector<2x41xf32>
    %63 = vector.shape_cast %62 : vector<2x41xf32> to vector<2x1x41xf32>
    %64 = vector.broadcast %63 : vector<2x1x41xf32> to vector<2x16x41xf32>
    %65 = arith.subf %61, %64 : vector<2x16x41xf32>
    %66 = math.exp %65 : vector<2x16x41xf32>
    %cst_37 = arith.constant dense<0.000000e+00> : vector<2x41xf32>
    %67 = vector.multi_reduction <add>, %66, %cst_37 [1] : vector<2x16x41xf32> to vector<2x41xf32>
    %68 = vector.shape_cast %67 : vector<2x41xf32> to vector<2x1x41xf32>
    %69 = tpu.reciprocal %68 {approx = true} : vector<2x1x41xf32> -> vector<2x1x41xf32>
    %70 = vector.broadcast %69 : vector<2x1x41xf32> to vector<2x16x41xf32>
    %71 = arith.mulf %66, %70 : vector<2x16x41xf32>
    %72 = vector.extract_strided_slice %60 {offsets = [0, 16, 0], sizes = [2, 16, 41], strides = [1, 1, 1]} : vector<2x32x41xf32> to vector<2x16x41xf32>
    %cst_38 = arith.constant dense<0xFF800000> : vector<2x41xf32>
    %73 = vector.multi_reduction <maximumf>, %72, %cst_38 [1] : vector<2x16x41xf32> to vector<2x41xf32>
    %74 = vector.shape_cast %73 : vector<2x41xf32> to vector<2x1x41xf32>
    %75 = vector.broadcast %74 : vector<2x1x41xf32> to vector<2x16x41xf32>
    %76 = arith.subf %72, %75 : vector<2x16x41xf32>
    %77 = math.exp %76 : vector<2x16x41xf32>
    %cst_39 = arith.constant dense<0.000000e+00> : vector<2x41xf32>
    %78 = vector.multi_reduction <add>, %77, %cst_39 [1] : vector<2x16x41xf32> to vector<2x41xf32>
    %79 = vector.shape_cast %78 : vector<2x41xf32> to vector<2x1x41xf32>
    %80 = tpu.reciprocal %79 {approx = true} : vector<2x1x41xf32> -> vector<2x1x41xf32>
    %81 = vector.broadcast %80 : vector<2x1x41xf32> to vector<2x16x41xf32>
    %82 = arith.mulf %77, %81 : vector<2x16x41xf32>
    "tpu.trace_start"() <{level = 10 : i32, message = "blq,bqd->bld"}> : () -> ()
    %cst_40 = arith.constant dense<0.000000e+00> : vector<2x32x512xf32>
    %83 = tpu.matmul %52, %8, %cst_40 {dimension_numbers = #tpu.dot_dimension_numbers<[2], [1], [1], [2], [0, 0, 0, 1, 1, 2], [0], [0]>} : vector<2x32x41xf32>, vector<2x41x512xf32>, vector<2x32x512xf32> -> vector<2x32x512xf32>
    "tpu.trace_stop"() : () -> ()
    %84 = vector.extract_strided_slice %52 {offsets = [0, 0, 0], sizes = [2, 16, 41], strides = [1, 1, 1]} : vector<2x32x41xf32> to vector<2x16x41xf32>
    "tpu.trace_start"() <{level = 10 : i32, message = "blq,bmq->blm"}> : () -> ()
    %cst_41 = arith.constant dense<0.000000e+00> : vector<2x16x16xf32>
    %85 = tpu.matmul %84, %71, %cst_41 {dimension_numbers = #tpu.dot_dimension_numbers<[2], [2], [1], [1], [0, 0, 0, 1, 1, 1], [0], [0]>} : vector<2x16x41xf32>, vector<2x16x41xf32>, vector<2x16x16xf32> -> vector<2x16x16xf32>
    "tpu.trace_stop"() : () -> ()
    %86 = vector.extract_strided_slice %52 {offsets = [0, 16, 0], sizes = [2, 16, 41], strides = [1, 1, 1]} : vector<2x32x41xf32> to vector<2x16x41xf32>
    "tpu.trace_start"() <{level = 10 : i32, message = "blq,bmq->blm"}> : () -> ()
    %cst_42 = arith.constant dense<0.000000e+00> : vector<2x16x16xf32>
    %87 = tpu.matmul %86, %82, %cst_42 {dimension_numbers = #tpu.dot_dimension_numbers<[2], [2], [1], [1], [0, 0, 0, 1, 1, 1], [0], [0]>} : vector<2x16x41xf32>, vector<2x16x41xf32>, vector<2x16x16xf32> -> vector<2x16x16xf32>
    "tpu.trace_stop"() : () -> ()
    %88 = tpu.concatenate %85, %87 in 1 : vector<2x16x16xf32>, vector<2x16x16xf32> -> vector<2x32x16xf32>
    "tpu.trace_start"() <{level = 10 : i32, message = "blm,bmd->bld"}> : () -> ()
    %cst_43 = arith.constant dense<0.000000e+00> : vector<2x32x512xf32>
    %89 = tpu.matmul %88, %7, %cst_43 {dimension_numbers = #tpu.dot_dimension_numbers<[2], [1], [1], [2], [0, 0, 0, 1, 1, 2], [0], [0]>} : vector<2x32x16xf32>, vector<2x16x512xf32>, vector<2x32x512xf32> -> vector<2x32x512xf32>
    "tpu.trace_stop"() : () -> ()
    %90 = vector.extract_strided_slice %83 {offsets = [0, 0, 0], sizes = [2, 16, 512], strides = [1, 1, 1]} : vector<2x32x512xf32> to vector<2x16x512xf32>
    %91 = vector.shape_cast %90 : vector<2x16x512xf32> to vector<32x512xf32>
    %92 = vector.extract_strided_slice %83 {offsets = [0, 16, 0], sizes = [2, 16, 512], strides = [1, 1, 1]} : vector<2x32x512xf32> to vector<2x16x512xf32>
    %93 = vector.shape_cast %92 : vector<2x16x512xf32> to vector<32x512xf32>
    %94 = vector.extract_strided_slice %89 {offsets = [0, 0, 0], sizes = [2, 16, 512], strides = [1, 1, 1]} : vector<2x32x512xf32> to vector<2x16x512xf32>
    %95 = vector.shape_cast %94 : vector<2x16x512xf32> to vector<32x512xf32>
    %96 = vector.extract_strided_slice %89 {offsets = [0, 16, 0], sizes = [2, 16, 512], strides = [1, 1, 1]} : vector<2x32x512xf32> to vector<2x16x512xf32>
    %97 = vector.shape_cast %96 : vector<2x16x512xf32> to vector<32x512xf32>
    %98 = tpu.concatenate %91, %93 in 1 : vector<32x512xf32>, vector<32x512xf32> -> vector<32x1024xf32>
    %99 = arith.truncf %98 : vector<32x1024xf32> to vector<32x1024xbf16>
    %c0_44 = arith.constant 0 : index
    %c0_45 = arith.constant 0 : index
    %100 = vector.load %arg11[%c0_44, %c0_45] : memref<1024x512xbf16, #tpu.memory_space<vmem>>, vector<1024x512xbf16>
    %cst_46 = arith.constant dense<0.000000e+00> : vector<32x512xf32>
    %101 = tpu.matmul %99, %100, %cst_46 {dimension_numbers = #tpu.dot_dimension_numbers<[1], [0], [0], [1], [0, 0, 1, 1], [], []>} : vector<32x1024xbf16>, vector<1024x512xbf16>, vector<32x512xf32> -> vector<32x512xf32>
    %c0_47 = arith.constant 0 : index
    %c0_48 = arith.constant 0 : index
    %102 = vector.load %arg12[%c0_47, %c0_48] : memref<1x512xf32, #tpu.memory_space<vmem>>, vector<1x512xf32>
    %103 = vector.broadcast %102 : vector<1x512xf32> to vector<32x512xf32>
    %104 = arith.addf %101, %103 : vector<32x512xf32>
    %105 = tpu.concatenate %95, %97 in 1 : vector<32x512xf32>, vector<32x512xf32> -> vector<32x1024xf32>
    %106 = arith.truncf %105 : vector<32x1024xf32> to vector<32x1024xbf16>
    %c0_49 = arith.constant 0 : index
    %c0_50 = arith.constant 0 : index
    %107 = vector.load %arg13[%c0_49, %c0_50] : memref<1024x512xbf16, #tpu.memory_space<vmem>>, vector<1024x512xbf16>
    %cst_51 = arith.constant dense<0.000000e+00> : vector<32x512xf32>
    %108 = tpu.matmul %106, %107, %cst_51 {dimension_numbers = #tpu.dot_dimension_numbers<[1], [0], [0], [1], [0, 0, 1, 1], [], []>} : vector<32x1024xbf16>, vector<1024x512xbf16>, vector<32x512xf32> -> vector<32x512xf32>
    %c0_52 = arith.constant 0 : index
    %c0_53 = arith.constant 0 : index
    %109 = vector.load %arg14[%c0_52, %c0_53] : memref<1x512xf32, #tpu.memory_space<vmem>>, vector<1x512xf32>
    %110 = vector.broadcast %109 : vector<1x512xf32> to vector<32x512xf32>
    %111 = arith.addf %108, %110 : vector<32x512xf32>
    %c0_54 = arith.constant 0 : index
    %c0_55 = arith.constant 0 : index
    %112 = vector.load %arg16[%c0_54, %c0_55] : memref<32x512xf32, #tpu.memory_space<vmem>>, vector<32x512xf32>
    tpu.vector_store %arg16[%c0_54, %c0_55], %6 {strides = array<i32>} : memref<32x512xf32, #tpu.memory_space<vmem>>, vector<32x512xf32>,
    %c0_56 = arith.constant 0 : index
    %c0_57 = arith.constant 0 : index
    %113 = vector.load %arg15[%c0_56, %c0_57] : memref<32x2048xf32, #tpu.memory_space<vmem>>, vector<32x512xf32>
    tpu.vector_store %arg15[%c0_56, %c0_57], %6 {strides = array<i32>} : memref<32x2048xf32, #tpu.memory_space<vmem>>, vector<32x512xf32>,
    %c0_58 = arith.constant 0 : index
    %c512 = arith.constant 512 : index
    %114 = vector.load %arg15[%c0_58, %c512] : memref<32x2048xf32, #tpu.memory_space<vmem>>, vector<32x512xf32>
    tpu.vector_store %arg15[%c0_58, %c512], %91 {strides = array<i32>} : memref<32x2048xf32, #tpu.memory_space<vmem>>, vector<32x512xf32>,
    %115 = arith.mulf %6, %91 : vector<32x512xf32>
    %c0_59 = arith.constant 0 : index
    %c1024 = arith.constant 1024 : index
    %116 = vector.load %arg15[%c0_59, %c1024] : memref<32x2048xf32, #tpu.memory_space<vmem>>, vector<32x512xf32>
    tpu.vector_store %arg15[%c0_59, %c1024], %115 {strides = array<i32>} : memref<32x2048xf32, #tpu.memory_space<vmem>>, vector<32x512xf32>,
    %117 = arith.mulf %6, %95 : vector<32x512xf32>
    %c0_60 = arith.constant 0 : index
    %c1536 = arith.constant 1536 : index
    %118 = vector.load %arg15[%c0_60, %c1536] : memref<32x2048xf32, #tpu.memory_space<vmem>>, vector<32x512xf32>
    tpu.vector_store %arg15[%c0_60, %c1536], %117 {strides = array<i32>} : memref<32x2048xf32, #tpu.memory_space<vmem>>, vector<32x512xf32>,
    %c0_61 = arith.constant 0 : index
    %c0_62 = arith.constant 0 : index
    %119 = vector.load %arg17[%c0_61, %c0_62] : memref<32x2048xf32, #tpu.memory_space<vmem>>, vector<32x512xf32>
    tpu.vector_store %arg17[%c0_61, %c0_62], %6 {strides = array<i32>} : memref<32x2048xf32, #tpu.memory_space<vmem>>, vector<32x512xf32>,
    %c0_63 = arith.constant 0 : index
    %c512_64 = arith.constant 512 : index
    %120 = vector.load %arg17[%c0_63, %c512_64] : memref<32x2048xf32, #tpu.memory_space<vmem>>, vector<32x512xf32>
    tpu.vector_store %arg17[%c0_63, %c512_64], %104 {strides = array<i32>} : memref<32x2048xf32, #tpu.memory_space<vmem>>, vector<32x512xf32>,
    %121 = arith.mulf %6, %104 : vector<32x512xf32>
    %c0_65 = arith.constant 0 : index
    %c1024_66 = arith.constant 1024 : index
    %122 = vector.load %arg17[%c0_65, %c1024_66] : memref<32x2048xf32, #tpu.memory_space<vmem>>, vector<32x512xf32>
    tpu.vector_store %arg17[%c0_65, %c1024_66], %121 {strides = array<i32>} : memref<32x2048xf32, #tpu.memory_space<vmem>>, vector<32x512xf32>,
    %123 = arith.mulf %6, %111 : vector<32x512xf32>
    %c0_67 = arith.constant 0 : index
    %c1536_68 = arith.constant 1536 : index
    %124 = vector.load %arg17[%c0_67, %c1536_68] : memref<32x2048xf32, #tpu.memory_space<vmem>>, vector<32x512xf32>
    tpu.vector_store %arg17[%c0_67, %c1536_68], %123 {strides = array<i32>} : memref<32x2048xf32, #tpu.memory_space<vmem>>, vector<32x512xf32>,
    return
  }
}

</mosaic_0001>

<bundles_post_ra>
// kernel: vq_attention_counter_concat.1
= control target key start
LH: loop header
LB: loop body
LE: loop exit
PB: predicated region body
PF: predicated region fallthrough
CT: control target
= control target key end

     0   :  { %s18372_s0 = inlined_call_operand.vmem [shape: f32[32,2048], index: 0, kind: input, shape index: {}]   ;;  %s18373_s1 = inlined_call_operand.vmem [shape: f32[2,41,512], index: 1, kind: input, shape index: {}]   ;;  %s18374_s2 = inlined_call_operand.vmem [shape: f32[2,16,1], index: 2, kind: input, shape index: {}]   ;;  %s18375_s3 = inlined_call_operand.vmem [shape: f32[2,1,41], index: 3, kind: input, shape index: {}]   ;;  %s18376_s4 = inlined_call_operand.vmem [shape: f32[2,16,41], index: 4, kind: input, shape index: {}]   ;;  %s18377_s5 = inlined_call_operand.vmem [shape: bf16[2048,512], index: 5, kind: input, shape index: {}]   ;;  %s18378_s6 = inlined_call_operand.vmem [shape: f32[1,512], index: 6, kind: input, shape index: {}]   ;;  %s18379_s7 = inlined_call_operand.vmem [shape: f32[1,1,512], index: 7, kind: input, shape index: {}]   ;;  %s18380_s8 = inlined_call_operand.vmem [shape: f32[1,1,512], index: 8, kind: input, shape index: {}]   ;;  %s18381_s9 = inlined_call_operand.vmem [shape: f32[1,1,512], index: 9, kind: input, shape index: {}]   ;;  %s18382_s10 = inlined_call_operand.<no memory space> [shape: f32[1], index: 10, kind: input, shape index: {}]   ;;  %s18383_s11 = inlined_call_operand.vmem [shape: bf16[1024,512], index: 11, kind: input, shape index: {}]   ;;  %s18384_s12 = inlined_call_operand.vmem [shape: f32[1,512], index: 12, kind: input, shape index: {}]   ;;  %s18385_s13 = inlined_call_operand.vmem [shape: bf16[1024,512], index: 13, kind: input, shape index: {}]   ;;  %s18386_s14 = inlined_call_operand.vmem [shape: f32[1,512], index: 14, kind: input, shape index: {}]   ;;  %s18387_s15 = inlined_call_operand.hbm [shape: f32[32,2048], index: 15, kind: output, shape index: {0}]   ;;  %s18388_s16 = inlined_call_operand.hbm [shape: f32[32,512], index: 16, kind: output, shape index: {1}]   ;;  %s18389_s17 = inlined_call_operand.hbm [shape: f32[32,2048], index: 17, kind: output, shape index: {2}]  }
   0x1   :  { %18429 = sst [smem:[#allocation37_spill]] %s18372_s0 }
   0x2   :  { %18430 = sst [smem:[#allocation38_spill]] %s18373_s1 }
   0x3   :  { %24 = vsyncpa [#allocation4], 0  ;;  %v11603_v0 = vld [vmem:[%s18377_s5 + $0xe4] ss:$16 sps:$4 sm:$0xff]   ;;  %v11607_v2 = vld [vmem:[%s18377_s5 + $0xe0] ss:$16 sps:$4 sm:$0xff]  }
   0x4   :  { %v11605_v1 = vld [vmem:[%s18377_s5 + $0x2e4] ss:$16 sps:$4 sm:$0xff]   ;;  %3246 = vmatprep.subr.bf16.mxu0 %v11603_v0  ;;  %v11608_v3 = vld [vmem:[%s18377_s5 + $0x2e0] ss:$16 sps:$4 sm:$0xff]   ;;  %s18431_s28 = sld [smem:[#allocation37_spill]] }
   0x5   :  { %3299 = vmatprep.subr.bf16.mxu1 %v11605_v1  ;;  %v11609_v4 = vld [vmem:[%s18377_s5 + $0xc4] ss:$16 sps:$4 sm:$0xff]   ;;  %3247 = vmatpush1.bf16.msra.mxu0 %v11607_v2  ;;  %v11613_v6 = vld [vmem:[%s18377_s5 + $0xc0] ss:$16 sps:$4 sm:$0xff]   ;;  %s18447_s21 = sld [smem:[#allocation38_spill]] }
   0x6   :  { %3300 = vmatpush1.bf16.msra.mxu1 %v11608_v3  ;;  %v11611_v5 = vld [vmem:[%s18377_s5 + $0x2c4] ss:$16 sps:$4 sm:$0xff]   ;;  %3248 = vmatprep.subr.bf16.mxu0 %v11609_v4  ;;  %v11614_v7 = vld [vmem:[%s18377_s5 + $0x2c0] ss:$16 sps:$4 sm:$0xff]  }
   0x7   :  { %3301 = vmatprep.subr.bf16.mxu1 %v11611_v5  ;;  %v11615_v8 = vld [vmem:[%s18377_s5 + $0xa4] ss:$16 sps:$4 sm:$0xff]   ;;  %v11619_v10 = vld [vmem:[%s18377_s5 + $0xa0] ss:$16 sps:$4 sm:$0xff]  }
   0x8   :  { %v11617_v9 = vld [vmem:[%s18377_s5 + $0x2a4] ss:$16 sps:$4 sm:$0xff]   ;;  %v11620_v11 = vld [vmem:[%s18377_s5 + $0x2a0] ss:$16 sps:$4 sm:$0xff]  }
   0x9   :  { %3249 = vmatpush1.bf16.msra.mxu0 %v11613_v6  ;;  %v11621_v12 = vld [vmem:[%s18377_s5 + $0x84] ss:$16 sps:$4 sm:$0xff]   ;;  %v11625_v14 = vld [vmem:[%s18377_s5 + $0x80] ss:$16 sps:$4 sm:$0xff]  }
   0xa   :  { %3302 = vmatpush1.bf16.msra.mxu1 %v11614_v7  ;;  %3250 = vmatprep.subr.bf16.mxu0 %v11615_v8  ;;  %v11623_v13 = vld [vmem:[%s18377_s5 + $0x284] ss:$16 sps:$4 sm:$0xff]   ;;  %v11626_v15 = vld [vmem:[%s18377_s5 + $0x280] ss:$16 sps:$4 sm:$0xff]   ;;  %v57_v46 = vld [vmem:[%s18431_s28 + $0x8] sm:$0xff] }
   0xb   :  { %3303 = vmatprep.subr.bf16.mxu1 %v11617_v9  ;;  %v11627_v16 = vld [vmem:[%s18377_s5 + $0x64] ss:$16 sps:$4 sm:$0xff]   ;;  %v11631_v18 = vld [vmem:[%s18377_s5 + $0x60] ss:$16 sps:$4 sm:$0xff]   ;;  %v73_v47 = vld [vmem:[%s18431_s28 + $0x88] sm:$0xff] }
   0xc   :  { %v11629_v17 = vld [vmem:[%s18377_s5 + $0x264] ss:$16 sps:$4 sm:$0xff]   ;;  %v11632_v19 = vld [vmem:[%s18377_s5 + $0x260] ss:$16 sps:$4 sm:$0xff]   ;;  %v59_v48 = vld [vmem:[%s18431_s28 + $0x18] sm:$0xff]  ;;  %v13593_v53 = vpack.c.bf16 %v73_v47, %v57_v46 }
   0xd   :  { %3251 = vmatpush1.bf16.msra.mxu0 %v11619_v10  ;;  %v11633_v20 = vld [vmem:[%s18377_s5 + $0x44] ss:$16 sps:$4 sm:$0xff]   ;;  %v11637_v22 = vld [vmem:[%s18377_s5 + $0x40] ss:$16 sps:$4 sm:$0xff]   ;;  %v75_v49 = vld [vmem:[%s18431_s28 + $0x98] sm:$0xff] }
   0xe   :  { %3304 = vmatpush1.bf16.msra.mxu1 %v11620_v11  ;;  %3252 = vmatprep.subr.bf16.mxu0 %v11621_v12  ;;  %v11635_v21 = vld [vmem:[%s18377_s5 + $0x244] ss:$16 sps:$4 sm:$0xff]   ;;  %v11638_v23 = vld [vmem:[%s18377_s5 + $0x240] ss:$16 sps:$4 sm:$0xff]   ;;  %v13595_v54 = vpack.c.bf16 %v75_v49, %v59_v48 }
   0xf   :  { %3305 = vmatprep.subr.bf16.mxu1 %v11623_v13  ;;  %v11639_v24 = vld [vmem:[%s18377_s5 + $0x24] ss:$16 sps:$4 sm:$0xff]   ;;  %v11643_v26 = vld [vmem:[%s18377_s5 + $0x20] ss:$16 sps:$4 sm:$0xff]   ;;  %3278 = vmatprep.mubr.bf16.mxu0 %v13593_v53 }
  0x10   :  { %v11641_v25 = vld [vmem:[%s18377_s5 + $0x224] ss:$16 sps:$4 sm:$0xff]   ;;  %v11644_v27 = vld [vmem:[%s18377_s5 + $0x220] ss:$16 sps:$4 sm:$0xff]   ;;  %3331 = vmatprep.mubr.bf16.mxu1 %v13595_v54 }
  0x11   :  { %3253 = vmatpush1.bf16.msra.mxu0 %v11625_v14  ;;  %v11645_v28 = vld [vmem:[%s18377_s5 + $0x4] ss:$16 sps:$4 sm:$0xff]   ;;  %v11649_v30 = vld [vmem:[%s18377_s5] ss:$16 sps:$4 sm:$0xff]  }
  0x12   :  { %3306 = vmatpush1.bf16.msra.mxu1 %v11626_v15  ;;  %3254 = vmatprep.subr.bf16.mxu0 %v11627_v16  ;;  %v11647_v29 = vld [vmem:[%s18377_s5 + $0x204] ss:$16 sps:$4 sm:$0xff]   ;;  %v11650_v31 = vld [vmem:[%s18377_s5 + $0x200] ss:$16 sps:$4 sm:$0xff]  }
  0x13   :  { %3307 = vmatprep.subr.bf16.mxu1 %v11629_v17  ;;  %v11651_v32 = vld [vmem:[%s18377_s5 + $0x1e4] ss:$16 sps:$4 sm:$0xff]   ;;  %v11655_v34 = vld [vmem:[%s18377_s5 + $0x1e0] ss:$16 sps:$4 sm:$0xff]  }
  0x14   :  { %v11653_v33 = vld [vmem:[%s18377_s5 + $0x3e4] ss:$16 sps:$4 sm:$0xff]   ;;  %v11656_v35 = vld [vmem:[%s18377_s5 + $0x3e0] ss:$16 sps:$4 sm:$0xff]  }
  0x15   :  { %3255 = vmatpush1.bf16.msra.mxu0 %v11631_v18  ;;  %v11657_v36 = vld [vmem:[%s18377_s5 + $0x1c4] ss:$16 sps:$4 sm:$0xff]   ;;  %v11661_v38 = vld [vmem:[%s18377_s5 + $0x1c0] ss:$16 sps:$4 sm:$0xff]  }
  0x16   :  { %3308 = vmatpush1.bf16.msra.mxu1 %v11632_v19  ;;  %3256 = vmatprep.subr.bf16.mxu0 %v11633_v20  ;;  %v11659_v37 = vld [vmem:[%s18377_s5 + $0x3c4] ss:$16 sps:$4 sm:$0xff]   ;;  %v11662_v39 = vld [vmem:[%s18377_s5 + $0x3c0] ss:$16 sps:$4 sm:$0xff]  }
  0x17   :  { %3309 = vmatprep.subr.bf16.mxu1 %v11635_v21  ;;  %v11663_v40 = vld [vmem:[%s18377_s5 + $0x1a4] ss:$16 sps:$4 sm:$0xff]   ;;  %v11667_v42 = vld [vmem:[%s18377_s5 + $0x1a0] ss:$16 sps:$4 sm:$0xff]  }
  0x18   :  { %v11665_v41 = vld [vmem:[%s18377_s5 + $0x3a4] ss:$16 sps:$4 sm:$0xff]   ;;  %v11668_v43 = vld [vmem:[%s18377_s5 + $0x3a0] ss:$16 sps:$4 sm:$0xff]  }
  0x19   :  { %3257 = vmatpush1.bf16.msra.mxu0 %v11637_v22  ;;  %v11669_v44 = vld [vmem:[%s18377_s5 + $0x184] ss:$16 sps:$4 sm:$0xff]   ;;  %v11673_v50 = vld [vmem:[%s18377_s5 + $0x180] ss:$16 sps:$4 sm:$0xff]  }
  0x1a   :  { %3310 = vmatpush1.bf16.msra.mxu1 %v11638_v23  ;;  %3258 = vmatprep.subr.bf16.mxu0 %v11639_v24  ;;  %v11671_v45 = vld [vmem:[%s18377_s5 + $0x384] ss:$16 sps:$4 sm:$0xff]   ;;  %v11674_v51 = vld [vmem:[%s18377_s5 + $0x380] ss:$16 sps:$4 sm:$0xff]  }
  0x1b   :  { %3311 = vmatprep.subr.bf16.mxu1 %v11641_v25  ;;  %v11675_v52 = vld [vmem:[%s18377_s5 + $0x164] ss:$16 sps:$4 sm:$0xff]   ;;  %v11679_v56 = vld [vmem:[%s18377_s5 + $0x160] ss:$16 sps:$4 sm:$0xff]  }
  0x1c   :  { %v11677_v55 = vld [vmem:[%s18377_s5 + $0x364] ss:$16 sps:$4 sm:$0xff]   ;;  %v11680_v57 = vld [vmem:[%s18377_s5 + $0x360] ss:$16 sps:$4 sm:$0xff]  }
  0x1d   :  { %3259 = vmatpush1.bf16.msra.mxu0 %v11643_v26  ;;  %v11681_v58 = vld [vmem:[%s18377_s5 + $0x144] ss:$16 sps:$4 sm:$0xff]   ;;  %v11685_v60 = vld [vmem:[%s18377_s5 + $0x140] ss:$16 sps:$4 sm:$0xff]  }
  0x1e   :  { %3312 = vmatpush1.bf16.msra.mxu1 %v11644_v27  ;;  %3260 = vmatprep.subr.bf16.mxu0 %v11645_v28  ;;  %v11683_v59 = vld [vmem:[%s18377_s5 + $0x344] ss:$16 sps:$4 sm:$0xff]   ;;  %v11686_v61 = vld [vmem:[%s18377_s5 + $0x340] ss:$16 sps:$4 sm:$0xff]  }
  0x1f   :  { %3313 = vmatprep.subr.bf16.mxu1 %v11647_v29  ;;  %v11687_v62 = vld [vmem:[%s18377_s5 + $0x124] ss:$16 sps:$4 sm:$0xff]   ;;  %v11691_v0 = vld [vmem:[%s18377_s5 + $0x120] ss:$16 sps:$4 sm:$0xff]  }
  0x20   :  { %v11689_v63 = vld [vmem:[%s18377_s5 + $0x324] ss:$16 sps:$4 sm:$0xff]   ;;  %v11692_v1 = vld [vmem:[%s18377_s5 + $0x320] ss:$16 sps:$4 sm:$0xff]  }
  0x21   :  { %3261 = vmatpush1.bf16.msra.mxu0 %v11649_v30  ;;  %v11693_v2 = vld [vmem:[%s18377_s5 + $0x104] ss:$16 sps:$4 sm:$0xff]   ;;  %v11697_v4 = vld [vmem:[%s18377_s5 + $0x100] ss:$16 sps:$4 sm:$0xff]  }
  0x22   :  { %3314 = vmatpush1.bf16.msra.mxu1 %v11650_v31  ;;  %3262 = vmatprep.subr.bf16.mxu0 %v11651_v32  ;;  %v11695_v3 = vld [vmem:[%s18377_s5 + $0x304] ss:$16 sps:$4 sm:$0xff]   ;;  %v11698_v5 = vld [vmem:[%s18377_s5 + $0x300] ss:$16 sps:$4 sm:$0xff]  }
  0x23   :  { %3315 = vmatprep.subr.bf16.mxu1 %v11653_v33  ;;  %v56_v6 = vld [vmem:[%s18431_s28] sm:$0xff]  ;;  %v58_v8 = vld [vmem:[%s18431_s28 + $0x10] sm:$0xff] }
  0x24   :  { %v72_v7 = vld [vmem:[%s18431_s28 + $0x80] sm:$0xff]  ;;  %v74_v9 = vld [vmem:[%s18431_s28 + $0x90] sm:$0xff] }
  0x25   :  { %3263 = vmatpush2.bf16.msra.mxu0 %v11655_v34  ;;  %v11701_v10 = vld [vmem:[%s18377_s5 + $0x4e4] ss:$16 sps:$4 sm:$0xff]   ;;  %v13662_v12 = vpack.c.bf16 %v72_v7, %v56_v6  ;;  %v13664_v13 = vpack.c.bf16 %v74_v9, %v58_v8  ;;  %v11699_v14 = vld [vmem:[%s18377_s5 + $0x4e0] ss:$16 sps:$4 sm:$0xff]   ;;  %v89_v34 = vld [vmem:[%s18431_s28 + $0x108] sm:$0xff] }
  0x26   :  { %3316 = vmatpush2.bf16.msra.mxu1 %v11656_v35  ;;  %3264 = vmatprep.subr.bf16.mxu0 %v11657_v36  ;;  %v11704_v11 = vld [vmem:[%s18377_s5 + $0x6e4] ss:$16 sps:$4 sm:$0xff]   ;;  %v11702_v15 = vld [vmem:[%s18377_s5 + $0x6e0] ss:$16 sps:$4 sm:$0xff]   ;;  %v105_v35 = vld [vmem:[%s18431_s28 + $0x188] sm:$0xff] }
  0x27   :  { %3317 = vmatprep.subr.bf16.mxu1 %v11659_v37  ;;  %v11707_v16 = vld [vmem:[%s18377_s5 + $0x4c4] ss:$16 sps:$4 sm:$0xff]   ;;  %v11705_v18 = vld [vmem:[%s18377_s5 + $0x4c0] ss:$16 sps:$4 sm:$0xff]   ;;  %v13737_v37 = vpack.c.bf16 %v105_v35, %v89_v34 }
  0x28   :  { %v11710_v17 = vld [vmem:[%s18377_s5 + $0x6c4] ss:$16 sps:$4 sm:$0xff]   ;;  %v11708_v19 = vld [vmem:[%s18377_s5 + $0x6c0] ss:$16 sps:$4 sm:$0xff]  }
  0x29   :  { %3265 = vmatpush2.bf16.msra.mxu0 %v11661_v38  ;;  %v11713_v20 = vld [vmem:[%s18377_s5 + $0x4a4] ss:$16 sps:$4 sm:$0xff]   ;;  %v11711_v22 = vld [vmem:[%s18377_s5 + $0x4a0] ss:$16 sps:$4 sm:$0xff]  }
  0x2a   :  { %3318 = vmatpush2.bf16.msra.mxu1 %v11662_v39  ;;  %3266 = vmatprep.subr.bf16.mxu0 %v11663_v40  ;;  %v11716_v21 = vld [vmem:[%s18377_s5 + $0x6a4] ss:$16 sps:$4 sm:$0xff]   ;;  %v11714_v23 = vld [vmem:[%s18377_s5 + $0x6a0] ss:$16 sps:$4 sm:$0xff]   ;;  %v91_v39 = vld [vmem:[%s18431_s28 + $0x118] sm:$0xff] }
  0x2b   :  { %3319 = vmatprep.subr.bf16.mxu1 %v11665_v41  ;;  %v11719_v24 = vld [vmem:[%s18377_s5 + $0x484] ss:$16 sps:$4 sm:$0xff]   ;;  %v11717_v26 = vld [vmem:[%s18377_s5 + $0x480] ss:$16 sps:$4 sm:$0xff]   ;;  %v107_v40 = vld [vmem:[%s18431_s28 + $0x198] sm:$0xff] }
  0x2c   :  { %v11722_v25 = vld [vmem:[%s18377_s5 + $0x684] ss:$16 sps:$4 sm:$0xff]   ;;  %v11720_v27 = vld [vmem:[%s18377_s5 + $0x680] ss:$16 sps:$4 sm:$0xff]  }
  0x2d   :  { %3267 = vmatpush2.bf16.msra.mxu0 %v11667_v42  ;;  %v11725_v28 = vld [vmem:[%s18377_s5 + $0x464] ss:$16 sps:$4 sm:$0xff]   ;;  %v11723_v30 = vld [vmem:[%s18377_s5 + $0x460] ss:$16 sps:$4 sm:$0xff]  }
  0x2e   :  { %3320 = vmatpush2.bf16.msra.mxu1 %v11668_v43  ;;  %3268 = vmatprep.subr.bf16.mxu0 %v11669_v44  ;;  %v11728_v29 = vld [vmem:[%s18377_s5 + $0x664] ss:$16 sps:$4 sm:$0xff]   ;;  %v11726_v31 = vld [vmem:[%s18377_s5 + $0x660] ss:$16 sps:$4 sm:$0xff]   ;;  %v13753_v43 = vpack.c.bf16 %v107_v40, %v91_v39 }
  0x2f   :  { %3321 = vmatprep.subr.bf16.mxu1 %v11671_v45  ;;  %v11731_v32 = vld [vmem:[%s18377_s5 + $0x444] ss:$16 sps:$4 sm:$0xff]   ;;  %v11729_v41 = vld [vmem:[%s18377_s5 + $0x440] ss:$16 sps:$4 sm:$0xff]  }
  0x30   :  { %v11734_v33 = vld [vmem:[%s18377_s5 + $0x644] ss:$16 sps:$4 sm:$0xff]   ;;  %v11732_v44 = vld [vmem:[%s18377_s5 + $0x640] ss:$16 sps:$4 sm:$0xff]  }
  0x31   :  { %3269 = vmatpush2.bf16.msra.mxu0 %v11673_v50  ;;  %v88_v36 = vld [vmem:[%s18431_s28 + $0x100] sm:$0xff]  ;;  %v90_v47 = vld [vmem:[%s18431_s28 + $0x110] sm:$0xff] }
  0x32   :  { %3322 = vmatpush2.bf16.msra.mxu1 %v11674_v51  ;;  %3270 = vmatprep.subr.bf16.mxu0 %v11675_v52  ;;  %v104_v38 = vld [vmem:[%s18431_s28 + $0x180] sm:$0xff]  ;;  %v106_v48 = vld [vmem:[%s18431_s28 + $0x190] sm:$0xff] }
  0x33   :  { %3323 = vmatprep.subr.bf16.mxu1 %v11677_v55  ;;  %v13751_v42 = vpack.c.bf16 %v104_v38, %v88_v36  ;;  %v11737_v45 = vld [vmem:[%s18377_s5 + $0x424] ss:$16 sps:$4 sm:$0xff]   ;;  %v13773_v49 = vpack.c.bf16 %v106_v48, %v90_v47  ;;  %v11735_v50 = vld [vmem:[%s18377_s5 + $0x420] ss:$16 sps:$4 sm:$0xff]  }
  0x34   :  { %v11740_v46 = vld [vmem:[%s18377_s5 + $0x624] ss:$16 sps:$4 sm:$0xff]   ;;  %v11738_v51 = vld [vmem:[%s18377_s5 + $0x620] ss:$16 sps:$4 sm:$0xff]  }
  0x35   :  { %3271 = vmatpush2.bf16.msra.mxu0 %v11679_v56  ;;  %v11743_v52 = vld [vmem:[%s18377_s5 + $0x404] ss:$16 sps:$4 sm:$0xff]   ;;  %v61_v56 = vld [vmem:[%s18431_s28 + $0x28] sm:$0xff]  ;;  %v11753_v6 = vld [vmem:[%s18377_s5 + $0x5c0] ss:$16 sps:$4 sm:$0xff]  }
  0x36   :  { %3324 = vmatpush2.bf16.msra.mxu1 %v11680_v57  ;;  %3272 = vmatprep.subr.bf16.mxu0 %v11681_v58  ;;  %v11746_v55 = vld [vmem:[%s18377_s5 + $0x604] ss:$16 sps:$4 sm:$0xff]   ;;  %v77_v57 = vld [vmem:[%s18431_s28 + $0xa8] sm:$0xff]  ;;  %v63_v58 = vld [vmem:[%s18431_s28 + $0x38] sm:$0xff] }
  0x37   :  { %3325 = vmatprep.subr.bf16.mxu1 %v11683_v59  ;;  %v79_v59 = vld [vmem:[%s18431_s28 + $0xb8] sm:$0xff]  ;;  %v11756_v7 = vld [vmem:[%s18377_s5 + $0x7c0] ss:$16 sps:$4 sm:$0xff]   ;;  %v11761_v8 = vld [vmem:[%s18377_s5 + $0x5a4] ss:$16 sps:$4 sm:$0xff]  }
  0x38   :  { %v11764_v9 = vld [vmem:[%s18377_s5 + $0x7a4] ss:$16 sps:$4 sm:$0xff]  }
  0x39   :  { %3273 = vmatpush2.bf16.msra.mxu0 %v11685_v60  ;;  %v11741_v60 = vld [vmem:[%s18377_s5 + $0x400] ss:$16 sps:$4 sm:$0xff]   ;;  %v11797_v39 = vld [vmem:[%s18377_s5 + $0x8e4] ss:$16 sps:$4 sm:$0xff]  }
  0x3a   :  { %3326 = vmatpush2.bf16.msra.mxu1 %v11686_v61  ;;  %3274 = vmatprep.subr.bf16.mxu0 %v11687_v62  ;;  %v11744_v61 = vld [vmem:[%s18377_s5 + $0x600] ss:$16 sps:$4 sm:$0xff]   ;;  %v11749_v62 = vld [vmem:[%s18377_s5 + $0x5e4] ss:$16 sps:$4 sm:$0xff]  }
  0x3b   :  { %3327 = vmatprep.subr.bf16.mxu1 %v11689_v63  ;;  %v13809_v63 = vpack.c.bf16 %v77_v57, %v61_v56  ;;  %v60_v34 = vld [vmem:[%s18431_s28 + $0x20] sm:$0xff]  ;;  %v62_v36 = vld [vmem:[%s18431_s28 + $0x30] sm:$0xff] }
  0x3c   :  { %v76_v35 = vld [vmem:[%s18431_s28 + $0xa0] sm:$0xff]  ;;  %v78_v38 = vld [vmem:[%s18431_s28 + $0xb0] sm:$0xff] }
  0x3d   :  { %3275 = vmatpush2.bf16.msra.mxu0 %v11691_v0  ;;  %v13811_v0 = vpack.c.bf16 %v79_v59, %v63_v58  ;;  %v11800_v40 = vld [vmem:[%s18377_s5 + $0xae4] ss:$16 sps:$4 sm:$0xff]   ;;  %v13938_v47 = vpack.c.bf16 %v76_v35, %v60_v34  ;;  %v13940_v48 = vpack.c.bf16 %v78_v38, %v62_v36  ;;  %v11801_v56 = vld [vmem:[%s18377_s5 + $0x8c0] ss:$16 sps:$4 sm:$0xff]  }
  0x3e   :  { %3328 = vmatpush2.bf16.msra.mxu1 %v11692_v1  ;;  %3276 = vmatprep.subr.bf16.mxu0 %v11693_v2  ;;  %v11752_v1 = vld [vmem:[%s18377_s5 + $0x7e4] ss:$16 sps:$4 sm:$0xff]   ;;  %v11747_v2 = vld [vmem:[%s18377_s5 + $0x5e0] ss:$16 sps:$4 sm:$0xff]  }
  0x3f   :  { %3329 = vmatprep.subr.bf16.mxu1 %v11695_v3  ;;  %v11750_v3 = vld [vmem:[%s18377_s5 + $0x7e0] ss:$16 sps:$4 sm:$0xff]   ;;  %v11845_v36 = vld [vmem:[%s18377_s5 + $0x9e4] ss:$16 sps:$4 sm:$0xff]  }
  0x40   :  { %v11804_v57 = vld [vmem:[%s18377_s5 + $0xac0] ss:$16 sps:$4 sm:$0xff]   ;;  %v11848_v38 = vld [vmem:[%s18377_s5 + $0xbe4] ss:$16 sps:$4 sm:$0xff]  }
  0x41   :  { %3277 = vmatpush2.bf16.msra.mxu0 %v11697_v4  ;;  %v11755_v4 = vld [vmem:[%s18377_s5 + $0x5c4] ss:$16 sps:$4 sm:$0xff]   ;;  %v11837_v34 = vld [vmem:[%s18377_s5 + $0x800] ss:$16 sps:$4 sm:$0xff]  }
  0x42   :  { %3330 = vmatpush2.bf16.msra.mxu1 %v11698_v5  ;;  %3352 = vmatprep.subr.bf16.mxu0 %v11701_v10  ;;  %v11758_v5 = vld [vmem:[%s18377_s5 + $0x7c4] ss:$16 sps:$4 sm:$0xff]   ;;  %v11759_v10 = vld [vmem:[%s18377_s5 + $0x5a0] ss:$16 sps:$4 sm:$0xff]  }
  0x43   :  { %3405 = vmatprep.subr.bf16.mxu1 %v11704_v11  ;;  %v11762_v11 = vld [vmem:[%s18377_s5 + $0x7a0] ss:$16 sps:$4 sm:$0xff]  }
  0x44   :  { %3279 = vmatmul.mubr.bf16.vlgmr.msra.gmra.mxu0 %v13662_v12  ;;  %v92_v59 = vld [vmem:[%s18431_s28 + $0x120] sm:$0xff] }
  0x45   :  { %3332 = vmatmul.mubr.bf16.vlgmr.msra.gmra.mxu1 %v13664_v13  ;;  %3353 = vmatpush1.bf16.msra.mxu0 %v11699_v14  ;;  %v11767_v14 = vld [vmem:[%s18377_s5 + $0x584] ss:$16 sps:$4 sm:$0xff]   ;;  %v11840_v35 = vld [vmem:[%s18377_s5 + $0xa00] ss:$16 sps:$4 sm:$0xff]  }
  0x46   :  { %3406 = vmatpush1.bf16.msra.mxu1 %v11702_v15  ;;  %3354 = vmatprep.subr.bf16.mxu0 %v11707_v16  ;;  %v11770_v15 = vld [vmem:[%s18377_s5 + $0x784] ss:$16 sps:$4 sm:$0xff]   ;;  %v11765_v16 = vld [vmem:[%s18377_s5 + $0x580] ss:$16 sps:$4 sm:$0xff]  }
  0x47   :  { %3407 = vmatprep.subr.bf16.mxu1 %v11710_v17  ;;  %3288 = vmatprep.mubr.bf16.mxu0 %v13737_v37  ;;  %v11768_v17 = vld [vmem:[%s18377_s5 + $0x780] ss:$16 sps:$4 sm:$0xff]  }
  0x48   :  { %3341 = vmatprep.mubr.bf16.mxu1 %v13753_v43 }
  0x49   :  { %3355 = vmatpush1.bf16.msra.mxu0 %v11705_v18  ;;  %v11773_v18 = vld [vmem:[%s18377_s5 + $0x564] ss:$16 sps:$4 sm:$0xff]  }
  0x4a   :  { %3408 = vmatpush1.bf16.msra.mxu1 %v11708_v19  ;;  %3356 = vmatprep.subr.bf16.mxu0 %v11713_v20  ;;  %v11776_v19 = vld [vmem:[%s18377_s5 + $0x764] ss:$16 sps:$4 sm:$0xff]   ;;  %v11771_v20 = vld [vmem:[%s18377_s5 + $0x560] ss:$16 sps:$4 sm:$0xff]  }
  0x4b   :  { %3409 = vmatprep.subr.bf16.mxu1 %v11716_v21  ;;  %v11774_v21 = vld [vmem:[%s18377_s5 + $0x760] ss:$16 sps:$4 sm:$0xff]  }
  0x4c   :  { %3289 = vmatmul.mubr.bf16.gmra.mxu0 %v13751_v42 }
  0x4d   :  { %3357 = vmatpush1.bf16.msra.mxu0 %v11711_v22  ;;  %3342 = vmatmul.mubr.bf16.gmra.mxu1 %v13773_v49  ;;  %v11779_v22 = vld [vmem:[%s18377_s5 + $0x544] ss:$16 sps:$4 sm:$0xff]  }
  0x4e   :  { %3410 = vmatpush1.bf16.msra.mxu1 %v11714_v23  ;;  %3358 = vmatprep.subr.bf16.mxu0 %v11719_v24  ;;  %v11782_v23 = vld [vmem:[%s18377_s5 + $0x744] ss:$16 sps:$4 sm:$0xff]   ;;  %v11777_v24 = vld [vmem:[%s18377_s5 + $0x540] ss:$16 sps:$4 sm:$0xff]  }
  0x4f   :  { %3411 = vmatprep.subr.bf16.mxu1 %v11722_v25  ;;  %3384 = vmatprep.mubr.bf16.mxu0 %v13809_v63  ;;  %v11780_v25 = vld [vmem:[%s18377_s5 + $0x740] ss:$16 sps:$4 sm:$0xff]  }
  0x50   :  { %3437 = vmatprep.mubr.bf16.mxu1 %v13811_v0 }
  0x51   :  { %3359 = vmatpush1.bf16.msra.mxu0 %v11717_v26  ;;  %v11785_v26 = vld [vmem:[%s18377_s5 + $0x524] ss:$16 sps:$4 sm:$0xff]  }
  0x52   :  { %3412 = vmatpush1.bf16.msra.mxu1 %v11720_v27  ;;  %3360 = vmatprep.subr.bf16.mxu0 %v11725_v28  ;;  %v11788_v27 = vld [vmem:[%s18377_s5 + $0x724] ss:$16 sps:$4 sm:$0xff]   ;;  %v11783_v28 = vld [vmem:[%s18377_s5 + $0x520] ss:$16 sps:$4 sm:$0xff]  }
  0x53   :  { %3413 = vmatprep.subr.bf16.mxu1 %v11728_v29  ;;  %v11786_v29 = vld [vmem:[%s18377_s5 + $0x720] ss:$16 sps:$4 sm:$0xff]  }
  0x55   :  { %3361 = vmatpush1.bf16.msra.mxu0 %v11723_v30  ;;  %v11791_v30 = vld [vmem:[%s18377_s5 + $0x504] ss:$16 sps:$4 sm:$0xff]  }
  0x56   :  { %3414 = vmatpush1.bf16.msra.mxu1 %v11726_v31  ;;  %3362 = vmatprep.subr.bf16.mxu0 %v11731_v32  ;;  %v11794_v31 = vld [vmem:[%s18377_s5 + $0x704] ss:$16 sps:$4 sm:$0xff]   ;;  %v11789_v32 = vld [vmem:[%s18377_s5 + $0x500] ss:$16 sps:$4 sm:$0xff]  }
  0x57   :  { %3415 = vmatprep.subr.bf16.mxu1 %v11734_v33  ;;  %v11792_v33 = vld [vmem:[%s18377_s5 + $0x700] ss:$16 sps:$4 sm:$0xff]  }
  0x59   :  { %3363 = vmatpush1.bf16.msra.mxu0 %v11729_v41  ;;  %v11795_v41 = vld [vmem:[%s18377_s5 + $0x8e0] ss:$16 sps:$4 sm:$0xff]  }
  0x5a   :  { %3416 = vmatpush1.bf16.msra.mxu1 %v11732_v44  ;;  %3364 = vmatprep.subr.bf16.mxu0 %v11737_v45  ;;  %v11798_v44 = vld [vmem:[%s18377_s5 + $0xae0] ss:$16 sps:$4 sm:$0xff]   ;;  %v93_v45 = vld [vmem:[%s18431_s28 + $0x128] sm:$0xff] }
  0x5b   :  { %3417 = vmatprep.subr.bf16.mxu1 %v11740_v46  ;;  %v109_v46 = vld [vmem:[%s18431_s28 + $0x1a8] sm:$0xff] }
  0x5c   :  { %v13960_v58 = vpack.c.bf16 %v109_v46, %v93_v45  ;;  %v11849_v45 = vld [vmem:[%s18377_s5 + $0x9c0] ss:$16 sps:$4 sm:$0xff]  }
  0x5d   :  { %3365 = vmatpush1.bf16.msra.mxu0 %v11735_v50  ;;  %v95_v50 = vld [vmem:[%s18431_s28 + $0x138] sm:$0xff]  ;;  %v11852_v46 = vld [vmem:[%s18377_s5 + $0xbc0] ss:$16 sps:$4 sm:$0xff]  }
  0x5e   :  { %3418 = vmatpush1.bf16.msra.mxu1 %v11738_v51  ;;  %3366 = vmatprep.subr.bf16.mxu0 %v11743_v52  ;;  %v111_v51 = vld [vmem:[%s18431_s28 + $0x1b8] sm:$0xff]  ;;  %v11803_v52 = vld [vmem:[%s18377_s5 + $0x8c4] ss:$16 sps:$4 sm:$0xff]  }
  0x5f   :  { %3419 = vmatprep.subr.bf16.mxu1 %v11746_v55  ;;  %v11806_v55 = vld [vmem:[%s18377_s5 + $0xac4] ss:$16 sps:$4 sm:$0xff]  }
  0x61   :  { %3367 = vmatpush1.bf16.msra.mxu0 %v11741_v60  ;;  %v108_v60 = vld [vmem:[%s18431_s28 + $0x1a0] sm:$0xff] }
  0x62   :  { %3420 = vmatpush1.bf16.msra.mxu1 %v11744_v61  ;;  %3368 = vmatprep.subr.bf16.mxu0 %v11749_v62  ;;  %v13968_v61 = vpack.c.bf16 %v111_v51, %v95_v50  ;;  %v11809_v62 = vld [vmem:[%s18377_s5 + $0x8a4] ss:$16 sps:$4 sm:$0xff]  }
  0x63   :  { %3421 = vmatprep.subr.bf16.mxu1 %v11752_v1  ;;  %v94_v1 = vld [vmem:[%s18431_s28 + $0x130] sm:$0xff] }
  0x64   :  { %v11857_v50 = vld [vmem:[%s18377_s5 + $0x9a4] ss:$16 sps:$4 sm:$0xff]  }
  0x65   :  { %3369 = vmatpush2.bf16.msra.mxu0 %v11747_v2  ;;  %v110_v2 = vld [vmem:[%s18431_s28 + $0x1b0] sm:$0xff] }
  0x66   :  { %3422 = vmatpush2.bf16.msra.mxu1 %v11750_v3  ;;  %3370 = vmatprep.subr.bf16.mxu0 %v11755_v4  ;;  %v11812_v3 = vld [vmem:[%s18377_s5 + $0xaa4] ss:$16 sps:$4 sm:$0xff]   ;;  %v13986_v4 = vpack.c.bf16 %v108_v60, %v92_v59  ;;  %v11861_v59 = vld [vmem:[%s18377_s5 + $0x980] ss:$16 sps:$4 sm:$0xff]  }
  0x67   :  { %3423 = vmatprep.subr.bf16.mxu1 %v11758_v5  ;;  %v11807_v5 = vld [vmem:[%s18377_s5 + $0x8a0] ss:$16 sps:$4 sm:$0xff]   ;;  %v11860_v51 = vld [vmem:[%s18377_s5 + $0xba4] ss:$16 sps:$4 sm:$0xff]  }
  0x68   :  { %v11864_v60 = vld [vmem:[%s18377_s5 + $0xb80] ss:$16 sps:$4 sm:$0xff]  }
  0x69   :  { %3371 = vmatpush2.bf16.msra.mxu0 %v11753_v6  ;;  %v11810_v6 = vld [vmem:[%s18377_s5 + $0xaa0] ss:$16 sps:$4 sm:$0xff]  }
  0x6a   :  { %3424 = vmatpush2.bf16.msra.mxu1 %v11756_v7  ;;  %3372 = vmatprep.subr.bf16.mxu0 %v11761_v8  ;;  %v13994_v7 = vpack.c.bf16 %v110_v2, %v94_v1  ;;  %v11815_v8 = vld [vmem:[%s18377_s5 + $0x884] ss:$16 sps:$4 sm:$0xff]   ;;  %v11867_v2 = vld [vmem:[%s18377_s5 + $0x960] ss:$16 sps:$4 sm:$0xff]  }
  0x6b   :  { %3425 = vmatprep.subr.bf16.mxu1 %v11764_v9  ;;  %v11818_v9 = vld [vmem:[%s18377_s5 + $0xa84] ss:$16 sps:$4 sm:$0xff]  }
  0x6c   :  { %v11872_v1 = vld [vmem:[%s18377_s5 + $0xb64] ss:$16 sps:$4 sm:$0xff]  }
  0x6d   :  { %3373 = vmatpush2.bf16.msra.mxu0 %v11759_v10  ;;  %v65_v10 = vld [vmem:[%s18431_s28 + $0x48] sm:$0xff] }
  0x6e   :  { %3426 = vmatpush2.bf16.msra.mxu1 %v11762_v11  ;;  %3374 = vmatprep.subr.bf16.mxu0 %v11767_v14  ;;  %v81_v11 = vld [vmem:[%s18431_s28 + $0xc8] sm:$0xff]  ;;  %v67_v14 = vld [vmem:[%s18431_s28 + $0x58] sm:$0xff] }
  0x6f   :  { %3427 = vmatprep.subr.bf16.mxu1 %v11770_v15  ;;  %v83_v15 = vld [vmem:[%s18431_s28 + $0xd8] sm:$0xff] }
  0x71   :  { %3375 = vmatpush2.bf16.msra.mxu0 %v11765_v16  ;;  %v11813_v16 = vld [vmem:[%s18377_s5 + $0x880] ss:$16 sps:$4 sm:$0xff]  }
  0x72   :  { %3428 = vmatpush2.bf16.msra.mxu1 %v11768_v17  ;;  %3376 = vmatprep.subr.bf16.mxu0 %v11773_v18  ;;  %v11816_v17 = vld [vmem:[%s18377_s5 + $0xa80] ss:$16 sps:$4 sm:$0xff]   ;;  %v11821_v18 = vld [vmem:[%s18377_s5 + $0x864] ss:$16 sps:$4 sm:$0xff]  }
  0x73   :  { %3429 = vmatprep.subr.bf16.mxu1 %v11776_v19  ;;  %v14025_v19 = vpack.c.bf16 %v81_v11, %v65_v10  ;;  %v11881_v10 = vld [vmem:[%s18377_s5 + $0x924] ss:$16 sps:$4 sm:$0xff]  }
  0x74   :  { %v11884_v11 = vld [vmem:[%s18377_s5 + $0xb24] ss:$16 sps:$4 sm:$0xff]  }
  0x75   :  { %3377 = vmatpush2.bf16.msra.mxu0 %v11771_v20  ;;  %v14027_v20 = vpack.c.bf16 %v83_v15, %v67_v14  ;;  %v11879_v14 = vld [vmem:[%s18377_s5 + $0x920] ss:$16 sps:$4 sm:$0xff]  }
  0x76   :  { %3430 = vmatpush2.bf16.msra.mxu1 %v11774_v21  ;;  %3378 = vmatprep.subr.bf16.mxu0 %v11779_v22  ;;  %v11824_v21 = vld [vmem:[%s18377_s5 + $0xa64] ss:$16 sps:$4 sm:$0xff]   ;;  %v11819_v22 = vld [vmem:[%s18377_s5 + $0x860] ss:$16 sps:$4 sm:$0xff]  }
  0x77   :  { %3431 = vmatprep.subr.bf16.mxu1 %v11782_v23  ;;  %v11822_v23 = vld [vmem:[%s18377_s5 + $0xa60] ss:$16 sps:$4 sm:$0xff]  }
  0x78   :  { %v11882_v15 = vld [vmem:[%s18377_s5 + $0xb20] ss:$16 sps:$4 sm:$0xff]  }
  0x79   :  { %3379 = vmatpush2.bf16.msra.mxu0 %v11777_v24  ;;  %v11827_v24 = vld [vmem:[%s18377_s5 + $0x844] ss:$16 sps:$4 sm:$0xff]  }
  0x7a   :  { %3432 = vmatpush2.bf16.msra.mxu1 %v11780_v25  ;;  %3380 = vmatprep.subr.bf16.mxu0 %v11785_v26  ;;  %v11830_v25 = vld [vmem:[%s18377_s5 + $0xa44] ss:$16 sps:$4 sm:$0xff]   ;;  %v11825_v26 = vld [vmem:[%s18377_s5 + $0x840] ss:$16 sps:$4 sm:$0xff]  }
  0x7b   :  { %3433 = vmatprep.subr.bf16.mxu1 %v11788_v27  ;;  %v11828_v27 = vld [vmem:[%s18377_s5 + $0xa40] ss:$16 sps:$4 sm:$0xff]  }
  0x7d   :  { %3381 = vmatpush2.bf16.msra.mxu0 %v11783_v28  ;;  %v11833_v28 = vld [vmem:[%s18377_s5 + $0x824] ss:$16 sps:$4 sm:$0xff]  }
  0x7e   :  { %3434 = vmatpush2.bf16.msra.mxu1 %v11786_v29  ;;  %3382 = vmatprep.subr.bf16.mxu0 %v11791_v30  ;;  %v11836_v29 = vld [vmem:[%s18377_s5 + $0xa24] ss:$16 sps:$4 sm:$0xff]   ;;  %v11831_v30 = vld [vmem:[%s18377_s5 + $0x820] ss:$16 sps:$4 sm:$0xff]  }
  0x7f   :  { %3435 = vmatprep.subr.bf16.mxu1 %v11794_v31  ;;  %v11834_v31 = vld [vmem:[%s18377_s5 + $0xa20] ss:$16 sps:$4 sm:$0xff]  }
  0x81   :  { %3383 = vmatpush2.bf16.msra.mxu0 %v11789_v32  ;;  %v11839_v32 = vld [vmem:[%s18377_s5 + $0x804] ss:$16 sps:$4 sm:$0xff]  }
  0x82   :  { %3436 = vmatpush2.bf16.msra.mxu1 %v11792_v33  ;;  %3458 = vmatprep.subr.bf16.mxu0 %v11797_v39  ;;  %v11842_v33 = vld [vmem:[%s18377_s5 + $0xa04] ss:$16 sps:$4 sm:$0xff]   ;;  %v11843_v39 = vld [vmem:[%s18377_s5 + $0x9e0] ss:$16 sps:$4 sm:$0xff]  }
  0x83   :  { %3511 = vmatprep.subr.bf16.mxu1 %v11800_v40  ;;  %v11846_v40 = vld [vmem:[%s18377_s5 + $0xbe0] ss:$16 sps:$4 sm:$0xff]  }
  0x84   :  { %3385 = vmatmul.mubr.bf16.vlgmr.msra.gmra.mxu0 %v13938_v47 }
  0x85   :  { %3438 = vmatmul.mubr.bf16.vlgmr.msra.gmra.mxu1 %v13940_v48  ;;  %3459 = vmatpush1.bf16.msra.mxu0 %v11795_v41  ;;  %v11851_v41 = vld [vmem:[%s18377_s5 + $0x9c4] ss:$16 sps:$4 sm:$0xff]  }
  0x86   :  { %3512 = vmatpush1.bf16.msra.mxu1 %v11798_v44  ;;  %3460 = vmatprep.subr.bf16.mxu0 %v11803_v52  ;;  %v11854_v44 = vld [vmem:[%s18377_s5 + $0xbc4] ss:$16 sps:$4 sm:$0xff]   ;;  %v11855_v52 = vld [vmem:[%s18377_s5 + $0x9a0] ss:$16 sps:$4 sm:$0xff]  }
  0x87   :  { %3513 = vmatprep.subr.bf16.mxu1 %v11806_v55  ;;  %3394 = vmatprep.mubr.bf16.mxu0 %v13960_v58  ;;  %v11858_v55 = vld [vmem:[%s18377_s5 + $0xba0] ss:$16 sps:$4 sm:$0xff]  }
  0x88   :  { %3447 = vmatprep.mubr.bf16.mxu1 %v13968_v61 }
  0x89   :  { %3461 = vmatpush1.bf16.msra.mxu0 %v11801_v56  ;;  %v11863_v56 = vld [vmem:[%s18377_s5 + $0x984] ss:$16 sps:$4 sm:$0xff]  }
  0x8a   :  { %3514 = vmatpush1.bf16.msra.mxu1 %v11804_v57  ;;  %3462 = vmatprep.subr.bf16.mxu0 %v11809_v62  ;;  %v11866_v57 = vld [vmem:[%s18377_s5 + $0xb84] ss:$16 sps:$4 sm:$0xff]  }
  0x8b   :  { %3515 = vmatprep.subr.bf16.mxu1 %v11812_v3  ;;  %v11869_v62 = vld [vmem:[%s18377_s5 + $0x964] ss:$16 sps:$4 sm:$0xff]   ;;  %v11870_v3 = vld [vmem:[%s18377_s5 + $0xb60] ss:$16 sps:$4 sm:$0xff]  }
  0x8c   :  { %3395 = vmatmul.mubr.bf16.gmra.mxu0 %v13986_v4 }
  0x8d   :  { %3448 = vmatmul.mubr.bf16.gmra.mxu1 %v13994_v7  ;;  %3463 = vmatpush1.bf16.msra.mxu0 %v11807_v5  ;;  %v11875_v5 = vld [vmem:[%s18377_s5 + $0x944] ss:$16 sps:$4 sm:$0xff]  }
  0x8e   :  { %3516 = vmatpush1.bf16.msra.mxu1 %v11810_v6  ;;  %3464 = vmatprep.subr.bf16.mxu0 %v11815_v8  ;;  %v11878_v6 = vld [vmem:[%s18377_s5 + $0xb44] ss:$16 sps:$4 sm:$0xff]   ;;  %v11873_v8 = vld [vmem:[%s18377_s5 + $0x940] ss:$16 sps:$4 sm:$0xff]  }
  0x8f   :  { %3517 = vmatprep.subr.bf16.mxu1 %v11818_v9  ;;  %3490 = vmatprep.mubr.bf16.mxu0 %v14025_v19  ;;  %v11876_v9 = vld [vmem:[%s18377_s5 + $0xb40] ss:$16 sps:$4 sm:$0xff]  }
  0x90   :  { %3543 = vmatprep.mubr.bf16.mxu1 %v14027_v20 }
  0x91   :  { %3465 = vmatpush1.bf16.msra.mxu0 %v11813_v16  ;;  %v11887_v16 = vld [vmem:[%s18377_s5 + $0x904] ss:$16 sps:$4 sm:$0xff]  }
  0x92   :  { %3518 = vmatpush1.bf16.msra.mxu1 %v11816_v17  ;;  %3466 = vmatprep.subr.bf16.mxu0 %v11821_v18  ;;  %v11890_v17 = vld [vmem:[%s18377_s5 + $0xb04] ss:$16 sps:$4 sm:$0xff]   ;;  %v11885_v18 = vld [vmem:[%s18377_s5 + $0x900] ss:$16 sps:$4 sm:$0xff]  }
  0x93   :  { %3519 = vmatprep.subr.bf16.mxu1 %v11824_v21  ;;  %v11888_v21 = vld [vmem:[%s18377_s5 + $0xb00] ss:$16 sps:$4 sm:$0xff]  }
  0x95   :  { %3467 = vmatpush1.bf16.msra.mxu0 %v11819_v22  ;;  %v64_v22 = vld [vmem:[%s18431_s28 + $0x40] sm:$0xff] }
  0x96   :  { %3520 = vmatpush1.bf16.msra.mxu1 %v11822_v23  ;;  %3468 = vmatprep.subr.bf16.mxu0 %v11827_v24  ;;  %v80_v23 = vld [vmem:[%s18431_s28 + $0xc0] sm:$0xff]  ;;  %v66_v24 = vld [vmem:[%s18431_s28 + $0x50] sm:$0xff] }
  0x97   :  { %3521 = vmatprep.subr.bf16.mxu1 %v11830_v25  ;;  %v82_v25 = vld [vmem:[%s18431_s28 + $0xd0] sm:$0xff] }
  0x99   :  { %3469 = vmatpush1.bf16.msra.mxu0 %v11825_v26  ;;  %v11893_v26 = vld [vmem:[%s18377_s5 + $0xce4] ss:$16 sps:$4 sm:$0xff]  }
  0x9a   :  { %3522 = vmatpush1.bf16.msra.mxu1 %v11828_v27  ;;  %3470 = vmatprep.subr.bf16.mxu0 %v11833_v28  ;;  %v11896_v27 = vld [vmem:[%s18377_s5 + $0xee4] ss:$16 sps:$4 sm:$0xff]   ;;  %v97_v28 = vld [vmem:[%s18431_s28 + $0x148] sm:$0xff] }
  0x9b   :  { %3523 = vmatprep.subr.bf16.mxu1 %v11836_v29  ;;  %v11891_v29 = vld [vmem:[%s18377_s5 + $0xce0] ss:$16 sps:$4 sm:$0xff]  }
  0x9d   :  { %3471 = vmatpush1.bf16.msra.mxu0 %v11831_v30  ;;  %v113_v30 = vld [vmem:[%s18431_s28 + $0x1c8] sm:$0xff] }
  0x9e   :  { %3524 = vmatpush1.bf16.msra.mxu1 %v11834_v31  ;;  %3472 = vmatprep.subr.bf16.mxu0 %v11839_v32  ;;  %v99_v31 = vld [vmem:[%s18431_s28 + $0x158] sm:$0xff]  ;;  %v14202_v32 = vpack.c.bf16 %v80_v23, %v64_v22  ;;  %v11921_v22 = vld [vmem:[%s18377_s5 + $0xc40] ss:$16 sps:$4 sm:$0xff]  }
  0x9f   :  { %3525 = vmatprep.subr.bf16.mxu1 %v11842_v33  ;;  %v14204_v33 = vpack.c.bf16 %v82_v25, %v66_v24  ;;  %v11924_v23 = vld [vmem:[%s18377_s5 + $0xe40] ss:$16 sps:$4 sm:$0xff]   ;;  %v11929_v24 = vld [vmem:[%s18377_s5 + $0xc24] ss:$16 sps:$4 sm:$0xff]  }
  0xa0   :  { %v11932_v25 = vld [vmem:[%s18377_s5 + $0xe24] ss:$16 sps:$4 sm:$0xff]  }
  0xa1   :  { %3473 = vmatpush1.bf16.msra.mxu0 %v11837_v34  ;;  %v115_v34 = vld [vmem:[%s18431_s28 + $0x1d8] sm:$0xff] }
  0xa2   :  { %3526 = vmatpush1.bf16.msra.mxu1 %v11840_v35  ;;  %3474 = vmatprep.subr.bf16.mxu0 %v11845_v36  ;;  %v11894_v35 = vld [vmem:[%s18377_s5 + $0xee0] ss:$16 sps:$4 sm:$0xff]   ;;  %v11899_v36 = vld [vmem:[%s18377_s5 + $0xcc4] ss:$16 sps:$4 sm:$0xff]  }
  0xa3   :  { %3527 = vmatprep.subr.bf16.mxu1 %v11848_v38  ;;  %v11902_v38 = vld [vmem:[%s18377_s5 + $0xec4] ss:$16 sps:$4 sm:$0xff]  }
  0xa5   :  { %3475 = vmatpush2.bf16.msra.mxu0 %v11843_v39  ;;  %v11897_v39 = vld [vmem:[%s18377_s5 + $0xcc0] ss:$16 sps:$4 sm:$0xff]  }
  0xa6   :  { %3528 = vmatpush2.bf16.msra.mxu1 %v11846_v40  ;;  %3476 = vmatprep.subr.bf16.mxu0 %v11851_v41  ;;  %v11900_v40 = vld [vmem:[%s18377_s5 + $0xec0] ss:$16 sps:$4 sm:$0xff]   ;;  %v14224_v41 = vpack.c.bf16 %v113_v30, %v97_v28  ;;  %v11935_v28 = vld [vmem:[%s18377_s5 + $0xc04] ss:$16 sps:$4 sm:$0xff]  }
  0xa7   :  { %3529 = vmatprep.subr.bf16.mxu1 %v11854_v44  ;;  %v14226_v44 = vpack.c.bf16 %v115_v34, %v99_v31  ;;  %v11933_v30 = vld [vmem:[%s18377_s5 + $0xc00] ss:$16 sps:$4 sm:$0xff]   ;;  %v11941_v34 = vld [vmem:[%s18377_s5 + $0xde4] ss:$16 sps:$4 sm:$0xff]  }
  0xa8   :  { %v11936_v31 = vld [vmem:[%s18377_s5 + $0xe00] ss:$16 sps:$4 sm:$0xff]  }
  0xa9   :  { %3477 = vmatpush2.bf16.msra.mxu0 %v11849_v45  ;;  %v96_v45 = vld [vmem:[%s18431_s28 + $0x140] sm:$0xff] }
  0xaa   :  { %3530 = vmatpush2.bf16.msra.mxu1 %v11852_v46  ;;  %3478 = vmatprep.subr.bf16.mxu0 %v11857_v50  ;;  %v112_v46 = vld [vmem:[%s18431_s28 + $0x1c0] sm:$0xff]  ;;  %v98_v50 = vld [vmem:[%s18431_s28 + $0x150] sm:$0xff] }
  0xab   :  { %3531 = vmatprep.subr.bf16.mxu1 %v11860_v51  ;;  %v114_v51 = vld [vmem:[%s18431_s28 + $0x1d0] sm:$0xff] }
  0xad   :  { %3479 = vmatpush2.bf16.msra.mxu0 %v11855_v52  ;;  %v11905_v52 = vld [vmem:[%s18377_s5 + $0xca4] ss:$16 sps:$4 sm:$0xff]  }
  0xae   :  { %3532 = vmatpush2.bf16.msra.mxu1 %v11858_v55  ;;  %3480 = vmatprep.subr.bf16.mxu0 %v11863_v56  ;;  %v11908_v55 = vld [vmem:[%s18377_s5 + $0xea4] ss:$16 sps:$4 sm:$0xff]   ;;  %v11903_v56 = vld [vmem:[%s18377_s5 + $0xca0] ss:$16 sps:$4 sm:$0xff]  }
  0xaf   :  { %3533 = vmatprep.subr.bf16.mxu1 %v11866_v57  ;;  %v69_v57 = vld [vmem:[%s18431_s28 + $0x68] sm:$0xff] }
  0xb1   :  { %3481 = vmatpush2.bf16.msra.mxu0 %v11861_v59  ;;  %v14256_v59 = vpack.c.bf16 %v112_v46, %v96_v45  ;;  %v11945_v45 = vld [vmem:[%s18377_s5 + $0xdc0] ss:$16 sps:$4 sm:$0xff]  }
  0xb2   :  { %3534 = vmatpush2.bf16.msra.mxu1 %v11864_v60  ;;  %3482 = vmatprep.subr.bf16.mxu0 %v11869_v62  ;;  %v14258_v60 = vpack.c.bf16 %v114_v51, %v98_v50  ;;  %v85_v62 = vld [vmem:[%s18431_s28 + $0xe8] sm:$0xff]  ;;  %v11948_v46 = vld [vmem:[%s18377_s5 + $0xfc0] ss:$16 sps:$4 sm:$0xff]   ;;  %v11953_v50 = vld [vmem:[%s18377_s5 + $0xda4] ss:$16 sps:$4 sm:$0xff]  }
  0xb3   :  { %3535 = vmatprep.subr.bf16.mxu1 %v11872_v1  ;;  %v71_v1 = vld [vmem:[%s18431_s28 + $0x78] sm:$0xff]  ;;  %v11956_v51 = vld [vmem:[%s18377_s5 + $0xfa4] ss:$16 sps:$4 sm:$0xff]  }
  0xb4   :  { %18432 = vst [vmem:[#allocation10_spill] sm:$0xff] %v14258_v60 }
  0xb5   :  { %3483 = vmatpush2.bf16.msra.mxu0 %v11867_v2  ;;  %v87_v2 = vld [vmem:[%s18431_s28 + $0xf8] sm:$0xff] }
  0xb6   :  { %3536 = vmatpush2.bf16.msra.mxu1 %v11870_v3  ;;  %3484 = vmatprep.subr.bf16.mxu0 %v11875_v5  ;;  %v11906_v3 = vld [vmem:[%s18377_s5 + $0xea0] ss:$16 sps:$4 sm:$0xff]   ;;  %v11911_v5 = vld [vmem:[%s18377_s5 + $0xc84] ss:$16 sps:$4 sm:$0xff]  }
  0xb7   :  { %3537 = vmatprep.subr.bf16.mxu1 %v11878_v6  ;;  %v11914_v6 = vld [vmem:[%s18377_s5 + $0xe84] ss:$16 sps:$4 sm:$0xff]  }
  0xb9   :  { %3485 = vmatpush2.bf16.msra.mxu0 %v11873_v8  ;;  %v14278_v8 = vpack.c.bf16 %v85_v62, %v69_v57  ;;  %v11962_v57 = vld [vmem:[%s18377_s5 + $0xf84] ss:$16 sps:$4 sm:$0xff]   ;;  %v11957_v62 = vld [vmem:[%s18377_s5 + $0xd80] ss:$16 sps:$4 sm:$0xff]  }
  0xba   :  { %3538 = vmatpush2.bf16.msra.mxu1 %v11876_v9  ;;  %3486 = vmatprep.subr.bf16.mxu0 %v11881_v10  ;;  %v14280_v9 = vpack.c.bf16 %v87_v2, %v71_v1  ;;  %v11909_v10 = vld [vmem:[%s18377_s5 + $0xc80] ss:$16 sps:$4 sm:$0xff]   ;;  %v11965_v2 = vld [vmem:[%s18377_s5 + $0xd64] ss:$16 sps:$4 sm:$0xff]  }
  0xbb   :  { %3539 = vmatprep.subr.bf16.mxu1 %v11884_v11  ;;  %18433 = vst [vmem:[#allocation11_spill] sm:$0xff] %v14278_v8  ;;  %v11912_v11 = vld [vmem:[%s18377_s5 + $0xe80] ss:$16 sps:$4 sm:$0xff]  }
  0xbc   :  { %18434 = vst [vmem:[#allocation12_spill] sm:$0xff] %v14280_v9  ;;  %v11960_v1 = vld [vmem:[%s18377_s5 + $0xf80] ss:$16 sps:$4 sm:$0xff]  }
  0xbd   :  { %3487 = vmatpush2.bf16.msra.mxu0 %v11879_v14  ;;  %v11917_v14 = vld [vmem:[%s18377_s5 + $0xc64] ss:$16 sps:$4 sm:$0xff]  }
  0xbe   :  { %3540 = vmatpush2.bf16.msra.mxu1 %v11882_v15  ;;  %3488 = vmatprep.subr.bf16.mxu0 %v11887_v16  ;;  %v11920_v15 = vld [vmem:[%s18377_s5 + $0xe64] ss:$16 sps:$4 sm:$0xff]   ;;  %v11915_v16 = vld [vmem:[%s18377_s5 + $0xc60] ss:$16 sps:$4 sm:$0xff]  }
  0xbf   :  { %3541 = vmatprep.subr.bf16.mxu1 %v11890_v17  ;;  %v11918_v17 = vld [vmem:[%s18377_s5 + $0xe60] ss:$16 sps:$4 sm:$0xff]  }
  0xc1   :  { %3489 = vmatpush2.bf16.msra.mxu0 %v11885_v18  ;;  %v11923_v18 = vld [vmem:[%s18377_s5 + $0xc44] ss:$16 sps:$4 sm:$0xff]  }
  0xc2   :  { %3542 = vmatpush2.bf16.msra.mxu1 %v11888_v21  ;;  %3564 = vmatprep.subr.bf16.mxu0 %v11893_v26  ;;  %v11926_v21 = vld [vmem:[%s18377_s5 + $0xe44] ss:$16 sps:$4 sm:$0xff]   ;;  %v11927_v26 = vld [vmem:[%s18377_s5 + $0xc20] ss:$16 sps:$4 sm:$0xff]  }
  0xc3   :  { %3617 = vmatprep.subr.bf16.mxu1 %v11896_v27  ;;  %v11930_v27 = vld [vmem:[%s18377_s5 + $0xe20] ss:$16 sps:$4 sm:$0xff]  }
  0xc4   :  { %3491 = vmatmul.mubr.bf16.vlgmr.msra.gmra.mxu0 %v14202_v32 }
  0xc5   :  { %3544 = vmatmul.mubr.bf16.vlgmr.msra.gmra.mxu1 %v14204_v33  ;;  %3565 = vmatpush1.bf16.msra.mxu0 %v11891_v29  ;;  %v11938_v29 = vld [vmem:[%s18377_s5 + $0xe04] ss:$16 sps:$4 sm:$0xff]  }
  0xc6   :  { %3618 = vmatpush1.bf16.msra.mxu1 %v11894_v35  ;;  %3566 = vmatprep.subr.bf16.mxu0 %v11899_v36  ;;  %v11944_v35 = vld [vmem:[%s18377_s5 + $0xfe4] ss:$16 sps:$4 sm:$0xff]   ;;  %v11939_v36 = vld [vmem:[%s18377_s5 + $0xde0] ss:$16 sps:$4 sm:$0xff]  }
  0xc7   :  { %3619 = vmatprep.subr.bf16.mxu1 %v11902_v38  ;;  %3500 = vmatprep.mubr.bf16.mxu0 %v14224_v41  ;;  %v11942_v38 = vld [vmem:[%s18377_s5 + $0xfe0] ss:$16 sps:$4 sm:$0xff]  }
  0xc8   :  { %3553 = vmatprep.mubr.bf16.mxu1 %v14226_v44 }
  0xc9   :  { %3567 = vmatpush1.bf16.msra.mxu0 %v11897_v39  ;;  %v11947_v39 = vld [vmem:[%s18377_s5 + $0xdc4] ss:$16 sps:$4 sm:$0xff]  }
  0xca   :  { %3620 = vmatpush1.bf16.msra.mxu1 %v11900_v40  ;;  %3568 = vmatprep.subr.bf16.mxu0 %v11905_v52  ;;  %v11950_v40 = vld [vmem:[%s18377_s5 + $0xfc4] ss:$16 sps:$4 sm:$0xff]   ;;  %v11951_v52 = vld [vmem:[%s18377_s5 + $0xda0] ss:$16 sps:$4 sm:$0xff]  }
  0xcb   :  { %3621 = vmatprep.subr.bf16.mxu1 %v11908_v55  ;;  %v11954_v55 = vld [vmem:[%s18377_s5 + $0xfa0] ss:$16 sps:$4 sm:$0xff]  }
  0xcc   :  { %3501 = vmatmul.mubr.bf16.gmra.mxu0 %v14256_v59 }
  0xcd   :  { %3554 = vmatmul.mubr.bf16.gmra.mxu1 %v14258_v60  ;;  %3569 = vmatpush1.bf16.msra.mxu0 %v11903_v56  ;;  %v11959_v56 = vld [vmem:[%s18377_s5 + $0xd84] ss:$16 sps:$4 sm:$0xff]  }
  0xce   :  { %3622 = vmatpush1.bf16.msra.mxu1 %v11906_v3  ;;  %3570 = vmatprep.subr.bf16.mxu0 %v11911_v5  ;;  %v11968_v3 = vld [vmem:[%s18377_s5 + $0xf64] ss:$16 sps:$4 sm:$0xff]   ;;  %v11963_v5 = vld [vmem:[%s18377_s5 + $0xd60] ss:$16 sps:$4 sm:$0xff]  }
  0xcf   :  { %3623 = vmatprep.subr.bf16.mxu1 %v11914_v6  ;;  %3596 = vmatprep.mubr.bf16.mxu0 %v14278_v8  ;;  %v11966_v6 = vld [vmem:[%s18377_s5 + $0xf60] ss:$16 sps:$4 sm:$0xff]  }
  0xd0   :  { %3649 = vmatprep.mubr.bf16.mxu1 %v14280_v9 }
  0xd1   :  { %3571 = vmatpush1.bf16.msra.mxu0 %v11909_v10  ;;  %v11971_v10 = vld [vmem:[%s18377_s5 + $0xd44] ss:$16 sps:$4 sm:$0xff]  }
  0xd2   :  { %3624 = vmatpush1.bf16.msra.mxu1 %v11912_v11  ;;  %3572 = vmatprep.subr.bf16.mxu0 %v11917_v14  ;;  %v11974_v11 = vld [vmem:[%s18377_s5 + $0xf44] ss:$16 sps:$4 sm:$0xff]   ;;  %v11969_v14 = vld [vmem:[%s18377_s5 + $0xd40] ss:$16 sps:$4 sm:$0xff]  }
  0xd3   :  { %3625 = vmatprep.subr.bf16.mxu1 %v11920_v15  ;;  %v11972_v15 = vld [vmem:[%s18377_s5 + $0xf40] ss:$16 sps:$4 sm:$0xff]  }
  0xd5   :  { %3573 = vmatpush1.bf16.msra.mxu0 %v11915_v16  ;;  %v11977_v16 = vld [vmem:[%s18377_s5 + $0xd24] ss:$16 sps:$4 sm:$0xff]  }
  0xd6   :  { %3626 = vmatpush1.bf16.msra.mxu1 %v11918_v17  ;;  %3574 = vmatprep.subr.bf16.mxu0 %v11923_v18  ;;  %v11980_v17 = vld [vmem:[%s18377_s5 + $0xf24] ss:$16 sps:$4 sm:$0xff]   ;;  %v11975_v18 = vld [vmem:[%s18377_s5 + $0xd20] ss:$16 sps:$4 sm:$0xff]  }
  0xd7   :  { %3627 = vmatprep.subr.bf16.mxu1 %v11926_v21  ;;  %v11978_v21 = vld [vmem:[%s18377_s5 + $0xf20] ss:$16 sps:$4 sm:$0xff]  }
  0xd9   :  { %3575 = vmatpush1.bf16.msra.mxu0 %v11921_v22  ;;  %v11983_v22 = vld [vmem:[%s18377_s5 + $0xd04] ss:$16 sps:$4 sm:$0xff]  }
  0xda   :  { %3628 = vmatpush1.bf16.msra.mxu1 %v11924_v23  ;;  %3576 = vmatprep.subr.bf16.mxu0 %v11929_v24  ;;  %v11986_v23 = vld [vmem:[%s18377_s5 + $0xf04] ss:$16 sps:$4 sm:$0xff]   ;;  %v11981_v24 = vld [vmem:[%s18377_s5 + $0xd00] ss:$16 sps:$4 sm:$0xff]  }
  0xdb   :  { %3629 = vmatprep.subr.bf16.mxu1 %v11932_v25  ;;  %v11984_v25 = vld [vmem:[%s18377_s5 + $0xf00] ss:$16 sps:$4 sm:$0xff]  }
  0xdd   :  { %3577 = vmatpush1.bf16.msra.mxu0 %v11927_v26  ;;  %v68_v26 = vld [vmem:[%s18431_s28 + $0x60] sm:$0xff] }
  0xde   :  { %3630 = vmatpush1.bf16.msra.mxu1 %v11930_v27  ;;  %3578 = vmatprep.subr.bf16.mxu0 %v11935_v28  ;;  %v84_v27 = vld [vmem:[%s18431_s28 + $0xe0] sm:$0xff]  ;;  %v70_v28 = vld [vmem:[%s18431_s28 + $0x70] sm:$0xff] }
  0xdf   :  { %3631 = vmatprep.subr.bf16.mxu1 %v11938_v29  ;;  %v86_v29 = vld [vmem:[%s18431_s28 + $0xf0] sm:$0xff] }
  0xe1   :  { %3579 = vmatpush1.bf16.msra.mxu0 %v11933_v30  ;;  %v11989_v30 = vld [vmem:[%s18377_s5 + $0xec] ss:$16 sps:$4 sm:$0xff]  }
  0xe2   :  { %3632 = vmatpush1.bf16.msra.mxu1 %v11936_v31  ;;  %3580 = vmatprep.subr.bf16.mxu0 %v11941_v34  ;;  %v11992_v31 = vld [vmem:[%s18377_s5 + $0x2ec] ss:$16 sps:$4 sm:$0xff]  }
  0xe3   :  { %3633 = vmatprep.subr.bf16.mxu1 %v11944_v35  ;;  %v101_v34 = vld [vmem:[%s18431_s28 + $0x168] sm:$0xff] }
  0xe4   :  { %v11987_v35 = vld [vmem:[%s18377_s5 + $0xe8] ss:$16 sps:$4 sm:$0xff]  }
  0xe5   :  { %3581 = vmatpush2.bf16.msra.mxu0 %v11939_v36  ;;  %v117_v36 = vld [vmem:[%s18431_s28 + $0x1e8] sm:$0xff] }
  0xe6   :  { %3634 = vmatpush2.bf16.msra.mxu1 %v11942_v38  ;;  %3582 = vmatprep.subr.bf16.mxu0 %v11947_v39  ;;  %v103_v38 = vld [vmem:[%s18431_s28 + $0x178] sm:$0xff]  ;;  %v14466_v39 = vpack.c.bf16 %v84_v27, %v68_v26 }
  0xe7   :  { %3635 = vmatprep.subr.bf16.mxu1 %v11950_v40  ;;  %v14468_v40 = vpack.c.bf16 %v86_v29, %v70_v28  ;;  %v12019_v26 = vld [vmem:[%s18377_s5 + $0x4c] ss:$16 sps:$4 sm:$0xff]   ;;  %v12020_v27 = vld [vmem:[%s18377_s5 + $0x248] ss:$16 sps:$4 sm:$0xff]  }
  0xe8   :  { %18435 = vst [vmem:[#allocation13_spill] sm:$0xff] %v14466_v39  ;;  %v12025_v28 = vld [vmem:[%s18377_s5 + $0x2c] ss:$16 sps:$4 sm:$0xff]  }
  0xe9   :  { %3583 = vmatpush2.bf16.msra.mxu0 %v11945_v45  ;;  %18436 = vst [vmem:[#allocation14_spill] sm:$0xff] %v14468_v40  ;;  %v119_v45 = vld [vmem:[%s18431_s28 + $0x1f8] sm:$0xff] }
  0xea   :  { %3636 = vmatpush2.bf16.msra.mxu1 %v11948_v46  ;;  %3584 = vmatprep.subr.bf16.mxu0 %v11953_v50  ;;  %v11990_v46 = vld [vmem:[%s18377_s5 + $0x2e8] ss:$16 sps:$4 sm:$0xff]   ;;  %v11995_v50 = vld [vmem:[%s18377_s5 + $0xcc] ss:$16 sps:$4 sm:$0xff]  }
  0xeb   :  { %3637 = vmatprep.subr.bf16.mxu1 %v11956_v51  ;;  %v11998_v51 = vld [vmem:[%s18377_s5 + $0x2cc] ss:$16 sps:$4 sm:$0xff]  }
  0xec   :  { %v12028_v29 = vld [vmem:[%s18377_s5 + $0x22c] ss:$16 sps:$4 sm:$0xff]  }
  0xed   :  { %3585 = vmatpush2.bf16.msra.mxu0 %v11951_v52  ;;  %v11993_v52 = vld [vmem:[%s18377_s5 + $0xc8] ss:$16 sps:$4 sm:$0xff]  }
  0xee   :  { %3638 = vmatpush2.bf16.msra.mxu1 %v11954_v55  ;;  %3586 = vmatprep.subr.bf16.mxu0 %v11959_v56  ;;  %v11996_v55 = vld [vmem:[%s18377_s5 + $0x2c8] ss:$16 sps:$4 sm:$0xff]   ;;  %v14488_v56 = vpack.c.bf16 %v117_v36, %v101_v34  ;;  %v12031_v34 = vld [vmem:[%s18377_s5 + $0xc] ss:$16 sps:$4 sm:$0xff]  }
  0xef   :  { %3639 = vmatprep.subr.bf16.mxu1 %v11962_v57  ;;  %v100_v57 = vld [vmem:[%s18431_s28 + $0x160] sm:$0xff]  ;;  %v12029_v36 = vld [vmem:[%s18377_s5 + $0x8] ss:$16 sps:$4 sm:$0xff]  }
  0xf0   :  { %18437 = vst [vmem:[#allocation15_spill] sm:$0xff] %v14488_v56 }
  0xf1   :  { %3587 = vmatpush2.bf16.msra.mxu0 %v11957_v62  ;;  %v116_v62 = vld [vmem:[%s18431_s28 + $0x1e0] sm:$0xff] }
  0xf2   :  { %3640 = vmatpush2.bf16.msra.mxu1 %v11960_v1  ;;  %3588 = vmatprep.subr.bf16.mxu0 %v11965_v2  ;;  %v14496_v1 = vpack.c.bf16 %v119_v45, %v103_v38  ;;  %v102_v2 = vld [vmem:[%s18431_s28 + $0x170] sm:$0xff]  ;;  %v12032_v38 = vld [vmem:[%s18377_s5 + $0x208] ss:$16 sps:$4 sm:$0xff]   ;;  %v12037_v45 = vld [vmem:[%s18377_s5 + $0x1ec] ss:$16 sps:$4 sm:$0xff]  }
  0xf3   :  { %3641 = vmatprep.subr.bf16.mxu1 %v11968_v3  ;;  %v118_v3 = vld [vmem:[%s18431_s28 + $0x1f0] sm:$0xff] }
  0xf4   :  { %18438 = vst [vmem:[#allocation16_spill] sm:$0xff] %v14496_v1 }
  0xf5   :  { %3589 = vmatpush2.bf16.msra.mxu0 %v11963_v5  ;;  %v12001_v5 = vld [vmem:[%s18377_s5 + $0xac] ss:$16 sps:$4 sm:$0xff]  }
  0xf6   :  { %3642 = vmatpush2.bf16.msra.mxu1 %v11966_v6  ;;  %3590 = vmatprep.subr.bf16.mxu0 %v11971_v10  ;;  %v12004_v6 = vld [vmem:[%s18377_s5 + $0x2ac] ss:$16 sps:$4 sm:$0xff]   ;;  %v14514_v10 = vpack.c.bf16 %v116_v62, %v100_v57  ;;  %v12041_v57 = vld [vmem:[%s18377_s5 + $0x1c8] ss:$16 sps:$4 sm:$0xff]  }
  0xf7   :  { %3643 = vmatprep.subr.bf16.mxu1 %v11974_v11  ;;  %v11999_v11 = vld [vmem:[%s18377_s5 + $0xa8] ss:$16 sps:$4 sm:$0xff]  }
  0xf8   :  { %18439 = vst [vmem:[#allocation17_spill] sm:$0xff] %v14514_v10  ;;  %v12044_v62 = vld [vmem:[%s18377_s5 + $0x3c8] ss:$16 sps:$4 sm:$0xff]  }
  0xf9   :  { %3591 = vmatpush2.bf16.msra.mxu0 %v11969_v14  ;;  %v14519_v14 = vpack.c.bf16 %v118_v3, %v102_v2  ;;  %v12049_v2 = vld [vmem:[%s18377_s5 + $0x1ac] ss:$16 sps:$4 sm:$0xff]  }
  0xfa   :  { %3644 = vmatpush2.bf16.msra.mxu1 %v11972_v15  ;;  %3592 = vmatprep.subr.bf16.mxu0 %v11977_v16  ;;  %v12002_v15 = vld [vmem:[%s18377_s5 + $0x2a8] ss:$16 sps:$4 sm:$0xff]   ;;  %v12007_v16 = vld [vmem:[%s18377_s5 + $0x8c] ss:$16 sps:$4 sm:$0xff]  }
  0xfb   :  { %3645 = vmatprep.subr.bf16.mxu1 %v11980_v17  ;;  %18440 = vst [vmem:[#allocation18_spill] sm:$0xff] %v14519_v14  ;;  %v12010_v17 = vld [vmem:[%s18377_s5 + $0x28c] ss:$16 sps:$4 sm:$0xff]  }
  0xfc   :  { %v12052_v3 = vld [vmem:[%s18377_s5 + $0x3ac] ss:$16 sps:$4 sm:$0xff]  }
  0xfd   :  { %3593 = vmatpush2.bf16.msra.mxu0 %v11975_v18  ;;  %v12005_v18 = vld [vmem:[%s18377_s5 + $0x88] ss:$16 sps:$4 sm:$0xff]  }
  0xfe   :  { %3646 = vmatpush2.bf16.msra.mxu1 %v11978_v21  ;;  %3594 = vmatprep.subr.bf16.mxu0 %v11983_v22  ;;  %v12008_v21 = vld [vmem:[%s18377_s5 + $0x288] ss:$16 sps:$4 sm:$0xff]   ;;  %v12013_v22 = vld [vmem:[%s18377_s5 + $0x6c] ss:$16 sps:$4 sm:$0xff]  }
  0xff   :  { %3647 = vmatprep.subr.bf16.mxu1 %v11986_v23  ;;  %v12016_v23 = vld [vmem:[%s18377_s5 + $0x26c] ss:$16 sps:$4 sm:$0xff]  }
 0x101   :  { %3595 = vmatpush2.bf16.msra.mxu0 %v11981_v24  ;;  %v12011_v24 = vld [vmem:[%s18377_s5 + $0x68] ss:$16 sps:$4 sm:$0xff]  }
 0x102   :  { %3648 = vmatpush2.bf16.msra.mxu1 %v11984_v25  ;;  %3670 = vmatprep.subr.bf16.mxu0 %v11989_v30  ;;  %v12014_v25 = vld [vmem:[%s18377_s5 + $0x268] ss:$16 sps:$4 sm:$0xff]  }
 0x103   :  { %3723 = vmatprep.subr.bf16.mxu1 %v11992_v31  ;;  %v12023_v30 = vld [vmem:[%s18377_s5 + $0x28] ss:$16 sps:$4 sm:$0xff]  }
 0x104   :  { %3597 = vmatmul.mubr.bf16.vlgmr.msra.gmra.mxu0 %v14466_v39  ;;  %v12026_v31 = vld [vmem:[%s18377_s5 + $0x228] ss:$16 sps:$4 sm:$0xff]  }
 0x105   :  { %3650 = vmatmul.mubr.bf16.vlgmr.msra.gmra.mxu1 %v14468_v40  ;;  %3671 = vmatpush1.bf16.msra.mxu0 %v11987_v35  ;;  %v12034_v35 = vld [vmem:[%s18377_s5 + $0x20c] ss:$16 sps:$4 sm:$0xff]   ;;  %v12263_v39 = vld [vmem:[%s18377_s5 + $0x928] ss:$16 sps:$4 sm:$0xff]  }
 0x106   :  { %3724 = vmatpush1.bf16.msra.mxu1 %v11990_v46  ;;  %3672 = vmatprep.subr.bf16.mxu0 %v11995_v50  ;;  %v12040_v46 = vld [vmem:[%s18377_s5 + $0x3ec] ss:$16 sps:$4 sm:$0xff]   ;;  %v12035_v50 = vld [vmem:[%s18377_s5 + $0x1e8] ss:$16 sps:$4 sm:$0xff]  }
 0x107   :  { %3725 = vmatprep.subr.bf16.mxu1 %v11998_v51  ;;  %3606 = vmatprep.mubr.bf16.mxu0 %v14488_v56  ;;  %v12038_v51 = vld [vmem:[%s18377_s5 + $0x3e8] ss:$16 sps:$4 sm:$0xff]  }
 0x108   :  { %3659 = vmatprep.mubr.bf16.mxu1 %v14496_v1  ;;  %v12257_v1 = vld [vmem:[%s18377_s5 + $0x948] ss:$16 sps:$4 sm:$0xff]  }
 0x109   :  { %3673 = vmatpush1.bf16.msra.mxu0 %v11993_v52  ;;  %v12043_v52 = vld [vmem:[%s18377_s5 + $0x1cc] ss:$16 sps:$4 sm:$0xff]   ;;  %v12260_v56 = vld [vmem:[%s18377_s5 + $0xb48] ss:$16 sps:$4 sm:$0xff]  }
 0x10a   :  { %3726 = vmatpush1.bf16.msra.mxu1 %v11996_v55  ;;  %3674 = vmatprep.subr.bf16.mxu0 %v12001_v5  ;;  %v12046_v55 = vld [vmem:[%s18377_s5 + $0x3cc] ss:$16 sps:$4 sm:$0xff]   ;;  %v12047_v5 = vld [vmem:[%s18377_s5 + $0x1a8] ss:$16 sps:$4 sm:$0xff]  }
 0x10b   :  { %3727 = vmatprep.subr.bf16.mxu1 %v12004_v6  ;;  %v12050_v6 = vld [vmem:[%s18377_s5 + $0x3a8] ss:$16 sps:$4 sm:$0xff]  }
 0x10c   :  { %3607 = vmatmul.mubr.bf16.gmra.mxu0 %v14514_v10 }
 0x10d   :  { %3660 = vmatmul.mubr.bf16.gmra.mxu1 %v14519_v14  ;;  %3675 = vmatpush1.bf16.msra.mxu0 %v11999_v11  ;;  %v12055_v11 = vld [vmem:[%s18377_s5 + $0x18c] ss:$16 sps:$4 sm:$0xff]  }
 0x10e   :  { %3728 = vmatpush1.bf16.msra.mxu1 %v12002_v15  ;;  %3676 = vmatprep.subr.bf16.mxu0 %v12007_v16  ;;  %v12058_v15 = vld [vmem:[%s18377_s5 + $0x38c] ss:$16 sps:$4 sm:$0xff]   ;;  %v12053_v16 = vld [vmem:[%s18377_s5 + $0x188] ss:$16 sps:$4 sm:$0xff]  }
 0x10f   :  { %3729 = vmatprep.subr.bf16.mxu1 %v12010_v17  ;;  %3702 = vmatprep.mubr.bf16.mxu0 %v13593_v53  ;;  %v12022_v53 = vld [vmem:[%s18377_s5 + $0x24c] ss:$16 sps:$4 sm:$0xff]   ;;  %v12056_v17 = vld [vmem:[%s18377_s5 + $0x388] ss:$16 sps:$4 sm:$0xff]  }
 0x110   :  { %3755 = vmatprep.mubr.bf16.mxu1 %v13595_v54  ;;  %v12017_v54 = vld [vmem:[%s18377_s5 + $0x48] ss:$16 sps:$4 sm:$0xff]  }
 0x111   :  { %3677 = vmatpush1.bf16.msra.mxu0 %v12005_v18  ;;  %v12061_v18 = vld [vmem:[%s18377_s5 + $0x16c] ss:$16 sps:$4 sm:$0xff]  }
 0x112   :  { %3730 = vmatpush1.bf16.msra.mxu1 %v12008_v21  ;;  %3678 = vmatprep.subr.bf16.mxu0 %v12013_v22  ;;  %v12064_v21 = vld [vmem:[%s18377_s5 + $0x36c] ss:$16 sps:$4 sm:$0xff]   ;;  %v12059_v22 = vld [vmem:[%s18377_s5 + $0x168] ss:$16 sps:$4 sm:$0xff]  }
 0x113   :  { %3731 = vmatprep.subr.bf16.mxu1 %v12016_v23  ;;  %v12062_v23 = vld [vmem:[%s18377_s5 + $0x368] ss:$16 sps:$4 sm:$0xff]  }
 0x115   :  { %3679 = vmatpush1.bf16.msra.mxu0 %v12011_v24  ;;  %v12067_v24 = vld [vmem:[%s18377_s5 + $0x14c] ss:$16 sps:$4 sm:$0xff]  }
 0x116   :  { %3732 = vmatpush1.bf16.msra.mxu1 %v12014_v25  ;;  %3680 = vmatprep.subr.bf16.mxu0 %v12019_v26  ;;  %v12070_v25 = vld [vmem:[%s18377_s5 + $0x34c] ss:$16 sps:$4 sm:$0xff]   ;;  %v12065_v26 = vld [vmem:[%s18377_s5 + $0x148] ss:$16 sps:$4 sm:$0xff]  }
 0x117   :  { %3733 = vmatprep.subr.bf16.mxu1 %v12022_v53  ;;  %v12068_v53 = vld [vmem:[%s18377_s5 + $0x348] ss:$16 sps:$4 sm:$0xff]  }
 0x119   :  { %3681 = vmatpush1.bf16.msra.mxu0 %v12017_v54  ;;  %v12073_v54 = vld [vmem:[%s18377_s5 + $0x12c] ss:$16 sps:$4 sm:$0xff]  }
 0x11a   :  { %3734 = vmatpush1.bf16.msra.mxu1 %v12020_v27  ;;  %3682 = vmatprep.subr.bf16.mxu0 %v12025_v28  ;;  %v12076_v27 = vld [vmem:[%s18377_s5 + $0x32c] ss:$16 sps:$4 sm:$0xff]   ;;  %v12071_v28 = vld [vmem:[%s18377_s5 + $0x128] ss:$16 sps:$4 sm:$0xff]  }
 0x11b   :  { %3735 = vmatprep.subr.bf16.mxu1 %v12028_v29  ;;  %v12074_v29 = vld [vmem:[%s18377_s5 + $0x328] ss:$16 sps:$4 sm:$0xff]  }
 0x11d   :  { %3683 = vmatpush1.bf16.msra.mxu0 %v12023_v30  ;;  %v12079_v30 = vld [vmem:[%s18377_s5 + $0x10c] ss:$16 sps:$4 sm:$0xff]  }
 0x11e   :  { %3736 = vmatpush1.bf16.msra.mxu1 %v12026_v31  ;;  %3684 = vmatprep.subr.bf16.mxu0 %v12031_v34  ;;  %v12082_v31 = vld [vmem:[%s18377_s5 + $0x30c] ss:$16 sps:$4 sm:$0xff]   ;;  %v12077_v34 = vld [vmem:[%s18377_s5 + $0x108] ss:$16 sps:$4 sm:$0xff]  }
 0x11f   :  { %3737 = vmatprep.subr.bf16.mxu1 %v12034_v35  ;;  %v12080_v35 = vld [vmem:[%s18377_s5 + $0x308] ss:$16 sps:$4 sm:$0xff]  }
 0x121   :  { %3685 = vmatpush1.bf16.msra.mxu0 %v12029_v36  ;;  %v12085_v36 = vld [vmem:[%s18377_s5 + $0x4ec] ss:$16 sps:$4 sm:$0xff]  }
 0x122   :  { %3738 = vmatpush1.bf16.msra.mxu1 %v12032_v38  ;;  %3686 = vmatprep.subr.bf16.mxu0 %v12037_v45  ;;  %v12088_v38 = vld [vmem:[%s18377_s5 + $0x6ec] ss:$16 sps:$4 sm:$0xff]   ;;  %v12083_v45 = vld [vmem:[%s18377_s5 + $0x4e8] ss:$16 sps:$4 sm:$0xff]  }
 0x123   :  { %3739 = vmatprep.subr.bf16.mxu1 %v12040_v46  ;;  %v12086_v46 = vld [vmem:[%s18377_s5 + $0x6e8] ss:$16 sps:$4 sm:$0xff]  }
 0x125   :  { %3687 = vmatpush2.bf16.msra.mxu0 %v12035_v50  ;;  %v12091_v50 = vld [vmem:[%s18377_s5 + $0x4cc] ss:$16 sps:$4 sm:$0xff]  }
 0x126   :  { %3740 = vmatpush2.bf16.msra.mxu1 %v12038_v51  ;;  %3688 = vmatprep.subr.bf16.mxu0 %v12043_v52  ;;  %v12094_v51 = vld [vmem:[%s18377_s5 + $0x6cc] ss:$16 sps:$4 sm:$0xff]   ;;  %v12089_v52 = vld [vmem:[%s18377_s5 + $0x4c8] ss:$16 sps:$4 sm:$0xff]  }
 0x127   :  { %3741 = vmatprep.subr.bf16.mxu1 %v12046_v55  ;;  %v12092_v55 = vld [vmem:[%s18377_s5 + $0x6c8] ss:$16 sps:$4 sm:$0xff]  }
 0x129   :  { %3689 = vmatpush2.bf16.msra.mxu0 %v12041_v57  ;;  %v12097_v57 = vld [vmem:[%s18377_s5 + $0x4ac] ss:$16 sps:$4 sm:$0xff]  }
 0x12a   :  { %3742 = vmatpush2.bf16.msra.mxu1 %v12044_v62  ;;  %3690 = vmatprep.subr.bf16.mxu0 %v12049_v2  ;;  %v12100_v62 = vld [vmem:[%s18377_s5 + $0x6ac] ss:$16 sps:$4 sm:$0xff]   ;;  %v12095_v2 = vld [vmem:[%s18377_s5 + $0x4a8] ss:$16 sps:$4 sm:$0xff]  }
 0x12b   :  { %3743 = vmatprep.subr.bf16.mxu1 %v12052_v3  ;;  %v12106_v3 = vld [vmem:[%s18377_s5 + $0x68c] ss:$16 sps:$4 sm:$0xff]  }
 0x12d   :  { %3691 = vmatpush2.bf16.msra.mxu0 %v12047_v5  ;;  %v12101_v5 = vld [vmem:[%s18377_s5 + $0x488] ss:$16 sps:$4 sm:$0xff]  }
 0x12e   :  { %3744 = vmatpush2.bf16.msra.mxu1 %v12050_v6  ;;  %3692 = vmatprep.subr.bf16.mxu0 %v12055_v11  ;;  %v12112_v6 = vld [vmem:[%s18377_s5 + $0x66c] ss:$16 sps:$4 sm:$0xff]   ;;  %v12107_v11 = vld [vmem:[%s18377_s5 + $0x468] ss:$16 sps:$4 sm:$0xff]  }
 0x12f   :  { %3745 = vmatprep.subr.bf16.mxu1 %v12058_v15  ;;  %v12118_v15 = vld [vmem:[%s18377_s5 + $0x64c] ss:$16 sps:$4 sm:$0xff]  }
 0x131   :  { %3693 = vmatpush2.bf16.msra.mxu0 %v12053_v16  ;;  %v12113_v16 = vld [vmem:[%s18377_s5 + $0x448] ss:$16 sps:$4 sm:$0xff]  }
 0x132   :  { %3746 = vmatpush2.bf16.msra.mxu1 %v12056_v17  ;;  %3694 = vmatprep.subr.bf16.mxu0 %v12061_v18  ;;  %v12124_v17 = vld [vmem:[%s18377_s5 + $0x62c] ss:$16 sps:$4 sm:$0xff]   ;;  %v12119_v18 = vld [vmem:[%s18377_s5 + $0x428] ss:$16 sps:$4 sm:$0xff]  }
 0x133   :  { %3747 = vmatprep.subr.bf16.mxu1 %v12064_v21  ;;  %v12122_v21 = vld [vmem:[%s18377_s5 + $0x628] ss:$16 sps:$4 sm:$0xff]  }
 0x135   :  { %3695 = vmatpush2.bf16.msra.mxu0 %v12059_v22  ;;  %v12127_v22 = vld [vmem:[%s18377_s5 + $0x40c] ss:$16 sps:$4 sm:$0xff]  }
 0x136   :  { %3748 = vmatpush2.bf16.msra.mxu1 %v12062_v23  ;;  %3696 = vmatprep.subr.bf16.mxu0 %v12067_v24  ;;  %v12130_v23 = vld [vmem:[%s18377_s5 + $0x60c] ss:$16 sps:$4 sm:$0xff]   ;;  %v12125_v24 = vld [vmem:[%s18377_s5 + $0x408] ss:$16 sps:$4 sm:$0xff]  }
 0x137   :  { %3749 = vmatprep.subr.bf16.mxu1 %v12070_v25  ;;  %v12128_v25 = vld [vmem:[%s18377_s5 + $0x608] ss:$16 sps:$4 sm:$0xff]  }
 0x139   :  { %3697 = vmatpush2.bf16.msra.mxu0 %v12065_v26  ;;  %v12133_v26 = vld [vmem:[%s18377_s5 + $0x5ec] ss:$16 sps:$4 sm:$0xff]  }
 0x13a   :  { %3750 = vmatpush2.bf16.msra.mxu1 %v12068_v53  ;;  %3698 = vmatprep.subr.bf16.mxu0 %v12073_v54  ;;  %v12136_v53 = vld [vmem:[%s18377_s5 + $0x7ec] ss:$16 sps:$4 sm:$0xff]   ;;  %v12131_v54 = vld [vmem:[%s18377_s5 + $0x5e8] ss:$16 sps:$4 sm:$0xff]  }
 0x13b   :  { %3751 = vmatprep.subr.bf16.mxu1 %v12076_v27  ;;  %v12134_v27 = vld [vmem:[%s18377_s5 + $0x7e8] ss:$16 sps:$4 sm:$0xff]  }
 0x13d   :  { %3699 = vmatpush2.bf16.msra.mxu0 %v12071_v28  ;;  %v12139_v28 = vld [vmem:[%s18377_s5 + $0x5cc] ss:$16 sps:$4 sm:$0xff]  }
 0x13e   :  { %3752 = vmatpush2.bf16.msra.mxu1 %v12074_v29  ;;  %3700 = vmatprep.subr.bf16.mxu0 %v12079_v30  ;;  %v12142_v29 = vld [vmem:[%s18377_s5 + $0x7cc] ss:$16 sps:$4 sm:$0xff]   ;;  %v12137_v30 = vld [vmem:[%s18377_s5 + $0x5c8] ss:$16 sps:$4 sm:$0xff]  }
 0x13f   :  { %3753 = vmatprep.subr.bf16.mxu1 %v12082_v31  ;;  %v12140_v31 = vld [vmem:[%s18377_s5 + $0x7c8] ss:$16 sps:$4 sm:$0xff]  }
 0x141   :  { %3701 = vmatpush2.bf16.msra.mxu0 %v12077_v34  ;;  %v12145_v34 = vld [vmem:[%s18377_s5 + $0x5ac] ss:$16 sps:$4 sm:$0xff]  }
 0x142   :  { %3754 = vmatpush2.bf16.msra.mxu1 %v12080_v35  ;;  %3776 = vmatprep.subr.bf16.mxu0 %v12085_v36  ;;  %v12148_v35 = vld [vmem:[%s18377_s5 + $0x7ac] ss:$16 sps:$4 sm:$0xff]   ;;  %v12143_v36 = vld [vmem:[%s18377_s5 + $0x5a8] ss:$16 sps:$4 sm:$0xff]  }
 0x143   :  { %3829 = vmatprep.subr.bf16.mxu1 %v12088_v38  ;;  %v12146_v38 = vld [vmem:[%s18377_s5 + $0x7a8] ss:$16 sps:$4 sm:$0xff]  }
 0x144   :  { %3703 = vmatmul.mubr.bf16.vlgmr.msra.gmra.mxu0 %v13662_v12  ;;  %v12098_v12 = vld [vmem:[%s18377_s5 + $0x6a8] ss:$16 sps:$4 sm:$0xff]  }
 0x145   :  { %3756 = vmatmul.mubr.bf16.vlgmr.msra.gmra.mxu1 %v13664_v13  ;;  %3777 = vmatpush1.bf16.msra.mxu0 %v12083_v45  ;;  %v12103_v13 = vld [vmem:[%s18377_s5 + $0x48c] ss:$16 sps:$4 sm:$0xff]  }
 0x146   :  { %3830 = vmatpush1.bf16.msra.mxu1 %v12086_v46  ;;  %3778 = vmatprep.subr.bf16.mxu0 %v12091_v50  ;;  %v12151_v45 = vld [vmem:[%s18377_s5 + $0x58c] ss:$16 sps:$4 sm:$0xff]   ;;  %v14830_v50 = vpop.f32.mrf.mxu0 }
 0x147   :  { %3831 = vmatprep.subr.bf16.mxu1 %v12094_v51  ;;  %3712 = vmatprep.mubr.bf16.mxu0 %v13737_v37  ;;  %v12104_v37 = vld [vmem:[%s18377_s5 + $0x688] ss:$16 sps:$4 sm:$0xff]   ;;  %v12154_v46 = vld [vmem:[%s18377_s5 + $0x78c] ss:$16 sps:$4 sm:$0xff]  }
 0x148   :  { %3765 = vmatprep.mubr.bf16.mxu1 %v13753_v43  ;;  %v12109_v43 = vld [vmem:[%s18377_s5 + $0x46c] ss:$16 sps:$4 sm:$0xff]   ;;  %v12149_v51 = vld [vmem:[%s18377_s5 + $0x588] ss:$16 sps:$4 sm:$0xff]  }
 0x149   :  { %3779 = vmatpush1.bf16.msra.mxu0 %v12089_v52  ;;  %v12152_v52 = vld [vmem:[%s18377_s5 + $0x788] ss:$16 sps:$4 sm:$0xff]  }
 0x14a   :  { %3832 = vmatpush1.bf16.msra.mxu1 %v12092_v55  ;;  %3780 = vmatprep.subr.bf16.mxu0 %v12097_v57  ;;  %v12157_v55 = vld [vmem:[%s18377_s5 + $0x56c] ss:$16 sps:$4 sm:$0xff]  }
 0x14b   :  { %3833 = vmatprep.subr.bf16.mxu1 %v12100_v62  ;;  %v12160_v57 = vld [vmem:[%s18377_s5 + $0x76c] ss:$16 sps:$4 sm:$0xff]   ;;  %v14844_v62 = vpop.f32.mrf.mxu1 }
 0x14c   :  { %3713 = vmatmul.mubr.bf16.gmra.mxu0 %v13751_v42  ;;  %v12110_v42 = vld [vmem:[%s18377_s5 + $0x668] ss:$16 sps:$4 sm:$0xff]  }
 0x14d   :  { %3766 = vmatmul.mubr.bf16.gmra.mxu1 %v13773_v49  ;;  %3781 = vmatpush1.bf16.msra.mxu0 %v12095_v2  ;;  %v12115_v49 = vld [vmem:[%s18377_s5 + $0x44c] ss:$16 sps:$4 sm:$0xff]   ;;  %v14846_v2 = vpop.f32.mrf.mxu0 }
 0x14e   :  { %3834 = vmatpush1.bf16.msra.mxu1 %v12098_v12  ;;  %3782 = vmatprep.subr.bf16.mxu0 %v12103_v13  ;;  %v12155_v12 = vld [vmem:[%s18377_s5 + $0x568] ss:$16 sps:$4 sm:$0xff]  }
 0x14f   :  { %3835 = vmatprep.subr.bf16.mxu1 %v12106_v3  ;;  %3808 = vmatprep.mubr.bf16.mxu0 %v13809_v63  ;;  %v12116_v63 = vld [vmem:[%s18377_s5 + $0x648] ss:$16 sps:$4 sm:$0xff]   ;;  %v12163_v3 = vld [vmem:[%s18377_s5 + $0x54c] ss:$16 sps:$4 sm:$0xff]  }
 0x150   :  { %3861 = vmatprep.mubr.bf16.mxu1 %v13811_v0  ;;  %v12121_v0 = vld [vmem:[%s18377_s5 + $0x42c] ss:$16 sps:$4 sm:$0xff]   ;;  %v12158_v13 = vld [vmem:[%s18377_s5 + $0x768] ss:$16 sps:$4 sm:$0xff]  }
 0x151   :  { %3783 = vmatpush1.bf16.msra.mxu0 %v12101_v5  ;;  %v12166_v5 = vld [vmem:[%s18377_s5 + $0x74c] ss:$16 sps:$4 sm:$0xff]  }
 0x152   :  { %3836 = vmatpush1.bf16.msra.mxu1 %v12104_v37  ;;  %3784 = vmatprep.subr.bf16.mxu0 %v12109_v43  ;;  %v14860_v37 = vpop.f32.mrf.mxu1  ;;  %v14862_v43 = vpop.f32.mrf.mxu0 }
 0x153   :  { %3837 = vmatprep.subr.bf16.mxu1 %v12112_v6  ;;  %v12161_v6 = vld [vmem:[%s18377_s5 + $0x548] ss:$16 sps:$4 sm:$0xff]  }
 0x155   :  { %3785 = vmatpush1.bf16.msra.mxu0 %v12107_v11  ;;  %v12164_v11 = vld [vmem:[%s18377_s5 + $0x748] ss:$16 sps:$4 sm:$0xff]  }
 0x156   :  { %3838 = vmatpush1.bf16.msra.mxu1 %v12110_v42  ;;  %3786 = vmatprep.subr.bf16.mxu0 %v12115_v49  ;;  %v12169_v42 = vld [vmem:[%s18377_s5 + $0x52c] ss:$16 sps:$4 sm:$0xff]  }
 0x157   :  { %3839 = vmatprep.subr.bf16.mxu1 %v12118_v15  ;;  %v12172_v49 = vld [vmem:[%s18377_s5 + $0x72c] ss:$16 sps:$4 sm:$0xff]   ;;  %v14876_v15 = vpop.f32.mrf.mxu1 }
 0x159   :  { %3787 = vmatpush1.bf16.msra.mxu0 %v12113_v16  ;;  %v14878_v16 = vpop.f32.mrf.mxu0 }
 0x15a   :  { %3840 = vmatpush1.bf16.msra.mxu1 %v12116_v63  ;;  %3788 = vmatprep.subr.bf16.mxu0 %v12121_v0  ;;  %v12167_v63 = vld [vmem:[%s18377_s5 + $0x528] ss:$16 sps:$4 sm:$0xff]  }
 0x15b   :  { %3841 = vmatprep.subr.bf16.mxu1 %v12124_v17  ;;  %v12170_v0 = vld [vmem:[%s18377_s5 + $0x728] ss:$16 sps:$4 sm:$0xff]   ;;  %v14886_v17 = vpop.f32.mrf.mxu0 }
 0x15d   :  { %3789 = vmatpush1.bf16.msra.mxu0 %v12119_v18  ;;  %v12175_v18 = vld [vmem:[%s18377_s5 + $0x50c] ss:$16 sps:$4 sm:$0xff]  }
 0x15e   :  { %3842 = vmatpush1.bf16.msra.mxu1 %v12122_v21  ;;  %3790 = vmatprep.subr.bf16.mxu0 %v12127_v22  ;;  %v12178_v21 = vld [vmem:[%s18377_s5 + $0x70c] ss:$16 sps:$4 sm:$0xff]   ;;  %v14894_v22 = vpop.f32.mrf.mxu1 }
 0x15f   :  { %3843 = vmatprep.subr.bf16.mxu1 %v12130_v23  ;;  %v12173_v23 = vld [vmem:[%s18377_s5 + $0x508] ss:$16 sps:$4 sm:$0xff]  }
 0x161   :  { %3791 = vmatpush1.bf16.msra.mxu0 %v12125_v24  ;;  %v12176_v24 = vld [vmem:[%s18377_s5 + $0x708] ss:$16 sps:$4 sm:$0xff]  }
 0x162   :  { %3844 = vmatpush1.bf16.msra.mxu1 %v12128_v25  ;;  %3792 = vmatprep.subr.bf16.mxu0 %v12133_v26  ;;  %v14902_v25 = vpop.f32.mrf.mxu0  ;;  %v14904_v26 = vpop.f32.mrf.mxu1 }
 0x163   :  { %3845 = vmatprep.subr.bf16.mxu1 %v12136_v53  ;;  %v12181_v53 = vld [vmem:[%s18377_s5 + $0x8ec] ss:$16 sps:$4 sm:$0xff]  }
 0x165   :  { %3793 = vmatpush2.bf16.msra.mxu0 %v12131_v54  ;;  %v12184_v54 = vld [vmem:[%s18377_s5 + $0xaec] ss:$16 sps:$4 sm:$0xff]  }
 0x166   :  { %3846 = vmatpush2.bf16.msra.mxu1 %v12134_v27  ;;  %3794 = vmatprep.subr.bf16.mxu0 %v12139_v28  ;;  %v12179_v27 = vld [vmem:[%s18377_s5 + $0x8e8] ss:$16 sps:$4 sm:$0xff]  }
 0x167   :  { %3847 = vmatprep.subr.bf16.mxu1 %v12142_v29  ;;  %v12182_v28 = vld [vmem:[%s18377_s5 + $0xae8] ss:$16 sps:$4 sm:$0xff]   ;;  %v12187_v29 = vld [vmem:[%s18377_s5 + $0x8cc] ss:$16 sps:$4 sm:$0xff]  }
 0x169   :  { %3795 = vmatpush2.bf16.msra.mxu0 %v12137_v30  ;;  %v12190_v30 = vld [vmem:[%s18377_s5 + $0xacc] ss:$16 sps:$4 sm:$0xff]  }
 0x16a   :  { %3848 = vmatpush2.bf16.msra.mxu1 %v12140_v31  ;;  %3796 = vmatprep.subr.bf16.mxu0 %v12145_v34  ;;  %v14924_v31 = vpop.f32.mrf.mxu0  ;;  %v14926_v34 = vpop.f32.mrf.mxu1 }
 0x16b   :  { %3849 = vmatprep.subr.bf16.mxu1 %v12148_v35  ;;  %v12185_v35 = vld [vmem:[%s18377_s5 + $0x8c8] ss:$16 sps:$4 sm:$0xff]  }
 0x16d   :  { %3797 = vmatpush2.bf16.msra.mxu0 %v12143_v36  ;;  %v12188_v36 = vld [vmem:[%s18377_s5 + $0xac8] ss:$16 sps:$4 sm:$0xff]  }
 0x16e   :  { %3850 = vmatpush2.bf16.msra.mxu1 %v12146_v38  ;;  %3798 = vmatprep.subr.bf16.mxu0 %v12151_v45  ;;  %v12193_v38 = vld [vmem:[%s18377_s5 + $0x8ac] ss:$16 sps:$4 sm:$0xff]  }
 0x16f   :  { %3851 = vmatprep.subr.bf16.mxu1 %v12154_v46  ;;  %v12196_v45 = vld [vmem:[%s18377_s5 + $0xaac] ss:$16 sps:$4 sm:$0xff]   ;;  %v14942_v46 = vpop.f32.mrf.mxu0 }
 0x171   :  { %3799 = vmatpush2.bf16.msra.mxu0 %v12149_v51  ;;  %v14944_v51 = vpop.f32.mrf.mxu1 }
 0x172   :  { %3852 = vmatpush2.bf16.msra.mxu1 %v12152_v52  ;;  %3800 = vmatprep.subr.bf16.mxu0 %v12157_v55  ;;  %v14954_v52 = vpop.f32.mrf.mxu0  ;;  %v12199_v55 = vld [vmem:[%s18377_s5 + $0x88c] ss:$16 sps:$4 sm:$0xff]  }
 0x173   :  { %3853 = vmatprep.subr.bf16.mxu1 %v12160_v57  ;;  %v14962_v57 = vpop.f32.mrf.mxu1 }
 0x175   :  { %3801 = vmatpush2.bf16.msra.mxu0 %v12155_v12  ;;  %v14967_v12 = vpop.f32.mrf.mxu1 }
 0x176   :  { %3854 = vmatpush2.bf16.msra.mxu1 %v12158_v13  ;;  %3802 = vmatprep.subr.bf16.mxu0 %v12163_v3  ;;  %v14969_v13 = vpop.f32.mrf.mxu0  ;;  %v12200_v3 = vld [vmem:[%s18377_s5 + $0xa88] ss:$16 sps:$4 sm:$0xff]  }
 0x177   :  { %3855 = vmatprep.subr.bf16.mxu1 %v12166_v5  ;;  %v12205_v5 = vld [vmem:[%s18377_s5 + $0x86c] ss:$16 sps:$4 sm:$0xff]  }
 0x179   :  { %3803 = vmatpush2.bf16.msra.mxu0 %v12161_v6  ;;  %v12208_v6 = vld [vmem:[%s18377_s5 + $0xa6c] ss:$16 sps:$4 sm:$0xff]  }
 0x17a   :  { %3856 = vmatpush2.bf16.msra.mxu1 %v12164_v11  ;;  %3804 = vmatprep.subr.bf16.mxu0 %v12169_v42  ;;  %v14990_v11 = vpop.f32.mrf.mxu1  ;;  %v14992_v42 = vpop.f32.mrf.mxu0 }
 0x17b   :  { %3857 = vmatprep.subr.bf16.mxu1 %v12172_v49  ;;  %v12211_v49 = vld [vmem:[%s18377_s5 + $0x84c] ss:$16 sps:$4 sm:$0xff]  }
 0x17d   :  { %3805 = vmatpush2.bf16.msra.mxu0 %v12167_v63  ;;  %v12214_v63 = vld [vmem:[%s18377_s5 + $0xa4c] ss:$16 sps:$4 sm:$0xff]  }
 0x17e   :  { %3858 = vmatpush2.bf16.msra.mxu1 %v12170_v0  ;;  %3806 = vmatprep.subr.bf16.mxu0 %v12175_v18  ;;  %v15006_v0 = vpop.f32.mrf.mxu1  ;;  %v15008_v18 = vpop.f32.mrf.mxu0 }
 0x17f   :  { %3859 = vmatprep.subr.bf16.mxu1 %v12178_v21  ;;  %v12217_v21 = vld [vmem:[%s18377_s5 + $0x82c] ss:$16 sps:$4 sm:$0xff]  }
 0x181   :  { %3807 = vmatpush2.bf16.msra.mxu0 %v12173_v23  ;;  %v12220_v23 = vld [vmem:[%s18377_s5 + $0xa2c] ss:$16 sps:$4 sm:$0xff]  }
 0x182   :  { %3860 = vmatpush2.bf16.msra.mxu1 %v12176_v24  ;;  %3882 = vmatprep.subr.bf16.mxu0 %v12181_v53  ;;  %v12215_v24 = vld [vmem:[%s18377_s5 + $0x828] ss:$16 sps:$4 sm:$0xff]  }
 0x183   :  { %3935 = vmatprep.subr.bf16.mxu1 %v12184_v54  ;;  %v12218_v53 = vld [vmem:[%s18377_s5 + $0xa28] ss:$16 sps:$4 sm:$0xff]   ;;  %v15022_v54 = vpop.f32.mrf.mxu1 }
 0x184   :  { %3809 = vmatmul.mubr.bf16.vlgmr.msra.gmra.mxu0 %v13938_v47  ;;  %v12191_v47 = vld [vmem:[%s18377_s5 + $0x8a8] ss:$16 sps:$4 sm:$0xff]  }
 0x185   :  { %3862 = vmatmul.mubr.bf16.vlgmr.msra.gmra.mxu1 %v13940_v48  ;;  %3883 = vmatpush1.bf16.msra.mxu0 %v12179_v27  ;;  %v12194_v48 = vld [vmem:[%s18377_s5 + $0xaa8] ss:$16 sps:$4 sm:$0xff]   ;;  %v15024_v27 = vpop.f32.mrf.mxu0 }
 0x186   :  { %3936 = vmatpush1.bf16.msra.mxu1 %v12182_v28  ;;  %3884 = vmatprep.subr.bf16.mxu0 %v12187_v29  ;;  %v12223_v28 = vld [vmem:[%s18377_s5 + $0x80c] ss:$16 sps:$4 sm:$0xff]  }
 0x187   :  { %3937 = vmatprep.subr.bf16.mxu1 %v12190_v30  ;;  %3818 = vmatprep.mubr.bf16.mxu0 %v13960_v58  ;;  %v12202_v58 = vld [vmem:[%s18377_s5 + $0xa8c] ss:$16 sps:$4 sm:$0xff]   ;;  %v15032_v30 = vpop.f32.mrf.mxu1 }
 0x188   :  { %3871 = vmatprep.mubr.bf16.mxu1 %v13968_v61  ;;  %v12197_v61 = vld [vmem:[%s18377_s5 + $0x888] ss:$16 sps:$4 sm:$0xff]   ;;  %v12226_v29 = vld [vmem:[%s18377_s5 + $0xa0c] ss:$16 sps:$4 sm:$0xff]  }
 0x189   :  { %3885 = vmatpush1.bf16.msra.mxu0 %v12185_v35  ;;  %v12221_v35 = vld [vmem:[%s18377_s5 + $0x808] ss:$16 sps:$4 sm:$0xff]  }
 0x18a   :  { %3938 = vmatpush1.bf16.msra.mxu1 %v12188_v36  ;;  %3886 = vmatprep.subr.bf16.mxu0 %v12193_v38  ;;  %v12224_v36 = vld [vmem:[%s18377_s5 + $0xa08] ss:$16 sps:$4 sm:$0xff]   ;;  %v15040_v38 = vpop.f32.mrf.mxu0 }
 0x18b   :  { %3939 = vmatprep.subr.bf16.mxu1 %v12196_v45  ;;  %v12229_v45 = vld [vmem:[%s18377_s5 + $0x9ec] ss:$16 sps:$4 sm:$0xff]  }
 0x18c   :  { %3819 = vmatmul.mubr.bf16.gmra.mxu0 %v13986_v4  ;;  %v12203_v4 = vld [vmem:[%s18377_s5 + $0x868] ss:$16 sps:$4 sm:$0xff]  }
 0x18d   :  { %3872 = vmatmul.mubr.bf16.gmra.mxu1 %v13994_v7  ;;  %3887 = vmatpush1.bf16.msra.mxu0 %v12191_v47  ;;  %v12206_v7 = vld [vmem:[%s18377_s5 + $0xa68] ss:$16 sps:$4 sm:$0xff]   ;;  %v12232_v47 = vld [vmem:[%s18377_s5 + $0xbec] ss:$16 sps:$4 sm:$0xff]  }
 0x18e   :  { %3940 = vmatpush1.bf16.msra.mxu1 %v12194_v48  ;;  %3888 = vmatprep.subr.bf16.mxu0 %v12199_v55  ;;  %v15048_v48 = vpop.f32.mrf.mxu1  ;;  %v12227_v55 = vld [vmem:[%s18377_s5 + $0x9e8] ss:$16 sps:$4 sm:$0xff]  }
 0x18f   :  { %3941 = vmatprep.subr.bf16.mxu1 %v12202_v58  ;;  %3914 = vmatprep.mubr.bf16.mxu0 %v14025_v19  ;;  %v12209_v19 = vld [vmem:[%s18377_s5 + $0x848] ss:$16 sps:$4 sm:$0xff]   ;;  %v15053_v58 = vpop.f32.mrf.mxu0 }
 0x190   :  { %3967 = vmatprep.mubr.bf16.mxu1 %v14027_v20  ;;  %v12212_v20 = vld [vmem:[%s18377_s5 + $0xa48] ss:$16 sps:$4 sm:$0xff]  }
 0x191   :  { %3889 = vmatpush1.bf16.msra.mxu0 %v12197_v61  ;;  %v12230_v61 = vld [vmem:[%s18377_s5 + $0xbe8] ss:$16 sps:$4 sm:$0xff]  }
 0x192   :  { %3942 = vmatpush1.bf16.msra.mxu1 %v12200_v3  ;;  %3890 = vmatprep.subr.bf16.mxu0 %v12205_v5  ;;  %v12235_v3 = vld [vmem:[%s18377_s5 + $0x9cc] ss:$16 sps:$4 sm:$0xff]   ;;  %v15061_v5 = vpop.f32.mrf.mxu1 }
 0x193   :  { %3943 = vmatprep.subr.bf16.mxu1 %v12208_v6  ;;  %v12238_v6 = vld [vmem:[%s18377_s5 + $0xbcc] ss:$16 sps:$4 sm:$0xff]  }
 0x195   :  { %3891 = vmatpush1.bf16.msra.mxu0 %v12203_v4  ;;  %v18392_v4 = vlaneseq }
 0x196   :  { %3944 = vmatpush1.bf16.msra.mxu1 %v12206_v7  ;;  %3892 = vmatprep.subr.bf16.mxu0 %v12211_v49  ;;  %v12233_v7 = vld [vmem:[%s18377_s5 + $0x9c8] ss:$16 sps:$4 sm:$0xff]  }
 0x197   :  { %3945 = vmatprep.subr.bf16.mxu1 %v12214_v63  ;;  %v12236_v49 = vld [vmem:[%s18377_s5 + $0xbc8] ss:$16 sps:$4 sm:$0xff]   ;;  %v15072_v63 = vpop.f32.mrf.mxu0 }
 0x199   :  { %3893 = vmatpush1.bf16.msra.mxu0 %v12209_v19  ;;  %v12241_v19 = vld [vmem:[%s18377_s5 + $0x9ac] ss:$16 sps:$4 sm:$0xff]  }
 0x19a   :  { %3946 = vmatpush1.bf16.msra.mxu1 %v12212_v20  ;;  %3894 = vmatprep.subr.bf16.mxu0 %v12217_v21  ;;  %v15077_v20 = vpop.f32.mrf.mxu1  ;;  %v15079_v21 = vpop.f32.mrf.mxu0 }
 0x19b   :  { %3947 = vmatprep.subr.bf16.mxu1 %v12220_v23  ;;  %v12244_v23 = vld [vmem:[%s18377_s5 + $0xbac] ss:$16 sps:$4 sm:$0xff]  }
 0x19d   :  { %3895 = vmatpush1.bf16.msra.mxu0 %v12215_v24  ;;  %v15085_v24 = vshrl.u32 %v18392_v4, 7 }
 0x19e   :  { %3948 = vmatpush1.bf16.msra.mxu1 %v12218_v53  ;;  %3896 = vmatprep.subr.bf16.mxu0 %v12223_v28  ;;  %v12239_v53 = vld [vmem:[%s18377_s5 + $0x9a8] ss:$16 sps:$4 sm:$0xff]  }
 0x19f   :  { %3949 = vmatprep.subr.bf16.mxu1 %v12226_v29  ;;  %18441 = vst [vmem:[#allocation19_spill] sm:$0xff] %v15085_v24  ;;  %v12242_v28 = vld [vmem:[%s18377_s5 + $0xba8] ss:$16 sps:$4 sm:$0xff]   ;;  %v15093_v29 = vpop.f32.mrf.mxu1 }
 0x1a1   :  { %3897 = vmatpush1.bf16.msra.mxu0 %v12221_v35  ;;  %v12247_v35 = vld [vmem:[%s18377_s5 + $0x98c] ss:$16 sps:$4 sm:$0xff]  }
 0x1a2   :  { %3950 = vmatpush1.bf16.msra.mxu1 %v12224_v36  ;;  %3898 = vmatprep.subr.bf16.mxu0 %v12229_v45  ;;  %v664_v36 = vld [vmem:[%s18378_s6] sm:$0xf]  ;;  %v15101_v45 = vpop.f32.mrf.mxu0 }
 0x1a3   :  { %3951 = vmatprep.subr.bf16.mxu1 %v12232_v47  ;;  %v12250_v47 = vld [vmem:[%s18377_s5 + $0xb8c] ss:$16 sps:$4 sm:$0xff]  }
 0x1a5   :  { %3899 = vmatpush2.bf16.msra.mxu0 %v12227_v55  ;;  %v15107_v55 = vsub.s32 0, %v15085_v24 }
 0x1a6   :  { %3952 = vmatpush2.bf16.msra.mxu1 %v12230_v61  ;;  %3900 = vmatprep.subr.bf16.mxu0 %v12235_v3  ;;  %v12245_v61 = vld [vmem:[%s18377_s5 + $0x988] ss:$16 sps:$4 sm:$0xff]  }
 0x1a7   :  { %3953 = vmatprep.subr.bf16.mxu1 %v12238_v6  ;;  %18442 = vst [vmem:[#allocation20_spill] sm:$0xff] %v15107_v55  ;;  %v12248_v3 = vld [vmem:[%s18377_s5 + $0xb88] ss:$16 sps:$4 sm:$0xff]   ;;  %v15115_v6 = vpop.f32.mrf.mxu1  ;;  %v669_v4 = vrot.slane %v664_v36, %v15107_v55 }
 0x1a9   :  { %3901 = vmatpush2.bf16.msra.mxu0 %v12233_v7  ;;  %v15118_v7 = vsub.s32 1, %v15085_v24  ;;  %v12251_v24 = vld [vmem:[%s18377_s5 + $0x968] ss:$16 sps:$4 sm:$0xff]   ;;  %v3281_v10 = vadd.f32 %v14830_v50, %v669_v4 }
 0x1aa   :  { %3954 = vmatpush2.bf16.msra.mxu1 %v12236_v49  ;;  %3902 = vmatprep.subr.bf16.mxu0 %v12241_v19  ;;  %v12253_v49 = vld [vmem:[%s18377_s5 + $0x96c] ss:$16 sps:$4 sm:$0xff]   ;;  %v15123_v19 = vpop.f32.mrf.mxu0 }
 0x1ab   :  { %3955 = vmatprep.subr.bf16.mxu1 %v12244_v23  ;;  %18443 = vst [vmem:[#allocation21_spill] sm:$0xff] %v15118_v7  ;;  %v12256_v23 = vld [vmem:[%s18377_s5 + $0xb6c] ss:$16 sps:$4 sm:$0xff]   ;;  %v673_v55 = vrot.slane %v664_v36, %v15118_v7  ;;  %v3334_v7 = vadd.f32 %v14844_v62, %v3281_v10 }
 0x1ac   :  { %v15144_v14 = vpop.f32.mrf.mxu0  ;;  %v12265_v36 = vld [vmem:[%s18377_s5 + $0x92c] ss:$16 sps:$4 sm:$0xff]  }
 0x1ad   :  { %3903 = vmatpush2.bf16.msra.mxu0 %v12239_v53  ;;  %v12254_v53 = vld [vmem:[%s18377_s5 + $0xb68] ss:$16 sps:$4 sm:$0xff]   ;;  %v3283_v50 = vadd.f32 %v14846_v2, %v673_v55  ;;  %v3287_v10 = vadd.f32 %v14878_v16, %v673_v55  ;;  %v3387_v62 = vadd.f32 %v14954_v52, %v3334_v7  ;;  %v12277_v16 = vld [vmem:[%s18377_s5 + $0xcec] ss:$16 sps:$4 sm:$0xff]  }
 0x1ae   :  { %3956 = vmatpush2.bf16.msra.mxu1 %v12242_v28  ;;  %3904 = vmatprep.subr.bf16.mxu0 %v12247_v35  ;;  %v15135_v28 = vpop.f32.mrf.mxu1  ;;  %v12259_v35 = vld [vmem:[%s18377_s5 + $0x94c] ss:$16 sps:$4 sm:$0xff]   ;;  %v12266_v2 = vld [vmem:[%s18377_s5 + $0xb28] ss:$16 sps:$4 sm:$0xff]  }
 0x1af   :  { %3957 = vmatprep.subr.bf16.mxu1 %v12250_v47  ;;  %v12262_v47 = vld [vmem:[%s18377_s5 + $0xb4c] ss:$16 sps:$4 sm:$0xff]   ;;  %v3340_v52 = vadd.f32 %v14894_v22, %v3287_v10 }
 0x1b0   :  { %v15153_v40 = vpop.f32.mrf.mxu1 }
 0x1b1   :  { %3905 = vmatpush2.bf16.msra.mxu0 %v12245_v61  ;;  %v12268_v61 = vld [vmem:[%s18377_s5 + $0xb2c] ss:$16 sps:$4 sm:$0xff]  }
 0x1b2   :  { %3958 = vmatpush2.bf16.msra.mxu1 %v12248_v3  ;;  %3906 = vmatprep.subr.bf16.mxu0 %v12253_v49  ;;  %v3285_v3 = vadd.f32 %v14862_v43, %v669_v4  ;;  %v15163_v49 = vpop.f32.mrf.mxu0  ;;  %v12271_v43 = vld [vmem:[%s18377_s5 + $0x90c] ss:$16 sps:$4 sm:$0xff]  }
 0x1b3   :  { %3959 = vmatprep.subr.bf16.mxu1 %v12256_v23  ;;  %v15165_v23 = vpop.f32.mrf.mxu1 }
 0x1b4   :  { %v15185_v9 = vpop.f32.mrf.mxu0 }
 0x1b5   :  { %3907 = vmatpush2.bf16.msra.mxu0 %v12251_v24  ;;  %v12274_v24 = vld [vmem:[%s18377_s5 + $0xb0c] ss:$16 sps:$4 sm:$0xff]   ;;  %v15187_v8 = vpop.f32.mrf.mxu1 }
 0x1b6   :  { %3960 = vmatpush2.bf16.msra.mxu1 %v12254_v53  ;;  %3908 = vmatprep.subr.bf16.mxu0 %v12259_v35  ;;  %v3336_v53 = vadd.f32 %v14860_v37, %v3283_v50  ;;  %v3338_v35 = vadd.f32 %v14876_v15, %v3285_v3  ;;  %v12269_v37 = vld [vmem:[%s18377_s5 + $0x908] ss:$16 sps:$4 sm:$0xff]   ;;  %v3393_v50 = vadd.f32 %v15008_v18, %v3340_v52  ;;  %v12286_v18 = vld [vmem:[%s18377_s5 + $0xecc] ss:$16 sps:$4 sm:$0xff]  }
 0x1b7   :  { %3961 = vmatprep.subr.bf16.mxu1 %v12262_v47  ;;  %v3291_v47 = vadd.f32 %v14886_v17, %v669_v4  ;;  %v12280_v17 = vld [vmem:[%s18377_s5 + $0xeec] ss:$16 sps:$4 sm:$0xff]  }
 0x1b8   :  { %v3389_v60 = vadd.f32 %v14969_v13, %v3336_v53  ;;  %v3391_v15 = vadd.f32 %v14992_v42, %v3338_v35  ;;  %v3440_v13 = vadd.f32 %v14967_v12, %v3387_v62  ;;  %v15210_v42 = vpop.f32.mrf.mxu1  ;;  %v3297_v12 = vadd.f32 %v14942_v46, %v673_v55 }
 0x1b9   :  { %3909 = vmatpush2.bf16.msra.mxu0 %v12257_v1  ;;  %v3293_v1 = vadd.f32 %v14902_v25, %v673_v55  ;;  %v3344_v7 = vadd.f32 %v14904_v26, %v3291_v47  ;;  %v3295_v25 = vadd.f32 %v14924_v31, %v669_v4  ;;  %v12278_v26 = vld [vmem:[%s18377_s5 + $0xee8] ss:$16 sps:$4 sm:$0xff]   ;;  %v3446_v3 = vadd.f32 %v15022_v54, %v3393_v50  ;;  %v12289_v54 = vld [vmem:[%s18377_s5 + $0xcac] ss:$16 sps:$4 sm:$0xff]   ;;  %v18444_v50 = vld [vmem:[#allocation10_spill] sm:$0xff] }
 0x1ba   :  { %3962 = vmatpush2.bf16.msra.mxu1 %v12260_v56  ;;  %3910 = vmatprep.subr.bf16.mxu0 %v12265_v36  ;;  %v12272_v56 = vld [vmem:[%s18377_s5 + $0xb08] ss:$16 sps:$4 sm:$0xff]   ;;  %v15208_v36 = vpop.f32.mrf.mxu0  ;;  %v3493_v22 = vadd.f32 %v15079_v21, %v3440_v13  ;;  %v3444_v4 = vadd.f32 %v15006_v0, %v3391_v15 }
 0x1bb   :  { %3963 = vmatprep.subr.bf16.mxu1 %v12268_v61  ;;  %v3442_v61 = vadd.f32 %v14990_v11, %v3389_v60  ;;  %v3346_v31 = vadd.f32 %v14926_v34, %v3293_v1  ;;  %v3397_v60 = vadd.f32 %v15024_v27, %v3344_v7  ;;  %v12283_v11 = vld [vmem:[%s18377_s5 + $0xccc] ss:$16 sps:$4 sm:$0xff]   ;;  %v3348_v34 = vadd.f32 %v14944_v51, %v3295_v25  ;;  %v15237_v27 = vpop.f32.mrf.mxu1  ;;  %v12284_v51 = vld [vmem:[%s18377_s5 + $0xec8] ss:$16 sps:$4 sm:$0xff]  }
 0x1bc   :  { %v3497_v0 = vadd.f32 %v15123_v19, %v3444_v4  ;;  %v15235_v55 = vpop.f32.mrf.mxu0  ;;  %v12298_v1 = vld [vmem:[%s18377_s5 + $0xe8c] ss:$16 sps:$4 sm:$0xff]   ;;  %v12296_v25 = vld [vmem:[%s18377_s5 + $0xe88] ss:$16 sps:$4 sm:$0xff]  }
 0x1bd   :  { %3911 = vmatpush2.bf16.msra.mxu0 %v12263_v39  ;;  %v12275_v39 = vld [vmem:[%s18377_s5 + $0xce8] ss:$16 sps:$4 sm:$0xff]   ;;  %v3495_v21 = vadd.f32 %v15101_v45, %v3442_v61  ;;  %v3399_v46 = vadd.f32 %v15040_v38, %v3346_v31  ;;  %v3350_v38 = vadd.f32 %v14962_v57, %v3297_v12  ;;  %v3450_v19 = vadd.f32 %v15032_v30, %v3397_v60 }
 0x1be   :  { %3964 = vmatpush2.bf16.msra.mxu1 %v12266_v2  ;;  %3912 = vmatprep.subr.bf16.mxu0 %v12271_v43  ;;  %v3546_v2 = vadd.f32 %v15093_v29, %v3493_v22  ;;  %v12281_v45 = vld [vmem:[%s18377_s5 + $0xcc8] ss:$16 sps:$4 sm:$0xff]   ;;  %v3401_v43 = vadd.f32 %v15053_v58, %v3348_v34  ;;  %v12292_v29 = vld [vmem:[%s18377_s5 + $0xeac] ss:$16 sps:$4 sm:$0xff]   ;;  %v3499_v30 = vadd.f32 %v15144_v14, %v3446_v3 }
 0x1bf   :  { %3965 = vmatprep.subr.bf16.mxu1 %v12274_v24  ;;  %v3548_v57 = vadd.f32 %v15115_v6, %v3495_v21  ;;  %v3452_v58 = vadd.f32 %v15048_v48, %v3399_v46  ;;  %v3503_v47 = vadd.f32 %v15163_v49, %v3450_v19  ;;  %v12287_v14 = vld [vmem:[%s18377_s5 + $0xca8] ss:$16 sps:$4 sm:$0xff]   ;;  %v12301_v22 = vld [vmem:[%s18377_s5 + $0xc6c] ss:$16 sps:$4 sm:$0xff]  }
 0x1c0   :  { %v12290_v48 = vld [vmem:[%s18377_s5 + $0xea8] ss:$16 sps:$4 sm:$0xff]   ;;  %v3552_v15 = vadd.f32 %v15153_v40, %v3499_v30  ;;  %v12310_v3 = vld [vmem:[%s18377_s5 + $0xe4c] ss:$16 sps:$4 sm:$0xff]  }
 0x1c1   :  { %3913 = vmatpush2.bf16.msra.mxu0 %v12269_v37  ;;  %v3556_v52 = vadd.f32 %v15165_v23, %v3503_v47  ;;  %v12302_v21 = vld [vmem:[%s18377_s5 + $0xe68] ss:$16 sps:$4 sm:$0xff]   ;;  %v12328_v47 = vld [vmem:[%s18377_s5 + $0xfec] ss:$16 sps:$4 sm:$0xff]  }
 0x1c2   :  { %3966 = vmatpush2.bf16.msra.mxu1 %v12272_v56  ;;  %3988 = vmatprep.subr.bf16.mxu0 %v12277_v16  ;;  %v18445_v34 = vld [vmem:[#allocation11_spill] sm:$0xff] }
 0x1c3   :  { %4041 = vmatprep.subr.bf16.mxu1 %v12280_v17  ;;  %v12311_v30 = vld [vmem:[%s18377_s5 + $0xc28] ss:$16 sps:$4 sm:$0xff]  }
 0x1c4   :  { %v3598_v24 = vpop.f32.mrf.mxu0  ;;  %3915 = vmatmul.mubr.bf16.vlgmr.msra.gmra.mxu0 %v14202_v32  ;;  %v3403_v32 = vadd.f32 %v15072_v63, %v3350_v38  ;;  %v3454_v63 = vadd.f32 %v15061_v5, %v3401_v43 }
 0x1c5   :  { %v3651_v53 = vpop.f32.mrf.mxu1  ;;  %3968 = vmatmul.mubr.bf16.vlgmr.msra.gmra.mxu1 %v14204_v33  ;;  %v3599_v10 = vadd.f32 %v3598_v24, %v3546_v2  ;;  %3989 = vmatpush1.bf16.msra.mxu0 %v12275_v39  ;;  %v3550_v33 = vadd.f32 %v15135_v28, %v3497_v0  ;;  %v3505_v28 = vadd.f32 %v15185_v9, %v3452_v58  ;;  %v12304_v39 = vld [vmem:[%s18377_s5 + $0xe6c] ss:$16 sps:$4 sm:$0xff]   ;;  %v12305_v24 = vld [vmem:[%s18377_s5 + $0xc48] ss:$16 sps:$4 sm:$0xff]  }
 0x1c6   :  { %4042 = vmatpush1.bf16.msra.mxu1 %v12278_v26  ;;  %v3600_v62 = vpop.f32.mrf.mxu0  ;;  %3990 = vmatprep.subr.bf16.mxu0 %v12283_v11  ;;  %v3456_v5 = vadd.f32 %v15077_v20, %v3403_v32  ;;  %v3507_v40 = vadd.f32 %v15208_v36, %v3454_v63  ;;  %v12293_v20 = vld [vmem:[%s18377_s5 + $0xc88] ss:$16 sps:$4 sm:$0xff]   ;;  %v12319_v58 = vld [vmem:[%s18377_s5 + $0xc0c] ss:$16 sps:$4 sm:$0xff]  }
 0x1c7   :  { %v3653_v35 = vpop.f32.mrf.mxu1  ;;  %4043 = vmatprep.subr.bf16.mxu1 %v12286_v18  ;;  %v15264_v37 = vadd.f32 %v3651_v53, %v3599_v10  ;;  %v3601_v6 = vadd.f32 %v3600_v62, %v3548_v57  ;;  %3924 = vmatprep.mubr.bf16.mxu0 %v14224_v41  ;;  %v12295_v41 = vld [vmem:[%s18377_s5 + $0xc8c] ss:$16 sps:$4 sm:$0xff]   ;;  %v3558_v23 = vadd.f32 %v15187_v8, %v3505_v28  ;;  %v12299_v18 = vld [vmem:[%s18377_s5 + $0xc68] ss:$16 sps:$4 sm:$0xff]  }
 0x1c8   :  { %3977 = vmatprep.mubr.bf16.mxu1 %v14226_v44  ;;  %v3602_v49 = vpop.f32.mrf.mxu0  ;;  %v3509_v26 = vadd.f32 %v15235_v55, %v3456_v5  ;;  %v3560_v4 = vadd.f32 %v15210_v42, %v3507_v40  ;;  %v18446_v42 = vld [vmem:[#allocation12_spill] sm:$0xff]  ;;  %v12307_v55 = vld [vmem:[%s18377_s5 + $0xc4c] ss:$16 sps:$4 sm:$0xff]   ;;  %v12308_v53 = vld [vmem:[%s18377_s5 + $0xe48] ss:$16 sps:$4 sm:$0xff]  }
 0x1c9   :  { %v3655_v56 = vpop.f32.mrf.mxu1  ;;  %10213 = vst [vmem:[#allocation5] sm:$0xff] %v15264_v37  ;;  %10229 = vst [vmem:[#allocation3] sm:$0xff] %v15264_v37  ;;  %v15286_v44 = vadd.f32 %v3653_v35, %v3601_v6  ;;  %v3603_v9 = vadd.f32 %v3602_v49, %v3550_v33  ;;  %3991 = vmatpush1.bf16.msra.mxu0 %v12281_v45  ;;  %v12314_v10 = vld [vmem:[%s18377_s5 + $0xe28] ss:$16 sps:$4 sm:$0xff]   ;;  %v12322_v32 = vld [vmem:[%s18377_s5 + $0xe0c] ss:$16 sps:$4 sm:$0xff]  }
 0x1ca   :  { %10325 = vst [vmem:[#allocation7] sm:$0xff] %v15264_v37  ;;  %4044 = vmatpush1.bf16.msra.mxu1 %v12284_v51  ;;  %v3604_v16 = vpop.f32.mrf.mxu0  ;;  %3992 = vmatprep.subr.bf16.mxu0 %v12289_v54  ;;  %v3562_v2 = vadd.f32 %v15237_v27, %v3509_v26  ;;  %v12313_v54 = vld [vmem:[%s18377_s5 + $0xc2c] ss:$16 sps:$4 sm:$0xff]   ;;  %v12317_v33 = vld [vmem:[%s18377_s5 + $0xc08] ss:$16 sps:$4 sm:$0xff]  }
 0x1cb   :  { %v3657_v17 = vpop.f32.mrf.mxu1  ;;  %4045 = vmatprep.subr.bf16.mxu1 %v12292_v29  ;;  %10214 = vst [vmem:[#allocation5 + $0x8] sm:$0xff] %v15286_v44  ;;  %10230 = vst [vmem:[#allocation3 + $0x8] sm:$0xff] %v15286_v44  ;;  %v15294_v13 = vadd.f32 %v3655_v56, %v3603_v9  ;;  %v3605_v7 = vadd.f32 %v3604_v16, %v3552_v15  ;;  %v12316_v29 = vld [vmem:[%s18377_s5 + $0xe2c] ss:$16 sps:$4 sm:$0xff]   ;;  %v12320_v62 = vld [vmem:[%s18377_s5 + $0xe08] ss:$16 sps:$4 sm:$0xff]  }
 0x1cc   :  { %10326 = vst [vmem:[#allocation7 + $0x8] sm:$0xff] %v15286_v44  ;;  %v3608_v36 = vpop.f32.mrf.mxu0  ;;  %3925 = vmatmul.mubr.bf16.gmra.mxu0 %v14256_v59  ;;  %v12325_v35 = vld [vmem:[%s18377_s5 + $0xdec] ss:$16 sps:$4 sm:$0xff]   ;;  %v12323_v6 = vld [vmem:[%s18377_s5 + $0xde8] ss:$16 sps:$4 sm:$0xff]  }
 0x1cd   :  { %v3661_v61 = vpop.f32.mrf.mxu1  ;;  %3978 = vmatmul.mubr.bf16.gmra.mxu1 %v18444_v50  ;;  %10217 = vst [vmem:[#allocation5 + $0x20] sm:$0xff] %v15294_v13  ;;  %10233 = vst [vmem:[#allocation3 + $0x80] sm:$0xff] %v15294_v13  ;;  %v15315_v59 = vadd.f32 %v3657_v17, %v3605_v7  ;;  %v3609_v8 = vadd.f32 %v3608_v36, %v3556_v52  ;;  %3993 = vmatpush1.bf16.msra.mxu0 %v12287_v14  ;;  %v12326_v14 = vld [vmem:[%s18377_s5 + $0xfe8] ss:$16 sps:$4 sm:$0xff]   ;;  %v12334_v63 = vld [vmem:[%s18377_s5 + $0xfcc] ss:$16 sps:$4 sm:$0xff]  }
 0x1ce   :  { %10329 = vst [vmem:[#allocation7 + $0x80] sm:$0xff] %v15294_v13  ;;  %4046 = vmatpush1.bf16.msra.mxu1 %v12290_v48  ;;  %v3610_v31 = vpop.f32.mrf.mxu0  ;;  %3994 = vmatprep.subr.bf16.mxu0 %v12295_v41  ;;  %v12331_v48 = vld [vmem:[%s18377_s5 + $0xdcc] ss:$16 sps:$4 sm:$0xff]   ;;  %v12329_v28 = vld [vmem:[%s18377_s5 + $0xdc8] ss:$16 sps:$4 sm:$0xff]  }
 0x1cf   :  { %v3663_v12 = vpop.f32.mrf.mxu1  ;;  %4047 = vmatprep.subr.bf16.mxu1 %v12298_v1  ;;  %10218 = vst [vmem:[#allocation5 + $0x28] sm:$0xff] %v15315_v59  ;;  %10234 = vst [vmem:[#allocation3 + $0x88] sm:$0xff] %v15315_v59  ;;  %v3611_v60 = vadd.f32 %v3610_v31, %v3558_v23  ;;  %v15321_v11 = vadd.f32 %v3661_v61, %v3609_v8  ;;  %4020 = vmatprep.mubr.bf16.mxu0 %v18445_v34  ;;  %v12332_v49 = vld [vmem:[%s18377_s5 + $0xfc8] ss:$16 sps:$4 sm:$0xff]   ;;  %v12337_v56 = vld [vmem:[%s18377_s5 + $0xdac] ss:$16 sps:$4 sm:$0xff]  }
 0x1d0   :  { %10330 = vst [vmem:[#allocation7 + $0x88] sm:$0xff] %v15315_v59  ;;  %4073 = vmatprep.mubr.bf16.mxu1 %v18446_v42  ;;  %v3612_v46 = vpop.f32.mrf.mxu0  ;;  %v12340_v41 = vld [vmem:[%s18377_s5 + $0xfac] ss:$16 sps:$4 sm:$0xff]   ;;  %v12335_v1 = vld [vmem:[%s18377_s5 + $0xda8] ss:$16 sps:$4 sm:$0xff]   ;;  %v18449_v42 = vld [vmem:[#allocation14_spill] sm:$0xff] }
 0x1d1   :  { %v3665_v0 = vpop.f32.mrf.mxu1  ;;  %10221 = vst [vmem:[#allocation5 + $0x40] sm:$0xff] %v15321_v11  ;;  %10237 = vst [vmem:[#allocation3 + $0x100] sm:$0xff] %v15321_v11  ;;  %v3613_v45 = vadd.f32 %v3612_v46, %v3560_v4  ;;  %v15341_v51 = vadd.f32 %v3663_v12, %v3611_v60  ;;  %3995 = vmatpush1.bf16.msra.mxu0 %v12293_v20  ;;  %v12338_v15 = vld [vmem:[%s18377_s5 + $0xfa8] ss:$16 sps:$4 sm:$0xff]   ;;  %v12343_v9 = vld [vmem:[%s18377_s5 + $0xd8c] ss:$16 sps:$4 sm:$0xff]  }
 0x1d2   :  { %10333 = vst [vmem:[#allocation7 + $0x100] sm:$0xff] %v15321_v11  ;;  %4048 = vmatpush1.bf16.msra.mxu1 %v12296_v25  ;;  %v3614_v38 = vpop.f32.mrf.mxu0  ;;  %3996 = vmatprep.subr.bf16.mxu0 %v12301_v22  ;;  %v12346_v5 = vld [vmem:[%s18377_s5 + $0xf8c] ss:$16 sps:$4 sm:$0xff]   ;;  %v12341_v16 = vld [vmem:[%s18377_s5 + $0xd88] ss:$16 sps:$4 sm:$0xff]   ;;  %v15503_v46 = vld [vmem:[%s18447_s21 + $0x80] sm:$0xff] }
 0x1d3   :  { %v3667_v19 = vpop.f32.mrf.mxu1  ;;  %4049 = vmatprep.subr.bf16.mxu1 %v12304_v39  ;;  %10222 = vst [vmem:[#allocation5 + $0x48] sm:$0xff] %v15341_v51  ;;  %10238 = vst [vmem:[#allocation3 + $0x108] sm:$0xff] %v15341_v51  ;;  %v3615_v27 = vadd.f32 %v3614_v38, %v3562_v2  ;;  %v15346_v43 = vadd.f32 %v3665_v0, %v3613_v45  ;;  %v12344_v17 = vld [vmem:[%s18377_s5 + $0xf88] ss:$16 sps:$4 sm:$0xff]   ;;  %v12349_v52 = vld [vmem:[%s18377_s5 + $0xd6c] ss:$16 sps:$4 sm:$0xff]  }
 0x1d4   :  { %10334 = vst [vmem:[#allocation7 + $0x108] sm:$0xff] %v15341_v51  ;;  %v12352_v40 = vld [vmem:[%s18377_s5 + $0xf6c] ss:$16 sps:$4 sm:$0xff]   ;;  %v12347_v7 = vld [vmem:[%s18377_s5 + $0xd68] ss:$16 sps:$4 sm:$0xff]   ;;  %v18451_v2 = vld [vmem:[#allocation16_spill] sm:$0xff] }
 0x1d5   :  { %10225 = vst [vmem:[#allocation5 + $0x60] sm:$0xff] %v15346_v43  ;;  %10241 = vst [vmem:[#allocation3 + $0x180] sm:$0xff] %v15346_v43  ;;  %v15363_v57 = vadd.f32 %v3667_v19, %v3615_v27  ;;  %3997 = vmatpush1.bf16.msra.mxu0 %v12299_v18  ;;  %v12350_v20 = vld [vmem:[%s18377_s5 + $0xf68] ss:$16 sps:$4 sm:$0xff]   ;;  %v12355_v25 = vld [vmem:[%s18377_s5 + $0xd4c] ss:$16 sps:$4 sm:$0xff]  }
 0x1d6   :  { %10337 = vst [vmem:[#allocation7 + $0x180] sm:$0xff] %v15346_v43  ;;  %4050 = vmatpush1.bf16.msra.mxu1 %v12302_v21  ;;  %3998 = vmatprep.subr.bf16.mxu0 %v12307_v55  ;;  %v12358_v23 = vld [vmem:[%s18377_s5 + $0xf4c] ss:$16 sps:$4 sm:$0xff]   ;;  %v12353_v36 = vld [vmem:[%s18377_s5 + $0xd48] ss:$16 sps:$4 sm:$0xff]   ;;  %v15526_v19 = vld [vmem:[%s18447_s21 + $0x60] sm:$0xff] }
 0x1d7   :  { %4051 = vmatprep.subr.bf16.mxu1 %v12310_v3  ;;  %10226 = vst [vmem:[#allocation5 + $0x68] sm:$0xff] %v15363_v57  ;;  %10242 = vst [vmem:[#allocation3 + $0x188] sm:$0xff] %v15363_v57  ;;  %v12356_v61 = vld [vmem:[%s18377_s5 + $0xf48] ss:$16 sps:$4 sm:$0xff]   ;;  %v12361_v50 = vld [vmem:[%s18377_s5 + $0xd2c] ss:$16 sps:$4 sm:$0xff]  }
 0x1d8   :  { %10338 = vst [vmem:[#allocation7 + $0x188] sm:$0xff] %v15363_v57  ;;  %v12364_v22 = vld [vmem:[%s18377_s5 + $0xf2c] ss:$16 sps:$4 sm:$0xff]   ;;  %v12359_v39 = vld [vmem:[%s18377_s5 + $0xd28] ss:$16 sps:$4 sm:$0xff]  }
 0x1d9   :  { %3999 = vmatpush1.bf16.msra.mxu0 %v12305_v24  ;;  %v12362_v26 = vld [vmem:[%s18377_s5 + $0xf28] ss:$16 sps:$4 sm:$0xff]   ;;  %v12367_v8 = vld [vmem:[%s18377_s5 + $0xd0c] ss:$16 sps:$4 sm:$0xff]   ;;  %v15490_v18 = vld [vmem:[%s18447_s21 + $0xa0] sm:$0x1] }
 0x1da   :  { %4052 = vmatpush1.bf16.msra.mxu1 %v12308_v53  ;;  %4000 = vmatprep.subr.bf16.mxu0 %v12313_v54  ;;  %v12370_v31 = vld [vmem:[%s18377_s5 + $0xf0c] ss:$16 sps:$4 sm:$0xff]   ;;  %v12365_v12 = vld [vmem:[%s18377_s5 + $0xd08] ss:$16 sps:$4 sm:$0xff]   ;;  %v15508_v0 = vld [vmem:[%s18381_s9] sm:$0xf] }
 0x1db   :  { %4053 = vmatprep.subr.bf16.mxu1 %v12316_v29  ;;  %v12368_v4 = vld [vmem:[%s18377_s5 + $0xf08] ss:$16 sps:$4 sm:$0xff]   ;;  %v4200_v27 = vld [vmem:[%s18380_s8] sm:$0xf] }
 0x1dc   :  { %v15485_v60 = vld [vmem:[%s18447_s21 + $0xa8] sm:$0x1]  ;;  %v18448_v34 = vld [vmem:[#allocation13_spill] sm:$0xff]  ;;  %v18454_v29 = vld [vmem:[#allocation18_spill] sm:$0xff] }
 0x1dd   :  { %4001 = vmatpush1.bf16.msra.mxu0 %v12311_v30  ;;  %v15495_v21 = vld [vmem:[%s18447_s21 + $0x88] sm:$0xff]  ;;  %v18452_v45 = vld [vmem:[#allocation21_spill] sm:$0xff]  ;;  %v15545_v30 = vld [vmem:[%s18447_s21 + $0x40] sm:$0xff] }
 0x1de   :  { %4054 = vmatpush1.bf16.msra.mxu1 %v12314_v10  ;;  %4002 = vmatprep.subr.bf16.mxu0 %v12319_v58  ;;  %v18450_v55 = vld [vmem:[#allocation15_spill] sm:$0xff]  ;;  %v15521_v38 = vrot.slane %v15508_v0, %v18452_v45  ;;  %v18453_v54 = vld [vmem:[#allocation17_spill] sm:$0xff]  ;;  %v15554_v58 = vrot.slane %v4200_v27, %v18452_v45 }
 0x1df   :  { %4055 = vmatprep.subr.bf16.mxu1 %v12322_v32  ;;  %v15515_v3 = vld [vmem:[%s18447_s21 + $0x68] sm:$0xff] }
 0x1e0   :  { %v15535_v24 = vld [vmem:[%s18447_s21 + $0x48] sm:$0xff]  ;;  %v4362_v53 = vmul.f32 %v15521_v38, %v15286_v44  ;;  %v18455_v44 = vld [vmem:[#allocation20_spill] sm:$0xff] }
 0x1e1   :  { %4003 = vmatpush1.bf16.msra.mxu0 %v12317_v33  ;;  %v15551_v10 = vld [vmem:[%s18447_s21 + $0x28] sm:$0xff]  ;;  %v15557_v32 = vrot.slane %v4200_v27, %v18455_v44 }
 0x1e2   :  { %4056 = vmatpush1.bf16.msra.mxu1 %v12320_v62  ;;  %4004 = vmatprep.subr.bf16.mxu0 %v12325_v35  ;;  %v15563_v33 = vld [vmem:[%s18447_s21 + $0x8] sm:$0xff]  ;;  %v15568_v62 = vld [vmem:[%s18447_s21] sm:$0xff] }
 0x1e3   :  { %4057 = vmatprep.subr.bf16.mxu1 %v12328_v47  ;;  %v15573_v35 = vld [vmem:[%s18447_s21 + $0x20] sm:$0xff]  ;;  %v4231_v47 = vmul.f32 %v15554_v58, %v15535_v24 }
 0x1e5   :  { %4005 = vmatpush2.bf16.msra.mxu0 %v12323_v6  ;;  %v4230_v6 = vmul.f32 %v15557_v32, %v15545_v30 }
 0x1e6   :  { %4058 = vmatpush2.bf16.msra.mxu1 %v12326_v14  ;;  %4006 = vmatprep.subr.bf16.mxu0 %v12331_v48  ;;  %v4223_v14 = vmul.f32 %v15554_v58, %v15563_v33  ;;  %v4222_v48 = vmul.f32 %v15557_v32, %v15568_v62 }
 0x1e7   :  { %4059 = vmatprep.subr.bf16.mxu1 %v12334_v63  ;;  %v18456_v63 = vld [vmem:[#allocation19_spill] sm:$0xff] }
 0x1e9   :  { %4007 = vmatpush2.bf16.msra.mxu0 %v12329_v28  ;;  %v15586_v28 = vsub.s32 2, %v18456_v63 }
 0x1ea   :  { %4060 = vmatpush2.bf16.msra.mxu1 %v12332_v49  ;;  %4008 = vmatprep.subr.bf16.mxu0 %v12337_v56  ;;  %v15589_v49 = vsub.s32 3, %v18456_v63  ;;  %v15595_v56 = vld [vmem:[%s18447_s21 + $0xb8] sm:$0x1] }
 0x1eb   :  { %4061 = vmatprep.subr.bf16.mxu1 %v12340_v41  ;;  %18457 = vst [vmem:[#allocation10_spill] sm:$0xff] %v15595_v56 }
 0x1ec   :  { %v15598_v41 = vrot.slane %v4200_v27, %v15589_v49 }
 0x1ed   :  { %4009 = vmatpush2.bf16.msra.mxu0 %v12335_v1  ;;  %v15603_v1 = vld [vmem:[%s18447_s21 + $0xb0] sm:$0x1] }
 0x1ee   :  { %4062 = vmatpush2.bf16.msra.mxu1 %v12338_v15  ;;  %4010 = vmatprep.subr.bf16.mxu0 %v12343_v9  ;;  %18458 = vst [vmem:[#allocation11_spill] sm:$0xff] %v15603_v1  ;;  %v15606_v15 = vrot.slane %v4200_v27, %v15586_v28  ;;  %v15611_v9 = vld [vmem:[%s18447_s21 + $0x98] sm:$0xff]  ;;  %v15696_v27 = vld [vmem:[%s18447_s21 + $0x128] sm:$0xff] }
 0x1ef   :  { %4063 = vmatprep.subr.bf16.mxu1 %v12346_v5  ;;  %18459 = vst [vmem:[#allocation12_spill] sm:$0xff] %v15611_v9  ;;  %v15616_v5 = vrot.slane %v15508_v0, %v18455_v44 }
 0x1f1   :  { %4011 = vmatpush2.bf16.msra.mxu0 %v12341_v16  ;;  %v15621_v16 = vld [vmem:[%s18447_s21 + $0x168] sm:$0x1] }
 0x1f2   :  { %4064 = vmatpush2.bf16.msra.mxu1 %v12344_v17  ;;  %4012 = vmatprep.subr.bf16.mxu0 %v12349_v52  ;;  %v15627_v17 = vld [vmem:[%s18447_s21 + $0x90] sm:$0xff]  ;;  %v4270_v52 = vadd.f32 %v4223_v14, %v4222_v48 }
 0x1f3   :  { %4065 = vmatprep.subr.bf16.mxu1 %v12352_v40  ;;  %18460 = vst [vmem:[#allocation13_spill] sm:$0xff] %v15627_v17  ;;  %v4280_v40 = vadd.f32 %v4231_v47, %v4230_v6 }
 0x1f5   :  { %4013 = vmatpush2.bf16.msra.mxu0 %v12347_v7  ;;  %v15633_v7 = vld [vmem:[%s18447_s21 + $0x78] sm:$0xff] }
 0x1f6   :  { %4066 = vmatpush2.bf16.msra.mxu1 %v12350_v20  ;;  %4014 = vmatprep.subr.bf16.mxu0 %v12355_v25  ;;  %18461 = vst [vmem:[#allocation14_spill] sm:$0xff] %v15633_v7  ;;  %v15638_v20 = vld [vmem:[%s18447_s21 + $0x58] sm:$0xff]  ;;  %v15643_v25 = vld [vmem:[%s18447_s21 + $0x50] sm:$0xff] }
 0x1f7   :  { %4067 = vmatprep.subr.bf16.mxu1 %v12358_v23  ;;  %18462 = vst [vmem:[#allocation15_spill] sm:$0xff] %v15638_v20  ;;  %18463 = vst [vmem:[#allocation16_spill] sm:$0xff] %v15643_v25  ;;  %v15648_v23 = vld [vmem:[%s18447_s21 + $0x10] sm:$0xff] }
 0x1f8   :  { %18464 = vst [vmem:[#allocation21_spill] sm:$0xff] %v15648_v23 }
 0x1f9   :  { %4015 = vmatpush2.bf16.msra.mxu0 %v12353_v36  ;;  %v15653_v36 = vld [vmem:[%s18447_s21 + $0x160] sm:$0x1] }
 0x1fa   :  { %4068 = vmatpush2.bf16.msra.mxu1 %v12356_v61  ;;  %4016 = vmatprep.subr.bf16.mxu0 %v12361_v50  ;;  %v15659_v61 = vld [vmem:[%s18447_s21 + $0x18] sm:$0xff]  ;;  %v4224_v50 = vmul.f32 %v15606_v15, %v15648_v23 }
 0x1fb   :  { %4069 = vmatprep.subr.bf16.mxu1 %v12364_v22  ;;  %18465 = vst [vmem:[#allocation17_spill] sm:$0xff] %v15659_v61  ;;  %v4232_v22 = vmul.f32 %v15606_v15, %v15643_v25 }
 0x1fd   :  { %4017 = vmatpush2.bf16.msra.mxu0 %v12359_v39  ;;  %v4233_v39 = vmul.f32 %v15598_v41, %v15638_v20 }
 0x1fe   :  { %4070 = vmatpush2.bf16.msra.mxu1 %v12362_v26  ;;  %4018 = vmatprep.subr.bf16.mxu0 %v12367_v8  ;;  %v15671_v26 = vld [vmem:[%s18447_s21 + $0x148] sm:$0xff]  ;;  %v4225_v8 = vmul.f32 %v15598_v41, %v15659_v61 }
 0x1ff   :  { %4071 = vmatprep.subr.bf16.mxu1 %v12370_v31  ;;  %v4361_v31 = vmul.f32 %v15616_v5, %v15264_v37 }
 0x201   :  { %4019 = vmatpush2.bf16.msra.mxu0 %v12365_v12  ;;  %v15681_v12 = vld [vmem:[%s18447_s21 + $0x70] sm:$0xff] }
 0x202   :  { %4072 = vmatpush2.bf16.msra.mxu1 %v12368_v4  ;;  %4397 = vmatprep.subr.mxu0 %v15485_v60  ;;  %18466 = vst [vmem:[#allocation18_spill] sm:$0xff] %v15681_v12  ;;  %v4271_v4 = vadd.f32 %v4270_v52, %v4224_v50 }
 0x203   :  { %4472 = vmatprep.subr.mxu1 %v15595_v56 }
 0x204   :  { %4021 = vmatmul.mubr.bf16.vlgmr.msra.gmra.mxu0 %v18448_v34  ;;  %v4281_v34 = vadd.f32 %v4280_v40, %v4232_v22  ;;  %v4272_v37 = vadd.f32 %v4271_v4, %v4225_v8 }
 0x205   :  { %4074 = vmatmul.mubr.bf16.vlgmr.msra.gmra.mxu1 %v18449_v42  ;;  %4398 = vmatpush1.xpose.msra.mxu0 %v15490_v18  ;;  %v4366_v42 = vmul.f32 %v15521_v38, %v15315_v59  ;;  %v4365_v59 = vmul.f32 %v15616_v5, %v15294_v13  ;;  %v15715_v13 = vld [vmem:[%s18447_s21 + $0x108] sm:$0xff] }
 0x206   :  { %4030 = vmatprep.mubr.bf16.mxu0 %v18450_v55  ;;  %4399 = vmatprep.subr.mxu0 %v15495_v21  ;;  %v15689_v55 = vld [vmem:[%s18447_s21 + $0x140] sm:$0xff] }
 0x207   :  { %4083 = vmatprep.mubr.bf16.mxu1 %v18451_v2  ;;  %4473 = vmatpush1.xpose.msra.mxu1 %v15603_v1  ;;  %v4282_v2 = vadd.f32 %v4281_v34, %v4233_v39 }
 0x208   :  { %4474 = vmatprep.subr.mxu1 %v15611_v9  ;;  %4273 = vadd.xlane.f32.xlu0 %v4272_v37 }
 0x209   :  { %4400 = vmatpush1.xpose.msra.mxu0 %v15503_v46  ;;  %4283 = vadd.xlane.f32.xlu1 %v4282_v2 }
 0x20a   :  { %4401 = vmatprep.subr.mxu0 %v15515_v3 }
 0x20b   :  { %4475 = vmatpush1.xpose.msra.mxu1 %v15627_v17 }
 0x20c   :  { %4031 = vmatmul.mubr.bf16.gmra.mxu0 %v18453_v54  ;;  %4476 = vmatprep.subr.mxu1 %v15633_v7  ;;  %v15707_v54 = vld [vmem:[%s18447_s21 + $0x120] sm:$0xff] }
 0x20d   :  { %4084 = vmatmul.mubr.bf16.gmra.mxu1 %v18454_v29  ;;  %4402 = vmatpush1.xpose.msra.mxu0 %v15526_v19 }
 0x20e   :  { %4441 = vmatprep.mubr.f32.mxu0 %v4362_v53  ;;  %4403 = vmatprep.subr.mxu0 %v15535_v24  ;;  %v4370_v53 = vmul.f32 %v15521_v38, %v15341_v51 }
 0x20f   :  { %4477 = vmatpush1.xpose.msra.mxu1 %v15681_v12 }
 0x210   :  { %4478 = vmatprep.subr.mxu1 %v15638_v20 }
 0x211   :  { %4404 = vmatpush1.xpose.msra.mxu0 %v15545_v30 }
 0x212   :  { %4405 = vmatprep.subr.mxu0 %v15551_v10 }
 0x213   :  { %4479 = vmatpush1.xpose.msra.mxu1 %v15643_v25 }
 0x215   :  { %4406 = vmatpush1.xpose.msra.mxu0 %v15573_v35 }
 0x216   :  { %4407 = vmatprep.subr.mxu0 %v15563_v33 }
 0x219   :  { %4408 = vmatpush1.xpose.msra.mxu0 %v15568_v62 }
 0x21a   :  { %4547 = vmatprep.subr.mxu0 %v15621_v16 }
 0x21c   :  { %4442 = vmatmul.mubr.f32.vlgmr.msra.gmra.mxu0 %v4361_v31 }
 0x21d   :  { %4446 = vmatprep.mubr.f32.mxu0 %v4366_v42  ;;  %4548 = vmatpush1.xpose.msra.mxu0 %v15653_v36 }
 0x21e   :  { %4549 = vmatprep.subr.mxu0 %v15671_v26 }
 0x220   :  { %4447 = vmatmul.mubr.f32.gmra.mxu0 %v4365_v59 }
 0x221   :  { %4550 = vmatpush1.xpose.msra.mxu0 %v15689_v55  ;;  %4591 = vmatprep.mubr.f32.mxu0 %v4370_v53 }
 0x222   :  { %4551 = vmatprep.subr.mxu0 %v15696_v27 }
 0x223   :  { %25 = vsyncpa [#allocation6], 0  ;;  %v15723_v51 = vld [vmem:[%s18447_s21 + $0x100] sm:$0xff]  ;;  %v15728_v29 = vld [vmem:[%s18447_s21 + $0xe8] sm:$0xff]  ;;  %vm4295_vm0 = vcmask 1040384   ;;  %v4369_v48 = vmul.f32 %v15616_v5, %v15321_v11  ;;  %v4374_v52 = vmul.f32 %v15521_v38, %v15363_v57  ;;  %v4373_v40 = vmul.f32 %v15616_v5, %v15346_v43  ;;  %s13338_s1 = smov [#allocation3]  }
 0x224   :  { %v15735_v47 = vld [vmem:[%s18447_s21 + $0xe0] sm:$0xff]  ;;  %v15740_v6 = vld [vmem:[%s18447_s21 + $0xc8] sm:$0xff]  ;;  %v4227_v11 = vmul.f32 %v15554_v58, %v15551_v10  ;;  %v4226_v43 = vmul.f32 %v15557_v32, %v15573_v35  ;;  %v4235_v57 = vmul.f32 %v15554_v58, %v15515_v3  ;;  %v4234_v38 = vmul.f32 %v15557_v32, %v15526_v19 }
 0x225   :  { %4552 = vmatpush1.xpose.msra.mxu0 %v15707_v54  ;;  %v4118_v14 = vld [vmem:[%s18447_s21 + $0xc0] sm:$0xff]  ;;  %v4237_v22 = vmul.f32 %v15598_v41, %v15633_v7  ;;  %v4245_v8 = vmul.f32 %v15598_v41, %v15595_v56  ;;  %v4240_v4 = vmul.f32 %v15606_v15, %v15627_v17  ;;  %v4241_v2 = vmul.f32 %v15598_v41, %v15611_v9 }
 0x226   :  { %4553 = vmatprep.subr.mxu0 %v15715_v13  ;;  %v4285_v5 = vadd.f32 %v4235_v57, %v4234_v38  ;;  %v13195_v25 = vld [vmem:[%s18378_s6] sm:$0xf]  ;;  %vm4847_vm1 = vcmask 334848   ;;  %vm4700_vm2 = vcmask 130112   ;;  %vm4707_vm3 = vcmask 195712  }
 0x227   :  { %v677_v20 = vrot.slane %v13195_v25, %v15586_v28  ;;  %v681_v7 = vrot.slane %v13195_v25, %v15589_v49  ;;  %v4142_v25 = vld [vmem:[%s18379_s7] sm:$0xf]  ;;  %vm4714_vm4 = vcmask 261312   ;;  %vm4721_vm5 = vcmask 326912  }
 0x228   :  { %vm4728_vm6 = vcmask 392512   ;;  %vm5836_vm7 = vcmask 130048  }
 0x229   :  { %4554 = vmatpush1.xpose.msra.mxu0 %v15723_v51 }
 0x22a   :  { %4555 = vmatprep.subr.mxu0 %v15728_v29 }
 0x22d   :  { %4556 = vmatpush1.xpose.msra.mxu0 %v15735_v47 }
 0x22e   :  { %4557 = vmatprep.subr.mxu0 %v15740_v6 }
 0x231   :  { %4558 = vmatpush1.xpose.msra.mxu0 %v4118_v14 }
 0x232   :  { %10980 = vmatprep.subr.msk.mxu0 %vm4295_vm0, %v15485_v60 }
 0x234   :  { %4592 = vmatmul.mubr.f32.vlgmr.msra.gmra.mxu0 %v4369_v48 }
 0x235   :  { %4596 = vmatprep.mubr.f32.mxu0 %v4374_v52  ;;  %10981 = vmatpush1.msk.msra.mxu0 %vm4295_vm0, %v15490_v18 }
 0x236   :  { %5154 = vmatprep.subr.mxu0 %v15495_v21 }
 0x237   :  { %5155 = vmatpush1.msra.mxu0 %v15503_v46 }
 0x238   :  { %4597 = vmatmul.mubr.f32.gmra.mxu0 %v4373_v40  ;;  %5156 = vmatprep.subr.mxu0 %v15515_v3  ;;  %v4239_v3 = vmul.f32 %v15554_v58, %v15495_v21  ;;  %v4301_v40 = vsel %vm4295_vm0, %v4245_v8, 0.0  ;;  %v15876_v8 = vld [vmem:[%s18447_s21 + $0x150] sm:$0xff] }
 0x239   :  { %5157 = vmatpush1.msra.mxu0 %v15526_v19  ;;  %v4238_v19 = vmul.f32 %v15557_v32, %v15503_v46  ;;  %18475 = vst [vmem:[#allocation29_spill] sm:$0xff] %v15876_v8 }
 0x23a   :  { %5158 = vmatprep.subr.mxu0 %v15535_v24  ;;  %v4243_v24 = vmul.f32 %v15554_v58, %v15485_v60  ;;  %v4242_v60 = vmul.f32 %v15557_v32, %v15490_v18  ;;  %v4244_v18 = vmul.f32 %v15606_v15, %v15603_v1 }
 0x23b   :  { %5159 = vmatpush1.msra.mxu0 %v15545_v30  ;;  %v15780_v30 = vld [vmem:[%s18447_s21 + $0x30] sm:$0xff]  ;;  %v4290_v34 = vadd.f32 %v4239_v3, %v4238_v19 }
 0x23c   :  { %5160 = vmatprep.subr.mxu0 %v15551_v10  ;;  %18467 = vst [vmem:[#allocation20_spill] sm:$0xff] %v15780_v30  ;;  %v4228_v10 = vmul.f32 %v15606_v15, %v15780_v30  ;;  %v4297_v50 = vsel %vm4295_vm0, %v4243_v24, 0.0  ;;  %v4296_v37 = vsel %vm4295_vm0, %v4242_v60, 0.0  ;;  %v4299_v48 = vsel %vm4295_vm0, %v4244_v18, 0.0  ;;  %v15825_v24 = vld [vmem:[%s18447_s21 + $0x178] sm:$0x1] }
 0x23d   :  { %5161 = vmatpush1.msra.mxu0 %v15573_v35  ;;  %v4236_v35 = vmul.f32 %v15606_v15, %v15681_v12  ;;  %v4291_v59 = vadd.f32 %v4290_v34, %v4240_v4  ;;  %v4298_v53 = vadd.f32 %v4297_v50, %v4296_v37  ;;  %18469 = vst [vmem:[#allocation23_spill] sm:$0xff] %v15825_v24  ;;  %v15831_v3 = vld [vmem:[%s18447_s21 + $0xd0] sm:$0xff] }
 0x23e   :  { %5162 = vmatprep.subr.mxu0 %v15563_v33  ;;  %v4275_v33 = vadd.f32 %v4227_v11, %v4226_v43  ;;  %v4247_v11 = vmul.f32 %v15554_v58, %v15740_v6  ;;  %v4246_v43 = vmul.f32 %v15557_v32, %v4118_v14  ;;  %18470 = vst [vmem:[#allocation24_spill] sm:$0xff] %v15831_v3 }
 0x23f   :  { %5163 = vmatpush1.msra.mxu0 %v15568_v62  ;;  %v15795_v62 = vld [vmem:[%s18447_s21 + $0x38] sm:$0xff]  ;;  %v4286_v39 = vadd.f32 %v4285_v5, %v4236_v35  ;;  %v4292_v52 = vadd.f32 %v4291_v59, %v4241_v2  ;;  %v4300_v57 = vadd.f32 %v4299_v48, %v4298_v53  ;;  %v4251_v6 = vmul.f32 %v15554_v58, %v15728_v29  ;;  %v15850_v29 = vld [vmem:[%s18447_s21 + $0xf0] sm:$0xff] }
 0x240   :  { %10992 = vmatprep.subr.msk.mxu0 %vm4295_vm0, %v15621_v16  ;;  %18468 = vst [vmem:[#allocation22_spill] sm:$0xff] %v15795_v62  ;;  %4480 = vmatprep.subr.mxu1 %v15795_v62  ;;  %v4229_v21 = vmul.f32 %v15598_v41, %v15795_v62  ;;  %v4276_v46 = vadd.f32 %v4275_v33, %v4228_v10  ;;  %18472 = vst [vmem:[#allocation26_spill] sm:$0xff] %v15850_v29 }
 0x241   :  { %4481 = vmatpush1.xpose.msra.mxu1 %v15780_v30  ;;  %v4287_v42 = vadd.f32 %v4286_v39, %v4237_v22  ;;  %v4302_v38 = vadd.f32 %v4301_v40, %v4300_v57  ;;  %v4250_v14 = vmul.f32 %v15557_v32, %v15735_v47  ;;  %v4248_v19 = vmul.f32 %v15606_v15, %v15831_v3  ;;  %v15855_v47 = vld [vmem:[%s18447_s21 + $0x110] sm:$0xff]  ;;  %v3757_v40 = vpop.f32.mrf.mxu1 }
 0x242   :  { %v4277_v31 = vadd.f32 %v4276_v46, %v4229_v21  ;;  %4482 = vmatprep.subr.mxu1 %v15659_v61  ;;  %v4305_v10 = vadd.f32 %v4247_v11, %v4246_v43  ;;  %v4255_v33 = vmul.f32 %v15554_v58, %v15715_v13  ;;  %v4254_v60 = vmul.f32 %v15557_v32, %v15723_v51 }
 0x243   :  { %4288 = vadd.xlane.f32.xlu1 %v4287_v42  ;;  %v4259_v5 = vmul.f32 %v15554_v58, %v15696_v27  ;;  %18473 = vst [vmem:[#allocation27_spill] sm:$0xff] %v15855_v47  ;;  %v4258_v13 = vmul.f32 %v15557_v32, %v15707_v54  ;;  %v4252_v51 = vmul.f32 %v15606_v15, %v15850_v29  ;;  %v3759_v43 = vpop.f32.mrf.mxu1 }
 0x244   :  { %4278 = vadd.xlane.f32.xlu0 %v4277_v31  ;;  %v15843_v35 = vadd.f32 %v4305_v10, %v4248_v19  ;;  %v4310_v21 = vadd.f32 %v4251_v6, %v4250_v14  ;;  %v4256_v27 = vmul.f32 %v15606_v15, %v15855_v47  ;;  %v4267_v46 = vmul.f32 %v15554_v58, %v15621_v16  ;;  %v15881_v16 = vld [vmem:[%s18447_s21 + $0x130] sm:$0xff] }
 0x245   :  { %4483 = vmatpush1.xpose.msra.mxu1 %v15648_v23  ;;  %v4263_v50 = vmul.f32 %v15554_v58, %v15671_v26  ;;  %v4262_v18 = vmul.f32 %v15557_v32, %v15689_v55  ;;  %v4315_v22 = vadd.f32 %v4255_v33, %v4254_v60  ;;  %v4266_v54 = vmul.f32 %v15557_v32, %v15653_v36  ;;  %v15888_v26 = vld [vmem:[%s18447_s21 + $0x170] sm:$0x1] }
 0x246   :  { %4622 = vmatprep.subr.mxu1 %v15825_v24  ;;  %18471 = vst [vmem:[#allocation25_spill] sm:$0xff] %v15843_v35  ;;  %v15869_v39 = vadd.f32 %v4310_v21, %v4252_v51  ;;  %18476 = vst [vmem:[#allocation30_spill] sm:$0xff] %v15881_v16  ;;  %v4260_v32 = vmul.f32 %v15606_v15, %v15881_v16  ;;  %v4320_v36 = vadd.f32 %v4259_v5, %v4258_v13 }
 0x247   :  { %4303 = vadd.xlane.f32.xlu1 %v4302_v38  ;;  %v15883_v58 = vadd.f32 %v4315_v22, %v4256_v27  ;;  %18478 = vst [vmem:[#allocation32_spill] sm:$0xff] %v15888_v26  ;;  %v4264_v55 = vmul.f32 %v15606_v15, %v15876_v8  ;;  %v4331_v31 = vsel %vm4295_vm0, %v4267_v46, 0.0  ;;  %v4268_v4 = vmul.f32 %v15606_v15, %v15888_v26  ;;  %v3761_v38 = vpop.f32.mrf.mxu1 }
 0x248   :  { %4293 = vadd.xlane.f32.xlu0 %v4292_v52  ;;  %18474 = vst [vmem:[#allocation28_spill] sm:$0xff] %v15869_v39  ;;  %v4325_v34 = vadd.f32 %v4263_v50, %v4262_v18  ;;  %v15897_v42 = vadd.f32 %v4320_v36, %v4260_v32  ;;  %v4330_v2 = vsel %vm4295_vm0, %v4266_v54, 0.0  ;;  %v3704_v52 = vpop.f32.mrf.mxu0 }
 0x249   :  { %18477 = vst [vmem:[#allocation31_spill] sm:$0xff] %v15883_v58  ;;  %v4332_v59 = vadd.f32 %v4331_v31, %v4330_v2  ;;  %v4333_v53 = vsel %vm4295_vm0, %v4268_v4, 0.0  ;;  %v3763_v14 = vpop.f32.mrf.mxu1  ;;  %v3705_v9 = vadd.f32 %v3704_v52, %v677_v20 }
 0x24a   :  { %18479 = vst [vmem:[#allocation33_spill] sm:$0xff] %v15897_v42  ;;  %v15899_v37 = vadd.f32 %v4325_v34, %v4264_v55  ;;  %v3706_v11 = vpop.f32.mrf.mxu0 }
 0x24b   :  { %v15903_v48 = vadd.f32 %v4333_v53, %v4332_v59  ;;  %v3767_v10 = vpop.f32.mrf.mxu1  ;;  %v3707_v56 = vadd.f32 %v3706_v11, %v681_v7  ;;  %v15936_v11 = vrot.slane %v4142_v25, %v18452_v45 }
 0x24c   :  { %18480 = vst [vmem:[#allocation34_spill] sm:$0xff] %v15899_v37  ;;  %v3708_v57 = vpop.f32.mrf.mxu0 }
 0x24d   :  { %18481 = vst [vmem:[#allocation35_spill] sm:$0xff] %v15903_v48  ;;  %v3769_v60 = vpop.f32.mrf.mxu1  ;;  %v3758_v48 = vadd.f32 %v3757_v40, %v3705_v9  ;;  %v3709_v47 = vadd.f32 %v3708_v57, %v677_v20  ;;  %v3760_v37 = vadd.f32 %v3759_v43, %v3707_v56  ;;  %v15939_v56 = vrot.slane %v4142_v25, %v18455_v44 }
 0x24e   :  { %v3710_v6 = vpop.f32.mrf.mxu0 }
 0x24f   :  { %v15905_v13 = vpop.f32.mrf.mxu1  ;;  %v3711_v42 = vadd.f32 %v3710_v6, %v681_v7  ;;  %v3762_v52 = vadd.f32 %v3761_v38, %v3709_v47  ;;  %v13196_v47 = vld [vmem:[#allocation5 + $0x8] sm:$0xff] }
 0x250   :  { %v3714_v15 = vpop.f32.mrf.mxu0 }
 0x251   :  { %v15907_v21 = vpop.f32.mrf.mxu1  ;;  %v3715_v24 = vadd.f32 %v3714_v15, %v677_v20  ;;  %v3764_v35 = vadd.f32 %v3763_v14, %v3711_v42  ;;  %v13197_v14 = vld [vmem:[#allocation5] sm:$0xff] }
 0x252   :  { %v3716_v19 = vpop.f32.mrf.mxu0 }
 0x253   :  { %v3863_v27 = vpop.f32.mrf.mxu1  ;;  %v3717_v26 = vadd.f32 %v3716_v19, %v681_v7 }
 0x254   :  { %v3718_v33 = vpop.f32.mrf.mxu0 }
 0x255   :  { %v3865_v50 = vpop.f32.mrf.mxu1  ;;  %v3719_v43 = vadd.f32 %v3718_v33, %v677_v20  ;;  %v3770_v38 = vadd.f32 %v3769_v60, %v3717_v26 }
 0x256   :  { %v3720_v5 = vpop.f32.mrf.mxu0 }
 0x257   :  { %v3867_v22 = vpop.f32.mrf.mxu1 }
 0x258   :  { %v3810_v51 = vpop.f32.mrf.mxu0 }
 0x259   :  { %v3869_v32 = vpop.f32.mrf.mxu1  ;;  %v3811_v16 = vadd.f32 %v3810_v51, %v3758_v48  ;;  %v3768_v48 = vadd.f32 %v3767_v10, %v3715_v24  ;;  %v3772_v24 = vadd.f32 %v15905_v13, %v3719_v43 }
 0x25a   :  { %v3812_v46 = vpop.f32.mrf.mxu0 }
 0x25b   :  { %v15909_v55 = vpop.f32.mrf.mxu1  ;;  %v3813_v8 = vadd.f32 %v3812_v46, %v3760_v37  ;;  %v3864_v9 = vadd.f32 %v3863_v27, %v3811_v16  ;;  %v4165_v37 = vmul.f32 %v13196_v47, %v15936_v11  ;;  %v3721_v46 = vadd.f32 %v3720_v5, %v681_v7  ;;  %v13198_v5 = vld [vmem:[#allocation5 + $0x20] sm:$0xff] }
 0x25c   :  { %v3814_v18 = vpop.f32.mrf.mxu0  ;;  %v4164_v27 = vmul.f32 %v13197_v14, %v15939_v56 }
 0x25d   :  { %v15911_v4 = vpop.f32.mrf.mxu1  ;;  %v3815_v40 = vadd.f32 %v3814_v18, %v3762_v52  ;;  %v3866_v15 = vadd.f32 %v3865_v50, %v3813_v8  ;;  %v3774_v18 = vadd.f32 %v15907_v21, %v3721_v46 }
 0x25e   :  { %v3816_v54 = vpop.f32.mrf.mxu0  ;;  %v4180_v50 = vadd.f32 %v4165_v37, %v4164_v27 }
 0x25f   :  { %v15913_v2 = vpop.f32.mrf.mxu1  ;;  %v3817_v51 = vadd.f32 %v3816_v54, %v3764_v35  ;;  %v3868_v42 = vadd.f32 %v3867_v22, %v3815_v40  ;;  %v4168_v22 = vmul.f32 %v13198_v5, %v15939_v56 }
 0x260   :  { %v3820_v36 = vpop.f32.mrf.mxu0 }
 0x261   :  { %v15917_v53 = vpop.f32.mrf.mxu1  ;;  %v3821_v19 = vadd.f32 %v3820_v36, %v3768_v48  ;;  %v3870_v8 = vadd.f32 %v3869_v32, %v3817_v51  ;;  %v15972_v48 = vrot.slane %v15508_v0, %v15586_v28 }
 0x262   :  { %v3822_v31 = vpop.f32.mrf.mxu0 }
 0x263   :  { %v3823_v20 = vadd.f32 %v3822_v31, %v3770_v38  ;;  %v3874_v7 = vadd.f32 %v15909_v55, %v3821_v19  ;;  %v15952_v31 = vrot.slane %v4142_v25, %v15586_v28  ;;  %v15958_v55 = vrot.slane %v15508_v0, %v15589_v49 }
 0x264   :  { %v3824_v34 = vpop.f32.mrf.mxu0 }
 0x265   :  { %v3825_v26 = vadd.f32 %v3824_v34, %v3772_v24 }
 0x266   :  { %v15915_v59 = vpop.f32.mrf.mxu0 }
 0x284   :  { %v3916_v63 = vpop.f32.mrf.mxu0 }
 0x285   :  { %v3969_v23 = vpop.f32.mrf.mxu1 }
 0x286   :  { %v3918_v61 = vpop.f32.mrf.mxu0 }
 0x287   :  { %v3971_v30 = vpop.f32.mrf.mxu1  ;;  %v3919_v16 = vadd.f32 %v3918_v61, %v3866_v15 }
 0x288   :  { %v3920_v62 = vpop.f32.mrf.mxu0 }
 0x289   :  { %v15923_v12 = vpop.f32.mrf.mxu1  ;;  %v3972_v54 = vadd.f32 %v3971_v30, %v3919_v16 }
 0x28a   :  { %v3922_v17 = vpop.f32.mrf.mxu0 }
 0x28b   :  { %v15926_v1 = vpop.f32.mrf.mxu1  ;;  %v3923_v13 = vadd.f32 %v3922_v17, %v3870_v8  ;;  %v15962_v17 = vrot.slane %v4142_v25, %v15589_v49 }
 0x28c   :  { %v3926_v3 = vpop.f32.mrf.mxu0 }
 0x28d   :  { %v15928_v29 = vpop.f32.mrf.mxu1  ;;  %v3976_v25 = vadd.f32 %v15926_v1, %v3923_v13 }
 0x28e   :  { %v3928_v58 = vpop.f32.mrf.mxu0 }
 0x28f   :  { %v15930_v39 = vpop.f32.mrf.mxu1 }
 0x290   :  { %18482 = vst [vmem:[#allocation36_spill] sm:$0xff] %v15930_v39  ;;  %v3930_v57 = vpop.f32.mrf.mxu0  ;;  %v3917_v39 = vadd.f32 %v3916_v63, %v3864_v9  ;;  %v3921_v63 = vadd.f32 %v3920_v62, %v3868_v42  ;;  %v3827_v62 = vadd.f32 %v15915_v59, %v3774_v18 }
 0x291   :  { %v15941_v6 = vpop.f32.mrf.mxu1 }
 0x292   :  { %v3932_v10 = vpop.f32.mrf.mxu0  ;;  %v3970_v35 = vadd.f32 %v3969_v23, %v3917_v39  ;;  %v3876_v23 = vadd.f32 %v15911_v4, %v3823_v20  ;;  %v3927_v39 = vadd.f32 %v3926_v3, %v3874_v7  ;;  %v3974_v34 = vadd.f32 %v15923_v12, %v3921_v63  ;;  %v15967_v4 = vld [vmem:[%s18447_s21 + $0xd8] sm:$0xff]  ;;  %v13199_v12 = vld [vmem:[#allocation5 + $0x28] sm:$0xff] }
 0x293   :  { %v15946_v33 = vpop.f32.mrf.mxu1  ;;  %v3878_v3 = vadd.f32 %v15913_v2, %v3825_v26  ;;  %v4169_v43 = vmul.f32 %v13199_v12, %v15936_v11  ;;  %v4249_v46 = vmul.f32 %v15598_v41, %v15967_v4  ;;  %v15993_v7 = vld [vmem:[%s18447_s21 + $0x158] sm:$0xff] }
 0x294   :  { %v3929_v59 = vadd.f32 %v3928_v58, %v3876_v23  ;;  %v3880_v58 = vadd.f32 %v15917_v53, %v3827_v62  ;;  %v3980_v2 = vadd.f32 %v15928_v29, %v3927_v39  ;;  %v15986_v53 = vld [vmem:[%s18447_s21 + $0xf8] sm:$0xff]  ;;  %v18485_v62 = vld [vmem:[#allocation32_spill] sm:$0xff] }
 0x295   :  { %v3931_v37 = vadd.f32 %v3930_v57, %v3878_v3  ;;  %v4185_v8 = vadd.f32 %v4169_v43, %v4168_v22  ;;  %v18484_v22 = vld [vmem:[#allocation25_spill] sm:$0xff]  ;;  %v4253_v13 = vmul.f32 %v15598_v41, %v15986_v53 }
 0x297   :  { %v18483_v29 = vld [vmem:[#allocation36_spill] sm:$0xff] }
 0x298   :  { %v3982_v57 = vadd.f32 %v18483_v29, %v3929_v59 }
 0x2c4   :  { %v4022_v60 = vpop.f32.mrf.mxu0 }
 0x2c5   :  { %v4075_v61 = vpop.f32.mrf.mxu1  ;;  %v4023_v36 = vadd.f32 %v4022_v60, %v3970_v35  ;;  %v3933_v35 = vadd.f32 %v3932_v10, %v3880_v58  ;;  %v15999_v60 = vld [vmem:[%s18447_s21 + $0x118] sm:$0xff]  ;;  %v3984_v10 = vadd.f32 %v15941_v6, %v3931_v37  ;;  %v18487_v37 = vld [vmem:[#allocation28_spill] sm:$0xff] }
 0x2c6   :  { %v4024_v21 = vpop.f32.mrf.mxu0  ;;  %v18486_v58 = vld [vmem:[#allocation29_spill] sm:$0xff] }
 0x2c7   :  { %v4077_v32 = vpop.f32.mrf.mxu1  ;;  %v4076_v52 = vadd.f32 %v4075_v61, %v4023_v36  ;;  %v4025_v30 = vadd.f32 %v4024_v21, %v3972_v54  ;;  %v4307_v54 = vadd.f32 %v18484_v22, %v4249_v46  ;;  %v3986_v3 = vadd.f32 %v15946_v33, %v3933_v35  ;;  %v18492_v35 = vld [vmem:[#allocation34_spill] sm:$0xff] }
 0x2c8   :  { %v4026_v9 = vpop.f32.mrf.mxu0 }
 0x2c9   :  { %v4079_v40 = vpop.f32.mrf.mxu1  ;;  %10215 = vst [vmem:[#allocation5 + $0x10] sm:$0xff] %v4076_v52  ;;  %10231 = vst [vmem:[#allocation3 + $0x10] sm:$0xff] %v4076_v52  ;;  %v4078_v15 = vadd.f32 %v4077_v32, %v4025_v30  ;;  %v4027_v51 = vadd.f32 %v4026_v9, %v3974_v34  ;;  %v4166_v47 = vmul.f32 %v15952_v31, %v4076_v52 }
 0x2ca   :  { %10327 = vst [vmem:[#allocation7 + $0x10] sm:$0xff] %v4076_v52  ;;  %v4028_v38 = vpop.f32.mrf.mxu0  ;;  %v4363_v24 = vmul.f32 %v15972_v48, %v4076_v52  ;;  %v4257_v30 = vmul.f32 %v15598_v41, %v15999_v60 }
 0x2cb   :  { %v4081_v0 = vpop.f32.mrf.mxu1  ;;  %10216 = vst [vmem:[#allocation5 + $0x18] sm:$0xff] %v4078_v15  ;;  %10232 = vst [vmem:[#allocation3 + $0x18] sm:$0xff] %v4078_v15  ;;  %v4080_v1 = vadd.f32 %v4079_v40, %v4027_v51  ;;  %v4029_v19 = vadd.f32 %v4028_v38, %v3976_v25  ;;  %v4364_v42 = vmul.f32 %v15958_v55, %v4078_v15  ;;  %v16021_v25 = vld [vmem:[%s18447_s21 + $0x138] sm:$0xff] }
 0x2cc   :  { %10328 = vst [vmem:[#allocation7 + $0x18] sm:$0xff] %v4078_v15  ;;  %v4167_v16 = vmul.f32 %v15962_v17, %v4078_v15  ;;  %v4032_v14 = vpop.f32.mrf.mxu0  ;;  %v4181_v20 = vadd.f32 %v4180_v50, %v4166_v47  ;;  %v13200_v15 = vld [vmem:[#allocation5 + $0x48] sm:$0xff]  ;;  %v4312_v38 = vadd.f32 %v18487_v37, %v4253_v13 }
 0x2cd   :  { %v4085_v27 = vpop.f32.mrf.mxu1  ;;  %10219 = vst [vmem:[#allocation5 + $0x30] sm:$0xff] %v4080_v1  ;;  %10235 = vst [vmem:[#allocation3 + $0x90] sm:$0xff] %v4080_v1  ;;  %v4082_v63 = vadd.f32 %v4081_v0, %v4029_v19  ;;  %v4033_v18 = vadd.f32 %v4032_v14, %v3980_v2  ;;  %4516 = vmatprep.mubr.f32.mxu1 %v4364_v42  ;;  %v4170_v26 = vmul.f32 %v15952_v31, %v4080_v1  ;;  %v18488_v0 = vld [vmem:[#allocation31_spill] sm:$0xff] }
 0x2ce   :  { %10331 = vst [vmem:[#allocation7 + $0x90] sm:$0xff] %v4080_v1  ;;  %v4034_v50 = vpop.f32.mrf.mxu0  ;;  %4517 = vmatmul.mubr.f32.vlgmr.msra.gmra.mxu1 %v4363_v24  ;;  %v4182_v61 = vadd.f32 %v4181_v20, %v4167_v16  ;;  %v4367_v34 = vmul.f32 %v15972_v48, %v4080_v1  ;;  %v4173_v33 = vmul.f32 %v13200_v15, %v15936_v11  ;;  %v18489_v42 = vld [vmem:[#allocation23_spill] sm:$0xff]  ;;  %v18491_v20 = vld [vmem:[#allocation33_spill] sm:$0xff] }
 0x2cf   :  { %v4087_v5 = vpop.f32.mrf.mxu1  ;;  %10220 = vst [vmem:[#allocation5 + $0x38] sm:$0xff] %v4082_v63  ;;  %10236 = vst [vmem:[#allocation3 + $0x98] sm:$0xff] %v4082_v63  ;;  %v4035_v36 = vadd.f32 %v4034_v50, %v3982_v57  ;;  %v16005_v23 = vadd.f32 %v4085_v27, %v4033_v18  ;;  %4623 = vmatpush1.xpose.msra.mxu1 %v18485_v62  ;;  %v4368_v39 = vmul.f32 %v15958_v55, %v4082_v63  ;;  %v13201_v57 = vld [vmem:[#allocation5 + $0x40] sm:$0xff]  ;;  %v13202_v18 = vld [vmem:[#allocation5 + $0x68] sm:$0xff] }
 0x2d0   :  { %10332 = vst [vmem:[#allocation7 + $0x98] sm:$0xff] %v4082_v63  ;;  %v4171_v6 = vmul.f32 %v15962_v17, %v4082_v63  ;;  %4183 = vadd.xlane.f32.xlu0 %v4182_v61  ;;  %v4036_v21 = vpop.f32.mrf.mxu0  ;;  %4624 = vmatprep.subr.mxu1 %v15993_v7  ;;  %v4186_v52 = vadd.f32 %v4185_v8, %v4170_v26  ;;  %v18493_v13 = vld [vmem:[#allocation27_spill] sm:$0xff] }
 0x2d1   :  { %v4089_v32 = vpop.f32.mrf.mxu1  ;;  %10223 = vst [vmem:[#allocation5 + $0x50] sm:$0xff] %v16005_v23  ;;  %10239 = vst [vmem:[#allocation3 + $0x110] sm:$0xff] %v16005_v23  ;;  %v4037_v59 = vadd.f32 %v4036_v21, %v3984_v10  ;;  %v4088_v9 = vadd.f32 %v4087_v5, %v4035_v36  ;;  %4521 = vmatprep.mubr.f32.mxu1 %v4368_v39  ;;  %v4317_v46 = vadd.f32 %v18488_v0, %v4257_v30  ;;  %v13203_v5 = vld [vmem:[#allocation5 + $0x60] sm:$0xff]  ;;  %v18503_v15 = vld [vmem:[#allocation15_spill] sm:$0xff] }
 0x2d2   :  { %10335 = vst [vmem:[#allocation7 + $0x110] sm:$0xff] %v16005_v23  ;;  %v4038_v40 = vpop.f32.mrf.mxu0  ;;  %4522 = vmatmul.mubr.f32.gmra.mxu1 %v4367_v34  ;;  %v4187_v12 = vadd.f32 %v4186_v52, %v4171_v6  ;;  %v4261_v1 = vmul.f32 %v15598_v41, %v16021_v25  ;;  %v4265_v19 = vmul.f32 %v15598_v41, %v15993_v7  ;;  %v4797_v0 = vld [vmem:[%s18375_s3] sm:$0x1] }
 0x2d3   :  { %v4091_v43 = vpop.f32.mrf.mxu1  ;;  %10224 = vst [vmem:[#allocation5 + $0x58] sm:$0xff] %v4088_v9  ;;  %10240 = vst [vmem:[#allocation3 + $0x118] sm:$0xff] %v4088_v9  ;;  %v4039_v51 = vadd.f32 %v4038_v40, %v3986_v3  ;;  %v16024_v47 = vadd.f32 %v4089_v32, %v4037_v59  ;;  %4625 = vmatpush1.xpose.msra.mxu1 %v18486_v58  ;;  %v4372_v2 = vmul.f32 %v15958_v55, %v4088_v9  ;;  %v18496_v3 = vld [vmem:[#allocation24_spill] sm:$0xff]  ;;  %v18497_v59 = vld [vmem:[#allocation10_spill] sm:$0xff] }
 0x2d4   :  { %10336 = vst [vmem:[#allocation7 + $0x118] sm:$0xff] %v4088_v9  ;;  %4188 = vadd.xlane.f32.xlu1 %v4187_v12  ;;  %4308 = vadd.xlane.f32.xlu0 %v4307_v54  ;;  %v4269_v16 = vmul.f32 %v15598_v41, %v18489_v42  ;;  %v4172_v14 = vmul.f32 %v13201_v57, %v15939_v56  ;;  %v18490_v41 = vld [vmem:[#allocation30_spill] sm:$0xff]  ;;  %v18499_v40 = vld [vmem:[#allocation12_spill] sm:$0xff]  ;;  %v18500_v12 = vld [vmem:[#allocation13_spill] sm:$0xff] }
 0x2d5   :  { %10227 = vst [vmem:[#allocation5 + $0x70] sm:$0xff] %v16024_v47  ;;  %10243 = vst [vmem:[#allocation3 + $0x190] sm:$0xff] %v16024_v47  ;;  %v4092_v29 = vadd.f32 %v4091_v43, %v4039_v51  ;;  %4626 = vmatprep.subr.mxu1 %v16021_v25  ;;  %4666 = vmatprep.mubr.f32.mxu1 %v4372_v2  ;;  %v4174_v27 = vmul.f32 %v15952_v31, %v16005_v23  ;;  %v18501_v43 = vld [vmem:[#allocation14_spill] sm:$0xff]  ;;  %v18506_v51 = vld [vmem:[#allocation20_spill] sm:$0xff] }
 0x2d6   :  { %10339 = vst [vmem:[#allocation7 + $0x190] sm:$0xff] %v16024_v47  ;;  %v4190_v24 = vadd.f32 %v4173_v33, %v4172_v14  ;;  %v4322_v8 = vadd.f32 %v18491_v20, %v4261_v1  ;;  %v4327_v63 = vadd.f32 %v18492_v35, %v4265_v19  ;;  %v4177_v26 = vmul.f32 %v13202_v18, %v15936_v11  ;;  %v18494_v11 = vld [vmem:[#allocation35_spill] sm:$0xff]  ;;  %v18505_v33 = vld [vmem:[#allocation22_spill] sm:$0xff]  ;;  %v18507_v58 = vld [vmem:[#allocation17_spill] sm:$0xff]  ;;  %v4274_v20 = vpop.xlane.xlu0 %4273 }
 0x2d7   :  { %10228 = vst [vmem:[#allocation5 + $0x78] sm:$0xff] %v4092_v29  ;;  %10244 = vst [vmem:[#allocation3 + $0x198] sm:$0xff] %v4092_v29  ;;  %4627 = vmatpush1.xpose.msra.mxu1 %v18490_v41  ;;  %v4335_v10 = vsel %vm4295_vm0, %v4269_v16, 0.0  ;;  %v4175_v50 = vmul.f32 %v15962_v17, %v4088_v9  ;;  %v4176_v22 = vmul.f32 %v13203_v5, %v15939_v56  ;;  %v18495_v56 = vld [vmem:[#allocation26_spill] sm:$0xff]  ;;  %v18498_v9 = vld [vmem:[#allocation11_spill] sm:$0xff]  ;;  %v18509_v41 = vlaneseq }
 0x2d8   :  { %10340 = vst [vmem:[#allocation7 + $0x198] sm:$0xff] %v4092_v29  ;;  %4313 = vadd.xlane.f32.xlu1 %v4312_v38  ;;  %4318 = vadd.xlane.f32.xlu0 %v4317_v46  ;;  %v4191_v61 = vadd.f32 %v4190_v24, %v4174_v27  ;;  %v4178_v54 = vmul.f32 %v15952_v31, %v16024_v47  ;;  %v4823_v46 = vsub.f32 1.0, %v4797_v0  ;;  %v16098_v16 = vld [vmem:[%s18376_s4 + $0x8] sm:$0xff]  ;;  %v13335_v27 = vmov 0  }
 0x2d9   :  { %4628 = vmatprep.subr.mxu1 %v15999_v60  ;;  %v4336_v62 = vadd.f32 %v4335_v10, %v18494_v11  ;;  %v4195_v39 = vadd.f32 %v4177_v26, %v4176_v22  ;;  %v4179_v32 = vmul.f32 %v15962_v17, %v4092_v29  ;;  %v4376_v17 = vmul.f32 %v15958_v55, %v4092_v29  ;;  %v18504_v55 = vld [vmem:[#allocation16_spill] sm:$0xff]  ;;  %v4284_v10 = vpop.xlane.xlu1 %4283 }
 0x2da   :  { %v4192_v21 = vadd.f32 %v4191_v61, %v4175_v50  ;;  %v16093_v1 = vrot.slane %v4797_v0, %v18455_v44  ;;  %v4825_v19 = vmul.f32 -1e+30, %v4823_v46  ;;  %11602 = vset.pattern.permute.xlu1 %v13335_v27  ;;  %11601 = vset.pattern.permute.xlu0 %v13335_v27  ;;  %v4690_v24 = vand.u32 127, %v18509_v41  ;;  %v4279_v50 = vpop.xlane.xlu0 %4278  ;;  %v16164_v41 = vld [vmem:[%s18376_s4 + $0x18] sm:$0xff] }
 0x2db   :  { %4629 = vmatpush1.xpose.msra.mxu1 %v18493_v13  ;;  %v4196_v34 = vadd.f32 %v4195_v39, %v4178_v54 }
 0x2dc   :  { %4323 = vadd.xlane.f32.xlu1 %v4322_v8  ;;  %4328 = vadd.xlane.f32.xlu0 %v4327_v63  ;;  %v16054_v36 = vpop.f32.mrf.mxu0  ;;  %v16103_v29 = vrot.slane %v4825_v19, %v18455_v44  ;;  %v4695_v8 = vadd.s32 4294967288, %v4690_v24  ;;  %v4702_v35 = vadd.s32 4294967280, %v4690_v24  ;;  %v18510_v63 = vld [vmem:[#allocation19_spill] sm:$0xff]  ;;  %v4709_v61 = vadd.s32 4294967272, %v4690_v24 }
 0x2dd   :  { %4630 = vmatprep.subr.mxu1 %v15986_v53  ;;  %v4197_v30 = vadd.f32 %v4196_v34, %v4179_v32  ;;  %v4371_v53 = vmul.f32 %v15972_v48, %v16005_v23  ;;  %v18502_v23 = vld [vmem:[#allocation18_spill] sm:$0xff]  ;;  %v16112_v18 = vsub.s32 %v4690_v24, %v18510_v63  ;;  %v4716_v13 = vadd.s32 4294967264, %v4690_v24  ;;  %v4289_v39 = vpop.xlane.xlu1 %4288 }
 0x2de   :  { %v4445_v6 = vpop.f32.mrf.mxu0  ;;  %v16115_v26 = vsub.s32 %v4695_v8, %v18510_v63  ;;  %v16118_v5 = vsub.s32 %v4702_v35, %v18510_v63  ;;  %v16123_v11 = vsub.s32 %v4709_v61, %v18510_v63 }
 0x2df   :  { %4631 = vmatpush1.xpose.msra.mxu1 %v18495_v56  ;;  %v4694_v22 = vrot.slane %v4274_v20, %v16112_v18  ;;  %v16128_v32 = vsub.s32 %v4716_v13, %v18510_v63  ;;  %v4294_v56 = vpop.xlane.xlu0 %4293 }
 0x2e0   :  { %4337 = vadd.xlane.f32.xlu1 %v4336_v62  ;;  %4193 = vadd.xlane.f32.xlu0 %v4192_v21  ;;  %v16060_v31 = vpop.f32.mrf.mxu0  ;;  %v4699_v54 = vrot.slane %v4279_v50, %v16115_v26  ;;  %v4706_v62 = vrot.slane %v4284_v10, %v16118_v5  ;;  %v4723_v21 = vadd.s32 4294967256, %v4690_v24  ;;  %v4713_v34 = vrot.slane %v4289_v39, %v16123_v11 }
 0x2e1   :  { %4632 = vmatprep.subr.mxu1 %v15967_v4  ;;  %v4375_v4 = vmul.f32 %v15972_v48, %v16024_v47  ;;  %v18508_v48 = vld [vmem:[#allocation21_spill] sm:$0xff] }
 0x2e2   :  { %v4450_v52 = vpop.f32.mrf.mxu0  ;;  %v4701_v6 = vsel %vm4700_vm2, %v4699_v54, %v4694_v22 }
 0x2e3   :  { %4633 = vmatpush1.xpose.msra.mxu1 %v18496_v3  ;;  %v4708_v52 = vsel %vm4707_vm3, %v4706_v62, %v4701_v6  ;;  %v4720_v3 = vrot.slane %v4294_v56, %v16128_v32 }
 0x2e4   :  { %4198 = vadd.xlane.f32.xlu1 %v4197_v30  ;;  %10986 = vmatprep.subr.msk.mxu1 %vm4295_vm0, %v18497_v59  ;;  %v16133_v30 = vsub.s32 %v4723_v21, %v18510_v63  ;;  %v4715_v59 = vsel %vm4714_vm4, %v4713_v34, %v4708_v52 }
 0x2e6   :  { %4667 = vmatmul.mubr.f32.vlgmr.msra.gmra.mxu1 %v4371_v53  ;;  %v4304_v53 = vpop.xlane.xlu1 %4303 }
 0x2e7   :  { %4671 = vmatprep.mubr.f32.mxu1 %v4376_v17  ;;  %10987 = vmatpush1.msk.msra.mxu1 %vm4295_vm0, %v18498_v9  ;;  %v4727_v17 = vrot.slane %v4304_v53, %v16133_v30  ;;  %v4722_v9 = vsel %vm4721_vm5, %v4720_v3, %v4715_v59 }
 0x2e8   :  { %5243 = vmatprep.subr.mxu1 %v18499_v40 }
 0x2e9   :  { %5244 = vmatpush1.msra.mxu1 %v18500_v12  ;;  %v4798_v12 = vld [vmem:[%s18375_s3 + $0x1] sm:$0x1] }
 0x2ea   :  { %4672 = vmatmul.mubr.f32.gmra.mxu1 %v4375_v4  ;;  %5245 = vmatprep.subr.mxu1 %v18501_v43  ;;  %v4729_v43 = vsel %vm4728_vm6, %v4727_v17, %v4722_v9  ;;  %v16155_v19 = vrot.slane %v4798_v12, %v18455_v44 }
 0x2eb   :  { %5246 = vmatpush1.msra.mxu1 %v18502_v23 }
 0x2ec   :  { %5247 = vmatprep.subr.mxu1 %v18503_v15  ;;  %v4824_v15 = vsub.f32 1.0, %v4798_v12 }
 0x2ed   :  { %5248 = vmatpush1.msra.mxu1 %v18504_v55 }
 0x2ee   :  { %5249 = vmatprep.subr.mxu1 %v18505_v33 }
 0x2ef   :  { %5250 = vmatpush1.msra.mxu1 %v18506_v51 }
 0x2f0   :  { %5251 = vmatprep.subr.mxu1 %v18507_v58  ;;  %v16147_v58 = vstv %s18382_s10 }
 0x2f1   :  { %5252 = vmatpush1.msra.mxu1 %v18508_v48 }
 0x2f2   :  { %10998 = vmatprep.subr.msk.mxu1 %vm4295_vm0, %v18489_v42  ;;  %v4818_v42 = vmul.f32 %v16093_v1, %v16098_v16 }
 0x2f4   :  { %v16085_v47 = vpop.f32.mrf.mxu0  ;;  %v16106_v57 = vadd.f32 %v16103_v29, %v4818_v42  ;;  %v4826_v42 = vmul.f32 -1e+30, %v4824_v15  ;;  %v16212_v15 = vld [vmem:[%s18376_s4 + $0x10] sm:$0xff] }
 0x2f6   :  { %v4595_v2 = vpop.f32.mrf.mxu0  ;;  %v4857_v14 = vsel %vm4847_vm1, %v16106_v57, -inf  ;;  %v4836_v61 = vrot.slane %v4826_v42, %v18455_v44 }
 0x2f7   :  { %4858 = vmax.xlane.f32.xlu1 %v4857_v14  ;;  %v16152_v2 = vld [vmem:[%s18376_s4] sm:$0xff] }
 0x2f8   :  { %v16087_v37 = vpop.f32.mrf.mxu0  ;;  %v4817_v24 = vmul.f32 %v16093_v1, %v16152_v2 }
 0x2fa   :  { %v4600_v38 = vpop.f32.mrf.mxu0 }
 0x359   :  { %v4184_v4 = vpop.xlane.xlu0 %4183 }
 0x35a   :  { %v4779_v55 = vadd.f32 %v4729_v43, %v4184_v4 }
 0x35d   :  { %v4189_v40 = vpop.xlane.xlu1 %4188  ;;  %v4309_v51 = vpop.xlane.xlu0 %4308 }
 0x35e   :  { %v4733_v20 = vrot.slane %v4309_v51, %v16112_v18  ;;  %v4821_v51 = vmul.f32 %v16155_v19, %v16212_v15 }
 0x361   :  { %v4314_v38 = vpop.xlane.xlu1 %4313  ;;  %v4319_v50 = vpop.xlane.xlu0 %4318 }
 0x362   :  { %v4737_v8 = vrot.slane %v4314_v38, %v16115_v26  ;;  %v4742_v22 = vrot.slane %v4319_v50, %v16118_v5  ;;  %v16183_v26 = vadd.f32 %v16103_v29, %v4817_v24  ;;  %v4799_v38 = vld [vmem:[%s18374_s2] sm:$0xff] }
 0x363   :  { %v4964_v42 = vsub.f32 1.0, %v4799_v38 }
 0x364   :  { %v4738_v62 = vsel %vm4700_vm2, %v4737_v8, %v4733_v20  ;;  %v4854_v52 = vsel %vm4847_vm1, %v16183_v26, -inf }
 0x365   :  { %v4324_v54 = vpop.xlane.xlu1 %4323  ;;  %v4743_v21 = vsel %vm4707_vm3, %v4742_v22, %v4738_v62  ;;  %v4329_v3 = vpop.xlane.xlu0 %4328  ;;  %v4968_v20 = vmul.f32 -1e+30, %v4964_v42 }
 0x366   :  { %v4747_v5 = vrot.slane %v4324_v54, %v16123_v11  ;;  %v4752_v53 = vrot.slane %v4329_v3, %v16128_v32 }
 0x368   :  { %v4748_v11 = vsel %vm4714_vm4, %v4747_v5, %v4743_v21 }
 0x369   :  { %v4338_v59 = vpop.xlane.xlu1 %4337  ;;  %v4753_v9 = vsel %vm4721_vm5, %v4752_v53, %v4748_v11 }
 0x36a   :  { %v4757_v17 = vrot.slane %v4338_v59, %v16133_v30 }
 0x36c   :  { %v4758_v4 = vsel %vm4728_vm6, %v4757_v17, %v4753_v9 }
 0x36d   :  { %v4199_v8 = vpop.xlane.xlu1 %4198 }
 0x380   :  { %v4859_v21 = vpop.xlane.xlu1 %4858 }
 0x38e   :  { %v4518_v23 = vpop.f32.mrf.mxu1 }
 0x38f   :  { %v4519_v33 = vadd.f32 %v4518_v23, %v16054_v36  ;;  %v4780_v36 = vadd.f32 %v4729_v43, %v4189_v40  ;;  %v4194_v40 = vpop.xlane.xlu0 %4193 }
 0x390   :  { %v4520_v48 = vpop.f32.mrf.mxu1  ;;  %v4781_v12 = vadd.f32 %v4758_v4, %v4194_v40 }
 0x391   :  { %v4783_v0 = vadd.f32 %v4779_v55, %v4519_v33 }
 0x392   :  { %v4523_v46 = vpop.f32.mrf.mxu1 }
 0x393   :  { %v16158_v14 = vadd.f32 %v16147_v58, %v4783_v0  ;;  %v4524_v27 = vadd.f32 %v4523_v46, %v16060_v31  ;;  %v4822_v31 = vmul.f32 %v16155_v19, %v16164_v41  ;;  %v16226_v46 = vadd.f32 %v4836_v61, %v4821_v51 }
 0x394   :  { %v4525_v35 = vpop.f32.mrf.mxu1 }
 0x395   :  { %v4784_v63 = vadd.f32 %v4780_v36, %v4524_v27  ;;  %v4815_v10 = vmul.f32 %v16093_v1, %v16158_v14  ;;  %v16195_v56 = vadd.f32 %v4836_v61, %v4822_v31  ;;  %v4800_v36 = vld [vmem:[%s18374_s2 + $0x8] sm:$0xff]  ;;  %v4866_v24 = vsel %vm4847_vm1, %v16226_v46, -inf }
 0x396   :  { %v4965_v62 = vsub.f32 1.0, %v4800_v36 }
 0x397   :  { %v16177_v13 = vadd.f32 %v16147_v58, %v4784_v63  ;;  %v16180_v18 = vadd.f32 %v16103_v29, %v4815_v10  ;;  %v4782_v63 = vadd.f32 %v4758_v4, %v4199_v8 }
 0x399   :  { %v4848_v39 = vsel %vm4847_vm1, %v16180_v18, -inf  ;;  %v4816_v6 = vmul.f32 %v16093_v1, %v16177_v13 }
 0x39a   :  { %4849 = vmax.xlane.f32.xlu0 %v4848_v39  ;;  %v4969_v39 = vmul.f32 -1e+30, %v4965_v62 }
 0x39b   :  { %v16193_v34 = vadd.f32 %v16103_v29, %v4816_v6  ;;  %v4869_v29 = vsel %vm4847_vm1, %v16195_v56, -inf }
 0x39d   :  { %v4851_v1 = vsel %vm4847_vm1, %v16193_v34, -inf }
 0x39e   :  { %4852 = vmax.xlane.f32.xlu1 %v4851_v1  ;;  %4855 = vmax.xlane.f32.xlu0 %v4854_v52  ;;  %v4875_v52 = vsub.f32 %v16106_v57, %v4859_v21 }
 0x3a0   :  { %v4886_v59 = vmul.f32 1.442695, %v4875_v52 }
 0x3a2   :  { %4870 = vmax.xlane.f32.xlu1 %v4869_v29 }
 0x3a6   :  { %v4668_v32 = vpop.f32.mrf.mxu1 }
 0x3a7   :  { %v4669_v43 = vadd.f32 %v4668_v32, %v16085_v47 }
 0x3a8   :  { %v4670_v23 = vpop.f32.mrf.mxu1 }
 0x3a9   :  { %v4785_v55 = vadd.f32 %v4781_v12, %v4669_v43 }
 0x3aa   :  { %v4673_v33 = vpop.f32.mrf.mxu1 }
 0x3ab   :  { %v16215_v30 = vadd.f32 %v16147_v58, %v4785_v55  ;;  %v4674_v35 = vadd.f32 %v4673_v33, %v16087_v37  ;;  %v4801_v37 = vld [vmem:[%s18374_s2 + $0x10] sm:$0xff] }
 0x3ac   :  { %v4675_v48 = vpop.f32.mrf.mxu1  ;;  %v4966_v6 = vsub.f32 1.0, %v4801_v37 }
 0x3ad   :  { %v4819_v47 = vmul.f32 %v16155_v19, %v16215_v30  ;;  %v4786_v10 = vadd.f32 %v4782_v63, %v4674_v35 }
 0x3af   :  { %v16224_v0 = vadd.f32 %v4836_v61, %v4819_v47  ;;  %v16237_v50 = vadd.f32 %v16147_v58, %v4786_v10  ;;  %v4802_v58 = vld [vmem:[%s18374_s2 + $0x18] sm:$0xff]  ;;  %s10426_s2 = sshll.u32 %s13338_s1, 4  ;;  %s10427_s2 = int_to_ptr.vmem [resolvable:$true] %s10426_s2 }
 0x3b1   :  { %v4860_v27 = vsel %vm4847_vm1, %v16224_v0, -inf  ;;  %v4820_v31 = vmul.f32 %v16155_v19, %v16237_v50  ;;  %v4970_v19 = vmul.f32 -1e+30, %v4966_v6 }
 0x3b2   :  { %4861 = vmax.xlane.f32.xlu0 %v4860_v27  ;;  %v13336_v27 = vmov 0.0  }
 0x3b3   :  { %4943 = vperm.xlu1 %11602, %v4800_v36   ;;  %v16241_v22 = vadd.f32 %v4836_v61, %v4820_v31  ;;  %v4967_v61 = vsub.f32 1.0, %v4802_v58  ;;  %5196 = vmatprep.mubr.f32.mxu0 %v13336_v27 }
 0x3b4   :  { %5285 = vmatprep.mubr.f32.mxu1 %v13336_v27 }
 0x3b5   :  { %v4863_v54 = vsel %vm4847_vm1, %v16241_v22, -inf  ;;  %v4971_v5 = vmul.f32 -1e+30, %v4967_v61 }
 0x3b6   :  { %4867 = vmax.xlane.f32.xlu0 %v4866_v24 }
 0x3b7   :  { %4974 = vperm.xlu1 %11602, %v4968_v20  }
 0x3cc   :  { %4938 = vperm.xlu0 %11601, %v4799_v38  }
 0x3db   :  { %4864 = vmax.xlane.f32.xlu1 %v4863_v54 }
 0x3ec   :  { %4979 = vperm.xlu1 %11602, %v4969_v39  }
 0x3f0   :  { %4948 = vperm.xlu1 %11602, %v4801_v37  }
 0x3f4   :  { %4953 = vperm.xlu1 %11602, %v4802_v58  }
 0x3f8   :  { %4984 = vperm.xlu1 %11602, %v4970_v19  }
 0x3fc   :  { %4989 = vperm.xlu1 %11602, %v4971_v5  }
 0x423   :  { %v4850_v3 = vpop.xlane.xlu0 %4849 }
 0x424   :  { %v4872_v53 = vsub.f32 %v16180_v18, %v4850_v3 }
 0x426   :  { %v4880_v1 = vmul.f32 1.442695, %v4872_v53 }
 0x427   :  { %v4853_v11 = vpop.xlane.xlu1 %4852  ;;  %v4856_v29 = vpop.xlane.xlu0 %4855 }
 0x428   :  { %13139 = vpow2.f32 %v4880_v1  ;;  %v4873_v17 = vsub.f32 %v16193_v34, %v4853_v11  ;;  %v4874_v9 = vsub.f32 %v16183_v26, %v4856_v29 }
 0x429   :  { %13141 = vpow2.f32 %v4886_v59 }
 0x42a   :  { %v4882_v4 = vmul.f32 1.442695, %v4873_v17  ;;  %v4884_v40 = vmul.f32 1.442695, %v4874_v9 }
 0x42c   :  { %13143 = vpow2.f32 %v4882_v4 }
 0x42d   :  { %13145 = vpow2.f32 %v4884_v40 }
 0x435   :  { %v16255_v32 = vpop.eup %13139 }
 0x436   :  { %v4896_v57 = vsel %vm4847_vm1, %v16255_v32, 0.0  ;;  %v16259_v18 = vpop.eup %13141 }
 0x437   :  { %4897 = vadd.xlane.f32.xlu1 %v4896_v57  ;;  %v4905_v34 = vsel %vm4847_vm1, %v16259_v18, 0.0 }
 0x439   :  { %v16261_v12 = vpop.eup %13143 }
 0x43a   :  { %v16263_v43 = vpop.eup %13145  ;;  %v4899_v26 = vsel %vm4847_vm1, %v16261_v12, 0.0 }
 0x43b   :  { %v4862_v23 = vpop.xlane.xlu0 %4861  ;;  %4900 = vadd.xlane.f32.xlu0 %v4899_v26  ;;  %4906 = vadd.xlane.f32.xlu1 %v4905_v34  ;;  %v4902_v33 = vsel %vm4847_vm1, %v16263_v43, 0.0 }
 0x43c   :  { %v4876_v55 = vsub.f32 %v16224_v0, %v4862_v23 }
 0x43e   :  { %v4888_v51 = vmul.f32 1.442695, %v4876_v55 }
 0x43f   :  { %v4868_v48 = vpop.xlane.xlu0 %4867  ;;  %4903 = vadd.xlane.f32.xlu0 %v4902_v33 }
 0x440   :  { %13147 = vpow2.f32 %v4888_v51  ;;  %v4878_v38 = vsub.f32 %v16226_v46, %v4868_v48  ;;  %v4871_v46 = vpop.xlane.xlu1 %4870 }
 0x441   :  { %v4879_v63 = vsub.f32 %v16195_v56, %v4871_v46 }
 0x442   :  { %v4892_v47 = vmul.f32 1.442695, %v4878_v38 }
 0x443   :  { %v4894_v62 = vmul.f32 1.442695, %v4879_v63 }
 0x444   :  { %13149 = vpow2.f32 %v4892_v47  ;;  %v4944_v20 = vpop.permute.xlu1 %4943 }
 0x445   :  { %v4959_v39 = vmul.f32 %v4944_v20, %v16098_v16 }
 0x447   :  { %v4939_v35 = vpop.permute.xlu0 %4938 }
 0x448   :  { %v4975_v8 = vpop.permute.xlu1 %4974  ;;  %v4958_v10 = vmul.f32 %v4939_v35, %v16152_v2  ;;  %v4957_v2 = vmul.f32 %v4944_v20, %v16177_v13 }
 0x44a   :  { %v4994_v37 = vadd.f32 %v4975_v8, %v4958_v10 }
 0x44c   :  { %v5054_v61 = vsel %vm4847_vm1, %v4994_v37, -inf }
 0x44d   :  { %v16273_v42 = vpop.eup %13147 }
 0x44e   :  { %v4908_v36 = vsel %vm4847_vm1, %v16273_v42, 0.0 }
 0x44f   :  { %4909 = vadd.xlane.f32.xlu0 %v4908_v36 }
 0x451   :  { %v16279_v0 = vpop.eup %13149 }
 0x452   :  { %v4914_v24 = vsel %vm4847_vm1, %v16279_v0, 0.0 }
 0x453   :  { %4915 = vadd.xlane.f32.xlu0 %v4914_v24 }
 0x464   :  { %v4865_v31 = vpop.xlane.xlu1 %4864 }
 0x465   :  { %v4877_v54 = vsub.f32 %v16241_v22, %v4865_v31  ;;  %v4956_v22 = vmul.f32 %v4939_v35, %v16158_v14 }
 0x467   :  { %v4890_v6 = vmul.f32 1.442695, %v4877_v54  ;;  %v4992_v1 = vadd.f32 %v4975_v8, %v4956_v22 }
 0x468   :  { %v4980_v58 = vpop.permute.xlu1 %4979 }
 0x469   :  { %13151 = vpow2.f32 %v4890_v6  ;;  %v4995_v19 = vadd.f32 %v4980_v58, %v4959_v39  ;;  %v16291_v16 = vadd.f32 %v4980_v58, %v4957_v2  ;;  %v5000_v34 = vsel %vm4847_vm1, %v4992_v1, -inf }
 0x46a   :  { %13153 = vpow2.f32 %v4894_v62 }
 0x46b   :  { %v5055_v5 = vsel %vm4847_vm1, %v4995_v19, -inf  ;;  %v5001_v4 = vsel %vm4847_vm1, %v16291_v16, -inf }
 0x46c   :  { %v5056_v21 = vmax.f32 %v5054_v61, %v5055_v5  ;;  %v4949_v56 = vpop.permute.xlu1 %4948 }
 0x46d   :  { %v4960_v17 = vmul.f32 %v4949_v56, %v16215_v30  ;;  %v5002_v30 = vmax.f32 %v5000_v34, %v5001_v4  ;;  %v4962_v10 = vmul.f32 %v4949_v56, %v16212_v15 }
 0x46e   :  { %v5057_v52 = vrot.slane %v5056_v21, 4 }
 0x46f   :  { %v5003_v46 = vrot.slane %v5002_v30, 4 }
 0x470   :  { %v5058_v3 = vmax.f32 %v5056_v21, %v5057_v52  ;;  %v4954_v53 = vpop.permute.xlu1 %4953 }
 0x471   :  { %v4961_v13 = vmul.f32 %v4954_v53, %v16237_v50  ;;  %v4963_v8 = vmul.f32 %v4954_v53, %v16164_v41  ;;  %v5004_v63 = vmax.f32 %v5002_v30, %v5003_v46 }
 0x472   :  { %v5059_v59 = vrot.slane %v5058_v3, 2 }
 0x473   :  { %v5005_v39 = vrot.slane %v5004_v63, 2 }
 0x474   :  { %v5060_v11 = vmax.f32 %v5058_v3, %v5059_v59  ;;  %v4985_v29 = vpop.permute.xlu1 %4984 }
 0x475   :  { %v4996_v57 = vadd.f32 %v4985_v29, %v4960_v17  ;;  %v4998_v54 = vadd.f32 %v4985_v29, %v4962_v10 }
 0x476   :  { %v16294_v9 = vpop.eup %13151  ;;  %v5061_v40 = vrot.slane %v5060_v11, 1 }
 0x477   :  { %v4911_v14 = vsel %vm4847_vm1, %v16294_v9, 0.0  ;;  %v16301_v26 = vpop.eup %13153  ;;  %v5009_v38 = vsel %vm4847_vm1, %v4996_v57, -inf  ;;  %v5063_v6 = vsel %vm4847_vm1, %v4998_v54, -inf }
 0x478   :  { %v5062_v23 = vmax.f32 %v5060_v11, %v5061_v40  ;;  %v4990_v55 = vpop.permute.xlu1 %4989  ;;  %4912 = vadd.xlane.f32.xlu1 %v4911_v14  ;;  %v4917_v50 = vsel %vm4847_vm1, %v16301_v26, 0.0 }
 0x479   :  { %v4997_v33 = vadd.f32 %v4990_v55, %v4961_v13  ;;  %v4999_v31 = vadd.f32 %v4990_v55, %v4963_v8 }
 0x47a   :  { %v5072_v51 = vsub.f32 %v4994_v37, %v5062_v23  ;;  %v5073_v48 = vsub.f32 %v4995_v19, %v5062_v23  ;;  %v5006_v19 = vmax.f32 %v5004_v63, %v5005_v39 }
 0x47b   :  { %v5010_v47 = vsel %vm4847_vm1, %v4997_v33, -inf  ;;  %v5064_v37 = vsel %vm4847_vm1, %v4999_v31, -inf }
 0x47c   :  { %v5076_v36 = vmul.f32 1.442695, %v5072_v51  ;;  %v5011_v24 = vmax.f32 %v5009_v38, %v5010_v47  ;;  %4918 = vadd.xlane.f32.xlu1 %v4917_v50  ;;  %v5078_v20 = vmul.f32 1.442695, %v5073_v48  ;;  %v5065_v61 = vmax.f32 %v5063_v6, %v5064_v37 }
 0x47d   :  { %v5007_v52 = vrot.slane %v5006_v19, 1 }
 0x47e   :  { %13155 = vpow2.f32 %v5076_v36  ;;  %v5012_v35 = vrot.slane %v5011_v24, 4  ;;  %v5066_v41 = vrot.slane %v5065_v61, 4 }
 0x47f   :  { %13157 = vpow2.f32 %v5078_v20  ;;  %v5008_v53 = vmax.f32 %v5006_v19, %v5007_v52 }
 0x480   :  { %v5013_v62 = vmax.f32 %v5011_v24, %v5012_v35  ;;  %v5067_v59 = vmax.f32 %v5065_v61, %v5066_v41 }
 0x481   :  { %v5018_v4 = vsub.f32 %v4992_v1, %v5008_v53  ;;  %v5019_v14 = vsub.f32 %v16291_v16, %v5008_v53 }
 0x482   :  { %v5014_v58 = vrot.slane %v5013_v62, 2  ;;  %v5068_v40 = vrot.slane %v5067_v59, 2 }
 0x483   :  { %v5022_v55 = vmul.f32 1.442695, %v5018_v4  ;;  %v5024_v38 = vmul.f32 1.442695, %v5019_v14 }
 0x484   :  { %v5015_v5 = vmax.f32 %v5013_v62, %v5014_v58  ;;  %v5069_v51 = vmax.f32 %v5067_v59, %v5068_v40 }
 0x485   :  { %13159 = vpow2.f32 %v5022_v55 }
 0x486   :  { %v5016_v3 = vrot.slane %v5015_v5, 1  ;;  %v5070_v24 = vrot.slane %v5069_v51, 1 }
 0x488   :  { %v5017_v17 = vmax.f32 %v5015_v5, %v5016_v3  ;;  %v5071_v1 = vmax.f32 %v5069_v51, %v5070_v24  ;;  %v13206_v24 = vld [vmem:[%s18447_s21 + $0x148] sm:$0xff] }
 0x48a   :  { %v5020_v23 = vsub.f32 %v4996_v57, %v5017_v17  ;;  %v5021_v30 = vsub.f32 %v4997_v33, %v5017_v17  ;;  %v5074_v46 = vsub.f32 %v4998_v54, %v5071_v1  ;;  %v5075_v20 = vsub.f32 %v4999_v31, %v5071_v1  ;;  %v13207_v1 = vld [vmem:[%s18447_s21 + $0x140] sm:$0xff] }
 0x48b   :  { %v13156_v21 = vpop.eup %13155 }
 0x48c   :  { %v13158_v2 = vpop.eup %13157  ;;  %v5084_v22 = vsel %vm4847_vm1, %v13156_v21, 0.0  ;;  %v5026_v47 = vmul.f32 1.442695, %v5020_v23  ;;  %v5028_v36 = vmul.f32 1.442695, %v5021_v30 }
 0x48d   :  { %v5085_v15 = vsel %vm4847_vm1, %v13158_v2, 0.0  ;;  %v5080_v16 = vmul.f32 1.442695, %v5074_v46  ;;  %v5082_v57 = vmul.f32 1.442695, %v5075_v20  ;;  %v13208_v46 = vld [vmem:[%s18447_s21 + $0x150] sm:$0xff] }
 0x48e   :  { %v5086_v56 = vadd.f32 %v5085_v15, %v5084_v22 }
 0x490   :  { %v5087_v11 = vrot.slane %v5086_v56, 4 }
 0x492   :  { %v5088_v29 = vadd.f32 %v5087_v11, %v5086_v56  ;;  %v16315_v8 = vpop.eup %13159 }
 0x493   :  { %v5030_v31 = vsel %vm4847_vm1, %v16315_v8, 0.0 }
 0x494   :  { %v5089_v13 = vrot.slane %v5088_v29, 2 }
 0x496   :  { %v5090_v34 = vadd.f32 %v5089_v13, %v5088_v29 }
 0x498   :  { %v5091_v48 = vrot.slane %v5090_v34, 1 }
 0x49a   :  { %v5092_v50 = vadd.f32 %v5091_v48, %v5090_v34 }
 0x49c   :  { %13161 = vrcp.f32 %v5092_v50  ;;  %v13204_v50 = vld [vmem:[%s18447_s21 + $0x160] sm:$0x1] }
 0x49d   :  { %13163 = vpow2.f32 %v5024_v38 }
 0x49e   :  { %13165 = vpow2.f32 %v5026_v47 }
 0x49f   :  { %13167 = vpow2.f32 %v5028_v36 }
 0x4a0   :  { %13169 = vpow2.f32 %v5080_v16 }
 0x4a1   :  { %13171 = vpow2.f32 %v5082_v57 }
 0x4a9   :  { %v13162_v33 = vpop.eup %13161 }
 0x4aa   :  { %v16317_v35 = vpop.eup %13163  ;;  %v16319_v63 = vmul.f32 %v13162_v33, %v13158_v2  ;;  %v16321_v10 = vmul.f32 %v13162_v33, %v13156_v21  ;;  %v13211_v33 = vld [vmem:[%s18447_s21 + $0x130] sm:$0xff] }
 0x4ab   :  { %v16323_v62 = vpop.eup %13165  ;;  %v5031_v54 = vsel %vm4847_vm1, %v16317_v35, 0.0 }
 0x4ac   :  { %v16325_v39 = vpop.eup %13167  ;;  %v5039_v37 = vsel %vm4847_vm1, %v16323_v62, 0.0  ;;  %v5032_v58 = vadd.f32 %v5031_v54, %v5030_v31 }
 0x4ad   :  { %v5040_v6 = vsel %vm4847_vm1, %v16325_v39, 0.0  ;;  %v16335_v21 = vpop.eup %13169 }
 0x4ae   :  { %v5041_v19 = vadd.f32 %v5040_v6, %v5039_v37  ;;  %v5033_v61 = vrot.slane %v5032_v58, 4  ;;  %v16337_v52 = vpop.eup %13171  ;;  %v5093_v22 = vsel %vm4847_vm1, %v16335_v21, 0.0  ;;  %v13213_v6 = vld [vmem:[%s18447_s21 + $0x100] sm:$0xff] }
 0x4af   :  { %v5094_v15 = vsel %vm4847_vm1, %v16337_v52, 0.0 }
 0x4b0   :  { %v5042_v5 = vrot.slane %v5041_v19, 4  ;;  %v5034_v41 = vadd.f32 %v5033_v61, %v5032_v58  ;;  %v5095_v59 = vadd.f32 %v5094_v15, %v5093_v22  ;;  %v13214_v58 = vld [vmem:[%s18447_s21 + $0x110] sm:$0xff]  ;;  %v13219_v22 = vld [vmem:[%s18447_s21 + $0xc8] sm:$0xff]  ;;  %v13220_v15 = vld [vmem:[%s18447_s21 + $0xd8] sm:$0xff] }
 0x4b2   :  { %v5043_v2 = vadd.f32 %v5042_v5, %v5041_v19  ;;  %v5035_v56 = vrot.slane %v5034_v41, 2  ;;  %v5096_v4 = vrot.slane %v5095_v59, 4  ;;  %v13216_v19 = vld [vmem:[%s18447_s21 + $0xf8] sm:$0xff] }
 0x4b4   :  { %v5044_v3 = vrot.slane %v5043_v2, 2  ;;  %v5036_v11 = vadd.f32 %v5035_v56, %v5034_v41  ;;  %v5097_v34 = vadd.f32 %v5096_v4, %v5095_v59  ;;  %v13217_v41 = vld [vmem:[%s18447_s21 + $0xe0] sm:$0xff] }
 0x4b5   :  { %v13221_v56 = vld [vmem:[%s18447_s21 + $0xc0] sm:$0xff] }
 0x4b6   :  { %v5045_v29 = vadd.f32 %v5044_v3, %v5043_v2  ;;  %v5037_v40 = vrot.slane %v5036_v11, 1  ;;  %v5098_v30 = vrot.slane %v5097_v34, 2  ;;  %v13218_v2 = vld [vmem:[%s18447_s21 + $0xf0] sm:$0xff] }
 0x4b7   :  { %v13222_v3 = vld [vmem:[%s18447_s21 + $0xd0] sm:$0xff] }
 0x4b8   :  { %v5046_v14 = vrot.slane %v5045_v29, 1  ;;  %v5038_v23 = vadd.f32 %v5037_v40, %v5036_v11  ;;  %v5099_v47 = vadd.f32 %v5098_v30, %v5097_v34  ;;  %v13228_v30 = vld [vmem:[#allocation5 + $0x18] sm:$0xff] }
 0x4ba   :  { %v5047_v55 = vadd.f32 %v5046_v14, %v5045_v29  ;;  %v5100_v16 = vrot.slane %v5099_v47, 1 }
 0x4bc   :  { %v5101_v37 = vadd.f32 %v5100_v16, %v5099_v47 }
 0x4c0   :  { %v4898_v53 = vpop.xlane.xlu1 %4897 }
 0x4c1   :  { %13173 = vrcp.f32 %v4898_v53 }
 0x4c4   :  { %v4901_v17 = vpop.xlane.xlu0 %4900  ;;  %v4907_v48 = vpop.xlane.xlu1 %4906 }
 0x4c5   :  { %13175 = vrcp.f32 %v4901_v17 }
 0x4c8   :  { %v4904_v13 = vpop.xlane.xlu0 %4903 }
 0x4c9   :  { %13177 = vrcp.f32 %v4904_v13 }
 0x4ca   :  { %13179 = vrcp.f32 %v5038_v23  ;;  %v13226_v23 = vld [vmem:[#allocation5 + $0x30] sm:$0xff] }
 0x4cb   :  { %13181 = vrcp.f32 %v5047_v55  ;;  %v13227_v55 = vld [vmem:[#allocation5 + $0x8] sm:$0xff] }
 0x4cc   :  { %13183 = vrcp.f32 %v4907_v48  ;;  %v16497_v48 = vld [vmem:[#allocation5 + $0x68] sm:$0xff] }
 0x4ce   :  { %v13174_v51 = vpop.eup %13173 }
 0x4cf   :  { %v16344_v38 = vmul.f32 %v13174_v51, %v16255_v32  ;;  %v13205_v32 = vld [vmem:[%s18447_s21 + $0x170] sm:$0x1] }
 0x4d0   :  { %v13230_v51 = vld [vmem:[#allocation5 + $0x10] sm:$0xff] }
 0x4d1   :  { %10982 = vmatmul.mubr.msk.f32.vlgmr.msra.gmra.mxu0 %vm4847_vm1, %v16344_v38  ;;  %10988 = vmatmul.mubr.msk.f32.vlgmr.msra.gmra.mxu1 %vm4847_vm1, %v16344_v38 }
 0x4d2   :  { %10993 = vmatpush1.msk.msra.mxu0 %vm4295_vm0, %v13204_v50  ;;  %10999 = vmatpush1.msk.msra.mxu1 %vm4295_vm0, %v13205_v32  ;;  %v13176_v36 = vpop.eup %13175 }
 0x4d3   :  { %5356 = vmatprep.subr.mxu0 %v13206_v24  ;;  %5445 = vmatprep.subr.mxu1 %v15993_v7  ;;  %v16369_v20 = vmul.f32 %v13176_v36, %v16261_v12  ;;  %v13209_v7 = vld [vmem:[%s18447_s21 + $0x128] sm:$0xff]  ;;  %v13210_v12 = vld [vmem:[%s18447_s21 + $0x120] sm:$0xff] }
 0x4d4   :  { %5357 = vmatpush1.msra.mxu0 %v13207_v1  ;;  %5446 = vmatpush1.msra.mxu1 %v13208_v46 }
 0x4d5   :  { %5202 = vmatprep.mubr.f32.mxu0 %v13336_v27  ;;  %5291 = vmatprep.mubr.f32.mxu1 %v13336_v27 }
 0x4d6   :  { %v13178_v57 = vpop.eup %13177  ;;  %5358 = vmatprep.subr.mxu0 %v13209_v7  ;;  %5447 = vmatprep.subr.mxu1 %v16021_v25  ;;  %v13212_v25 = vld [vmem:[%s18447_s21 + $0x108] sm:$0xff] }
 0x4d7   :  { %10983 = vmatmul.mubr.msk.f32.gmra.mxu0 %vm4847_vm1, %v16369_v20  ;;  %10989 = vmatmul.mubr.msk.f32.gmra.mxu1 %vm4847_vm1, %v16369_v20  ;;  %v16392_v54 = vmul.f32 %v13178_v57, %v16263_v43  ;;  %v13215_v43 = vld [vmem:[%s18447_s21 + $0xe8] sm:$0xff] }
 0x4d8   :  { %5359 = vmatpush1.msra.mxu0 %v13210_v12  ;;  %5448 = vmatpush1.msra.mxu1 %v13211_v33  ;;  %v4910_v31 = vpop.xlane.xlu0 %4909 }
 0x4d9   :  { %5360 = vmatprep.subr.mxu0 %v13212_v25  ;;  %5449 = vmatprep.subr.mxu1 %v15999_v60  ;;  %13185 = vrcp.f32 %v4910_v31  ;;  %v13180_v60 = vpop.eup %13179 }
 0x4da   :  { %5361 = vmatpush1.msra.mxu0 %v13213_v6  ;;  %5450 = vmatpush1.msra.mxu1 %v13214_v58  ;;  %v13182_v61 = vpop.eup %13181  ;;  %13187 = vrcp.f32 %v5101_v37  ;;  %v5051_v53 = vmul.f32 %v13180_v60, %v16317_v35 }
 0x4db   :  { %5208 = vmatprep.mubr.f32.mxu0 %v13336_v27  ;;  %5297 = vmatprep.mubr.f32.mxu1 %v13336_v27  ;;  %v13184_v5 = vpop.eup %13183  ;;  %v5053_v59 = vmul.f32 %v13182_v61, %v16325_v39  ;;  %v5052_v29 = vmul.f32 %v13182_v61, %v16323_v62 }
 0x4dc   :  { %5362 = vmatprep.subr.mxu0 %v13215_v43  ;;  %5451 = vmatprep.subr.mxu1 %v13216_v19  ;;  %v16435_v11 = vmul.f32 %v13184_v5, %v16259_v18  ;;  %v5050_v18 = vmul.f32 %v13180_v60, %v16315_v8  ;;  %v4916_v8 = vpop.xlane.xlu0 %4915 }
 0x4dd   :  { %10984 = vmatmul.mubr.msk.f32.gmra.mxu0 %vm4847_vm1, %v16392_v54  ;;  %10990 = vmatmul.mubr.msk.f32.gmra.mxu1 %vm4847_vm1, %v16392_v54 }
 0x4de   :  { %5363 = vmatpush1.msra.mxu0 %v13217_v41  ;;  %5452 = vmatpush1.msra.mxu1 %v13218_v2 }
 0x4df   :  { %5364 = vmatprep.subr.mxu0 %v13219_v22  ;;  %5453 = vmatprep.subr.mxu1 %v13220_v15 }
 0x4e0   :  { %5365 = vmatpush1.msra.mxu0 %v13221_v56  ;;  %5454 = vmatpush1.msra.mxu1 %v13222_v3 }
 0x4e1   :  { %5214 = vmatprep.mubr.f32.mxu0 %v13336_v27  ;;  %5303 = vmatprep.mubr.f32.mxu1 %v13336_v27 }
 0x4e2   :  { %11564 = vmatprep.subr.msk.mxu0 %vm4847_vm1, %v5051_v53  ;;  %11571 = vmatprep.subr.msk.mxu1 %vm4847_vm1, %v5053_v59 }
 0x4e3   :  { %10985 = vmatmul.mubr.msk.f32.gmra.mxu0 %vm4847_vm1, %v16435_v11  ;;  %10991 = vmatmul.mubr.msk.f32.gmra.mxu1 %vm4847_vm1, %v16435_v11 }
 0x4e4   :  { %5398 = vmatprep.mubr.f32.mxu0 %v13336_v27  ;;  %5487 = vmatprep.mubr.f32.mxu1 %v13336_v27 }
 0x4e6   :  { %v13186_v35 = vpop.eup %13185 }
 0x4e7   :  { %v4932_v39 = vmul.f32 %v13186_v35, %v16273_v42  ;;  %v13188_v17 = vpop.eup %13187 }
 0x4e8   :  { %v5107_v42 = vmul.f32 %v13188_v17, %v16337_v52 }
 0x4e9   :  { %10994 = vmatmul.mubr.msk.f32.vlgmr.msra.gmra.mxu0 %vm4847_vm1, %v4932_v39  ;;  %11000 = vmatmul.mubr.msk.f32.vlgmr.msra.gmra.mxu1 %vm4847_vm1, %v4932_v39 }
 0x4ea   :  { %11565 = vmatpush3.xpose.msk.msra.mxu0 %vm4847_vm1, %v5051_v53  ;;  %11572 = vmatpush3.xpose.msk.msra.mxu1 %vm4847_vm1, %v5053_v59 }
 0x4eb   :  { %11566 = vmatprep.subr.msk.mxu0 %vm4847_vm1, %v5050_v18  ;;  %11573 = vmatprep.subr.msk.mxu1 %vm4847_vm1, %v5052_v29 }
 0x4ec   :  { %5404 = vmatprep.mubr.f32.mxu0 %v13336_v27  ;;  %5493 = vmatprep.mubr.f32.mxu1 %v13336_v27 }
 0x4ee   :  { %11567 = vmatpush3.xpose.msk.msra.mxu0 %vm4847_vm1, %v5050_v18  ;;  %11574 = vmatpush3.xpose.msk.msra.mxu1 %vm4847_vm1, %v5052_v29  ;;  %v13234_v29 = vld [vmem:[#allocation5 + $0x50] sm:$0xff] }
 0x4ef   :  { %11578 = vmatprep.subr.msk.mxu0 %vm4847_vm1, %v16319_v63  ;;  %11585 = vmatprep.subr.msk.mxu1 %vm4847_vm1, %v5107_v42 }
 0x501   :  { %v4913_v62 = vpop.xlane.xlu1 %4912 }
 0x502   :  { %13189 = vrcp.f32 %v4913_v62  ;;  %v13235_v62 = vld [vmem:[#allocation5 + $0x48] sm:$0xff] }
 0x503   :  { %13191 = vrcp.f32 %v4916_v8 }
 0x505   :  { %v4919_v4 = vpop.xlane.xlu1 %4918 }
 0x506   :  { %13193 = vrcp.f32 %v4919_v4 }
 0x50f   :  { %v13190_v40 = vpop.eup %13189 }
 0x510   :  { %v4933_v13 = vmul.f32 %v13190_v40, %v16294_v9  ;;  %v13192_v14 = vpop.eup %13191  ;;  %v13236_v40 = vld [vmem:[#allocation5 + $0x58] sm:$0xff] }
 0x511   :  { %v4934_v52 = vmul.f32 %v13192_v14, %v16279_v0  ;;  %v5106_v0 = vmul.f32 %v13188_v17, %v16335_v21  ;;  %v13225_v21 = vld [vmem:[#allocation5 + $0x20] sm:$0xff] }
 0x512   :  { %10995 = vmatmul.mubr.msk.f32.gmra.mxu0 %vm4847_vm1, %v4933_v13  ;;  %11001 = vmatmul.mubr.msk.f32.gmra.mxu1 %vm4847_vm1, %v4933_v13 }
 0x513   :  { %5410 = vmatprep.mubr.f32.mxu0 %v13336_v27  ;;  %5499 = vmatprep.mubr.f32.mxu1 %v13336_v27  ;;  %v13194_v34 = vpop.eup %13193 }
 0x514   :  { %v4935_v9 = vmul.f32 %v13194_v34, %v16301_v26  ;;  %v13223_v26 = vld [vmem:[#allocation5 + $0x28] sm:$0xff] }
 0x516   :  { %10996 = vmatmul.mubr.msk.f32.gmra.mxu0 %vm4847_vm1, %v4934_v52  ;;  %11002 = vmatmul.mubr.msk.f32.gmra.mxu1 %vm4847_vm1, %v4934_v52 }
 0x517   :  { %5416 = vmatprep.mubr.f32.mxu0 %v13336_v27  ;;  %5505 = vmatprep.mubr.f32.mxu1 %v13336_v27 }
 0x51a   :  { %10997 = vmatmul.mubr.msk.f32.gmra.mxu0 %vm4847_vm1, %v4935_v9  ;;  %11003 = vmatmul.mubr.msk.f32.gmra.mxu1 %vm4847_vm1, %v4935_v9 }
 0x51b   :  { %11568 = vmatprep.mubr.msk.f32.mxu0 %vm4847_vm1, %v16344_v38  ;;  %11575 = vmatprep.mubr.msk.f32.mxu1 %vm4847_vm1, %v4932_v39  ;;  %v16500_v38 = vld [vmem:[#allocation5 + $0x78] sm:$0xff]  ;;  %v13233_v39 = vld [vmem:[#allocation5 + $0x40] sm:$0xff] }
 0x51e   :  { %11569 = vmatmul.mubr.msk.f32.vlgmr.msra.gmra.mxu0 %vm4847_vm1, %v16369_v20  ;;  %11576 = vmatmul.mubr.msk.f32.vlgmr.msra.gmra.mxu1 %vm4847_vm1, %v4933_v13 }
 0x51f   :  { %11579 = vmatpush3.xpose.msk.msra.mxu0 %vm4847_vm1, %v16319_v63  ;;  %11586 = vmatpush3.xpose.msk.msra.mxu1 %vm4847_vm1, %v5107_v42  ;;  %v13224_v63 = vld [vmem:[#allocation5 + $0x38] sm:$0xff] }
 0x520   :  { %11580 = vmatprep.subr.msk.mxu0 %vm4847_vm1, %v16321_v10  ;;  %11582 = vmatprep.mubr.msk.f32.mxu0 %vm4847_vm1, %v16392_v54 }
 0x521   :  { %11587 = vmatprep.subr.msk.mxu1 %vm4847_vm1, %v5106_v0  ;;  %11589 = vmatprep.mubr.msk.f32.mxu1 %vm4847_vm1, %v4934_v52 }
 0x523   :  { %11581 = vmatpush3.xpose.msk.msra.mxu0 %vm4847_vm1, %v16321_v10  ;;  %11588 = vmatpush3.xpose.msk.msra.mxu1 %vm4847_vm1, %v5106_v0  ;;  %v13229_v10 = vld [vmem:[#allocation5] sm:$0xff] }
 0x524   :  { %5877 = vmatprep.subr.mxu0 %v13223_v26  ;;  %5966 = vmatprep.subr.mxu1 %v13224_v63 }
 0x526   :  { %11583 = vmatmul.mubr.msk.f32.vlgmr.msra.gmra.mxu0 %vm4847_vm1, %v16435_v11  ;;  %11590 = vmatmul.mubr.msk.f32.vlgmr.msra.gmra.mxu1 %vm4847_vm1, %v4935_v9  ;;  %v13237_v9 = vld [vmem:[#allocation5 + $0x60] sm:$0xff] }
 0x527   :  { %5878 = vmatpush1.msra.mxu0 %v13225_v21  ;;  %5967 = vmatpush1.msra.mxu1 %v13226_v23 }
 0x528   :  { %5879 = vmatprep.subr.mxu0 %v13227_v55  ;;  %5968 = vmatprep.subr.mxu1 %v13228_v30 }
 0x529   :  { %5880 = vmatpush1.msra.mxu0 %v13229_v10  ;;  %5969 = vmatpush1.msra.mxu1 %v13230_v51 }
 0x52a   :  { %6067 = vmatprep.subr.mxu0 %v16497_v48  ;;  %6156 = vmatprep.subr.mxu1 %v16500_v38 }
 0x52b   :  { %5913 = vmatprep.mubr.f32.mxu0 %v13336_v27  ;;  %6002 = vmatprep.mubr.f32.mxu1 %v13336_v27 }
 0x591   :  { %v5198_v47 = vpop.f32.mrf.mxu0  ;;  %v5287_v50 = vpop.f32.mrf.mxu1 }
 0x592   :  { %10245 = vst [vmem:[#allocation3 + $0x20] sm:$0xff] %v5198_v47  ;;  %v10261_v32 = vmul.f32 %v13229_v10, %v5198_v47  ;;  %10247 = vst [vmem:[#allocation3 + $0x30] sm:$0xff] %v5287_v50  ;;  %v10263_v36 = vmul.f32 %v13230_v51, %v5287_v50 }
 0x593   :  { %v5200_v24 = vpop.f32.mrf.mxu0  ;;  %v5289_v1 = vpop.f32.mrf.mxu1 }
 0x594   :  { %10277 = vst [vmem:[#allocation3 + $0x40] sm:$0xff] %v10261_v32  ;;  %10279 = vst [vmem:[#allocation3 + $0x50] sm:$0xff] %v10263_v36  ;;  %v10262_v46 = vmul.f32 %v13227_v55, %v5200_v24  ;;  %v10264_v20 = vmul.f32 %v13228_v30, %v5289_v1 }
 0x595   :  { %10246 = vst [vmem:[#allocation3 + $0x28] sm:$0xff] %v5200_v24  ;;  %10248 = vst [vmem:[#allocation3 + $0x38] sm:$0xff] %v5289_v1 }
 0x596   :  { %10278 = vst [vmem:[#allocation3 + $0x48] sm:$0xff] %v10262_v46  ;;  %10280 = vst [vmem:[#allocation3 + $0x58] sm:$0xff] %v10264_v20 }
 0x597   :  { %v5204_v16 = vpop.f32.mrf.mxu0  ;;  %v5293_v57 = vpop.f32.mrf.mxu1 }
 0x598   :  { %v16505_v7 = vpack.c.bf16 %v5204_v16, %v5198_v47  ;;  %10249 = vst [vmem:[#allocation3 + $0xa0] sm:$0xff] %v5204_v16  ;;  %v10265_v12 = vmul.f32 %v13225_v21, %v5204_v16  ;;  %v16507_v33 = vpack.c.bf16 %v5293_v57, %v5287_v50  ;;  %10251 = vst [vmem:[#allocation3 + $0xb0] sm:$0xff] %v5293_v57 }
 0x599   :  { %v10267_v31 = vmul.f32 %v13226_v23, %v5293_v57  ;;  %v5206_v25 = vpop.f32.mrf.mxu0  ;;  %v5295_v54 = vpop.f32.mrf.mxu1 }
 0x59a   :  { %10281 = vst [vmem:[#allocation3 + $0xc0] sm:$0xff] %v10265_v12  ;;  %v16509_v37 = vpack.c.bf16 %v5206_v25, %v5200_v24  ;;  %10250 = vst [vmem:[#allocation3 + $0xa8] sm:$0xff] %v5206_v25  ;;  %v10266_v6 = vmul.f32 %v13223_v26, %v5206_v25  ;;  %v16511_v58 = vpack.c.bf16 %v5295_v54, %v5289_v1 }
 0x59b   :  { %10283 = vst [vmem:[#allocation3 + $0xd0] sm:$0xff] %v10267_v31  ;;  %10252 = vst [vmem:[#allocation3 + $0xb8] sm:$0xff] %v5295_v54  ;;  %v10268_v60 = vmul.f32 %v13224_v63, %v5295_v54  ;;  %v13238_v63 = vld [vmem:[#allocation5 + $0x70] sm:$0xff] }
 0x59c   :  { %10282 = vst [vmem:[#allocation3 + $0xc8] sm:$0xff] %v10266_v6  ;;  %v12373_v54 = vld [vmem:[%s18383_s11 + $0xe4] ss:$16 sps:$4 sm:$0xff]  }
 0x59d   :  { %10284 = vst [vmem:[#allocation3 + $0xd8] sm:$0xff] %v10268_v60  ;;  %v5210_v43 = vpop.f32.mrf.mxu0  ;;  %v5299_v19 = vpop.f32.mrf.mxu1  ;;  %v12376_v6 = vld [vmem:[%s18383_s11 + $0x2e4] ss:$16 sps:$4 sm:$0xff]  }
 0x59f   :  { %v5212_v61 = vpop.f32.mrf.mxu0  ;;  %v5301_v5 = vpop.f32.mrf.mxu1 }
 0x5a3   :  { %v5216_v41 = vpop.f32.mrf.mxu0  ;;  %v5305_v2 = vpop.f32.mrf.mxu1 }
 0x5a4   :  { %v16513_v22 = vpack.c.bf16 %v5216_v41, %v5210_v43  ;;  %v16515_v15 = vpack.c.bf16 %v5305_v2, %v5299_v19  ;;  %v12379_v2 = vld [vmem:[%s18383_s11 + $0xc4] ss:$16 sps:$4 sm:$0xff]  }
 0x5a5   :  { %v5218_v56 = vpop.f32.mrf.mxu0  ;;  %v5307_v3 = vpop.f32.mrf.mxu1 }
 0x5a6   :  { %v16517_v53 = vpack.c.bf16 %v5218_v56, %v5212_v61  ;;  %v16519_v59 = vpack.c.bf16 %v5307_v3, %v5301_v5  ;;  %v12371_v61 = vld [vmem:[%s18383_s11 + $0xe0] ss:$16 sps:$4 sm:$0xff]   ;;  %v12382_v56 = vld [vmem:[%s18383_s11 + $0x2c4] ss:$16 sps:$4 sm:$0xff]  }
 0x5a7   :  { %v12374_v5 = vld [vmem:[%s18383_s11 + $0x2e0] ss:$16 sps:$4 sm:$0xff]  }
 0x5a8   :  { %v12377_v3 = vld [vmem:[%s18383_s11 + $0xc0] ss:$16 sps:$4 sm:$0xff]  }
 0x5a9   :  { %v5400_v11 = vpop.f32.mrf.mxu0  ;;  %v5489_v35 = vpop.f32.mrf.mxu1 }
 0x5aa   :  { %10253 = vst [vmem:[#allocation3 + $0x120] sm:$0xff] %v5400_v11  ;;  %v10269_v18 = vmul.f32 %v13233_v39, %v5400_v11  ;;  %10255 = vst [vmem:[#allocation3 + $0x130] sm:$0xff] %v5489_v35  ;;  %v10271_v17 = vmul.f32 %v13234_v29, %v5489_v35 }
 0x5ab   :  { %v5402_v42 = vpop.f32.mrf.mxu0  ;;  %v5491_v8 = vpop.f32.mrf.mxu1 }
 0x5ac   :  { %10285 = vst [vmem:[#allocation3 + $0x140] sm:$0xff] %v10269_v18  ;;  %10287 = vst [vmem:[#allocation3 + $0x150] sm:$0xff] %v10271_v17  ;;  %v10270_v4 = vmul.f32 %v13235_v62, %v5402_v42  ;;  %v10272_v13 = vmul.f32 %v13236_v40, %v5491_v8  ;;  %v12388_v18 = vld [vmem:[%s18383_s11 + $0x2a4] ss:$16 sps:$4 sm:$0xff]   ;;  %v12386_v17 = vld [vmem:[%s18383_s11 + $0x2a0] ss:$16 sps:$4 sm:$0xff]  }
 0x5ad   :  { %10254 = vst [vmem:[#allocation3 + $0x128] sm:$0xff] %v5402_v42  ;;  %10256 = vst [vmem:[#allocation3 + $0x138] sm:$0xff] %v5491_v8 }
 0x5ae   :  { %10286 = vst [vmem:[#allocation3 + $0x148] sm:$0xff] %v10270_v4  ;;  %10288 = vst [vmem:[#allocation3 + $0x158] sm:$0xff] %v10272_v13  ;;  %v12389_v4 = vld [vmem:[%s18383_s11 + $0x80] ss:$16 sps:$4 sm:$0xff]   ;;  %v12397_v13 = vld [vmem:[%s18383_s11 + $0x64] ss:$16 sps:$4 sm:$0xff]  }
 0x5d2   :  { %v5406_v14 = vpop.f32.mrf.mxu0  ;;  %v5495_v52 = vpop.f32.mrf.mxu1 }
 0x5d3   :  { %v16521_v34 = vpack.c.bf16 %v5406_v14, %v5400_v11  ;;  %10257 = vst [vmem:[#allocation3 + $0x1a0] sm:$0xff] %v5406_v14  ;;  %v10273_v0 = vmul.f32 %v13237_v9, %v5406_v14  ;;  %v16523_v26 = vpack.c.bf16 %v5495_v52, %v5489_v35  ;;  %10259 = vst [vmem:[#allocation3 + $0x1b0] sm:$0xff] %v5495_v52  ;;  %v12380_v11 = vld [vmem:[%s18383_s11 + $0x2c0] ss:$16 sps:$4 sm:$0xff]   ;;  %v12400_v14 = vld [vmem:[%s18383_s11 + $0x264] ss:$16 sps:$4 sm:$0xff]  }
 0x5d4   :  { %v10275_v21 = vmul.f32 %v13238_v63, %v5495_v52  ;;  %v5408_v23 = vpop.f32.mrf.mxu0  ;;  %v5497_v55 = vpop.f32.mrf.mxu1  ;;  %v12398_v52 = vld [vmem:[%s18383_s11 + $0x260] ss:$16 sps:$4 sm:$0xff]  }
 0x5d5   :  { %10289 = vst [vmem:[#allocation3 + $0x1c0] sm:$0xff] %v10273_v0  ;;  %v16525_v30 = vpack.c.bf16 %v5408_v23, %v5402_v42  ;;  %10258 = vst [vmem:[#allocation3 + $0x1a8] sm:$0xff] %v5408_v23  ;;  %v10274_v10 = vmul.f32 %v16497_v48, %v5408_v23  ;;  %v16528_v51 = vpack.c.bf16 %v5497_v55, %v5491_v8  ;;  %v12391_v8 = vld [vmem:[%s18383_s11 + $0x84] ss:$16 sps:$4 sm:$0xff]  }
 0x5d6   :  { %10291 = vst [vmem:[#allocation3 + $0x1d0] sm:$0xff] %v10275_v21  ;;  %10260 = vst [vmem:[#allocation3 + $0x1b8] sm:$0xff] %v5497_v55  ;;  %v10276_v47 = vmul.f32 %v16500_v38, %v5497_v55  ;;  %v5412_v50 = vpop.f32.mrf.mxu0  ;;  %v5501_v32 = vpop.f32.mrf.mxu1  ;;  %v12406_v0 = vld [vmem:[%s18383_s11 + $0x244] ss:$16 sps:$4 sm:$0xff]   ;;  %v12404_v21 = vld [vmem:[%s18383_s11 + $0x240] ss:$16 sps:$4 sm:$0xff]  }
 0x5d7   :  { %10290 = vst [vmem:[#allocation3 + $0x1c8] sm:$0xff] %v10274_v10  ;;  %v12409_v23 = vld [vmem:[%s18383_s11 + $0x24] ss:$16 sps:$4 sm:$0xff]   ;;  %v12407_v10 = vld [vmem:[%s18383_s11 + $0x20] ss:$16 sps:$4 sm:$0xff]  }
 0x5d8   :  { %10292 = vst [vmem:[#allocation3 + $0x1d8] sm:$0xff] %v10276_v47  ;;  %v5414_v36 = vpop.f32.mrf.mxu0  ;;  %v5503_v24 = vpop.f32.mrf.mxu1  ;;  %v12412_v55 = vld [vmem:[%s18383_s11 + $0x224] ss:$16 sps:$4 sm:$0xff]   ;;  %v12410_v47 = vld [vmem:[%s18383_s11 + $0x220] ss:$16 sps:$4 sm:$0xff]  }
 0x5da   :  { %v5418_v1 = vpop.f32.mrf.mxu0  ;;  %v5507_v46 = vpop.f32.mrf.mxu1 }
 0x5db   :  { %v16531_v20 = vpack.c.bf16 %v5418_v1, %v5412_v50  ;;  %v16533_v16 = vpack.c.bf16 %v5507_v46, %v5501_v32  ;;  %v12415_v50 = vld [vmem:[%s18383_s11 + $0x4] ss:$16 sps:$4 sm:$0xff]  }
 0x5dc   :  { %v5420_v57 = vpop.f32.mrf.mxu0  ;;  %v5509_v12 = vpop.f32.mrf.mxu1  ;;  %v12418_v32 = vld [vmem:[%s18383_s11 + $0x204] ss:$16 sps:$4 sm:$0xff]  }
 0x5dd   :  { %v16535_v48 = vpack.c.bf16 %v5420_v57, %v5414_v36  ;;  %v16537_v31 = vpack.c.bf16 %v5509_v12, %v5503_v24  ;;  %v12413_v36 = vld [vmem:[%s18383_s11] ss:$16 sps:$4 sm:$0xff]   ;;  %v12421_v1 = vld [vmem:[%s18383_s11 + $0x1e4] ss:$16 sps:$4 sm:$0xff]  }
 0x5de   :  { %v11570_v25 = vpop.f32.mrf.mxu0  ;;  %v11577_v19 = vpop.f32.mrf.mxu1  ;;  %v12416_v24 = vld [vmem:[%s18383_s11 + $0x200] ss:$16 sps:$4 sm:$0xff]   ;;  %v12424_v46 = vld [vmem:[%s18383_s11 + $0x3e4] ss:$16 sps:$4 sm:$0xff]  }
 0x5df   :  { %v12419_v57 = vld [vmem:[%s18383_s11 + $0x1e0] ss:$16 sps:$4 sm:$0xff]  }
 0x5e0   :  { %v5584_v38 = vpop.f32.mrf.mxu0  ;;  %v5665_v41 = vpop.f32.mrf.mxu1  ;;  %v12422_v12 = vld [vmem:[%s18383_s11 + $0x3e0] ss:$16 sps:$4 sm:$0xff]  }
 0x5e1   :  { %11020 = vmatmul.mubr.msk.f32.vlgmr.msra.gmra.mxu0 %vm5836_vm7, %v5584_v38  ;;  %11024 = vmatmul.mubr.msk.f32.vlgmr.msra.gmra.mxu1 %vm5836_vm7, %v5584_v38  ;;  %v12430_v38 = vld [vmem:[%s18383_s11 + $0x3c4] ss:$16 sps:$4 sm:$0xff]  }
 0x5e2   :  { %6068 = vmatpush1.msra.mxu0 %v13237_v9  ;;  %6157 = vmatpush1.msra.mxu1 %v13238_v63  ;;  %v12403_v9 = vld [vmem:[%s18383_s11 + $0x44] ss:$16 sps:$4 sm:$0xff]   ;;  %v12401_v63 = vld [vmem:[%s18383_s11 + $0x40] ss:$16 sps:$4 sm:$0xff]  }
 0x5e3   :  { %6069 = vmatprep.subr.mxu0 %v13235_v62  ;;  %6158 = vmatprep.subr.mxu1 %v13236_v40  ;;  %v12394_v62 = vld [vmem:[%s18383_s11 + $0x284] ss:$16 sps:$4 sm:$0xff]   ;;  %v12392_v40 = vld [vmem:[%s18383_s11 + $0x280] ss:$16 sps:$4 sm:$0xff]  }
 0x5e4   :  { %6070 = vmatpush1.msra.mxu0 %v13233_v39  ;;  %6159 = vmatpush1.msra.mxu1 %v13234_v29  ;;  %v12385_v39 = vld [vmem:[%s18383_s11 + $0xa4] ss:$16 sps:$4 sm:$0xff]   ;;  %v12383_v29 = vld [vmem:[%s18383_s11 + $0xa0] ss:$16 sps:$4 sm:$0xff]  }
 0x5e5   :  { %5919 = vmatprep.mubr.f32.mxu0 %v13336_v27  ;;  %6008 = vmatprep.mubr.f32.mxu1 %v13336_v27 }
 0x5e6   :  { %v11584_v60 = vpop.f32.mrf.mxu0  ;;  %11021 = vmatmul.mubr.msk.f32.gmra.mxu0 %vm5836_vm7, %v11570_v25  ;;  %11025 = vmatmul.mubr.msk.f32.gmra.mxu1 %vm5836_vm7, %v11570_v25  ;;  %v11591_v35 = vpop.f32.mrf.mxu1  ;;  %v12427_v25 = vld [vmem:[%s18383_s11 + $0x1c4] ss:$16 sps:$4 sm:$0xff]  }
 0x5e7   :  { %5925 = vmatprep.mubr.f32.mxu0 %v13336_v27  ;;  %6014 = vmatprep.mubr.f32.mxu1 %v13336_v27 }
 0x5e8   :  { %v5746_v43 = vpop.f32.mrf.mxu0  ;;  %7791 = vmatprep.subr.bf16.mxu0 %v12373_v54  ;;  %7844 = vmatprep.subr.bf16.mxu1 %v12376_v6  ;;  %v5827_v42 = vpop.f32.mrf.mxu1  ;;  %v12425_v54 = vld [vmem:[%s18383_s11 + $0x1c0] ss:$16 sps:$4 sm:$0xff]  }
 0x5e9   :  { %v12428_v6 = vld [vmem:[%s18383_s11 + $0x3c0] ss:$16 sps:$4 sm:$0xff]  }
 0x5ea   :  { %11022 = vmatmul.mubr.msk.f32.gmra.mxu0 %vm5836_vm7, %v5746_v43  ;;  %11026 = vmatmul.mubr.msk.f32.gmra.mxu1 %vm5836_vm7, %v5746_v43  ;;  %v12436_v43 = vld [vmem:[%s18383_s11 + $0x3a4] ss:$16 sps:$4 sm:$0xff]  }
 0x5eb   :  { %5931 = vmatprep.mubr.f32.mxu0 %v13336_v27  ;;  %6020 = vmatprep.mubr.f32.mxu1 %v13336_v27 }
 0x5ee   :  { %11023 = vmatmul.mubr.msk.f32.gmra.mxu0 %vm5836_vm7, %v11584_v60  ;;  %11027 = vmatmul.mubr.msk.f32.gmra.mxu1 %vm5836_vm7, %v11584_v60  ;;  %v12433_v60 = vld [vmem:[%s18383_s11 + $0x1a4] ss:$16 sps:$4 sm:$0xff]  }
 0x5ef   :  { %6103 = vmatprep.mubr.f32.mxu0 %v13336_v27  ;;  %6192 = vmatprep.mubr.f32.mxu1 %v13336_v27 }
 0x5f2   :  { %11028 = vmatmul.mubr.msk.f32.vlgmr.msra.gmra.mxu0 %vm5836_vm7, %v5665_v41  ;;  %11032 = vmatmul.mubr.msk.f32.vlgmr.msra.gmra.mxu1 %vm5836_vm7, %v5665_v41  ;;  %v12442_v41 = vld [vmem:[%s18383_s11 + $0x384] ss:$16 sps:$4 sm:$0xff]  }
 0x5f3   :  { %7792 = vmatpush1.bf16.msra.mxu0 %v12371_v61  ;;  %7845 = vmatpush1.bf16.msra.mxu1 %v12374_v5  ;;  %v12434_v61 = vld [vmem:[%s18383_s11 + $0x3a0] ss:$16 sps:$4 sm:$0xff]   ;;  %v12439_v5 = vld [vmem:[%s18383_s11 + $0x184] ss:$16 sps:$4 sm:$0xff]  }
 0x5f4   :  { %6109 = vmatprep.mubr.f32.mxu0 %v13336_v27  ;;  %6198 = vmatprep.mubr.f32.mxu1 %v13336_v27 }
 0x5f5   :  { %7793 = vmatprep.subr.bf16.mxu0 %v12379_v2  ;;  %7846 = vmatprep.subr.bf16.mxu1 %v12382_v56  ;;  %v12437_v2 = vld [vmem:[%s18383_s11 + $0x180] ss:$16 sps:$4 sm:$0xff]  }
 0x5f6   :  { %11029 = vmatmul.mubr.msk.f32.gmra.mxu0 %vm5836_vm7, %v11577_v19  ;;  %11033 = vmatmul.mubr.msk.f32.gmra.mxu1 %vm5836_vm7, %v11577_v19  ;;  %v12431_v19 = vld [vmem:[%s18383_s11 + $0x1a0] ss:$16 sps:$4 sm:$0xff]  }
 0x5f7   :  { %7794 = vmatpush1.bf16.msra.mxu0 %v12377_v3  ;;  %7847 = vmatpush1.bf16.msra.mxu1 %v12380_v11  ;;  %v12440_v56 = vld [vmem:[%s18383_s11 + $0x380] ss:$16 sps:$4 sm:$0xff]   ;;  %v12445_v3 = vld [vmem:[%s18383_s11 + $0x164] ss:$16 sps:$4 sm:$0xff]  }
 0x5f8   :  { %6115 = vmatprep.mubr.f32.mxu0 %v13336_v27  ;;  %6204 = vmatprep.mubr.f32.mxu1 %v13336_v27  ;;  %v12448_v11 = vld [vmem:[%s18383_s11 + $0x364] ss:$16 sps:$4 sm:$0xff]  }
 0x5f9   :  { %7795 = vmatprep.subr.bf16.mxu0 %v12385_v39  ;;  %7848 = vmatprep.subr.bf16.mxu1 %v12388_v18  ;;  %v12446_v39 = vld [vmem:[%s18383_s11 + $0x360] ss:$16 sps:$4 sm:$0xff]   ;;  %v12451_v18 = vld [vmem:[%s18383_s11 + $0x144] ss:$16 sps:$4 sm:$0xff]  }
 0x5fa   :  { %11030 = vmatmul.mubr.msk.f32.gmra.mxu0 %vm5836_vm7, %v5827_v42  ;;  %11034 = vmatmul.mubr.msk.f32.gmra.mxu1 %vm5836_vm7, %v5827_v42  ;;  %v12452_v42 = vld [vmem:[%s18383_s11 + $0x340] ss:$16 sps:$4 sm:$0xff]  }
 0x5fb   :  { %7796 = vmatpush1.bf16.msra.mxu0 %v12383_v29  ;;  %7849 = vmatpush1.bf16.msra.mxu1 %v12386_v17  ;;  %v12454_v29 = vld [vmem:[%s18383_s11 + $0x344] ss:$16 sps:$4 sm:$0xff]   ;;  %v12449_v17 = vld [vmem:[%s18383_s11 + $0x140] ss:$16 sps:$4 sm:$0xff]  }
 0x5fc   :  { %6121 = vmatprep.mubr.f32.mxu0 %v13336_v27  ;;  %6210 = vmatprep.mubr.f32.mxu1 %v13336_v27  ;;  %v12395_v27 = vld [vmem:[%s18383_s11 + $0x60] ss:$16 sps:$4 sm:$0xff]  }
 0x5fd   :  { %7797 = vmatprep.subr.bf16.mxu0 %v12391_v8  ;;  %7850 = vmatprep.subr.bf16.mxu1 %v12394_v62  ;;  %v12457_v8 = vld [vmem:[%s18383_s11 + $0x124] ss:$16 sps:$4 sm:$0xff]  }
 0x5fe   :  { %11031 = vmatmul.mubr.msk.f32.gmra.mxu0 %vm5836_vm7, %v11591_v35  ;;  %11035 = vmatmul.mubr.msk.f32.gmra.mxu1 %vm5836_vm7, %v11591_v35  ;;  %v12443_v35 = vld [vmem:[%s18383_s11 + $0x160] ss:$16 sps:$4 sm:$0xff]   ;;  %v12460_v62 = vld [vmem:[%s18383_s11 + $0x324] ss:$16 sps:$4 sm:$0xff]  }
 0x5ff   :  { %7798 = vmatpush1.bf16.msra.mxu0 %v12389_v4  ;;  %7851 = vmatpush1.bf16.msra.mxu1 %v12392_v40  ;;  %v12455_v4 = vld [vmem:[%s18383_s11 + $0x120] ss:$16 sps:$4 sm:$0xff]  }
 0x600   :  { %7823 = vmatprep.mubr.bf16.mxu0 %v16509_v37  ;;  %7876 = vmatprep.mubr.bf16.mxu1 %v16511_v58  ;;  %v12458_v40 = vld [vmem:[%s18383_s11 + $0x320] ss:$16 sps:$4 sm:$0xff]  }
 0x601   :  { %7799 = vmatprep.subr.bf16.mxu0 %v12397_v13  ;;  %7852 = vmatprep.subr.bf16.mxu1 %v12400_v14  ;;  %v12463_v13 = vld [vmem:[%s18383_s11 + $0x104] ss:$16 sps:$4 sm:$0xff]  }
 0x602   :  { %v12466_v14 = vld [vmem:[%s18383_s11 + $0x304] ss:$16 sps:$4 sm:$0xff]  }
 0x603   :  { %7800 = vmatpush1.bf16.msra.mxu0 %v12395_v27  ;;  %7853 = vmatpush1.bf16.msra.mxu1 %v12398_v52  ;;  %v12461_v27 = vld [vmem:[%s18383_s11 + $0x100] ss:$16 sps:$4 sm:$0xff]  }
 0x604   :  { %7801 = vmatprep.subr.bf16.mxu0 %v12403_v9  ;;  %7854 = vmatprep.subr.bf16.mxu1 %v12406_v0  ;;  %v12464_v52 = vld [vmem:[%s18383_s11 + $0x300] ss:$16 sps:$4 sm:$0xff]   ;;  %v12469_v9 = vld [vmem:[%s18383_s11 + $0x4e4] ss:$16 sps:$4 sm:$0xff]  }
 0x605   :  { %v12472_v0 = vld [vmem:[%s18383_s11 + $0x6e4] ss:$16 sps:$4 sm:$0xff]  }
 0x607   :  { %7802 = vmatpush1.bf16.msra.mxu0 %v12401_v63  ;;  %7855 = vmatpush1.bf16.msra.mxu1 %v12404_v21  ;;  %v12467_v63 = vld [vmem:[%s18383_s11 + $0x4e0] ss:$16 sps:$4 sm:$0xff]  }
 0x608   :  { %7803 = vmatprep.subr.bf16.mxu0 %v12409_v23  ;;  %7856 = vmatprep.subr.bf16.mxu1 %v12412_v55  ;;  %v12470_v21 = vld [vmem:[%s18383_s11 + $0x6e0] ss:$16 sps:$4 sm:$0xff]   ;;  %v12475_v23 = vld [vmem:[%s18383_s11 + $0x4c4] ss:$16 sps:$4 sm:$0xff]  }
 0x609   :  { %v12478_v55 = vld [vmem:[%s18383_s11 + $0x6c4] ss:$16 sps:$4 sm:$0xff]  }
 0x60b   :  { %7804 = vmatpush1.bf16.msra.mxu0 %v12407_v10  ;;  %7857 = vmatpush1.bf16.msra.mxu1 %v12410_v47  ;;  %v12473_v10 = vld [vmem:[%s18383_s11 + $0x4c0] ss:$16 sps:$4 sm:$0xff]  }
 0x60c   :  { %7805 = vmatprep.subr.bf16.mxu0 %v12415_v50  ;;  %7858 = vmatprep.subr.bf16.mxu1 %v12418_v32  ;;  %v12476_v47 = vld [vmem:[%s18383_s11 + $0x6c0] ss:$16 sps:$4 sm:$0xff]   ;;  %v12481_v50 = vld [vmem:[%s18383_s11 + $0x4a4] ss:$16 sps:$4 sm:$0xff]  }
 0x60d   :  { %v12484_v32 = vld [vmem:[%s18383_s11 + $0x6a4] ss:$16 sps:$4 sm:$0xff]  }
 0x60f   :  { %7806 = vmatpush1.bf16.msra.mxu0 %v12413_v36  ;;  %7859 = vmatpush1.bf16.msra.mxu1 %v12416_v24  ;;  %v12479_v36 = vld [vmem:[%s18383_s11 + $0x4a0] ss:$16 sps:$4 sm:$0xff]  }
 0x610   :  { %7807 = vmatprep.subr.bf16.mxu0 %v12421_v1  ;;  %7860 = vmatprep.subr.bf16.mxu1 %v12424_v46  ;;  %v12482_v24 = vld [vmem:[%s18383_s11 + $0x6a0] ss:$16 sps:$4 sm:$0xff]   ;;  %v12487_v1 = vld [vmem:[%s18383_s11 + $0x484] ss:$16 sps:$4 sm:$0xff]  }
 0x611   :  { %v12490_v46 = vld [vmem:[%s18383_s11 + $0x684] ss:$16 sps:$4 sm:$0xff]  }
 0x613   :  { %7808 = vmatpush2.bf16.msra.mxu0 %v12419_v57  ;;  %7861 = vmatpush2.bf16.msra.mxu1 %v12422_v12  ;;  %v12485_v57 = vld [vmem:[%s18383_s11 + $0x480] ss:$16 sps:$4 sm:$0xff]  }
 0x614   :  { %7809 = vmatprep.subr.bf16.mxu0 %v12427_v25  ;;  %7862 = vmatprep.subr.bf16.mxu1 %v12430_v38  ;;  %v12488_v12 = vld [vmem:[%s18383_s11 + $0x680] ss:$16 sps:$4 sm:$0xff]   ;;  %v12493_v25 = vld [vmem:[%s18383_s11 + $0x464] ss:$16 sps:$4 sm:$0xff]  }
 0x615   :  { %v12496_v38 = vld [vmem:[%s18383_s11 + $0x664] ss:$16 sps:$4 sm:$0xff]  }
 0x617   :  { %7810 = vmatpush2.bf16.msra.mxu0 %v12425_v54  ;;  %7863 = vmatpush2.bf16.msra.mxu1 %v12428_v6  ;;  %v12491_v54 = vld [vmem:[%s18383_s11 + $0x460] ss:$16 sps:$4 sm:$0xff]  }
 0x618   :  { %7811 = vmatprep.subr.bf16.mxu0 %v12433_v60  ;;  %7864 = vmatprep.subr.bf16.mxu1 %v12436_v43  ;;  %v12494_v6 = vld [vmem:[%s18383_s11 + $0x660] ss:$16 sps:$4 sm:$0xff]   ;;  %v12499_v60 = vld [vmem:[%s18383_s11 + $0x444] ss:$16 sps:$4 sm:$0xff]  }
 0x619   :  { %v12502_v43 = vld [vmem:[%s18383_s11 + $0x644] ss:$16 sps:$4 sm:$0xff]  }
 0x61b   :  { %7812 = vmatpush2.bf16.msra.mxu0 %v12431_v19  ;;  %7865 = vmatpush2.bf16.msra.mxu1 %v12434_v61  ;;  %v12497_v19 = vld [vmem:[%s18383_s11 + $0x440] ss:$16 sps:$4 sm:$0xff]  }
 0x61c   :  { %7813 = vmatprep.subr.bf16.mxu0 %v12439_v5  ;;  %7866 = vmatprep.subr.bf16.mxu1 %v12442_v41  ;;  %v12500_v61 = vld [vmem:[%s18383_s11 + $0x640] ss:$16 sps:$4 sm:$0xff]   ;;  %v12505_v5 = vld [vmem:[%s18383_s11 + $0x424] ss:$16 sps:$4 sm:$0xff]  }
 0x61d   :  { %v12508_v41 = vld [vmem:[%s18383_s11 + $0x624] ss:$16 sps:$4 sm:$0xff]  }
 0x61f   :  { %7814 = vmatpush2.bf16.msra.mxu0 %v12437_v2  ;;  %7867 = vmatpush2.bf16.msra.mxu1 %v12440_v56  ;;  %v12503_v2 = vld [vmem:[%s18383_s11 + $0x420] ss:$16 sps:$4 sm:$0xff]  }
 0x620   :  { %7815 = vmatprep.subr.bf16.mxu0 %v12445_v3  ;;  %7868 = vmatprep.subr.bf16.mxu1 %v12448_v11  ;;  %v12506_v56 = vld [vmem:[%s18383_s11 + $0x620] ss:$16 sps:$4 sm:$0xff]   ;;  %v12511_v3 = vld [vmem:[%s18383_s11 + $0x404] ss:$16 sps:$4 sm:$0xff]  }
 0x621   :  { %v12514_v11 = vld [vmem:[%s18383_s11 + $0x604] ss:$16 sps:$4 sm:$0xff]  }
 0x623   :  { %7816 = vmatpush2.bf16.msra.mxu0 %v12443_v35  ;;  %7869 = vmatpush2.bf16.msra.mxu1 %v12446_v39  ;;  %v12509_v35 = vld [vmem:[%s18383_s11 + $0x400] ss:$16 sps:$4 sm:$0xff]  }
 0x624   :  { %7817 = vmatprep.subr.bf16.mxu0 %v12451_v18  ;;  %7870 = vmatprep.subr.bf16.mxu1 %v12454_v29  ;;  %v12512_v39 = vld [vmem:[%s18383_s11 + $0x600] ss:$16 sps:$4 sm:$0xff]   ;;  %v12517_v18 = vld [vmem:[%s18383_s11 + $0x5e4] ss:$16 sps:$4 sm:$0xff]  }
 0x625   :  { %v12520_v29 = vld [vmem:[%s18383_s11 + $0x7e4] ss:$16 sps:$4 sm:$0xff]  }
 0x627   :  { %7818 = vmatpush2.bf16.msra.mxu0 %v12449_v17  ;;  %7871 = vmatpush2.bf16.msra.mxu1 %v12452_v42  ;;  %v12515_v17 = vld [vmem:[%s18383_s11 + $0x5e0] ss:$16 sps:$4 sm:$0xff]  }
 0x628   :  { %7819 = vmatprep.subr.bf16.mxu0 %v12457_v8  ;;  %7872 = vmatprep.subr.bf16.mxu1 %v12460_v62  ;;  %v12518_v42 = vld [vmem:[%s18383_s11 + $0x7e0] ss:$16 sps:$4 sm:$0xff]   ;;  %v12523_v8 = vld [vmem:[%s18383_s11 + $0x5c4] ss:$16 sps:$4 sm:$0xff]  }
 0x629   :  { %v12526_v62 = vld [vmem:[%s18383_s11 + $0x7c4] ss:$16 sps:$4 sm:$0xff]  }
 0x62b   :  { %7820 = vmatpush2.bf16.msra.mxu0 %v12455_v4  ;;  %7873 = vmatpush2.bf16.msra.mxu1 %v12458_v40  ;;  %v12521_v4 = vld [vmem:[%s18383_s11 + $0x5c0] ss:$16 sps:$4 sm:$0xff]  }
 0x62c   :  { %7821 = vmatprep.subr.bf16.mxu0 %v12463_v13  ;;  %7874 = vmatprep.subr.bf16.mxu1 %v12466_v14  ;;  %v12524_v40 = vld [vmem:[%s18383_s11 + $0x7c0] ss:$16 sps:$4 sm:$0xff]   ;;  %v12529_v13 = vld [vmem:[%s18383_s11 + $0x5a4] ss:$16 sps:$4 sm:$0xff]  }
 0x62d   :  { %v12532_v14 = vld [vmem:[%s18383_s11 + $0x7a4] ss:$16 sps:$4 sm:$0xff]  }
 0x62f   :  { %7822 = vmatpush2.bf16.msra.mxu0 %v12461_v27  ;;  %7875 = vmatpush2.bf16.msra.mxu1 %v12464_v52  ;;  %v12527_v27 = vld [vmem:[%s18383_s11 + $0x5a0] ss:$16 sps:$4 sm:$0xff]  }
 0x630   :  { %7897 = vmatprep.subr.bf16.mxu0 %v12469_v9  ;;  %7950 = vmatprep.subr.bf16.mxu1 %v12472_v0  ;;  %v12530_v52 = vld [vmem:[%s18383_s11 + $0x7a0] ss:$16 sps:$4 sm:$0xff]   ;;  %v12535_v9 = vld [vmem:[%s18383_s11 + $0x584] ss:$16 sps:$4 sm:$0xff]  }
 0x631   :  { %v12538_v0 = vld [vmem:[%s18383_s11 + $0x784] ss:$16 sps:$4 sm:$0xff]  }
 0x632   :  { %7824 = vmatmul.mubr.bf16.vlgmr.msra.gmra.mxu0 %v16505_v7  ;;  %7877 = vmatmul.mubr.bf16.vlgmr.msra.gmra.mxu1 %v16507_v33 }
 0x633   :  { %7833 = vmatprep.mubr.bf16.mxu0 %v16525_v30  ;;  %7886 = vmatprep.mubr.bf16.mxu1 %v16528_v51 }
 0x634   :  { %7898 = vmatpush1.bf16.msra.mxu0 %v12467_v63  ;;  %7951 = vmatpush1.bf16.msra.mxu1 %v12470_v21  ;;  %v12533_v63 = vld [vmem:[%s18383_s11 + $0x580] ss:$16 sps:$4 sm:$0xff]  }
 0x635   :  { %7899 = vmatprep.subr.bf16.mxu0 %v12475_v23  ;;  %7952 = vmatprep.subr.bf16.mxu1 %v12478_v55  ;;  %v12536_v21 = vld [vmem:[%s18383_s11 + $0x780] ss:$16 sps:$4 sm:$0xff]   ;;  %v12541_v23 = vld [vmem:[%s18383_s11 + $0x564] ss:$16 sps:$4 sm:$0xff]  }
 0x636   :  { %v12544_v55 = vld [vmem:[%s18383_s11 + $0x764] ss:$16 sps:$4 sm:$0xff]  }
 0x638   :  { %7900 = vmatpush1.bf16.msra.mxu0 %v12473_v10  ;;  %7953 = vmatpush1.bf16.msra.mxu1 %v12476_v47  ;;  %v12539_v10 = vld [vmem:[%s18383_s11 + $0x560] ss:$16 sps:$4 sm:$0xff]  }
 0x639   :  { %7901 = vmatprep.subr.bf16.mxu0 %v12481_v50  ;;  %7954 = vmatprep.subr.bf16.mxu1 %v12484_v32  ;;  %v12542_v47 = vld [vmem:[%s18383_s11 + $0x760] ss:$16 sps:$4 sm:$0xff]   ;;  %v12547_v50 = vld [vmem:[%s18383_s11 + $0x544] ss:$16 sps:$4 sm:$0xff]  }
 0x63a   :  { %7834 = vmatmul.mubr.bf16.gmra.mxu0 %v16521_v34  ;;  %7887 = vmatmul.mubr.bf16.gmra.mxu1 %v16523_v26  ;;  %v12550_v32 = vld [vmem:[%s18383_s11 + $0x744] ss:$16 sps:$4 sm:$0xff]  }
 0x63b   :  { %7929 = vmatprep.mubr.bf16.mxu0 %v16517_v53  ;;  %7982 = vmatprep.mubr.bf16.mxu1 %v16519_v59 }
 0x63c   :  { %7902 = vmatpush1.bf16.msra.mxu0 %v12479_v36  ;;  %7955 = vmatpush1.bf16.msra.mxu1 %v12482_v24  ;;  %v12545_v36 = vld [vmem:[%s18383_s11 + $0x540] ss:$16 sps:$4 sm:$0xff]  }
 0x63d   :  { %7903 = vmatprep.subr.bf16.mxu0 %v12487_v1  ;;  %7956 = vmatprep.subr.bf16.mxu1 %v12490_v46  ;;  %v12548_v24 = vld [vmem:[%s18383_s11 + $0x740] ss:$16 sps:$4 sm:$0xff]   ;;  %v12553_v1 = vld [vmem:[%s18383_s11 + $0x524] ss:$16 sps:$4 sm:$0xff]  }
 0x63e   :  { %v12556_v46 = vld [vmem:[%s18383_s11 + $0x724] ss:$16 sps:$4 sm:$0xff]  }
 0x640   :  { %7904 = vmatpush1.bf16.msra.mxu0 %v12485_v57  ;;  %7957 = vmatpush1.bf16.msra.mxu1 %v12488_v12  ;;  %v12551_v57 = vld [vmem:[%s18383_s11 + $0x520] ss:$16 sps:$4 sm:$0xff]  }
 0x641   :  { %7905 = vmatprep.subr.bf16.mxu0 %v12493_v25  ;;  %7958 = vmatprep.subr.bf16.mxu1 %v12496_v38  ;;  %v12554_v12 = vld [vmem:[%s18383_s11 + $0x720] ss:$16 sps:$4 sm:$0xff]   ;;  %v12559_v25 = vld [vmem:[%s18383_s11 + $0x504] ss:$16 sps:$4 sm:$0xff]  }
 0x642   :  { %v12562_v38 = vld [vmem:[%s18383_s11 + $0x704] ss:$16 sps:$4 sm:$0xff]  }
 0x644   :  { %7906 = vmatpush1.bf16.msra.mxu0 %v12491_v54  ;;  %7959 = vmatpush1.bf16.msra.mxu1 %v12494_v6  ;;  %v12557_v54 = vld [vmem:[%s18383_s11 + $0x500] ss:$16 sps:$4 sm:$0xff]  }
 0x645   :  { %7907 = vmatprep.subr.bf16.mxu0 %v12499_v60  ;;  %7960 = vmatprep.subr.bf16.mxu1 %v12502_v43  ;;  %v12560_v6 = vld [vmem:[%s18383_s11 + $0x700] ss:$16 sps:$4 sm:$0xff]   ;;  %v12565_v60 = vld [vmem:[%s18383_s11 + $0xec] ss:$16 sps:$4 sm:$0xff]  }
 0x646   :  { %v12568_v43 = vld [vmem:[%s18383_s11 + $0x2ec] ss:$16 sps:$4 sm:$0xff]  }
 0x648   :  { %7908 = vmatpush1.bf16.msra.mxu0 %v12497_v19  ;;  %7961 = vmatpush1.bf16.msra.mxu1 %v12500_v61  ;;  %v12563_v19 = vld [vmem:[%s18383_s11 + $0xe8] ss:$16 sps:$4 sm:$0xff]  }
 0x649   :  { %7909 = vmatprep.subr.bf16.mxu0 %v12505_v5  ;;  %7962 = vmatprep.subr.bf16.mxu1 %v12508_v41  ;;  %v12566_v61 = vld [vmem:[%s18383_s11 + $0x2e8] ss:$16 sps:$4 sm:$0xff]   ;;  %v12571_v5 = vld [vmem:[%s18383_s11 + $0xcc] ss:$16 sps:$4 sm:$0xff]  }
 0x64a   :  { %v12574_v41 = vld [vmem:[%s18383_s11 + $0x2cc] ss:$16 sps:$4 sm:$0xff]  }
 0x64c   :  { %7910 = vmatpush1.bf16.msra.mxu0 %v12503_v2  ;;  %7963 = vmatpush1.bf16.msra.mxu1 %v12506_v56  ;;  %v12569_v2 = vld [vmem:[%s18383_s11 + $0xc8] ss:$16 sps:$4 sm:$0xff]  }
 0x64d   :  { %7911 = vmatprep.subr.bf16.mxu0 %v12511_v3  ;;  %7964 = vmatprep.subr.bf16.mxu1 %v12514_v11  ;;  %v12572_v56 = vld [vmem:[%s18383_s11 + $0x2c8] ss:$16 sps:$4 sm:$0xff]   ;;  %v12577_v3 = vld [vmem:[%s18383_s11 + $0xac] ss:$16 sps:$4 sm:$0xff]  }
 0x64e   :  { %v12580_v11 = vld [vmem:[%s18383_s11 + $0x2ac] ss:$16 sps:$4 sm:$0xff]  }
 0x650   :  { %7912 = vmatpush1.bf16.msra.mxu0 %v12509_v35  ;;  %7965 = vmatpush1.bf16.msra.mxu1 %v12512_v39  ;;  %v12575_v35 = vld [vmem:[%s18383_s11 + $0xa8] ss:$16 sps:$4 sm:$0xff]  }
 0x651   :  { %7913 = vmatprep.subr.bf16.mxu0 %v12517_v18  ;;  %7966 = vmatprep.subr.bf16.mxu1 %v12520_v29  ;;  %v12578_v39 = vld [vmem:[%s18383_s11 + $0x2a8] ss:$16 sps:$4 sm:$0xff]   ;;  %v12583_v18 = vld [vmem:[%s18383_s11 + $0x8c] ss:$16 sps:$4 sm:$0xff]  }
 0x652   :  { %v12586_v29 = vld [vmem:[%s18383_s11 + $0x28c] ss:$16 sps:$4 sm:$0xff]  }
 0x654   :  { %7914 = vmatpush2.bf16.msra.mxu0 %v12515_v17  ;;  %7967 = vmatpush2.bf16.msra.mxu1 %v12518_v42  ;;  %v12581_v17 = vld [vmem:[%s18383_s11 + $0x88] ss:$16 sps:$4 sm:$0xff]  }
 0x655   :  { %7915 = vmatprep.subr.bf16.mxu0 %v12523_v8  ;;  %7968 = vmatprep.subr.bf16.mxu1 %v12526_v62  ;;  %v12584_v42 = vld [vmem:[%s18383_s11 + $0x288] ss:$16 sps:$4 sm:$0xff]   ;;  %v12589_v8 = vld [vmem:[%s18383_s11 + $0x6c] ss:$16 sps:$4 sm:$0xff]  }
 0x656   :  { %v12590_v62 = vld [vmem:[%s18383_s11 + $0x268] ss:$16 sps:$4 sm:$0xff]  }
 0x658   :  { %7916 = vmatpush2.bf16.msra.mxu0 %v12521_v4  ;;  %7969 = vmatpush2.bf16.msra.mxu1 %v12524_v40  ;;  %v12595_v4 = vld [vmem:[%s18383_s11 + $0x4c] ss:$16 sps:$4 sm:$0xff]  }
 0x659   :  { %7917 = vmatprep.subr.bf16.mxu0 %v12529_v13  ;;  %7970 = vmatprep.subr.bf16.mxu1 %v12532_v14  ;;  %v12598_v40 = vld [vmem:[%s18383_s11 + $0x24c] ss:$16 sps:$4 sm:$0xff]   ;;  %v12593_v13 = vld [vmem:[%s18383_s11 + $0x48] ss:$16 sps:$4 sm:$0xff]  }
 0x65a   :  { %v12596_v14 = vld [vmem:[%s18383_s11 + $0x248] ss:$16 sps:$4 sm:$0xff]  }
 0x65c   :  { %7918 = vmatpush2.bf16.msra.mxu0 %v12527_v27  ;;  %7971 = vmatpush2.bf16.msra.mxu1 %v12530_v52  ;;  %v12601_v27 = vld [vmem:[%s18383_s11 + $0x2c] ss:$16 sps:$4 sm:$0xff]  }
 0x65d   :  { %7919 = vmatprep.subr.bf16.mxu0 %v12535_v9  ;;  %7972 = vmatprep.subr.bf16.mxu1 %v12538_v0  ;;  %v12604_v52 = vld [vmem:[%s18383_s11 + $0x22c] ss:$16 sps:$4 sm:$0xff]   ;;  %v12599_v9 = vld [vmem:[%s18383_s11 + $0x28] ss:$16 sps:$4 sm:$0xff]  }
 0x65e   :  { %v12602_v0 = vld [vmem:[%s18383_s11 + $0x228] ss:$16 sps:$4 sm:$0xff]  }
 0x660   :  { %7920 = vmatpush2.bf16.msra.mxu0 %v12533_v63  ;;  %7973 = vmatpush2.bf16.msra.mxu1 %v12536_v21  ;;  %v12607_v63 = vld [vmem:[%s18383_s11 + $0xc] ss:$16 sps:$4 sm:$0xff]  }
 0x661   :  { %7921 = vmatprep.subr.bf16.mxu0 %v12541_v23  ;;  %7974 = vmatprep.subr.bf16.mxu1 %v12544_v55  ;;  %v12610_v21 = vld [vmem:[%s18383_s11 + $0x20c] ss:$16 sps:$4 sm:$0xff]   ;;  %v12605_v23 = vld [vmem:[%s18383_s11 + $0x8] ss:$16 sps:$4 sm:$0xff]  }
 0x662   :  { %v12608_v55 = vld [vmem:[%s18383_s11 + $0x208] ss:$16 sps:$4 sm:$0xff]  }
 0x664   :  { %7922 = vmatpush2.bf16.msra.mxu0 %v12539_v10  ;;  %7975 = vmatpush2.bf16.msra.mxu1 %v12542_v47  ;;  %v12613_v10 = vld [vmem:[%s18383_s11 + $0x1ec] ss:$16 sps:$4 sm:$0xff]  }
 0x665   :  { %7923 = vmatprep.subr.bf16.mxu0 %v12547_v50  ;;  %7976 = vmatprep.subr.bf16.mxu1 %v12550_v32  ;;  %v12616_v47 = vld [vmem:[%s18383_s11 + $0x3ec] ss:$16 sps:$4 sm:$0xff]   ;;  %v12611_v50 = vld [vmem:[%s18383_s11 + $0x1e8] ss:$16 sps:$4 sm:$0xff]  }
 0x666   :  { %v12614_v32 = vld [vmem:[%s18383_s11 + $0x3e8] ss:$16 sps:$4 sm:$0xff]  }
 0x668   :  { %7924 = vmatpush2.bf16.msra.mxu0 %v12545_v36  ;;  %7977 = vmatpush2.bf16.msra.mxu1 %v12548_v24  ;;  %v12619_v36 = vld [vmem:[%s18383_s11 + $0x1cc] ss:$16 sps:$4 sm:$0xff]  }
 0x669   :  { %7925 = vmatprep.subr.bf16.mxu0 %v12553_v1  ;;  %7978 = vmatprep.subr.bf16.mxu1 %v12556_v46  ;;  %v12622_v24 = vld [vmem:[%s18383_s11 + $0x3cc] ss:$16 sps:$4 sm:$0xff]   ;;  %v12617_v1 = vld [vmem:[%s18383_s11 + $0x1c8] ss:$16 sps:$4 sm:$0xff]  }
 0x66a   :  { %v12620_v46 = vld [vmem:[%s18383_s11 + $0x3c8] ss:$16 sps:$4 sm:$0xff]  }
 0x66c   :  { %7926 = vmatpush2.bf16.msra.mxu0 %v12551_v57  ;;  %7979 = vmatpush2.bf16.msra.mxu1 %v12554_v12  ;;  %v12625_v57 = vld [vmem:[%s18383_s11 + $0x1ac] ss:$16 sps:$4 sm:$0xff]  }
 0x66d   :  { %7927 = vmatprep.subr.bf16.mxu0 %v12559_v25  ;;  %7980 = vmatprep.subr.bf16.mxu1 %v12562_v38  ;;  %v12628_v12 = vld [vmem:[%s18383_s11 + $0x3ac] ss:$16 sps:$4 sm:$0xff]   ;;  %v12623_v25 = vld [vmem:[%s18383_s11 + $0x1a8] ss:$16 sps:$4 sm:$0xff]  }
 0x66e   :  { %v12626_v38 = vld [vmem:[%s18383_s11 + $0x3a8] ss:$16 sps:$4 sm:$0xff]  }
 0x670   :  { %7928 = vmatpush2.bf16.msra.mxu0 %v12557_v54  ;;  %7981 = vmatpush2.bf16.msra.mxu1 %v12560_v6  ;;  %v12631_v54 = vld [vmem:[%s18383_s11 + $0x18c] ss:$16 sps:$4 sm:$0xff]  }
 0x671   :  { %8003 = vmatprep.subr.bf16.mxu0 %v12565_v60  ;;  %8056 = vmatprep.subr.bf16.mxu1 %v12568_v43  ;;  %v12634_v6 = vld [vmem:[%s18383_s11 + $0x38c] ss:$16 sps:$4 sm:$0xff]   ;;  %v12629_v60 = vld [vmem:[%s18383_s11 + $0x188] ss:$16 sps:$4 sm:$0xff]  }
 0x672   :  { %v12632_v43 = vld [vmem:[%s18383_s11 + $0x388] ss:$16 sps:$4 sm:$0xff]  }
 0x673   :  { %7930 = vmatmul.mubr.bf16.vlgmr.msra.gmra.mxu0 %v16513_v22  ;;  %7983 = vmatmul.mubr.bf16.vlgmr.msra.gmra.mxu1 %v16515_v15 }
 0x674   :  { %7939 = vmatprep.mubr.bf16.mxu0 %v16535_v48  ;;  %7992 = vmatprep.mubr.bf16.mxu1 %v16537_v31 }
 0x675   :  { %8004 = vmatpush1.bf16.msra.mxu0 %v12563_v19  ;;  %8057 = vmatpush1.bf16.msra.mxu1 %v12566_v61  ;;  %v12637_v19 = vld [vmem:[%s18383_s11 + $0x16c] ss:$16 sps:$4 sm:$0xff]  }
 0x676   :  { %8005 = vmatprep.subr.bf16.mxu0 %v12571_v5  ;;  %8058 = vmatprep.subr.bf16.mxu1 %v12574_v41  ;;  %v12640_v61 = vld [vmem:[%s18383_s11 + $0x36c] ss:$16 sps:$4 sm:$0xff]   ;;  %v12635_v5 = vld [vmem:[%s18383_s11 + $0x168] ss:$16 sps:$4 sm:$0xff]  }
 0x677   :  { %v12638_v41 = vld [vmem:[%s18383_s11 + $0x368] ss:$16 sps:$4 sm:$0xff]  }
 0x679   :  { %8006 = vmatpush1.bf16.msra.mxu0 %v12569_v2  ;;  %8059 = vmatpush1.bf16.msra.mxu1 %v12572_v56 }
 0x67a   :  { %8007 = vmatprep.subr.bf16.mxu0 %v12577_v3  ;;  %8060 = vmatprep.subr.bf16.mxu1 %v12580_v11  ;;  %v17127_v3 = vld [vmem:[#allocation5] sm:$0xff] }
 0x67b   :  { %7940 = vmatmul.mubr.bf16.gmra.mxu0 %v16531_v20  ;;  %7993 = vmatmul.mubr.bf16.gmra.mxu1 %v16533_v16 }
 0x67c   :  { %8035 = vmatprep.mubr.bf16.mxu0 %v16509_v37  ;;  %8088 = vmatprep.mubr.bf16.mxu1 %v16511_v58  ;;  %v12592_v37 = vld [vmem:[%s18383_s11 + $0x26c] ss:$16 sps:$4 sm:$0xff]   ;;  %v12587_v58 = vld [vmem:[%s18383_s11 + $0x68] ss:$16 sps:$4 sm:$0xff]  }
 0x67d   :  { %8008 = vmatpush1.bf16.msra.mxu0 %v12575_v35  ;;  %8061 = vmatpush1.bf16.msra.mxu1 %v12578_v39  ;;  %v13240_v35 = vld [vmem:[#allocation5 + $0x10] sm:$0xff] }
 0x67e   :  { %8009 = vmatprep.subr.bf16.mxu0 %v12583_v18  ;;  %8062 = vmatprep.subr.bf16.mxu1 %v12586_v29  ;;  %v12643_v18 = vld [vmem:[%s18383_s11 + $0x14c] ss:$16 sps:$4 sm:$0xff]  }
 0x67f   :  { %v12646_v29 = vld [vmem:[%s18383_s11 + $0x34c] ss:$16 sps:$4 sm:$0xff]  }
 0x681   :  { %8010 = vmatpush1.bf16.msra.mxu0 %v12581_v17  ;;  %8063 = vmatpush1.bf16.msra.mxu1 %v12584_v42 }
 0x682   :  { %8011 = vmatprep.subr.bf16.mxu0 %v12589_v8  ;;  %8064 = vmatprep.subr.bf16.mxu1 %v12592_v37  ;;  %v17136_v8 = vld [vmem:[#allocation5 + $0x8] sm:$0xff] }
 0x685   :  { %8012 = vmatpush1.bf16.msra.mxu0 %v12587_v58  ;;  %8065 = vmatpush1.bf16.msra.mxu1 %v12590_v62  ;;  %v13242_v58 = vld [vmem:[#allocation5 + $0x18] sm:$0xff] }
 0x686   :  { %8013 = vmatprep.subr.bf16.mxu0 %v12595_v4  ;;  %8066 = vmatprep.subr.bf16.mxu1 %v12598_v40  ;;  %v12641_v4 = vld [vmem:[%s18383_s11 + $0x148] ss:$16 sps:$4 sm:$0xff]  }
 0x687   :  { %v12644_v40 = vld [vmem:[%s18383_s11 + $0x348] ss:$16 sps:$4 sm:$0xff]  }
 0x689   :  { %8014 = vmatpush1.bf16.msra.mxu0 %v12593_v13  ;;  %8067 = vmatpush1.bf16.msra.mxu1 %v12596_v14 }
 0x68a   :  { %8015 = vmatprep.subr.bf16.mxu0 %v12601_v27  ;;  %8068 = vmatprep.subr.bf16.mxu1 %v12604_v52  ;;  %v12649_v27 = vld [vmem:[%s18383_s11 + $0x12c] ss:$16 sps:$4 sm:$0xff]  }
 0x68b   :  { %v12652_v52 = vld [vmem:[%s18383_s11 + $0x32c] ss:$16 sps:$4 sm:$0xff]  }
 0x68d   :  { %8016 = vmatpush1.bf16.msra.mxu0 %v12599_v9  ;;  %8069 = vmatpush1.bf16.msra.mxu1 %v12602_v0  ;;  %v17153_v0 = vld [vmem:[#allocation5 + $0x20] sm:$0xff] }
 0x68e   :  { %8017 = vmatprep.subr.bf16.mxu0 %v12607_v63  ;;  %8070 = vmatprep.subr.bf16.mxu1 %v12610_v21 }
 0x691   :  { %8018 = vmatpush1.bf16.msra.mxu0 %v12605_v23  ;;  %8071 = vmatpush1.bf16.msra.mxu1 %v12608_v55  ;;  %v13244_v23 = vld [vmem:[#allocation5 + $0x30] sm:$0xff] }
 0x692   :  { %8019 = vmatprep.subr.bf16.mxu0 %v12613_v10  ;;  %8072 = vmatprep.subr.bf16.mxu1 %v12616_v47 }
 0x695   :  { %8020 = vmatpush2.bf16.msra.mxu0 %v12611_v50  ;;  %8073 = vmatpush2.bf16.msra.mxu1 %v12614_v32  ;;  %v17160_v32 = vld [vmem:[#allocation5 + $0x28] sm:$0xff] }
 0x696   :  { %8021 = vmatprep.subr.bf16.mxu0 %v12619_v36  ;;  %8074 = vmatprep.subr.bf16.mxu1 %v12622_v24 }
 0x699   :  { %8022 = vmatpush2.bf16.msra.mxu0 %v12617_v1  ;;  %8075 = vmatpush2.bf16.msra.mxu1 %v12620_v46  ;;  %v12647_v1 = vld [vmem:[%s18383_s11 + $0x128] ss:$16 sps:$4 sm:$0xff]  }
 0x69a   :  { %8023 = vmatprep.subr.bf16.mxu0 %v12625_v57  ;;  %8076 = vmatprep.subr.bf16.mxu1 %v12628_v12  ;;  %v12650_v46 = vld [vmem:[%s18383_s11 + $0x328] ss:$16 sps:$4 sm:$0xff]  }
 0x69b   :  { %v13246_v57 = vld [vmem:[#allocation5 + $0x38] sm:$0xff] }
 0x69d   :  { %8024 = vmatpush2.bf16.msra.mxu0 %v12623_v25  ;;  %8077 = vmatpush2.bf16.msra.mxu1 %v12626_v38 }
 0x69e   :  { %8025 = vmatprep.subr.bf16.mxu0 %v12631_v54  ;;  %8078 = vmatprep.subr.bf16.mxu1 %v12634_v6  ;;  %v12655_v54 = vld [vmem:[%s18383_s11 + $0x10c] ss:$16 sps:$4 sm:$0xff]  }
 0x69f   :  { %v12658_v6 = vld [vmem:[%s18383_s11 + $0x30c] ss:$16 sps:$4 sm:$0xff]  }
 0x6a1   :  { %8026 = vmatpush2.bf16.msra.mxu0 %v12629_v60  ;;  %8079 = vmatpush2.bf16.msra.mxu1 %v12632_v43  ;;  %v5915_v2 = vpop.f32.mrf.mxu0  ;;  %v6004_v56 = vpop.f32.mrf.mxu1 }
 0x6a2   :  { %8027 = vmatprep.subr.bf16.mxu0 %v12637_v19  ;;  %8080 = vmatprep.subr.bf16.mxu1 %v12640_v61  ;;  %v10293_v11 = vmul.f32 %v17127_v3, %v5915_v2  ;;  %v10295_v39 = vmul.f32 %v13240_v35, %v6004_v56  ;;  %v12653_v19 = vld [vmem:[%s18383_s11 + $0x108] ss:$16 sps:$4 sm:$0xff]  }
 0x6a3   :  { %v5917_v17 = vpop.f32.mrf.mxu0  ;;  %v6006_v42 = vpop.f32.mrf.mxu1  ;;  %v12656_v61 = vld [vmem:[%s18383_s11 + $0x308] ss:$16 sps:$4 sm:$0xff]  }
 0x6a4   :  { %10309 = vst [vmem:[#allocation3 + $0x60] sm:$0xff] %v10293_v11  ;;  %10311 = vst [vmem:[#allocation3 + $0x70] sm:$0xff] %v10295_v39  ;;  %v10294_v37 = vmul.f32 %v17136_v8, %v5917_v17  ;;  %v10296_v62 = vmul.f32 %v13242_v58, %v6006_v42 }
 0x6a5   :  { %8028 = vmatpush2.bf16.msra.mxu0 %v12635_v5  ;;  %8081 = vmatpush2.bf16.msra.mxu1 %v12638_v41 }
 0x6a6   :  { %10310 = vst [vmem:[#allocation3 + $0x68] sm:$0xff] %v10294_v37  ;;  %10312 = vst [vmem:[#allocation3 + $0x78] sm:$0xff] %v10296_v62  ;;  %8029 = vmatprep.subr.bf16.mxu0 %v12643_v18  ;;  %8082 = vmatprep.subr.bf16.mxu1 %v12646_v29  ;;  %v5921_v13 = vpop.f32.mrf.mxu0  ;;  %v6010_v14 = vpop.f32.mrf.mxu1  ;;  %v12662_v37 = vld [vmem:[%s18383_s11 + $0x6e8] ss:$16 sps:$4 sm:$0xff]  }
 0x6a7   :  { %v17151_v9 = vpack.c.bf16 %v5921_v13, %v5915_v2  ;;  %v10297_v63 = vmul.f32 %v17153_v0, %v5921_v13  ;;  %v17156_v21 = vpack.c.bf16 %v6010_v14, %v6004_v56  ;;  %v10299_v55 = vmul.f32 %v13244_v23, %v6010_v14  ;;  %v12661_v2 = vld [vmem:[%s18383_s11 + $0x4ec] ss:$16 sps:$4 sm:$0xff]   ;;  %v13248_v13 = vld [vmem:[#allocation5 + $0x50] sm:$0xff] }
 0x6a8   :  { %v5923_v10 = vpop.f32.mrf.mxu0  ;;  %v6012_v47 = vpop.f32.mrf.mxu1  ;;  %v12664_v56 = vld [vmem:[%s18383_s11 + $0x6ec] ss:$16 sps:$4 sm:$0xff]  }
 0x6a9   :  { %10313 = vst [vmem:[#allocation3 + $0xe0] sm:$0xff] %v10297_v63  ;;  %10315 = vst [vmem:[#allocation3 + $0xf0] sm:$0xff] %v10299_v55  ;;  %8030 = vmatpush2.bf16.msra.mxu0 %v12641_v4  ;;  %8083 = vmatpush2.bf16.msra.mxu1 %v12644_v40  ;;  %v17158_v50 = vpack.c.bf16 %v5923_v10, %v5917_v17  ;;  %v10298_v36 = vmul.f32 %v17160_v32, %v5923_v10  ;;  %v17203_v4 = vld [vmem:[#allocation5 + $0x40] sm:$0xff]  ;;  %v17216_v55 = vld [vmem:[#allocation5 + $0x48] sm:$0xff] }
 0x6aa   :  { %v17163_v24 = vpack.c.bf16 %v6012_v47, %v6006_v42  ;;  %v10300_v12 = vmul.f32 %v13246_v57, %v6012_v47  ;;  %8031 = vmatprep.subr.bf16.mxu0 %v12649_v27  ;;  %8084 = vmatprep.subr.bf16.mxu1 %v12652_v52  ;;  %v5927_v25 = vpop.f32.mrf.mxu0  ;;  %v6016_v38 = vpop.f32.mrf.mxu1  ;;  %v12659_v42 = vld [vmem:[%s18383_s11 + $0x4e8] ss:$16 sps:$4 sm:$0xff]   ;;  %v12667_v27 = vld [vmem:[%s18383_s11 + $0x4cc] ss:$16 sps:$4 sm:$0xff]  }
 0x6ab   :  { %10314 = vst [vmem:[#allocation3 + $0xe8] sm:$0xff] %v10298_v36  ;;  %v12670_v52 = vld [vmem:[%s18383_s11 + $0x6cc] ss:$16 sps:$4 sm:$0xff]  }
 0x6ac   :  { %10316 = vst [vmem:[#allocation3 + $0xf8] sm:$0xff] %v10300_v12  ;;  %v5929_v60 = vpop.f32.mrf.mxu0  ;;  %v6018_v43 = vpop.f32.mrf.mxu1  ;;  %v13250_v47 = vld [vmem:[#allocation5 + $0x58] sm:$0xff] }
 0x6ad   :  { %8032 = vmatpush2.bf16.msra.mxu0 %v12647_v1  ;;  %8085 = vmatpush2.bf16.msra.mxu1 %v12650_v46  ;;  %v17227_v46 = vld [vmem:[#allocation5 + $0x60] sm:$0xff] }
 0x6ae   :  { %8033 = vmatprep.subr.bf16.mxu0 %v12655_v54  ;;  %8086 = vmatprep.subr.bf16.mxu1 %v12658_v6  ;;  %v5933_v5 = vpop.f32.mrf.mxu0  ;;  %v6022_v41 = vpop.f32.mrf.mxu1  ;;  %v13252_v54 = vld [vmem:[#allocation5 + $0x70] sm:$0xff] }
 0x6af   :  { %v17189_v11 = vpack.c.bf16 %v5933_v5, %v5927_v25  ;;  %v17191_v35 = vpack.c.bf16 %v6022_v41, %v6016_v38  ;;  %v12673_v25 = vld [vmem:[%s18383_s11 + $0x4ac] ss:$16 sps:$4 sm:$0xff]  }
 0x6b0   :  { %v5935_v39 = vpop.f32.mrf.mxu0  ;;  %v6024_v18 = vpop.f32.mrf.mxu1  ;;  %v12676_v38 = vld [vmem:[%s18383_s11 + $0x6ac] ss:$16 sps:$4 sm:$0xff]  }
 0x6b1   :  { %8034 = vmatpush2.bf16.msra.mxu0 %v12653_v19  ;;  %8087 = vmatpush2.bf16.msra.mxu1 %v12656_v61  ;;  %v17193_v29 = vpack.c.bf16 %v5935_v39, %v5929_v60  ;;  %v17195_v17 = vpack.c.bf16 %v6024_v18, %v6018_v43  ;;  %v17240_v61 = vld [vmem:[#allocation5 + $0x68] sm:$0xff] }
 0x6b2   :  { %8109 = vmatprep.subr.bf16.mxu0 %v12661_v2  ;;  %8162 = vmatprep.subr.bf16.mxu1 %v12664_v56  ;;  %v6105_v58 = vpop.f32.mrf.mxu0  ;;  %v6194_v62 = vpop.f32.mrf.mxu1  ;;  %v13254_v2 = vld [vmem:[#allocation5 + $0x78] sm:$0xff] }
 0x6b3   :  { %v10301_v40 = vmul.f32 %v17203_v4, %v6105_v58  ;;  %v10303_v14 = vmul.f32 %v13248_v13, %v6194_v62  ;;  %v12671_v39 = vld [vmem:[%s18383_s11 + $0x4a8] ss:$16 sps:$4 sm:$0xff]  }
 0x6b4   :  { %8036 = vmatmul.mubr.bf16.vlgmr.msra.gmra.mxu0 %v16505_v7  ;;  %8089 = vmatmul.mubr.bf16.vlgmr.msra.gmra.mxu1 %v16507_v33  ;;  %v6107_v63 = vpop.f32.mrf.mxu0  ;;  %v6196_v23 = vpop.f32.mrf.mxu1  ;;  %v12665_v7 = vld [vmem:[%s18383_s11 + $0x4c8] ss:$16 sps:$4 sm:$0xff]  }
 0x6b5   :  { %10317 = vst [vmem:[#allocation3 + $0x160] sm:$0xff] %v10301_v40  ;;  %10319 = vst [vmem:[#allocation3 + $0x170] sm:$0xff] %v10303_v14  ;;  %8045 = vmatprep.mubr.bf16.mxu0 %v16525_v30  ;;  %8098 = vmatprep.mubr.bf16.mxu1 %v16528_v51  ;;  %v10302_v10 = vmul.f32 %v17216_v55, %v6107_v63  ;;  %v10304_v36 = vmul.f32 %v13250_v47, %v6196_v23  ;;  %v12668_v33 = vld [vmem:[%s18383_s11 + $0x6c8] ss:$16 sps:$4 sm:$0xff]  }
 0x6b6   :  { %8110 = vmatpush1.bf16.msra.mxu0 %v12659_v42  ;;  %8163 = vmatpush1.bf16.msra.mxu1 %v12662_v37  ;;  %v6111_v1 = vpop.f32.mrf.mxu0  ;;  %v6200_v30 = vpop.f32.mrf.mxu1  ;;  %v12674_v18 = vld [vmem:[%s18383_s11 + $0x6a8] ss:$16 sps:$4 sm:$0xff]  }
 0x6b7   :  { %10318 = vst [vmem:[#allocation3 + $0x168] sm:$0xff] %v10302_v10  ;;  %10320 = vst [vmem:[#allocation3 + $0x178] sm:$0xff] %v10304_v36  ;;  %8111 = vmatprep.subr.bf16.mxu0 %v12667_v27  ;;  %8164 = vmatprep.subr.bf16.mxu1 %v12670_v52  ;;  %v17225_v51 = vpack.c.bf16 %v6111_v1, %v6105_v58  ;;  %v10305_v57 = vmul.f32 %v17227_v46, %v6111_v1  ;;  %v12679_v58 = vld [vmem:[%s18383_s11 + $0x48c] ss:$16 sps:$4 sm:$0xff]   ;;  %v12677_v14 = vld [vmem:[%s18383_s11 + $0x488] ss:$16 sps:$4 sm:$0xff]  }
 0x6b8   :  { %v17230_v12 = vpack.c.bf16 %v6200_v30, %v6194_v62  ;;  %v10307_v6 = vmul.f32 %v13252_v54, %v6200_v30  ;;  %v6113_v60 = vpop.f32.mrf.mxu0  ;;  %v6202_v43 = vpop.f32.mrf.mxu1  ;;  %v12682_v62 = vld [vmem:[%s18383_s11 + $0x68c] ss:$16 sps:$4 sm:$0xff]   ;;  %v12680_v27 = vld [vmem:[%s18383_s11 + $0x688] ss:$16 sps:$4 sm:$0xff]  }
 0x6b9   :  { %10321 = vst [vmem:[#allocation3 + $0x1e0] sm:$0xff] %v10305_v57  ;;  %v17238_v19 = vpack.c.bf16 %v6113_v60, %v6107_v63  ;;  %v10306_v5 = vmul.f32 %v17240_v61, %v6113_v60  ;;  %v17243_v41 = vpack.c.bf16 %v6202_v43, %v6196_v23  ;;  %v10308_v56 = vmul.f32 %v13254_v2, %v6202_v43  ;;  %v12691_v1 = vld [vmem:[%s18383_s11 + $0x44c] ss:$16 sps:$4 sm:$0xff]   ;;  %v12689_v57 = vld [vmem:[%s18383_s11 + $0x448] ss:$16 sps:$4 sm:$0xff]  }
 0x6ba   :  { %10323 = vst [vmem:[#allocation3 + $0x1f0] sm:$0xff] %v10307_v6  ;;  %8112 = vmatpush1.bf16.msra.mxu0 %v12665_v7  ;;  %8165 = vmatpush1.bf16.msra.mxu1 %v12668_v33  ;;  %v6117_v42 = vpop.f32.mrf.mxu0  ;;  %v6206_v37 = vpop.f32.mrf.mxu1  ;;  %v12683_v7 = vld [vmem:[%s18383_s11 + $0x468] ss:$16 sps:$4 sm:$0xff]   ;;  %v12694_v30 = vld [vmem:[%s18383_s11 + $0x64c] ss:$16 sps:$4 sm:$0xff]  }
 0x6bb   :  { %10322 = vst [vmem:[#allocation3 + $0x1e8] sm:$0xff] %v10306_v5  ;;  %10324 = vst [vmem:[#allocation3 + $0x1f8] sm:$0xff] %v10308_v56  ;;  %8113 = vmatprep.subr.bf16.mxu0 %v12673_v25  ;;  %8166 = vmatprep.subr.bf16.mxu1 %v12676_v38  ;;  %v12686_v33 = vld [vmem:[%s18383_s11 + $0x668] ss:$16 sps:$4 sm:$0xff]   ;;  %v12697_v38 = vld [vmem:[%s18383_s11 + $0x42c] ss:$16 sps:$4 sm:$0xff]  }
 0x6bc   :  { %8046 = vmatmul.mubr.bf16.gmra.mxu0 %v16521_v34  ;;  %8099 = vmatmul.mubr.bf16.gmra.mxu1 %v16523_v26  ;;  %v6119_v40 = vpop.f32.mrf.mxu0  ;;  %v6208_v13 = vpop.f32.mrf.mxu1  ;;  %v12692_v25 = vld [vmem:[%s18383_s11 + $0x648] ss:$16 sps:$4 sm:$0xff]   ;;  %v12700_v54 = vld [vmem:[%s18383_s11 + $0x62c] ss:$16 sps:$4 sm:$0xff]  }
 0x6bd   :  { %8141 = vmatprep.mubr.bf16.mxu0 %v16517_v53  ;;  %8194 = vmatprep.mubr.bf16.mxu1 %v16519_v59  ;;  %v12685_v53 = vld [vmem:[%s18383_s11 + $0x46c] ss:$16 sps:$4 sm:$0xff]   ;;  %v12695_v6 = vld [vmem:[%s18383_s11 + $0x428] ss:$16 sps:$4 sm:$0xff]  }
 0x6be   :  { %8114 = vmatpush1.bf16.msra.mxu0 %v12671_v39  ;;  %8167 = vmatpush1.bf16.msra.mxu1 %v12674_v18  ;;  %v6123_v52 = vpop.f32.mrf.mxu0  ;;  %v6212_v34 = vpop.f32.mrf.mxu1  ;;  %v12688_v59 = vld [vmem:[%s18383_s11 + $0x66c] ss:$16 sps:$4 sm:$0xff]   ;;  %v12698_v60 = vld [vmem:[%s18383_s11 + $0x628] ss:$16 sps:$4 sm:$0xff]  }
 0x6bf   :  { %8115 = vmatprep.subr.bf16.mxu0 %v12679_v58  ;;  %8168 = vmatprep.subr.bf16.mxu1 %v12682_v62  ;;  %v17267_v26 = vpack.c.bf16 %v6123_v52, %v6117_v42  ;;  %v17269_v63 = vpack.c.bf16 %v6212_v34, %v6206_v37  ;;  %v12703_v43 = vld [vmem:[%s18383_s11 + $0x40c] ss:$16 sps:$4 sm:$0xff]   ;;  %v12701_v2 = vld [vmem:[%s18383_s11 + $0x408] ss:$16 sps:$4 sm:$0xff]  }
 0x6c0   :  { %v6125_v23 = vpop.f32.mrf.mxu0  ;;  %v6214_v10 = vpop.f32.mrf.mxu1  ;;  %v12706_v5 = vld [vmem:[%s18383_s11 + $0x60c] ss:$16 sps:$4 sm:$0xff]   ;;  %v12704_v56 = vld [vmem:[%s18383_s11 + $0x608] ss:$16 sps:$4 sm:$0xff]  }
 0x6c1   :  { %v17277_v47 = vpack.c.bf16 %v6125_v23, %v6119_v40  ;;  %v17279_v36 = vpack.c.bf16 %v6214_v10, %v6208_v13  ;;  %v12709_v39 = vld [vmem:[%s18383_s11 + $0x5ec] ss:$16 sps:$4 sm:$0xff]   ;;  %v12707_v42 = vld [vmem:[%s18383_s11 + $0x5e8] ss:$16 sps:$4 sm:$0xff]  }
 0x6c2   :  { %8116 = vmatpush1.bf16.msra.mxu0 %v12677_v14  ;;  %8169 = vmatpush1.bf16.msra.mxu1 %v12680_v27  ;;  %v12712_v18 = vld [vmem:[%s18383_s11 + $0x7ec] ss:$16 sps:$4 sm:$0xff]   ;;  %v12710_v37 = vld [vmem:[%s18383_s11 + $0x7e8] ss:$16 sps:$4 sm:$0xff]  }
 0x6c3   :  { %8117 = vmatprep.subr.bf16.mxu0 %v12685_v53  ;;  %8170 = vmatprep.subr.bf16.mxu1 %v12688_v59  ;;  %v12715_v58 = vld [vmem:[%s18383_s11 + $0x5cc] ss:$16 sps:$4 sm:$0xff]   ;;  %v12713_v40 = vld [vmem:[%s18383_s11 + $0x5c8] ss:$16 sps:$4 sm:$0xff]  }
 0x6c4   :  { %v12718_v62 = vld [vmem:[%s18383_s11 + $0x7cc] ss:$16 sps:$4 sm:$0xff]   ;;  %v12716_v13 = vld [vmem:[%s18383_s11 + $0x7c8] ss:$16 sps:$4 sm:$0xff]  }
 0x6c5   :  { %v12721_v14 = vld [vmem:[%s18383_s11 + $0x5ac] ss:$16 sps:$4 sm:$0xff]   ;;  %v12719_v52 = vld [vmem:[%s18383_s11 + $0x5a8] ss:$16 sps:$4 sm:$0xff]  }
 0x6c6   :  { %8118 = vmatpush1.bf16.msra.mxu0 %v12683_v7  ;;  %8171 = vmatpush1.bf16.msra.mxu1 %v12686_v33  ;;  %v12724_v27 = vld [vmem:[%s18383_s11 + $0x7ac] ss:$16 sps:$4 sm:$0xff]   ;;  %v12722_v34 = vld [vmem:[%s18383_s11 + $0x7a8] ss:$16 sps:$4 sm:$0xff]  }
 0x6c7   :  { %8119 = vmatprep.subr.bf16.mxu0 %v12691_v1  ;;  %8172 = vmatprep.subr.bf16.mxu1 %v12694_v30  ;;  %v12727_v53 = vld [vmem:[%s18383_s11 + $0x58c] ss:$16 sps:$4 sm:$0xff]   ;;  %v12725_v23 = vld [vmem:[%s18383_s11 + $0x588] ss:$16 sps:$4 sm:$0xff]  }
 0x6c8   :  { %v12730_v59 = vld [vmem:[%s18383_s11 + $0x78c] ss:$16 sps:$4 sm:$0xff]   ;;  %v12728_v10 = vld [vmem:[%s18383_s11 + $0x788] ss:$16 sps:$4 sm:$0xff]  }
 0x6c9   :  { %v12733_v7 = vld [vmem:[%s18383_s11 + $0x56c] ss:$16 sps:$4 sm:$0xff]   ;;  %v12731_v1 = vld [vmem:[%s18383_s11 + $0x568] ss:$16 sps:$4 sm:$0xff]  }
 0x6ca   :  { %8120 = vmatpush1.bf16.msra.mxu0 %v12689_v57  ;;  %8173 = vmatpush1.bf16.msra.mxu1 %v12692_v25  ;;  %v12736_v33 = vld [vmem:[%s18383_s11 + $0x76c] ss:$16 sps:$4 sm:$0xff]   ;;  %v12734_v30 = vld [vmem:[%s18383_s11 + $0x768] ss:$16 sps:$4 sm:$0xff]  }
 0x6cb   :  { %8121 = vmatprep.subr.bf16.mxu0 %v12697_v38  ;;  %8174 = vmatprep.subr.bf16.mxu1 %v12700_v54  ;;  %v12739_v57 = vld [vmem:[%s18383_s11 + $0x54c] ss:$16 sps:$4 sm:$0xff]   ;;  %v12737_v38 = vld [vmem:[%s18383_s11 + $0x548] ss:$16 sps:$4 sm:$0xff]  }
 0x6cc   :  { %v12742_v25 = vld [vmem:[%s18383_s11 + $0x74c] ss:$16 sps:$4 sm:$0xff]   ;;  %v12740_v54 = vld [vmem:[%s18383_s11 + $0x748] ss:$16 sps:$4 sm:$0xff]  }
 0x6ce   :  { %8122 = vmatpush1.bf16.msra.mxu0 %v12695_v6  ;;  %8175 = vmatpush1.bf16.msra.mxu1 %v12698_v60  ;;  %v12745_v6 = vld [vmem:[%s18383_s11 + $0x52c] ss:$16 sps:$4 sm:$0xff]  }
 0x6cf   :  { %8123 = vmatprep.subr.bf16.mxu0 %v12703_v43  ;;  %8176 = vmatprep.subr.bf16.mxu1 %v12706_v5  ;;  %v12748_v60 = vld [vmem:[%s18383_s11 + $0x72c] ss:$16 sps:$4 sm:$0xff]   ;;  %v12743_v43 = vld [vmem:[%s18383_s11 + $0x528] ss:$16 sps:$4 sm:$0xff]  }
 0x6d0   :  { %v12746_v5 = vld [vmem:[%s18383_s11 + $0x728] ss:$16 sps:$4 sm:$0xff]  }
 0x6d2   :  { %8124 = vmatpush1.bf16.msra.mxu0 %v12701_v2  ;;  %8177 = vmatpush1.bf16.msra.mxu1 %v12704_v56  ;;  %v12751_v2 = vld [vmem:[%s18383_s11 + $0x50c] ss:$16 sps:$4 sm:$0xff]  }
 0x6d3   :  { %8125 = vmatprep.subr.bf16.mxu0 %v12709_v39  ;;  %8178 = vmatprep.subr.bf16.mxu1 %v12712_v18  ;;  %v12754_v56 = vld [vmem:[%s18383_s11 + $0x70c] ss:$16 sps:$4 sm:$0xff]   ;;  %v12749_v39 = vld [vmem:[%s18383_s11 + $0x508] ss:$16 sps:$4 sm:$0xff]  }
 0x6d4   :  { %v12752_v18 = vld [vmem:[%s18383_s11 + $0x708] ss:$16 sps:$4 sm:$0xff]  }
 0x6d6   :  { %8126 = vmatpush2.bf16.msra.mxu0 %v12707_v42  ;;  %8179 = vmatpush2.bf16.msra.mxu1 %v12710_v37  ;;  %v12757_v42 = vld [vmem:[%s18385_s13 + $0xe4] ss:$16 sps:$4 sm:$0xff]  }
 0x6d7   :  { %8127 = vmatprep.subr.bf16.mxu0 %v12715_v58  ;;  %8180 = vmatprep.subr.bf16.mxu1 %v12718_v62  ;;  %v12760_v37 = vld [vmem:[%s18385_s13 + $0x2e4] ss:$16 sps:$4 sm:$0xff]   ;;  %v12755_v58 = vld [vmem:[%s18385_s13 + $0xe0] ss:$16 sps:$4 sm:$0xff]  }
 0x6d8   :  { %v12758_v62 = vld [vmem:[%s18385_s13 + $0x2e0] ss:$16 sps:$4 sm:$0xff]  }
 0x6da   :  { %8128 = vmatpush2.bf16.msra.mxu0 %v12713_v40  ;;  %8181 = vmatpush2.bf16.msra.mxu1 %v12716_v13  ;;  %v12763_v40 = vld [vmem:[%s18385_s13 + $0xc4] ss:$16 sps:$4 sm:$0xff]  }
 0x6db   :  { %8129 = vmatprep.subr.bf16.mxu0 %v12721_v14  ;;  %8182 = vmatprep.subr.bf16.mxu1 %v12724_v27  ;;  %v12766_v13 = vld [vmem:[%s18385_s13 + $0x2c4] ss:$16 sps:$4 sm:$0xff]   ;;  %v12761_v14 = vld [vmem:[%s18385_s13 + $0xc0] ss:$16 sps:$4 sm:$0xff]  }
 0x6dc   :  { %v12764_v27 = vld [vmem:[%s18385_s13 + $0x2c0] ss:$16 sps:$4 sm:$0xff]  }
 0x6de   :  { %8130 = vmatpush2.bf16.msra.mxu0 %v12719_v52  ;;  %8183 = vmatpush2.bf16.msra.mxu1 %v12722_v34  ;;  %v12775_v52 = vld [vmem:[%s18385_s13 + $0x84] ss:$16 sps:$4 sm:$0xff]  }
 0x6df   :  { %8131 = vmatprep.subr.bf16.mxu0 %v12727_v53  ;;  %8184 = vmatprep.subr.bf16.mxu1 %v12730_v59  ;;  %v12778_v34 = vld [vmem:[%s18385_s13 + $0x284] ss:$16 sps:$4 sm:$0xff]   ;;  %v12773_v53 = vld [vmem:[%s18385_s13 + $0x80] ss:$16 sps:$4 sm:$0xff]  }
 0x6e0   :  { %v12776_v59 = vld [vmem:[%s18385_s13 + $0x280] ss:$16 sps:$4 sm:$0xff]  }
 0x6e2   :  { %8132 = vmatpush2.bf16.msra.mxu0 %v12725_v23  ;;  %8185 = vmatpush2.bf16.msra.mxu1 %v12728_v10  ;;  %v12779_v23 = vld [vmem:[%s18385_s13 + $0x60] ss:$16 sps:$4 sm:$0xff]  }
 0x6e3   :  { %8133 = vmatprep.subr.bf16.mxu0 %v12733_v7  ;;  %8186 = vmatprep.subr.bf16.mxu1 %v12736_v33  ;;  %v12782_v10 = vld [vmem:[%s18385_s13 + $0x260] ss:$16 sps:$4 sm:$0xff]   ;;  %v12787_v7 = vld [vmem:[%s18385_s13 + $0x44] ss:$16 sps:$4 sm:$0xff]  }
 0x6e4   :  { %v12790_v33 = vld [vmem:[%s18385_s13 + $0x244] ss:$16 sps:$4 sm:$0xff]  }
 0x6e6   :  { %8134 = vmatpush2.bf16.msra.mxu0 %v12731_v1  ;;  %8187 = vmatpush2.bf16.msra.mxu1 %v12734_v30  ;;  %v12785_v1 = vld [vmem:[%s18385_s13 + $0x40] ss:$16 sps:$4 sm:$0xff]  }
 0x6e7   :  { %8135 = vmatprep.subr.bf16.mxu0 %v12739_v57  ;;  %8188 = vmatprep.subr.bf16.mxu1 %v12742_v25  ;;  %v12788_v30 = vld [vmem:[%s18385_s13 + $0x240] ss:$16 sps:$4 sm:$0xff]   ;;  %v12793_v57 = vld [vmem:[%s18385_s13 + $0x24] ss:$16 sps:$4 sm:$0xff]  }
 0x6e8   :  { %v12796_v25 = vld [vmem:[%s18385_s13 + $0x224] ss:$16 sps:$4 sm:$0xff]  }
 0x6ea   :  { %8136 = vmatpush2.bf16.msra.mxu0 %v12737_v38  ;;  %8189 = vmatpush2.bf16.msra.mxu1 %v12740_v54  ;;  %v12791_v38 = vld [vmem:[%s18385_s13 + $0x20] ss:$16 sps:$4 sm:$0xff]  }
 0x6eb   :  { %8137 = vmatprep.subr.bf16.mxu0 %v12745_v6  ;;  %8190 = vmatprep.subr.bf16.mxu1 %v12748_v60  ;;  %v12794_v54 = vld [vmem:[%s18385_s13 + $0x220] ss:$16 sps:$4 sm:$0xff]   ;;  %v12799_v6 = vld [vmem:[%s18385_s13 + $0x4] ss:$16 sps:$4 sm:$0xff]  }
 0x6ec   :  { %v12802_v60 = vld [vmem:[%s18385_s13 + $0x204] ss:$16 sps:$4 sm:$0xff]  }
 0x6ee   :  { %8138 = vmatpush2.bf16.msra.mxu0 %v12743_v43  ;;  %8191 = vmatpush2.bf16.msra.mxu1 %v12746_v5  ;;  %v12797_v43 = vld [vmem:[%s18385_s13] ss:$16 sps:$4 sm:$0xff]  }
 0x6ef   :  { %8139 = vmatprep.subr.bf16.mxu0 %v12751_v2  ;;  %8192 = vmatprep.subr.bf16.mxu1 %v12754_v56  ;;  %v12800_v5 = vld [vmem:[%s18385_s13 + $0x200] ss:$16 sps:$4 sm:$0xff]   ;;  %v12805_v2 = vld [vmem:[%s18385_s13 + $0x1e4] ss:$16 sps:$4 sm:$0xff]  }
 0x6f0   :  { %v12808_v56 = vld [vmem:[%s18385_s13 + $0x3e4] ss:$16 sps:$4 sm:$0xff]  }
 0x6f2   :  { %8140 = vmatpush2.bf16.msra.mxu0 %v12749_v39  ;;  %8193 = vmatpush2.bf16.msra.mxu1 %v12752_v18  ;;  %v12803_v39 = vld [vmem:[%s18385_s13 + $0x1e0] ss:$16 sps:$4 sm:$0xff]  }
 0x6f3   :  { %9789 = vmatprep.subr.bf16.mxu0 %v12757_v42  ;;  %9842 = vmatprep.subr.bf16.mxu1 %v12760_v37  ;;  %v12806_v18 = vld [vmem:[%s18385_s13 + $0x3e0] ss:$16 sps:$4 sm:$0xff]   ;;  %v12811_v42 = vld [vmem:[%s18385_s13 + $0x1c4] ss:$16 sps:$4 sm:$0xff]  }
 0x6f4   :  { %v12814_v37 = vld [vmem:[%s18385_s13 + $0x3c4] ss:$16 sps:$4 sm:$0xff]  }
 0x6f5   :  { %8142 = vmatmul.mubr.bf16.vlgmr.msra.gmra.mxu0 %v16513_v22  ;;  %8195 = vmatmul.mubr.bf16.vlgmr.msra.gmra.mxu1 %v16515_v15  ;;  %v12769_v22 = vld [vmem:[%s18385_s13 + $0xa4] ss:$16 sps:$4 sm:$0xff]  }
 0x6f6   :  { %8151 = vmatprep.mubr.bf16.mxu0 %v16535_v48  ;;  %8204 = vmatprep.mubr.bf16.mxu1 %v16537_v31  ;;  %v12772_v15 = vld [vmem:[%s18385_s13 + $0x2a4] ss:$16 sps:$4 sm:$0xff]   ;;  %v12767_v48 = vld [vmem:[%s18385_s13 + $0xa0] ss:$16 sps:$4 sm:$0xff]  }
 0x6f7   :  { %9790 = vmatpush1.bf16.msra.mxu0 %v12755_v58  ;;  %9843 = vmatpush1.bf16.msra.mxu1 %v12758_v62  ;;  %v12770_v31 = vld [vmem:[%s18385_s13 + $0x2a0] ss:$16 sps:$4 sm:$0xff]   ;;  %v17541_v58 = vpop.f32.mrf.mxu0  ;;  %v17543_v62 = vpop.f32.mrf.mxu1 }
 0x6f8   :  { %9791 = vmatprep.subr.bf16.mxu0 %v12763_v40  ;;  %9844 = vmatprep.subr.bf16.mxu1 %v12766_v13  ;;  %v12809_v40 = vld [vmem:[%s18385_s13 + $0x1c0] ss:$16 sps:$4 sm:$0xff]  }
 0x6f9   :  { %v12812_v13 = vld [vmem:[%s18385_s13 + $0x3c0] ss:$16 sps:$4 sm:$0xff]  }
 0x6fb   :  { %9792 = vmatpush1.bf16.msra.mxu0 %v12761_v14  ;;  %9845 = vmatpush1.bf16.msra.mxu1 %v12764_v27  ;;  %v12817_v14 = vld [vmem:[%s18385_s13 + $0x1a4] ss:$16 sps:$4 sm:$0xff]  }
 0x6fc   :  { %9793 = vmatprep.subr.bf16.mxu0 %v12769_v22  ;;  %9846 = vmatprep.subr.bf16.mxu1 %v12772_v15  ;;  %v12820_v27 = vld [vmem:[%s18385_s13 + $0x3a4] ss:$16 sps:$4 sm:$0xff]   ;;  %v7827_v22 = vpop.f32.mrf.mxu0  ;;  %v17557_v15 = vpop.f32.mrf.mxu1 }
 0x6fd   :  { %8152 = vmatmul.mubr.bf16.gmra.mxu0 %v16531_v20  ;;  %8205 = vmatmul.mubr.bf16.gmra.mxu1 %v16533_v16  ;;  %v12781_v20 = vld [vmem:[%s18385_s13 + $0x64] ss:$16 sps:$4 sm:$0xff]  }
 0x6fe   :  { %9821 = vmatprep.mubr.bf16.mxu0 %v17158_v50  ;;  %9874 = vmatprep.mubr.bf16.mxu1 %v17163_v24  ;;  %v12784_v16 = vld [vmem:[%s18385_s13 + $0x264] ss:$16 sps:$4 sm:$0xff]  }
 0x6ff   :  { %9794 = vmatpush1.bf16.msra.mxu0 %v12767_v48  ;;  %9847 = vmatpush1.bf16.msra.mxu1 %v12770_v31  ;;  %v12815_v48 = vld [vmem:[%s18385_s13 + $0x1a0] ss:$16 sps:$4 sm:$0xff]  }
 0x700   :  { %9795 = vmatprep.subr.bf16.mxu0 %v12775_v52  ;;  %9848 = vmatprep.subr.bf16.mxu1 %v12778_v34  ;;  %v12818_v31 = vld [vmem:[%s18385_s13 + $0x3a0] ss:$16 sps:$4 sm:$0xff]   ;;  %v12823_v52 = vld [vmem:[%s18385_s13 + $0x184] ss:$16 sps:$4 sm:$0xff]  }
 0x701   :  { %v12826_v34 = vld [vmem:[%s18385_s13 + $0x384] ss:$16 sps:$4 sm:$0xff]  }
 0x703   :  { %9796 = vmatpush1.bf16.msra.mxu0 %v12773_v53  ;;  %9849 = vmatpush1.bf16.msra.mxu1 %v12776_v59  ;;  %v7829_v53 = vpop.f32.mrf.mxu0  ;;  %v17571_v59 = vpop.f32.mrf.mxu1 }
 0x704   :  { %9797 = vmatprep.subr.bf16.mxu0 %v12781_v20  ;;  %9850 = vmatprep.subr.bf16.mxu1 %v12784_v16  ;;  %v12821_v20 = vld [vmem:[%s18385_s13 + $0x180] ss:$16 sps:$4 sm:$0xff]  }
 0x705   :  { %v12824_v16 = vld [vmem:[%s18385_s13 + $0x380] ss:$16 sps:$4 sm:$0xff]  }
 0x707   :  { %9798 = vmatpush1.bf16.msra.mxu0 %v12779_v23  ;;  %9851 = vmatpush1.bf16.msra.mxu1 %v12782_v10  ;;  %v12829_v23 = vld [vmem:[%s18385_s13 + $0x164] ss:$16 sps:$4 sm:$0xff]  }
 0x708   :  { %9799 = vmatprep.subr.bf16.mxu0 %v12787_v7  ;;  %9852 = vmatprep.subr.bf16.mxu1 %v12790_v33  ;;  %v12832_v10 = vld [vmem:[%s18385_s13 + $0x364] ss:$16 sps:$4 sm:$0xff]   ;;  %v7831_v7 = vpop.f32.mrf.mxu0  ;;  %v17585_v33 = vpop.f32.mrf.mxu1 }
 0x70b   :  { %9800 = vmatpush1.bf16.msra.mxu0 %v12785_v1  ;;  %9853 = vmatpush1.bf16.msra.mxu1 %v12788_v30  ;;  %v12827_v1 = vld [vmem:[%s18385_s13 + $0x160] ss:$16 sps:$4 sm:$0xff]  }
 0x70c   :  { %9801 = vmatprep.subr.bf16.mxu0 %v12793_v57  ;;  %9854 = vmatprep.subr.bf16.mxu1 %v12796_v25  ;;  %v12830_v30 = vld [vmem:[%s18385_s13 + $0x360] ss:$16 sps:$4 sm:$0xff]   ;;  %v12835_v57 = vld [vmem:[%s18385_s13 + $0x144] ss:$16 sps:$4 sm:$0xff]  }
 0x70d   :  { %v12838_v25 = vld [vmem:[%s18385_s13 + $0x344] ss:$16 sps:$4 sm:$0xff]  }
 0x70f   :  { %9802 = vmatpush1.bf16.msra.mxu0 %v12791_v38  ;;  %9855 = vmatpush1.bf16.msra.mxu1 %v12794_v54  ;;  %v7835_v38 = vpop.f32.mrf.mxu0  ;;  %v17599_v54 = vpop.f32.mrf.mxu1 }
 0x710   :  { %9803 = vmatprep.subr.bf16.mxu0 %v12799_v6  ;;  %9856 = vmatprep.subr.bf16.mxu1 %v12802_v60  ;;  %v17604_v6 = vld [vmem:[%s18384_s12] sm:$0xf] }
 0x711   :  { %v12833_v60 = vld [vmem:[%s18385_s13 + $0x140] ss:$16 sps:$4 sm:$0xff]  }
 0x713   :  { %9804 = vmatpush1.bf16.msra.mxu0 %v12797_v43  ;;  %9857 = vmatpush1.bf16.msra.mxu1 %v12800_v5  ;;  %v12836_v43 = vld [vmem:[%s18385_s13 + $0x340] ss:$16 sps:$4 sm:$0xff]   ;;  %v12841_v5 = vld [vmem:[%s18385_s13 + $0x124] ss:$16 sps:$4 sm:$0xff]  }
 0x714   :  { %9805 = vmatprep.subr.bf16.mxu0 %v12805_v2  ;;  %9858 = vmatprep.subr.bf16.mxu1 %v12808_v56  ;;  %v12844_v2 = vld [vmem:[%s18385_s13 + $0x324] ss:$16 sps:$4 sm:$0xff]   ;;  %v7837_v56 = vpop.f32.mrf.mxu0 }
 0x717   :  { %9806 = vmatpush2.bf16.msra.mxu0 %v12803_v39  ;;  %9859 = vmatpush2.bf16.msra.mxu1 %v12806_v18  ;;  %v17618_v39 = vpop.f32.mrf.mxu1  ;;  %v6494_v18 = vrot.slane %v17604_v6, %v18455_v44 }
 0x718   :  { %9807 = vmatprep.subr.bf16.mxu0 %v12811_v42  ;;  %9860 = vmatprep.subr.bf16.mxu1 %v12814_v37  ;;  %v12839_v42 = vld [vmem:[%s18385_s13 + $0x120] ss:$16 sps:$4 sm:$0xff]  }
 0x719   :  { %v12842_v37 = vld [vmem:[%s18385_s13 + $0x320] ss:$16 sps:$4 sm:$0xff]  }
 0x71b   :  { %9808 = vmatpush2.bf16.msra.mxu0 %v12809_v40  ;;  %9861 = vmatpush2.bf16.msra.mxu1 %v12812_v13  ;;  %v17630_v40 = vrot.slane %v17604_v6, %v18452_v45  ;;  %v12847_v13 = vld [vmem:[%s18385_s13 + $0x104] ss:$16 sps:$4 sm:$0xff]  }
 0x71c   :  { %9809 = vmatprep.subr.bf16.mxu0 %v12817_v14  ;;  %9862 = vmatprep.subr.bf16.mxu1 %v12820_v27  ;;  %v12850_v14 = vld [vmem:[%s18385_s13 + $0x304] ss:$16 sps:$4 sm:$0xff]   ;;  %v7839_v27 = vpop.f32.mrf.mxu0 }
 0x71f   :  { %9810 = vmatpush2.bf16.msra.mxu0 %v12815_v48  ;;  %9863 = vmatpush2.bf16.msra.mxu1 %v12818_v31  ;;  %v17638_v48 = vpop.f32.mrf.mxu1  ;;  %v7826_v31 = vadd.f32 %v17541_v58, %v6494_v18  ;;  %v12856_v58 = vld [vmem:[%s18385_s13 + $0x6e4] ss:$16 sps:$4 sm:$0xff]  }
 0x720   :  { %9811 = vmatprep.subr.bf16.mxu0 %v12823_v52  ;;  %9864 = vmatprep.subr.bf16.mxu1 %v12826_v34  ;;  %v12845_v52 = vld [vmem:[%s18385_s13 + $0x100] ss:$16 sps:$4 sm:$0xff]  }
 0x721   :  { %v12848_v34 = vld [vmem:[%s18385_s13 + $0x300] ss:$16 sps:$4 sm:$0xff]  }
 0x723   :  { %9812 = vmatpush2.bf16.msra.mxu0 %v12821_v20  ;;  %9865 = vmatpush2.bf16.msra.mxu1 %v12824_v16  ;;  %v7828_v20 = vadd.f32 %v7827_v22, %v17630_v40  ;;  %v12853_v16 = vld [vmem:[%s18385_s13 + $0x4e4] ss:$16 sps:$4 sm:$0xff]  }
 0x724   :  { %9813 = vmatprep.subr.bf16.mxu0 %v12829_v23  ;;  %9866 = vmatprep.subr.bf16.mxu1 %v12832_v10  ;;  %v7830_v23 = vadd.f32 %v7829_v53, %v6494_v18  ;;  %v7841_v10 = vpop.f32.mrf.mxu0  ;;  %v12854_v53 = vld [vmem:[%s18385_s13 + $0x6e0] ss:$16 sps:$4 sm:$0xff]  }
 0x727   :  { %9814 = vmatpush2.bf16.msra.mxu0 %v12827_v1  ;;  %9867 = vmatpush2.bf16.msra.mxu1 %v12830_v30  ;;  %v17654_v1 = vpop.f32.mrf.mxu1  ;;  %v7879_v30 = vadd.f32 %v17543_v62, %v7826_v31  ;;  %v7883_v62 = vadd.f32 %v17571_v59, %v7830_v23  ;;  %v7838_v59 = vadd.f32 %v7837_v56, %v17630_v40 }
 0x728   :  { %9815 = vmatprep.subr.bf16.mxu0 %v12835_v57  ;;  %9868 = vmatprep.subr.bf16.mxu1 %v12838_v25  ;;  %v7832_v57 = vadd.f32 %v7831_v7, %v17630_v40  ;;  %v7840_v56 = vadd.f32 %v7839_v27, %v6494_v18 }
 0x729   :  { %v7891_v27 = vadd.f32 %v17618_v39, %v7838_v59  ;;  %v12866_v39 = vld [vmem:[%s18385_s13 + $0x6a0] ss:$16 sps:$4 sm:$0xff]  }
 0x72a   :  { %v7885_v31 = vadd.f32 %v17585_v33, %v7832_v57  ;;  %v12860_v33 = vld [vmem:[%s18385_s13 + $0x6c0] ss:$16 sps:$4 sm:$0xff]   ;;  %v12868_v57 = vld [vmem:[%s18385_s13 + $0x6a4] ss:$16 sps:$4 sm:$0xff]  }
 0x72b   :  { %9816 = vmatpush2.bf16.msra.mxu0 %v12833_v60  ;;  %9869 = vmatpush2.bf16.msra.mxu1 %v12836_v43  ;;  %v7881_v60 = vadd.f32 %v17557_v15, %v7828_v20  ;;  %v12862_v15 = vld [vmem:[%s18385_s13 + $0x6c4] ss:$16 sps:$4 sm:$0xff]  }
 0x72c   :  { %9817 = vmatprep.subr.bf16.mxu0 %v12841_v5  ;;  %9870 = vmatprep.subr.bf16.mxu1 %v12844_v2  ;;  %v12851_v5 = vld [vmem:[%s18385_s13 + $0x4e0] ss:$16 sps:$4 sm:$0xff]  }
 0x72f   :  { %9818 = vmatpush2.bf16.msra.mxu0 %v12839_v42  ;;  %9871 = vmatpush2.bf16.msra.mxu1 %v12842_v37  ;;  %v12859_v42 = vld [vmem:[%s18385_s13 + $0x4c4] ss:$16 sps:$4 sm:$0xff]   ;;  %v7836_v37 = vadd.f32 %v7835_v38, %v6494_v18 }
 0x730   :  { %9819 = vmatprep.subr.bf16.mxu0 %v12847_v13  ;;  %9872 = vmatprep.subr.bf16.mxu1 %v12850_v14 }
 0x733   :  { %9820 = vmatpush2.bf16.msra.mxu0 %v12845_v52  ;;  %9873 = vmatpush2.bf16.msra.mxu1 %v12848_v34  ;;  %v7931_v22 = vpop.f32.mrf.mxu0  ;;  %v7984_v25 = vpop.f32.mrf.mxu1 }
 0x734   :  { %v7932_v43 = vadd.f32 %v7931_v22, %v7879_v30  ;;  %9895 = vmatprep.subr.bf16.mxu0 %v12853_v16  ;;  %9948 = vmatprep.subr.bf16.mxu1 %v12856_v58  ;;  %v12857_v58 = vld [vmem:[%s18385_s13 + $0x4c0] ss:$16 sps:$4 sm:$0xff]   ;;  %v7889_v22 = vadd.f32 %v17599_v54, %v7836_v37 }
 0x735   :  { %v7933_v7 = vpop.f32.mrf.mxu0  ;;  %v7986_v2 = vpop.f32.mrf.mxu1 }
 0x736   :  { %v7985_v13 = vadd.f32 %v7984_v25, %v7932_v43  ;;  %9822 = vmatmul.mubr.bf16.vlgmr.msra.gmra.mxu0 %v17151_v9  ;;  %9875 = vmatmul.mubr.bf16.vlgmr.msra.gmra.mxu1 %v17156_v21  ;;  %v7934_v14 = vadd.f32 %v7933_v7, %v7881_v60  ;;  %v7842_v43 = vadd.f32 %v7841_v10, %v17630_v40 }
 0x737   :  { %9831 = vmatprep.mubr.bf16.mxu0 %v17238_v19  ;;  %9884 = vmatprep.mubr.bf16.mxu1 %v17243_v41  ;;  %v7935_v52 = vpop.f32.mrf.mxu0  ;;  %v7988_v34 = vpop.f32.mrf.mxu1  ;;  %v7893_v40 = vadd.f32 %v17638_v48, %v7840_v56 }
 0x738   :  { %10341 = vst [vmem:[#allocation7 + $0x20] sm:$0xff] %v7985_v13  ;;  %v10357_v20 = vmul.f32 %v17127_v3, %v7985_v13  ;;  %9896 = vmatpush1.bf16.msra.mxu0 %v12851_v5  ;;  %9949 = vmatpush1.bf16.msra.mxu1 %v12854_v53  ;;  %v7987_v38 = vadd.f32 %v7986_v2, %v7934_v14  ;;  %v12865_v3 = vld [vmem:[%s18385_s13 + $0x4a4] ss:$16 sps:$4 sm:$0xff]  }
 0x739   :  { %v7936_v16 = vadd.f32 %v7935_v52, %v7883_v62  ;;  %9897 = vmatprep.subr.bf16.mxu0 %v12859_v42  ;;  %9950 = vmatprep.subr.bf16.mxu1 %v12862_v15  ;;  %v7937_v23 = vpop.f32.mrf.mxu0  ;;  %v7990_v30 = vpop.f32.mrf.mxu1  ;;  %v12874_v42 = vld [vmem:[%s18385_s13 + $0x684] ss:$16 sps:$4 sm:$0xff]   ;;  %v7895_v13 = vadd.f32 %v17654_v1, %v7842_v43  ;;  %v12872_v1 = vld [vmem:[%s18385_s13 + $0x680] ss:$16 sps:$4 sm:$0xff]  }
 0x73a   :  { %10373 = vst [vmem:[#allocation7 + $0x40] sm:$0xff] %v10357_v20  ;;  %10342 = vst [vmem:[#allocation7 + $0x28] sm:$0xff] %v7987_v38  ;;  %v10358_v25 = vmul.f32 %v17136_v8, %v7987_v38  ;;  %v7938_v18 = vadd.f32 %v7937_v23, %v7885_v31  ;;  %v12863_v8 = vld [vmem:[%s18385_s13 + $0x4a0] ss:$16 sps:$4 sm:$0xff]   ;;  %v12877_v38 = vld [vmem:[%s18385_s13 + $0x464] ss:$16 sps:$4 sm:$0xff]  }
 0x73b   :  { %v7989_v60 = vadd.f32 %v7988_v34, %v7936_v16  ;;  %v7941_v5 = vpop.f32.mrf.mxu0  ;;  %v7994_v53 = vpop.f32.mrf.mxu1  ;;  %v12869_v34 = vld [vmem:[%s18385_s13 + $0x480] ss:$16 sps:$4 sm:$0xff]  }
 0x73c   :  { %10374 = vst [vmem:[#allocation7 + $0x48] sm:$0xff] %v10358_v25  ;;  %9898 = vmatpush1.bf16.msra.mxu0 %v12857_v58  ;;  %9951 = vmatpush1.bf16.msra.mxu1 %v12860_v33  ;;  %v7991_v7 = vadd.f32 %v7990_v30, %v7938_v18  ;;  %v7942_v54 = vadd.f32 %v7941_v5, %v7889_v22  ;;  %v12881_v25 = vld [vmem:[%s18385_s13 + $0x440] ss:$16 sps:$4 sm:$0xff]   ;;  %v12889_v18 = vld [vmem:[%s18385_s13 + $0x424] ss:$16 sps:$4 sm:$0xff]  }
 0x73d   :  { %10345 = vst [vmem:[#allocation7 + $0xa0] sm:$0xff] %v7989_v60  ;;  %v10361_v62 = vmul.f32 %v17153_v0, %v7989_v60  ;;  %9899 = vmatprep.subr.bf16.mxu0 %v12865_v3  ;;  %9952 = vmatprep.subr.bf16.mxu1 %v12868_v57  ;;  %v7943_v10 = vpop.f32.mrf.mxu0  ;;  %v7996_v2 = vpop.f32.mrf.mxu1  ;;  %v12871_v0 = vld [vmem:[%s18385_s13 + $0x484] ss:$16 sps:$4 sm:$0xff]   ;;  %v12875_v3 = vld [vmem:[%s18385_s13 + $0x460] ss:$16 sps:$4 sm:$0xff]  }
 0x73e   :  { %10346 = vst [vmem:[#allocation7 + $0xa8] sm:$0xff] %v7991_v7  ;;  %v10362_v15 = vmul.f32 %v17160_v32, %v7991_v7  ;;  %v7995_v37 = vadd.f32 %v7994_v53, %v7942_v54  ;;  %9832 = vmatmul.mubr.bf16.gmra.mxu0 %v17225_v51  ;;  %9885 = vmatmul.mubr.bf16.gmra.mxu1 %v17230_v12  ;;  %v12878_v57 = vld [vmem:[%s18385_s13 + $0x660] ss:$16 sps:$4 sm:$0xff]   ;;  %v12895_v5 = vld [vmem:[%s18385_s13 + $0x404] ss:$16 sps:$4 sm:$0xff]  }
 0x73f   :  { %10377 = vst [vmem:[#allocation7 + $0xc0] sm:$0xff] %v10361_v62  ;;  %v7944_v48 = vadd.f32 %v7943_v10, %v7891_v27  ;;  %9927 = vmatprep.mubr.bf16.mxu0 %v17193_v29  ;;  %9980 = vmatprep.mubr.bf16.mxu1 %v17195_v17  ;;  %v7945_v14 = vpop.f32.mrf.mxu0  ;;  %v7998_v31 = vpop.f32.mrf.mxu1  ;;  %v12884_v60 = vld [vmem:[%s18385_s13 + $0x640] ss:$16 sps:$4 sm:$0xff]   ;;  %v12898_v53 = vld [vmem:[%s18385_s13 + $0x604] ss:$16 sps:$4 sm:$0xff]  }
 0x740   :  { %10378 = vst [vmem:[#allocation7 + $0xc8] sm:$0xff] %v10362_v15  ;;  %10349 = vst [vmem:[#allocation7 + $0x120] sm:$0xff] %v7995_v37  ;;  %v10365_v59 = vmul.f32 %v17203_v4, %v7995_v37  ;;  %9900 = vmatpush1.bf16.msra.mxu0 %v12863_v8  ;;  %9953 = vmatpush1.bf16.msra.mxu1 %v12866_v39  ;;  %v7946_v52 = vadd.f32 %v7945_v14, %v7893_v40  ;;  %v12880_v4 = vld [vmem:[%s18385_s13 + $0x664] ss:$16 sps:$4 sm:$0xff]   ;;  %v12887_v27 = vld [vmem:[%s18385_s13 + $0x420] ss:$16 sps:$4 sm:$0xff]  }
 0x741   :  { %v7997_v32 = vadd.f32 %v7996_v2, %v7944_v48  ;;  %9901 = vmatprep.subr.bf16.mxu0 %v12871_v0  ;;  %9954 = vmatprep.subr.bf16.mxu1 %v12874_v42  ;;  %v7947_v20 = vpop.f32.mrf.mxu0  ;;  %v8000_v56 = vpop.f32.mrf.mxu1  ;;  %v12890_v43 = vld [vmem:[%s18385_s13 + $0x620] ss:$16 sps:$4 sm:$0xff]   ;;  %v12901_v54 = vld [vmem:[%s18385_s13 + $0x5e4] ss:$16 sps:$4 sm:$0xff]  }
 0x742   :  { %10381 = vst [vmem:[#allocation7 + $0x140] sm:$0xff] %v10365_v59  ;;  %v7999_v58 = vadd.f32 %v7998_v31, %v7946_v52  ;;  %v7948_v33 = vadd.f32 %v7947_v20, %v7895_v13  ;;  %v12893_v62 = vld [vmem:[%s18385_s13 + $0x400] ss:$16 sps:$4 sm:$0xff]   ;;  %v12904_v8 = vld [vmem:[%s18385_s13 + $0x7e4] ss:$16 sps:$4 sm:$0xff]  }
 0x743   :  { %10350 = vst [vmem:[#allocation7 + $0x128] sm:$0xff] %v7997_v32  ;;  %v10366_v16 = vmul.f32 %v17216_v55, %v7997_v32  ;;  %v12883_v55 = vld [vmem:[%s18385_s13 + $0x444] ss:$16 sps:$4 sm:$0xff]   ;;  %v12896_v7 = vld [vmem:[%s18385_s13 + $0x600] ss:$16 sps:$4 sm:$0xff]  }
 0x744   :  { %10353 = vst [vmem:[#allocation7 + $0x1a0] sm:$0xff] %v7999_v58  ;;  %v10369_v23 = vmul.f32 %v17227_v46, %v7999_v58  ;;  %9902 = vmatpush1.bf16.msra.mxu0 %v12869_v34  ;;  %9955 = vmatpush1.bf16.msra.mxu1 %v12872_v1  ;;  %v8001_v30 = vadd.f32 %v8000_v56, %v7948_v33  ;;  %v12886_v46 = vld [vmem:[%s18385_s13 + $0x644] ss:$16 sps:$4 sm:$0xff]   ;;  %v12899_v39 = vld [vmem:[%s18385_s13 + $0x5e0] ss:$16 sps:$4 sm:$0xff]  }
 0x745   :  { %10382 = vst [vmem:[#allocation7 + $0x148] sm:$0xff] %v10366_v16  ;;  %9903 = vmatprep.subr.bf16.mxu0 %v12877_v38  ;;  %9956 = vmatprep.subr.bf16.mxu1 %v12880_v4  ;;  %v12902_v40 = vld [vmem:[%s18385_s13 + $0x7e0] ss:$16 sps:$4 sm:$0xff]   ;;  %v12907_v10 = vld [vmem:[%s18385_s13 + $0x5c4] ss:$16 sps:$4 sm:$0xff]  }
 0x746   :  { %10385 = vst [vmem:[#allocation7 + $0x1c0] sm:$0xff] %v10369_v23  ;;  %10354 = vst [vmem:[#allocation7 + $0x1a8] sm:$0xff] %v8001_v30  ;;  %v10370_v22 = vmul.f32 %v17240_v61, %v8001_v30  ;;  %v12892_v61 = vld [vmem:[%s18385_s13 + $0x624] ss:$16 sps:$4 sm:$0xff]   ;;  %v12905_v0 = vld [vmem:[%s18385_s13 + $0x5c0] ss:$16 sps:$4 sm:$0xff]  }
 0x747   :  { %v12910_v2 = vld [vmem:[%s18385_s13 + $0x7c4] ss:$16 sps:$4 sm:$0xff]   ;;  %v12908_v42 = vld [vmem:[%s18385_s13 + $0x7c0] ss:$16 sps:$4 sm:$0xff]  }
 0x748   :  { %10386 = vst [vmem:[#allocation7 + $0x1c8] sm:$0xff] %v10370_v22  ;;  %9904 = vmatpush1.bf16.msra.mxu0 %v12875_v3  ;;  %9957 = vmatpush1.bf16.msra.mxu1 %v12878_v57  ;;  %v12913_v15 = vld [vmem:[%s18385_s13 + $0x5a4] ss:$16 sps:$4 sm:$0xff]   ;;  %v12911_v48 = vld [vmem:[%s18385_s13 + $0x5a0] ss:$16 sps:$4 sm:$0xff]  }
 0x749   :  { %9905 = vmatprep.subr.bf16.mxu0 %v12883_v55  ;;  %9958 = vmatprep.subr.bf16.mxu1 %v12886_v46  ;;  %v12916_v37 = vld [vmem:[%s18385_s13 + $0x7a4] ss:$16 sps:$4 sm:$0xff]   ;;  %v12914_v13 = vld [vmem:[%s18385_s13 + $0x7a0] ss:$16 sps:$4 sm:$0xff]   ;;  %v12949_v22 = vld [vmem:[%s18385_s13 + $0xec] ss:$16 sps:$4 sm:$0xff]  }
 0x74a   :  { %v12919_v14 = vld [vmem:[%s18385_s13 + $0x584] ss:$16 sps:$4 sm:$0xff]   ;;  %v12917_v59 = vld [vmem:[%s18385_s13 + $0x580] ss:$16 sps:$4 sm:$0xff]  }
 0x74b   :  { %v12922_v31 = vld [vmem:[%s18385_s13 + $0x784] ss:$16 sps:$4 sm:$0xff]   ;;  %v12920_v32 = vld [vmem:[%s18385_s13 + $0x780] ss:$16 sps:$4 sm:$0xff]  }
 0x74c   :  { %9906 = vmatpush1.bf16.msra.mxu0 %v12881_v25  ;;  %9959 = vmatpush1.bf16.msra.mxu1 %v12884_v60  ;;  %v12925_v52 = vld [vmem:[%s18385_s13 + $0x564] ss:$16 sps:$4 sm:$0xff]   ;;  %v12923_v1 = vld [vmem:[%s18385_s13 + $0x560] ss:$16 sps:$4 sm:$0xff]   ;;  %v12952_v25 = vld [vmem:[%s18385_s13 + $0x2ec] ss:$16 sps:$4 sm:$0xff]  }
 0x74d   :  { %9907 = vmatprep.subr.bf16.mxu0 %v12889_v18  ;;  %9960 = vmatprep.subr.bf16.mxu1 %v12892_v61  ;;  %v12928_v34 = vld [vmem:[%s18385_s13 + $0x764] ss:$16 sps:$4 sm:$0xff]   ;;  %v12926_v20 = vld [vmem:[%s18385_s13 + $0x760] ss:$16 sps:$4 sm:$0xff]   ;;  %v12947_v60 = vld [vmem:[%s18385_s13 + $0xe8] ss:$16 sps:$4 sm:$0xff]  }
 0x74e   :  { %v12931_v38 = vld [vmem:[%s18385_s13 + $0x544] ss:$16 sps:$4 sm:$0xff]   ;;  %v12929_v16 = vld [vmem:[%s18385_s13 + $0x540] ss:$16 sps:$4 sm:$0xff]   ;;  %v12950_v18 = vld [vmem:[%s18385_s13 + $0x2e8] ss:$16 sps:$4 sm:$0xff]  }
 0x74f   :  { %v12934_v4 = vld [vmem:[%s18385_s13 + $0x744] ss:$16 sps:$4 sm:$0xff]   ;;  %v12932_v58 = vld [vmem:[%s18385_s13 + $0x740] ss:$16 sps:$4 sm:$0xff]   ;;  %v12955_v61 = vld [vmem:[%s18385_s13 + $0xcc] ss:$16 sps:$4 sm:$0xff]  }
 0x750   :  { %9908 = vmatpush1.bf16.msra.mxu0 %v12887_v27  ;;  %9961 = vmatpush1.bf16.msra.mxu1 %v12890_v43  ;;  %v12937_v33 = vld [vmem:[%s18385_s13 + $0x524] ss:$16 sps:$4 sm:$0xff]   ;;  %v12935_v23 = vld [vmem:[%s18385_s13 + $0x520] ss:$16 sps:$4 sm:$0xff]   ;;  %v12958_v27 = vld [vmem:[%s18385_s13 + $0x2cc] ss:$16 sps:$4 sm:$0xff]  }
 0x751   :  { %9909 = vmatprep.subr.bf16.mxu0 %v12895_v5  ;;  %9962 = vmatprep.subr.bf16.mxu1 %v12898_v53  ;;  %v12940_v56 = vld [vmem:[%s18385_s13 + $0x724] ss:$16 sps:$4 sm:$0xff]   ;;  %v12938_v30 = vld [vmem:[%s18385_s13 + $0x720] ss:$16 sps:$4 sm:$0xff]   ;;  %v12953_v43 = vld [vmem:[%s18385_s13 + $0xc8] ss:$16 sps:$4 sm:$0xff]  }
 0x752   :  { %v12943_v3 = vld [vmem:[%s18385_s13 + $0x504] ss:$16 sps:$4 sm:$0xff]   ;;  %v12941_v55 = vld [vmem:[%s18385_s13 + $0x500] ss:$16 sps:$4 sm:$0xff]   ;;  %v12956_v5 = vld [vmem:[%s18385_s13 + $0x2c8] ss:$16 sps:$4 sm:$0xff]  }
 0x753   :  { %v12946_v57 = vld [vmem:[%s18385_s13 + $0x704] ss:$16 sps:$4 sm:$0xff]   ;;  %v12944_v46 = vld [vmem:[%s18385_s13 + $0x700] ss:$16 sps:$4 sm:$0xff]   ;;  %v12961_v53 = vld [vmem:[%s18385_s13 + $0xac] ss:$16 sps:$4 sm:$0xff]  }
 0x754   :  { %9910 = vmatpush1.bf16.msra.mxu0 %v12893_v62  ;;  %9963 = vmatpush1.bf16.msra.mxu1 %v12896_v7  ;;  %v12964_v62 = vld [vmem:[%s18385_s13 + $0x2ac] ss:$16 sps:$4 sm:$0xff]   ;;  %v12959_v7 = vld [vmem:[%s18385_s13 + $0xa8] ss:$16 sps:$4 sm:$0xff]  }
 0x755   :  { %9911 = vmatprep.subr.bf16.mxu0 %v12901_v54  ;;  %9964 = vmatprep.subr.bf16.mxu1 %v12904_v8  ;;  %v12962_v54 = vld [vmem:[%s18385_s13 + $0x2a8] ss:$16 sps:$4 sm:$0xff]   ;;  %v12967_v8 = vld [vmem:[%s18385_s13 + $0x8c] ss:$16 sps:$4 sm:$0xff]  }
 0x758   :  { %9912 = vmatpush2.bf16.msra.mxu0 %v12899_v39  ;;  %9965 = vmatpush2.bf16.msra.mxu1 %v12902_v40  ;;  %v12970_v39 = vld [vmem:[%s18385_s13 + $0x28c] ss:$16 sps:$4 sm:$0xff]   ;;  %v12965_v40 = vld [vmem:[%s18385_s13 + $0x88] ss:$16 sps:$4 sm:$0xff]  }
 0x759   :  { %9913 = vmatprep.subr.bf16.mxu0 %v12907_v10  ;;  %9966 = vmatprep.subr.bf16.mxu1 %v12910_v2  ;;  %v12968_v10 = vld [vmem:[%s18385_s13 + $0x288] ss:$16 sps:$4 sm:$0xff]   ;;  %v12973_v2 = vld [vmem:[%s18385_s13 + $0x6c] ss:$16 sps:$4 sm:$0xff]  }
 0x75c   :  { %9914 = vmatpush2.bf16.msra.mxu0 %v12905_v0  ;;  %9967 = vmatpush2.bf16.msra.mxu1 %v12908_v42  ;;  %v12974_v0 = vld [vmem:[%s18385_s13 + $0x268] ss:$16 sps:$4 sm:$0xff]   ;;  %v12979_v42 = vld [vmem:[%s18385_s13 + $0x4c] ss:$16 sps:$4 sm:$0xff]  }
 0x75d   :  { %9915 = vmatprep.subr.bf16.mxu0 %v12913_v15  ;;  %9968 = vmatprep.subr.bf16.mxu1 %v12916_v37  ;;  %v12982_v15 = vld [vmem:[%s18385_s13 + $0x24c] ss:$16 sps:$4 sm:$0xff]   ;;  %v12977_v37 = vld [vmem:[%s18385_s13 + $0x48] ss:$16 sps:$4 sm:$0xff]  }
 0x760   :  { %9916 = vmatpush2.bf16.msra.mxu0 %v12911_v48  ;;  %9969 = vmatpush2.bf16.msra.mxu1 %v12914_v13  ;;  %v12980_v48 = vld [vmem:[%s18385_s13 + $0x248] ss:$16 sps:$4 sm:$0xff]   ;;  %v12985_v13 = vld [vmem:[%s18385_s13 + $0x2c] ss:$16 sps:$4 sm:$0xff]  }
 0x761   :  { %9917 = vmatprep.subr.bf16.mxu0 %v12919_v14  ;;  %9970 = vmatprep.subr.bf16.mxu1 %v12922_v31  ;;  %v12988_v14 = vld [vmem:[%s18385_s13 + $0x22c] ss:$16 sps:$4 sm:$0xff]   ;;  %v12983_v31 = vld [vmem:[%s18385_s13 + $0x28] ss:$16 sps:$4 sm:$0xff]  }
 0x764   :  { %9918 = vmatpush2.bf16.msra.mxu0 %v12917_v59  ;;  %9971 = vmatpush2.bf16.msra.mxu1 %v12920_v32  ;;  %v12986_v59 = vld [vmem:[%s18385_s13 + $0x228] ss:$16 sps:$4 sm:$0xff]   ;;  %v12991_v32 = vld [vmem:[%s18385_s13 + $0xc] ss:$16 sps:$4 sm:$0xff]  }
 0x765   :  { %9919 = vmatprep.subr.bf16.mxu0 %v12925_v52  ;;  %9972 = vmatprep.subr.bf16.mxu1 %v12928_v34  ;;  %v12994_v52 = vld [vmem:[%s18385_s13 + $0x20c] ss:$16 sps:$4 sm:$0xff]   ;;  %v12989_v34 = vld [vmem:[%s18385_s13 + $0x8] ss:$16 sps:$4 sm:$0xff]  }
 0x768   :  { %9920 = vmatpush2.bf16.msra.mxu0 %v12923_v1  ;;  %9973 = vmatpush2.bf16.msra.mxu1 %v12926_v20  ;;  %v12992_v1 = vld [vmem:[%s18385_s13 + $0x208] ss:$16 sps:$4 sm:$0xff]   ;;  %v12997_v20 = vld [vmem:[%s18385_s13 + $0x1ec] ss:$16 sps:$4 sm:$0xff]  }
 0x769   :  { %9921 = vmatprep.subr.bf16.mxu0 %v12931_v38  ;;  %9974 = vmatprep.subr.bf16.mxu1 %v12934_v4  ;;  %v13000_v38 = vld [vmem:[%s18385_s13 + $0x3ec] ss:$16 sps:$4 sm:$0xff]   ;;  %v12995_v4 = vld [vmem:[%s18385_s13 + $0x1e8] ss:$16 sps:$4 sm:$0xff]  }
 0x76c   :  { %9922 = vmatpush2.bf16.msra.mxu0 %v12929_v16  ;;  %9975 = vmatpush2.bf16.msra.mxu1 %v12932_v58  ;;  %v12998_v16 = vld [vmem:[%s18385_s13 + $0x3e8] ss:$16 sps:$4 sm:$0xff]   ;;  %v13003_v58 = vld [vmem:[%s18385_s13 + $0x1cc] ss:$16 sps:$4 sm:$0xff]  }
 0x76d   :  { %9923 = vmatprep.subr.bf16.mxu0 %v12937_v33  ;;  %9976 = vmatprep.subr.bf16.mxu1 %v12940_v56  ;;  %v13006_v33 = vld [vmem:[%s18385_s13 + $0x3cc] ss:$16 sps:$4 sm:$0xff]  }
 0x770   :  { %9924 = vmatpush2.bf16.msra.mxu0 %v12935_v23  ;;  %9977 = vmatpush2.bf16.msra.mxu1 %v12938_v30  ;;  %v13001_v30 = vld [vmem:[%s18385_s13 + $0x1c8] ss:$16 sps:$4 sm:$0xff]  }
 0x771   :  { %9925 = vmatprep.subr.bf16.mxu0 %v12943_v3  ;;  %9978 = vmatprep.subr.bf16.mxu1 %v12946_v57  ;;  %v13004_v3 = vld [vmem:[%s18385_s13 + $0x3c8] ss:$16 sps:$4 sm:$0xff]   ;;  %v13009_v57 = vld [vmem:[%s18385_s13 + $0x1ac] ss:$16 sps:$4 sm:$0xff]  }
 0x774   :  { %9926 = vmatpush2.bf16.msra.mxu0 %v12941_v55  ;;  %9979 = vmatpush2.bf16.msra.mxu1 %v12944_v46  ;;  %v17991_v56 = vpop.f32.mrf.mxu0  ;;  %v17993_v23 = vpop.f32.mrf.mxu1  ;;  %v13012_v55 = vld [vmem:[%s18385_s13 + $0x3ac] ss:$16 sps:$4 sm:$0xff]  }
 0x775   :  { %10001 = vmatprep.subr.bf16.mxu0 %v12949_v22  ;;  %10054 = vmatprep.subr.bf16.mxu1 %v12952_v25  ;;  %v13007_v25 = vld [vmem:[%s18385_s13 + $0x1a8] ss:$16 sps:$4 sm:$0xff]  }
 0x776   :  { %v8039_v46 = vpop.f32.mrf.mxu0  ;;  %v18007_v22 = vpop.f32.mrf.mxu1 }
 0x777   :  { %9928 = vmatmul.mubr.bf16.vlgmr.msra.gmra.mxu0 %v17189_v11  ;;  %9981 = vmatmul.mubr.bf16.vlgmr.msra.gmra.mxu1 %v17191_v35 }
 0x778   :  { %9937 = vmatprep.mubr.bf16.mxu0 %v17277_v47  ;;  %9990 = vmatprep.mubr.bf16.mxu1 %v17279_v36 }
 0x779   :  { %10002 = vmatpush1.bf16.msra.mxu0 %v12947_v60  ;;  %10055 = vmatpush1.bf16.msra.mxu1 %v12950_v18  ;;  %v13010_v60 = vld [vmem:[%s18385_s13 + $0x3a8] ss:$16 sps:$4 sm:$0xff]   ;;  %v13015_v18 = vld [vmem:[%s18385_s13 + $0x18c] ss:$16 sps:$4 sm:$0xff]  }
 0x77a   :  { %10003 = vmatprep.subr.bf16.mxu0 %v12955_v61  ;;  %10056 = vmatprep.subr.bf16.mxu1 %v12958_v27  ;;  %v13018_v61 = vld [vmem:[%s18385_s13 + $0x38c] ss:$16 sps:$4 sm:$0xff]   ;;  %v8041_v27 = vpop.f32.mrf.mxu0 }
 0x77d   :  { %10004 = vmatpush1.bf16.msra.mxu0 %v12953_v43  ;;  %10057 = vmatpush1.bf16.msra.mxu1 %v12956_v5  ;;  %v18021_v43 = vpop.f32.mrf.mxu1  ;;  %v13013_v5 = vld [vmem:[%s18385_s13 + $0x188] ss:$16 sps:$4 sm:$0xff]  }
 0x77e   :  { %10005 = vmatprep.subr.bf16.mxu0 %v12961_v53  ;;  %10058 = vmatprep.subr.bf16.mxu1 %v12964_v62  ;;  %v13016_v53 = vld [vmem:[%s18385_s13 + $0x388] ss:$16 sps:$4 sm:$0xff]   ;;  %v13021_v62 = vld [vmem:[%s18385_s13 + $0x16c] ss:$16 sps:$4 sm:$0xff]  }
 0x77f   :  { %9938 = vmatmul.mubr.bf16.gmra.mxu0 %v17267_v26  ;;  %9991 = vmatmul.mubr.bf16.gmra.mxu1 %v17269_v63 }
 0x780   :  { %10033 = vmatprep.mubr.bf16.mxu0 %v17158_v50  ;;  %10086 = vmatprep.mubr.bf16.mxu1 %v17163_v24  ;;  %v12976_v50 = vld [vmem:[%s18385_s13 + $0x26c] ss:$16 sps:$4 sm:$0xff]   ;;  %v12971_v24 = vld [vmem:[%s18385_s13 + $0x68] ss:$16 sps:$4 sm:$0xff]  }
 0x781   :  { %10006 = vmatpush1.bf16.msra.mxu0 %v12959_v7  ;;  %10059 = vmatpush1.bf16.msra.mxu1 %v12962_v54  ;;  %v13024_v7 = vld [vmem:[%s18385_s13 + $0x36c] ss:$16 sps:$4 sm:$0xff]   ;;  %v8043_v54 = vpop.f32.mrf.mxu0 }
 0x782   :  { %10007 = vmatprep.subr.bf16.mxu0 %v12967_v8  ;;  %10060 = vmatprep.subr.bf16.mxu1 %v12970_v39  ;;  %v18035_v8 = vpop.f32.mrf.mxu1  ;;  %v13019_v39 = vld [vmem:[%s18385_s13 + $0x168] ss:$16 sps:$4 sm:$0xff]  }
 0x785   :  { %10008 = vmatpush1.bf16.msra.mxu0 %v12965_v40  ;;  %10061 = vmatpush1.bf16.msra.mxu1 %v12968_v10  ;;  %v13022_v40 = vld [vmem:[%s18385_s13 + $0x368] ss:$16 sps:$4 sm:$0xff]   ;;  %v13027_v10 = vld [vmem:[%s18385_s13 + $0x14c] ss:$16 sps:$4 sm:$0xff]  }
 0x786   :  { %10009 = vmatprep.subr.bf16.mxu0 %v12973_v2  ;;  %10062 = vmatprep.subr.bf16.mxu1 %v12976_v50  ;;  %v13030_v2 = vld [vmem:[%s18385_s13 + $0x34c] ss:$16 sps:$4 sm:$0xff]   ;;  %v8047_v50 = vpop.f32.mrf.mxu0 }
 0x789   :  { %10010 = vmatpush1.bf16.msra.mxu0 %v12971_v24  ;;  %10063 = vmatpush1.bf16.msra.mxu1 %v12974_v0  ;;  %v18049_v24 = vpop.f32.mrf.mxu1  ;;  %v13025_v0 = vld [vmem:[%s18385_s13 + $0x148] ss:$16 sps:$4 sm:$0xff]  }
 0x78a   :  { %10011 = vmatprep.subr.bf16.mxu0 %v12979_v42  ;;  %10064 = vmatprep.subr.bf16.mxu1 %v12982_v15  ;;  %v13028_v42 = vld [vmem:[%s18385_s13 + $0x348] ss:$16 sps:$4 sm:$0xff]   ;;  %v13033_v15 = vld [vmem:[%s18385_s13 + $0x12c] ss:$16 sps:$4 sm:$0xff]  }
 0x78d   :  { %10012 = vmatpush1.bf16.msra.mxu0 %v12977_v37  ;;  %10065 = vmatpush1.bf16.msra.mxu1 %v12980_v48  ;;  %v13036_v37 = vld [vmem:[%s18385_s13 + $0x32c] ss:$16 sps:$4 sm:$0xff]   ;;  %v8049_v48 = vpop.f32.mrf.mxu0 }
 0x78e   :  { %10013 = vmatprep.subr.bf16.mxu0 %v12985_v13  ;;  %10066 = vmatprep.subr.bf16.mxu1 %v12988_v14  ;;  %v18063_v13 = vpop.f32.mrf.mxu1  ;;  %v6502_v14 = vrot.slane %v17604_v6, %v15586_v28 }
 0x791   :  { %10014 = vmatpush1.bf16.msra.mxu0 %v12983_v31  ;;  %10067 = vmatpush1.bf16.msra.mxu1 %v12986_v59  ;;  %v13031_v31 = vld [vmem:[%s18385_s13 + $0x128] ss:$16 sps:$4 sm:$0xff]  }
 0x792   :  { %10015 = vmatprep.subr.bf16.mxu0 %v12991_v32  ;;  %10068 = vmatprep.subr.bf16.mxu1 %v12994_v52  ;;  %v13034_v59 = vld [vmem:[%s18385_s13 + $0x328] ss:$16 sps:$4 sm:$0xff]   ;;  %v18075_v32 = vrot.slane %v17604_v6, %v15589_v49  ;;  %v13039_v52 = vld [vmem:[%s18385_s13 + $0x10c] ss:$16 sps:$4 sm:$0xff]  }
 0x793   :  { %v13037_v6 = vld [vmem:[%s18385_s13 + $0x108] ss:$16 sps:$4 sm:$0xff]  }
 0x795   :  { %10016 = vmatpush1.bf16.msra.mxu0 %v12989_v34  ;;  %10069 = vmatpush1.bf16.msra.mxu1 %v12992_v1  ;;  %v13042_v34 = vld [vmem:[%s18385_s13 + $0x30c] ss:$16 sps:$4 sm:$0xff]   ;;  %v8051_v1 = vpop.f32.mrf.mxu0 }
 0x796   :  { %10017 = vmatprep.subr.bf16.mxu0 %v12997_v20  ;;  %10070 = vmatprep.subr.bf16.mxu1 %v13000_v38  ;;  %v18083_v20 = vpop.f32.mrf.mxu1  ;;  %v8038_v38 = vadd.f32 %v17991_v56, %v6502_v14  ;;  %v8042_v56 = vadd.f32 %v8041_v27, %v6502_v14  ;;  %v13046_v27 = vld [vmem:[%s18385_s13 + $0x6e8] ss:$16 sps:$4 sm:$0xff]  }
 0x799   :  { %10018 = vmatpush2.bf16.msra.mxu0 %v12995_v4  ;;  %10071 = vmatpush2.bf16.msra.mxu1 %v12998_v16  ;;  %v13040_v4 = vld [vmem:[%s18385_s13 + $0x308] ss:$16 sps:$4 sm:$0xff]   ;;  %v8040_v16 = vadd.f32 %v8039_v46, %v18075_v32 }
 0x79a   :  { %10019 = vmatprep.subr.bf16.mxu0 %v13003_v58  ;;  %10072 = vmatprep.subr.bf16.mxu1 %v13006_v33  ;;  %v13045_v58 = vld [vmem:[%s18385_s13 + $0x4ec] ss:$16 sps:$4 sm:$0xff]  }
 0x79b   :  { %v13048_v33 = vld [vmem:[%s18385_s13 + $0x6ec] ss:$16 sps:$4 sm:$0xff]  }
 0x79d   :  { %10020 = vmatpush2.bf16.msra.mxu0 %v13001_v30  ;;  %10073 = vmatpush2.bf16.msra.mxu1 %v13004_v3  ;;  %v8053_v30 = vpop.f32.mrf.mxu0  ;;  %v18099_v3 = vpop.f32.mrf.mxu1 }
 0x79e   :  { %10021 = vmatprep.subr.bf16.mxu0 %v13009_v57  ;;  %10074 = vmatprep.subr.bf16.mxu1 %v13012_v55  ;;  %v8091_v57 = vadd.f32 %v17993_v23, %v8038_v38  ;;  %v8044_v55 = vadd.f32 %v8043_v54, %v18075_v32  ;;  %v8095_v23 = vadd.f32 %v18021_v43, %v8042_v56  ;;  %v13055_v56 = vld [vmem:[%s18385_s13 + $0x4a8] ss:$16 sps:$4 sm:$0xff]  }
 0x79f   :  { %v8050_v43 = vadd.f32 %v8049_v48, %v18075_v32  ;;  %v13060_v48 = vld [vmem:[%s18385_s13 + $0x6ac] ss:$16 sps:$4 sm:$0xff]   ;;  %v8054_v38 = vadd.f32 %v8053_v30, %v18075_v32 }
 0x7a1   :  { %10022 = vmatpush2.bf16.msra.mxu0 %v13007_v25  ;;  %10075 = vmatpush2.bf16.msra.mxu1 %v13010_v60  ;;  %v8093_v60 = vadd.f32 %v18007_v22, %v8040_v16  ;;  %v13054_v22 = vld [vmem:[%s18385_s13 + $0x6cc] ss:$16 sps:$4 sm:$0xff]   ;;  %v18144_v16 = vld [vmem:[#allocation5 + $0x30] sm:$0xff] }
 0x7a2   :  { %10023 = vmatprep.subr.bf16.mxu0 %v13015_v18  ;;  %10076 = vmatprep.subr.bf16.mxu1 %v13018_v61  ;;  %v13043_v61 = vld [vmem:[%s18385_s13 + $0x4e8] ss:$16 sps:$4 sm:$0xff]  }
 0x7a5   :  { %10024 = vmatpush2.bf16.msra.mxu0 %v13013_v5  ;;  %10077 = vmatpush2.bf16.msra.mxu1 %v13016_v53 }
 0x7a6   :  { %10025 = vmatprep.subr.bf16.mxu0 %v13021_v62  ;;  %10078 = vmatprep.subr.bf16.mxu1 %v13024_v7  ;;  %v13051_v62 = vld [vmem:[%s18385_s13 + $0x4cc] ss:$16 sps:$4 sm:$0xff]   ;;  %v8048_v7 = vadd.f32 %v8047_v50, %v6502_v14 }
 0x7a9   :  { %10026 = vmatpush2.bf16.msra.mxu0 %v13019_v39  ;;  %10079 = vmatpush2.bf16.msra.mxu1 %v13022_v40  ;;  %v8097_v40 = vadd.f32 %v18035_v8, %v8044_v55  ;;  %v13049_v8 = vld [vmem:[%s18385_s13 + $0x4c8] ss:$16 sps:$4 sm:$0xff]   ;;  %v13063_v55 = vld [vmem:[%s18385_s13 + $0x48c] ss:$16 sps:$4 sm:$0xff]  }
 0x7aa   :  { %10027 = vmatprep.subr.bf16.mxu0 %v13027_v10  ;;  %10080 = vmatprep.subr.bf16.mxu1 %v13030_v2 }
 0x7ad   :  { %10028 = vmatpush2.bf16.msra.mxu0 %v13025_v0  ;;  %10081 = vmatpush2.bf16.msra.mxu1 %v13028_v42  ;;  %v18123_v0 = vld [vmem:[#allocation5 + $0x10] sm:$0xff] }
 0x7ae   :  { %10029 = vmatprep.subr.bf16.mxu0 %v13033_v15  ;;  %10082 = vmatprep.subr.bf16.mxu1 %v13036_v37  ;;  %v13057_v37 = vld [vmem:[%s18385_s13 + $0x4ac] ss:$16 sps:$4 sm:$0xff]  }
 0x7b1   :  { %10030 = vmatpush2.bf16.msra.mxu0 %v13031_v31  ;;  %10083 = vmatpush2.bf16.msra.mxu1 %v13034_v59  ;;  %v8101_v31 = vadd.f32 %v18049_v24, %v8048_v7  ;;  %v18139_v59 = vld [vmem:[#allocation5 + $0x18] sm:$0xff] }
 0x7b2   :  { %10031 = vmatprep.subr.bf16.mxu0 %v13039_v52  ;;  %10084 = vmatprep.subr.bf16.mxu1 %v13042_v34  ;;  %v18183_v7 = vld [vmem:[#allocation5 + $0x58] sm:$0xff] }
 0x7b5   :  { %10032 = vmatpush2.bf16.msra.mxu0 %v13037_v6  ;;  %10085 = vmatpush2.bf16.msra.mxu1 %v13040_v4  ;;  %v8143_v46 = vpop.f32.mrf.mxu0  ;;  %v8196_v25 = vpop.f32.mrf.mxu1 }
 0x7b6   :  { %v8144_v18 = vadd.f32 %v8143_v46, %v8091_v57  ;;  %10107 = vmatprep.subr.bf16.mxu0 %v13045_v58  ;;  %10160 = vmatprep.subr.bf16.mxu1 %v13048_v33  ;;  %v13066_v46 = vld [vmem:[%s18385_s13 + $0x68c] ss:$16 sps:$4 sm:$0xff]  }
 0x7b7   :  { %v8145_v5 = vpop.f32.mrf.mxu0  ;;  %v8198_v53 = vpop.f32.mrf.mxu1 }
 0x7b8   :  { %v8197_v54 = vadd.f32 %v8196_v25, %v8144_v18  ;;  %10034 = vmatmul.mubr.bf16.vlgmr.msra.gmra.mxu0 %v17151_v9  ;;  %10087 = vmatmul.mubr.bf16.vlgmr.msra.gmra.mxu1 %v17156_v21  ;;  %v8146_v39 = vadd.f32 %v8145_v5, %v8093_v60  ;;  %v18160_v25 = vld [vmem:[#allocation5 + $0x38] sm:$0xff]  ;;  %v18168_v5 = vld [vmem:[#allocation5 + $0x50] sm:$0xff] }
 0x7b9   :  { %10043 = vmatprep.mubr.bf16.mxu0 %v17238_v19  ;;  %10096 = vmatprep.mubr.bf16.mxu1 %v17243_v41  ;;  %v8147_v10 = vpop.f32.mrf.mxu0  ;;  %v8200_v2 = vpop.f32.mrf.mxu1  ;;  %v13052_v19 = vld [vmem:[%s18385_s13 + $0x6c8] ss:$16 sps:$4 sm:$0xff]   ;;  %v8052_v41 = vadd.f32 %v8051_v1, %v6502_v14  ;;  %v8103_v1 = vadd.f32 %v18063_v13, %v8050_v43 }
 0x7ba   :  { %10343 = vst [vmem:[#allocation7 + $0x30] sm:$0xff] %v8197_v54  ;;  %v10359_v50 = vmul.f32 %v18123_v0, %v8197_v54  ;;  %10108 = vmatpush1.bf16.msra.mxu0 %v13043_v61  ;;  %10161 = vmatpush1.bf16.msra.mxu1 %v13046_v27  ;;  %v8199_v9 = vadd.f32 %v8198_v53, %v8146_v39  ;;  %v13058_v13 = vld [vmem:[%s18385_s13 + $0x6a8] ss:$16 sps:$4 sm:$0xff]  }
 0x7bb   :  { %v8148_v21 = vadd.f32 %v8147_v10, %v8095_v23  ;;  %10109 = vmatprep.subr.bf16.mxu0 %v13051_v62  ;;  %10162 = vmatprep.subr.bf16.mxu1 %v13054_v22  ;;  %v8149_v42 = vpop.f32.mrf.mxu0  ;;  %v8202_v15 = vpop.f32.mrf.mxu1  ;;  %v8105_v32 = vadd.f32 %v18083_v20, %v8052_v41  ;;  %v8107_v61 = vadd.f32 %v18099_v3, %v8054_v38  ;;  %v13069_v3 = vld [vmem:[%s18385_s13 + $0x46c] ss:$16 sps:$4 sm:$0xff]   ;;  %v18186_v10 = vld [vmem:[#allocation5 + $0x70] sm:$0xff]  ;;  %v13085_v38 = vld [vmem:[%s18385_s13 + $0x408] ss:$16 sps:$4 sm:$0xff]  }
 0x7bc   :  { %10375 = vst [vmem:[#allocation7 + $0x50] sm:$0xff] %v10359_v50  ;;  %10344 = vst [vmem:[#allocation7 + $0x38] sm:$0xff] %v8199_v9  ;;  %v10360_v14 = vmul.f32 %v18139_v59, %v8199_v9  ;;  %v8150_v34 = vadd.f32 %v8149_v42, %v8097_v40  ;;  %v13072_v22 = vld [vmem:[%s18385_s13 + $0x66c] ss:$16 sps:$4 sm:$0xff]   ;;  %v13067_v9 = vld [vmem:[%s18385_s13 + $0x468] ss:$16 sps:$4 sm:$0xff]  }
 0x7bd   :  { %v8201_v52 = vadd.f32 %v8200_v2, %v8148_v21  ;;  %v8153_v6 = vpop.f32.mrf.mxu0  ;;  %v8206_v4 = vpop.f32.mrf.mxu1  ;;  %v13070_v21 = vld [vmem:[%s18385_s13 + $0x668] ss:$16 sps:$4 sm:$0xff]  }
 0x7be   :  { %10376 = vst [vmem:[#allocation7 + $0x58] sm:$0xff] %v10360_v14  ;;  %10110 = vmatpush1.bf16.msra.mxu0 %v13049_v8  ;;  %10163 = vmatpush1.bf16.msra.mxu1 %v13052_v19  ;;  %v8203_v58 = vadd.f32 %v8202_v15, %v8150_v34  ;;  %v8154_v33 = vadd.f32 %v8153_v6, %v8101_v31  ;;  %v13075_v8 = vld [vmem:[%s18385_s13 + $0x44c] ss:$16 sps:$4 sm:$0xff]   ;;  %v13073_v15 = vld [vmem:[%s18385_s13 + $0x448] ss:$16 sps:$4 sm:$0xff]  }
 0x7bf   :  { %10347 = vst [vmem:[#allocation7 + $0xb0] sm:$0xff] %v8201_v52  ;;  %v10363_v24 = vmul.f32 %v18144_v16, %v8201_v52  ;;  %10111 = vmatprep.subr.bf16.mxu0 %v13057_v37  ;;  %10164 = vmatprep.subr.bf16.mxu1 %v13060_v48  ;;  %v8155_v30 = vpop.f32.mrf.mxu0  ;;  %v8208_v57 = vpop.f32.mrf.mxu1  ;;  %v13078_v19 = vld [vmem:[%s18385_s13 + $0x64c] ss:$16 sps:$4 sm:$0xff]   ;;  %v13076_v37 = vld [vmem:[%s18385_s13 + $0x648] ss:$16 sps:$4 sm:$0xff]  }
 0x7c0   :  { %10348 = vst [vmem:[#allocation7 + $0xb8] sm:$0xff] %v8203_v58  ;;  %v10364_v60 = vmul.f32 %v18160_v25, %v8203_v58  ;;  %v8207_v18 = vadd.f32 %v8206_v4, %v8154_v33  ;;  %10044 = vmatmul.mubr.bf16.gmra.mxu0 %v17225_v51  ;;  %10097 = vmatmul.mubr.bf16.gmra.mxu1 %v17230_v12  ;;  %v13061_v12 = vld [vmem:[%s18385_s13 + $0x488] ss:$16 sps:$4 sm:$0xff]   ;;  %v13081_v48 = vld [vmem:[%s18385_s13 + $0x42c] ss:$16 sps:$4 sm:$0xff]  }
 0x7c1   :  { %10379 = vst [vmem:[#allocation7 + $0xd0] sm:$0xff] %v10363_v24  ;;  %v8156_v20 = vadd.f32 %v8155_v30, %v8103_v1  ;;  %10139 = vmatprep.mubr.bf16.mxu0 %v17193_v29  ;;  %10192 = vmatprep.mubr.bf16.mxu1 %v17195_v17  ;;  %v8157_v27 = vpop.f32.mrf.mxu0  ;;  %v8210_v23 = vpop.f32.mrf.mxu1  ;;  %v13064_v29 = vld [vmem:[%s18385_s13 + $0x688] ss:$16 sps:$4 sm:$0xff]   ;;  %v13084_v31 = vld [vmem:[%s18385_s13 + $0x62c] ss:$16 sps:$4 sm:$0xff]  }
 0x7c2   :  { %10380 = vst [vmem:[#allocation7 + $0xd8] sm:$0xff] %v10364_v60  ;;  %10351 = vst [vmem:[#allocation7 + $0x130] sm:$0xff] %v8207_v18  ;;  %v10367_v53 = vmul.f32 %v18168_v5, %v8207_v18  ;;  %10112 = vmatpush1.bf16.msra.mxu0 %v13055_v56  ;;  %10165 = vmatpush1.bf16.msra.mxu1 %v13058_v13  ;;  %v8158_v62 = vadd.f32 %v8157_v27, %v8105_v32  ;;  %v18201_v41 = vld [vmem:[#allocation5 + $0x78] sm:$0xff] }
 0x7c3   :  { %v8209_v51 = vadd.f32 %v8208_v57, %v8156_v20  ;;  %10113 = vmatprep.subr.bf16.mxu0 %v13063_v55  ;;  %10166 = vmatprep.subr.bf16.mxu1 %v13066_v46  ;;  %v8159_v17 = vpop.f32.mrf.mxu0  ;;  %v8212_v43 = vpop.f32.mrf.mxu1  ;;  %v13079_v14 = vld [vmem:[%s18385_s13 + $0x428] ss:$16 sps:$4 sm:$0xff]   ;;  %v13087_v34 = vld [vmem:[%s18385_s13 + $0x40c] ss:$16 sps:$4 sm:$0xff]  }
 0x7c4   :  { %10383 = vst [vmem:[#allocation7 + $0x150] sm:$0xff] %v10367_v53  ;;  %v8211_v39 = vadd.f32 %v8210_v23, %v8158_v62  ;;  %v8160_v40 = vadd.f32 %v8159_v17, %v8107_v61  ;;  %v13082_v52 = vld [vmem:[%s18385_s13 + $0x628] ss:$16 sps:$4 sm:$0xff]   ;;  %v13090_v1 = vld [vmem:[%s18385_s13 + $0x60c] ss:$16 sps:$4 sm:$0xff]  }
 0x7c5   :  { %10352 = vst [vmem:[#allocation7 + $0x138] sm:$0xff] %v8209_v51  ;;  %v10368_v54 = vmul.f32 %v18183_v7, %v8209_v51  ;;  %v13088_v6 = vld [vmem:[%s18385_s13 + $0x608] ss:$16 sps:$4 sm:$0xff]   ;;  %v13093_v4 = vld [vmem:[%s18385_s13 + $0x5ec] ss:$16 sps:$4 sm:$0xff]  }
 0x7c6   :  { %10355 = vst [vmem:[#allocation7 + $0x1b0] sm:$0xff] %v8211_v39  ;;  %v10371_v2 = vmul.f32 %v18186_v10, %v8211_v39  ;;  %10114 = vmatpush1.bf16.msra.mxu0 %v13061_v12  ;;  %10167 = vmatpush1.bf16.msra.mxu1 %v13064_v29  ;;  %v8213_v50 = vadd.f32 %v8212_v43, %v8160_v40  ;;  %v13096_v24 = vld [vmem:[%s18385_s13 + $0x7ec] ss:$16 sps:$4 sm:$0xff]   ;;  %v13091_v58 = vld [vmem:[%s18385_s13 + $0x5e8] ss:$16 sps:$4 sm:$0xff]  }
 0x7c7   :  { %10384 = vst [vmem:[#allocation7 + $0x158] sm:$0xff] %v10368_v54  ;;  %10115 = vmatprep.subr.bf16.mxu0 %v13069_v3  ;;  %10168 = vmatprep.subr.bf16.mxu1 %v13072_v22  ;;  %v13094_v33 = vld [vmem:[%s18385_s13 + $0x7e8] ss:$16 sps:$4 sm:$0xff]   ;;  %v13099_v56 = vld [vmem:[%s18385_s13 + $0x5cc] ss:$16 sps:$4 sm:$0xff]  }
 0x7c8   :  { %10387 = vst [vmem:[#allocation7 + $0x1d0] sm:$0xff] %v10371_v2  ;;  %10356 = vst [vmem:[#allocation7 + $0x1b8] sm:$0xff] %v8213_v50  ;;  %v10372_v42 = vmul.f32 %v18201_v41, %v8213_v50  ;;  %v13102_v13 = vld [vmem:[%s18385_s13 + $0x7cc] ss:$16 sps:$4 sm:$0xff]   ;;  %v13097_v32 = vld [vmem:[%s18385_s13 + $0x5c8] ss:$16 sps:$4 sm:$0xff]  }
 0x7c9   :  { %v13100_v30 = vld [vmem:[%s18385_s13 + $0x7c8] ss:$16 sps:$4 sm:$0xff]   ;;  %v13105_v57 = vld [vmem:[%s18385_s13 + $0x5ac] ss:$16 sps:$4 sm:$0xff]  }
 0x7ca   :  { %10388 = vst [vmem:[#allocation7 + $0x1d8] sm:$0xff] %v10372_v42  ;;  %10116 = vmatpush1.bf16.msra.mxu0 %v13067_v9  ;;  %10169 = vmatpush1.bf16.msra.mxu1 %v13070_v21  ;;  %v13108_v55 = vld [vmem:[%s18385_s13 + $0x7ac] ss:$16 sps:$4 sm:$0xff]   ;;  %v13103_v46 = vld [vmem:[%s18385_s13 + $0x5a8] ss:$16 sps:$4 sm:$0xff]  }
 0x7cb   :  { %10117 = vmatprep.subr.bf16.mxu0 %v13075_v8  ;;  %10170 = vmatprep.subr.bf16.mxu1 %v13078_v19  ;;  %v13106_v60 = vld [vmem:[%s18385_s13 + $0x7a8] ss:$16 sps:$4 sm:$0xff]   ;;  %v13111_v18 = vld [vmem:[%s18385_s13 + $0x58c] ss:$16 sps:$4 sm:$0xff]  }
 0x7cc   :  { %v13114_v20 = vld [vmem:[%s18385_s13 + $0x78c] ss:$16 sps:$4 sm:$0xff]   ;;  %v13109_v61 = vld [vmem:[%s18385_s13 + $0x588] ss:$16 sps:$4 sm:$0xff]  }
 0x7cd   :  { %v13112_v27 = vld [vmem:[%s18385_s13 + $0x788] ss:$16 sps:$4 sm:$0xff]   ;;  %v13117_v23 = vld [vmem:[%s18385_s13 + $0x56c] ss:$16 sps:$4 sm:$0xff]  }
 0x7ce   :  { %10118 = vmatpush1.bf16.msra.mxu0 %v13073_v15  ;;  %10171 = vmatpush1.bf16.msra.mxu1 %v13076_v37  ;;  %v13120_v53 = vld [vmem:[%s18385_s13 + $0x76c] ss:$16 sps:$4 sm:$0xff]   ;;  %v13115_v51 = vld [vmem:[%s18385_s13 + $0x568] ss:$16 sps:$4 sm:$0xff]  }
 0x7cf   :  { %10119 = vmatprep.subr.bf16.mxu0 %v13081_v48  ;;  %10172 = vmatprep.subr.bf16.mxu1 %v13084_v31  ;;  %v13118_v62 = vld [vmem:[%s18385_s13 + $0x768] ss:$16 sps:$4 sm:$0xff]   ;;  %v13123_v12 = vld [vmem:[%s18385_s13 + $0x54c] ss:$16 sps:$4 sm:$0xff]  }
 0x7d0   :  { %v13126_v29 = vld [vmem:[%s18385_s13 + $0x74c] ss:$16 sps:$4 sm:$0xff]   ;;  %v13121_v17 = vld [vmem:[%s18385_s13 + $0x548] ss:$16 sps:$4 sm:$0xff]  }
 0x7d1   :  { %v13124_v3 = vld [vmem:[%s18385_s13 + $0x748] ss:$16 sps:$4 sm:$0xff]   ;;  %v13129_v22 = vld [vmem:[%s18385_s13 + $0x52c] ss:$16 sps:$4 sm:$0xff]  }
 0x7d2   :  { %10120 = vmatpush1.bf16.msra.mxu0 %v13079_v14  ;;  %10173 = vmatpush1.bf16.msra.mxu1 %v13082_v52  ;;  %v13132_v54 = vld [vmem:[%s18385_s13 + $0x72c] ss:$16 sps:$4 sm:$0xff]   ;;  %v13127_v39 = vld [vmem:[%s18385_s13 + $0x528] ss:$16 sps:$4 sm:$0xff]  }
 0x7d3   :  { %10121 = vmatprep.subr.bf16.mxu0 %v13087_v34  ;;  %10174 = vmatprep.subr.bf16.mxu1 %v13090_v1  ;;  %v13130_v40 = vld [vmem:[%s18385_s13 + $0x728] ss:$16 sps:$4 sm:$0xff]   ;;  %v13135_v43 = vld [vmem:[%s18385_s13 + $0x50c] ss:$16 sps:$4 sm:$0xff]  }
 0x7d4   :  { %v13138_v2 = vld [vmem:[%s18385_s13 + $0x70c] ss:$16 sps:$4 sm:$0xff]   ;;  %v13133_v50 = vld [vmem:[%s18385_s13 + $0x508] ss:$16 sps:$4 sm:$0xff]  }
 0x7d5   :  { %v13136_v9 = vld [vmem:[%s18385_s13 + $0x708] ss:$16 sps:$4 sm:$0xff]  }
 0x7d6   :  { %10122 = vmatpush1.bf16.msra.mxu0 %v13085_v38  ;;  %10175 = vmatpush1.bf16.msra.mxu1 %v13088_v6 }
 0x7d7   :  { %10123 = vmatprep.subr.bf16.mxu0 %v13093_v4  ;;  %10176 = vmatprep.subr.bf16.mxu1 %v13096_v24 }
 0x7da   :  { %10124 = vmatpush2.bf16.msra.mxu0 %v13091_v58  ;;  %10177 = vmatpush2.bf16.msra.mxu1 %v13094_v33 }
 0x7db   :  { %10125 = vmatprep.subr.bf16.mxu0 %v13099_v56  ;;  %10178 = vmatprep.subr.bf16.mxu1 %v13102_v13 }
 0x7de   :  { %10126 = vmatpush2.bf16.msra.mxu0 %v13097_v32  ;;  %10179 = vmatpush2.bf16.msra.mxu1 %v13100_v30 }
 0x7df   :  { %10127 = vmatprep.subr.bf16.mxu0 %v13105_v57  ;;  %10180 = vmatprep.subr.bf16.mxu1 %v13108_v55 }
 0x7e2   :  { %10128 = vmatpush2.bf16.msra.mxu0 %v13103_v46  ;;  %10181 = vmatpush2.bf16.msra.mxu1 %v13106_v60 }
 0x7e3   :  { %10129 = vmatprep.subr.bf16.mxu0 %v13111_v18  ;;  %10182 = vmatprep.subr.bf16.mxu1 %v13114_v20 }
 0x7e6   :  { %10130 = vmatpush2.bf16.msra.mxu0 %v13109_v61  ;;  %10183 = vmatpush2.bf16.msra.mxu1 %v13112_v27 }
 0x7e7   :  { %10131 = vmatprep.subr.bf16.mxu0 %v13117_v23  ;;  %10184 = vmatprep.subr.bf16.mxu1 %v13120_v53  ;;  %v13263_v23 = vld [vmem:[#allocation5] sm:$0xff] }
 0x7ea   :  { %10132 = vmatpush2.bf16.msra.mxu0 %v13115_v51  ;;  %10185 = vmatpush2.bf16.msra.mxu1 %v13118_v62 }
 0x7eb   :  { %10133 = vmatprep.subr.bf16.mxu0 %v13123_v12  ;;  %10186 = vmatprep.subr.bf16.mxu1 %v13126_v29 }
 0x7ee   :  { %10134 = vmatpush2.bf16.msra.mxu0 %v13121_v17  ;;  %10187 = vmatpush2.bf16.msra.mxu1 %v13124_v3 }
 0x7ef   :  { %10135 = vmatprep.subr.bf16.mxu0 %v13129_v22  ;;  %10188 = vmatprep.subr.bf16.mxu1 %v13132_v54  ;;  %v13264_v22 = vld [vmem:[#allocation5 + $0x8] sm:$0xff] }
 0x7f2   :  { %10136 = vmatpush2.bf16.msra.mxu0 %v13127_v39  ;;  %10189 = vmatpush2.bf16.msra.mxu1 %v13130_v40 }
 0x7f3   :  { %10137 = vmatprep.subr.bf16.mxu0 %v13135_v43  ;;  %10190 = vmatprep.subr.bf16.mxu1 %v13138_v2 }
 0x7f6   :  { %10138 = vmatpush2.bf16.msra.mxu0 %v13133_v50  ;;  %10191 = vmatpush2.bf16.msra.mxu1 %v13136_v9  ;;  %v9823_v21 = vpop.f32.mrf.mxu0  ;;  %v9876_v8 = vpop.f32.mrf.mxu1 }
 0x7f8   :  { %v9825_v19 = vpop.f32.mrf.mxu0  ;;  %v9878_v42 = vpop.f32.mrf.mxu1 }
 0x7f9   :  { %10140 = vmatmul.mubr.bf16.vlgmr.msra.gmra.mxu0 %v17189_v11  ;;  %10193 = vmatmul.mubr.bf16.vlgmr.msra.gmra.mxu1 %v17191_v35  ;;  %v18339_v35 = vld [vmem:[%s18386_s14] sm:$0xf]  ;;  %s13337_s14 = smov [#allocation5]  }
 0x7fa   :  { %10149 = vmatprep.mubr.bf16.mxu0 %v17277_v47  ;;  %10202 = vmatprep.mubr.bf16.mxu1 %v17279_v36  ;;  %v9827_v15 = vpop.f32.mrf.mxu0  ;;  %v9880_v37 = vpop.f32.mrf.mxu1  ;;  %s10438_s19 = sshll.u32 %s13337_s14, 4  ;;  %s10439_s19 = int_to_ptr.vmem [resolvable:$true] %s10438_s19 }
 0x7fb   :  { %s13271_s20 = scalar_lea.vmem %s10439_s19, 2048  ;;  %p13276_p1 = scmp.lt.s32.totalorder %s10439_s19, %s10439_s19 }
 0x7fc   :  { %v9829_v48 = vpop.f32.mrf.mxu0  ;;  %v9882_v31 = vpop.f32.mrf.mxu1  ;;  %p13272_p0 = scmp.ne.s32.totalorder %s10439_s19, %s13271_s20  ;;  %p13277_p2 = scmp.lt.s32.totalorder %s13271_s20, %s13271_s20 }
 0x7fe   :  { %v9833_v14 = vpop.f32.mrf.mxu0  ;;  %v9886_v11 = vpop.f32.mrf.mxu1  ;;  %p13278_p3 = por %p13277_p2, %p13276_p1 }
 0x800   :  { %v9835_v47 = vpop.f32.mrf.mxu0  ;;  %v9888_v36 = vpop.f32.mrf.mxu1  ;;  %p13279_p4 = pnand %p13278_p3, %p13272_p0 }
 0x801   :  { %10150 = vmatmul.mubr.bf16.gmra.mxu0 %v17267_v26  ;;  %10203 = vmatmul.mubr.bf16.gmra.mxu1 %v17269_v63  ;;  %v8492_v26 = vrot.slane %v18339_v35, %v18455_v44  ;;  %v8496_v63 = vrot.slane %v18339_v35, %v18452_v45 }
 0x802   :  { %v9837_v52 = vpop.f32.mrf.mxu0  ;;  %v9890_v34 = vpop.f32.mrf.mxu1 }
 0x803   :  { %v9824_v1 = vadd.f32 %v9823_v21, %v8492_v26  ;;  %v9826_v38 = vadd.f32 %v9825_v19, %v8496_v63  ;;  %v9828_v58 = vadd.f32 %v9827_v15, %v8492_v26  ;;  %v9830_v32 = vadd.f32 %v9829_v48, %v8496_v63  ;;  %v13265_v21 = vld [vmem:[#allocation5 + $0x20] sm:$0xff] }
 0x804   :  { %v9839_v6 = vpop.f32.mrf.mxu0  ;;  %v9892_v4 = vpop.f32.mrf.mxu1  ;;  %v9834_v57 = vadd.f32 %v9833_v14, %v8492_v26  ;;  %v9836_v45 = vadd.f32 %v9835_v47, %v8496_v63  ;;  %v9838_v3 = vadd.f32 %v9837_v52, %v8492_v26 }
 0x805   :  { %v9877_v24 = vadd.f32 %v9876_v8, %v9824_v1  ;;  %v9879_v13 = vadd.f32 %v9878_v42, %v9826_v38  ;;  %v9881_v44 = vadd.f32 %v9880_v37, %v9828_v58  ;;  %v9883_v27 = vadd.f32 %v9882_v31, %v9830_v32  ;;  %v13266_v31 = vld [vmem:[#allocation5 + $0x28] sm:$0xff]  ;;  %v13269_v32 = vld [vmem:[#allocation5 + $0x60] sm:$0xff] }
 0x806   :  { %v9887_v12 = vadd.f32 %v9886_v11, %v9834_v57  ;;  %v9889_v43 = vadd.f32 %v9888_v36, %v9836_v45  ;;  %v9840_v9 = vadd.f32 %v9839_v6, %v8496_v63  ;;  %v9891_v48 = vadd.f32 %v9890_v34, %v9838_v3  ;;  %v13267_v36 = vld [vmem:[#allocation5 + $0x40] sm:$0xff]  ;;  %v13268_v58 = vld [vmem:[#allocation5 + $0x48] sm:$0xff] }
 0x808   :  { %v9893_v1 = vadd.f32 %v9892_v4, %v9840_v9 }
 0x837   :  { %v9929_v33 = vpop.f32.mrf.mxu0  ;;  %v9982_v56 = vpop.f32.mrf.mxu1 }
 0x838   :  { %v9930_v30 = vadd.f32 %v9929_v33, %v9877_v24 }
 0x839   :  { %v9931_v55 = vpop.f32.mrf.mxu0  ;;  %v9984_v46 = vpop.f32.mrf.mxu1 }
 0x83a   :  { %v9983_v60 = vadd.f32 %v9982_v56, %v9930_v30  ;;  %v9932_v18 = vadd.f32 %v9931_v55, %v9879_v13  ;;  %v13270_v55 = vld [vmem:[#allocation5 + $0x68] sm:$0xff] }
 0x83b   :  { %v9933_v20 = vpop.f32.mrf.mxu0  ;;  %v9986_v61 = vpop.f32.mrf.mxu1 }
 0x83c   :  { %v10389_v53 = vmul.f32 %v13263_v23, %v9983_v60  ;;  %v9985_v51 = vadd.f32 %v9984_v46, %v9932_v18  ;;  %v9934_v62 = vadd.f32 %v9933_v20, %v9881_v44 }
 0x83d   :  { %v9935_v29 = vpop.f32.mrf.mxu0  ;;  %v9988_v17 = vpop.f32.mrf.mxu1 }
 0x83e   :  { %10405 = vst [vmem:[#allocation7 + $0x60] sm:$0xff] %v10389_v53  ;;  %v10390_v54 = vmul.f32 %v13264_v22, %v9985_v51  ;;  %v9987_v39 = vadd.f32 %v9986_v61, %v9934_v62  ;;  %v9936_v40 = vadd.f32 %v9935_v29, %v9883_v27 }
 0x83f   :  { %v9939_v2 = vpop.f32.mrf.mxu0  ;;  %v9992_v50 = vpop.f32.mrf.mxu1 }
 0x840   :  { %10406 = vst [vmem:[#allocation7 + $0x68] sm:$0xff] %v10390_v54  ;;  %v10393_v8 = vmul.f32 %v13265_v21, %v9987_v39  ;;  %v9989_v19 = vadd.f32 %v9988_v17, %v9936_v40  ;;  %v9940_v42 = vadd.f32 %v9939_v2, %v9887_v12 }
 0x841   :  { %v9941_v15 = vpop.f32.mrf.mxu0  ;;  %v9994_v37 = vpop.f32.mrf.mxu1 }
 0x842   :  { %10409 = vst [vmem:[#allocation7 + $0xe0] sm:$0xff] %v10393_v8  ;;  %v10394_v14 = vmul.f32 %v13266_v31, %v9989_v19  ;;  %v9993_v11 = vadd.f32 %v9992_v50, %v9940_v42  ;;  %v9942_v47 = vadd.f32 %v9941_v15, %v9889_v43 }
 0x843   :  { %v9943_v26 = vpop.f32.mrf.mxu0  ;;  %v9996_v52 = vpop.f32.mrf.mxu1 }
 0x844   :  { %10410 = vst [vmem:[#allocation7 + $0xe8] sm:$0xff] %v10394_v14  ;;  %v10397_v38 = vmul.f32 %v13267_v36, %v9993_v11  ;;  %v9995_v63 = vadd.f32 %v9994_v37, %v9942_v47  ;;  %v9944_v6 = vadd.f32 %v9943_v26, %v9891_v48 }
 0x845   :  { %v9945_v24 = vpop.f32.mrf.mxu0  ;;  %v9998_v34 = vpop.f32.mrf.mxu1 }
 0x846   :  { %10413 = vst [vmem:[#allocation7 + $0x160] sm:$0xff] %v10397_v38  ;;  %v10398_v33 = vmul.f32 %v13268_v58, %v9995_v63  ;;  %v9997_v56 = vadd.f32 %v9996_v52, %v9944_v6  ;;  %v9946_v13 = vadd.f32 %v9945_v24, %v9893_v1 }
 0x848   :  { %10414 = vst [vmem:[#allocation7 + $0x168] sm:$0xff] %v10398_v33  ;;  %v10401_v30 = vmul.f32 %v13269_v32, %v9997_v56  ;;  %v9999_v57 = vadd.f32 %v9998_v34, %v9946_v13 }
 0x84a   :  { %10417 = vst [vmem:[#allocation7 + $0x1e0] sm:$0xff] %v10401_v30  ;;  %v10402_v46 = vmul.f32 %v13270_v55, %v9999_v57 }
 0x84c   :  { %10418 = vst [vmem:[#allocation7 + $0x1e8] sm:$0xff] %v10402_v46 }
 0x84d   :  { %13282 = shalt.err (!%p13279_p4)
}
 0x84e   :  { %s13339_s28 = smov 512   ;;  %s13340_s22 = smov 32  }
 0x84f   :  { %10444 = dma.vmem_to_hbm [thread:$0]  %s10439_s19, 2048, %s18388_s16, [#allocation6], %s13339_s28, %s13339_s28, %s13340_s22  }
 0x850   :  { %s13291_s24 = scalar_lea.vmem %s10427_s2, 8192  ;;  %p13296_p6 = scmp.lt.s32.totalorder %s10427_s2, %s10427_s2 }
 0x851   :  { %p13292_p5 = scmp.ne.s32.totalorder %s10427_s2, %s13291_s24  ;;  %p13297_p7 = scmp.lt.s32.totalorder %s13291_s24, %s13291_s24 }
 0x853   :  { %p13298_p8 = por %p13297_p7, %p13296_p6 }
 0x855   :  { %p13299_p9 = pnand %p13298_p8, %p13292_p5 }
 0x857   :  { %13302 = shalt.err (!%p13299_p9)
}
 0x858   :  { %s13341_s11 = smov 2048   ;;  %s13342_s5 = smov 128   ;;  %v8500_v12 = vrot.slane %v18339_v35, %v15586_v28  ;;  %v8504_v29 = vrot.slane %v18339_v35, %v15589_v49 }
 0x859   :  { %10432 = dma.vmem_to_hbm [thread:$0]  %s10427_s2, 8192, %s18387_s15, [#allocation4], %s13341_s11, %s13341_s11, %s13342_s5  }
 0x85a   :  { %s13343_s15 = smov [#allocation7]  }
 0x85b   :  { %s10450_s16 = sshll.u32 %s13343_s15, 4  ;;  %s10451_s16 = int_to_ptr.vmem [resolvable:$true] %s10450_s16 }
 0x85c   :  { %s13311_s7 = scalar_lea.vmem %s10451_s16, 8192  ;;  %p13316_p11 = scmp.lt.s32.totalorder %s10451_s16, %s10451_s16 }
 0x85d   :  { %p13312_p10 = scmp.ne.s32.totalorder %s10451_s16, %s13311_s7  ;;  %p13317_p12 = scmp.lt.s32.totalorder %s13311_s7, %s13311_s7 }
 0x85f   :  { %p13318_p13 = por %p13317_p12, %p13316_p11 }
 0x861   :  { %p13319_p0 = pnand %p13318_p13, %p13312_p10 }
 0x878   :  { %v10035_v4 = vpop.f32.mrf.mxu0  ;;  %v10088_v44 = vpop.f32.mrf.mxu1 }
 0x879   :  { %v10036_v22 = vadd.f32 %v10035_v4, %v8500_v12 }
 0x87a   :  { %v10037_v60 = vpop.f32.mrf.mxu0  ;;  %v10090_v18 = vpop.f32.mrf.mxu1 }
 0x87b   :  { %v10038_v54 = vadd.f32 %v10037_v60, %v8504_v29  ;;  %v10089_v43 = vadd.f32 %v10088_v44, %v10036_v22 }
 0x87c   :  { %v10039_v45 = vpop.f32.mrf.mxu0  ;;  %v10092_v20 = vpop.f32.mrf.mxu1 }
 0x87d   :  { %v10040_v2 = vadd.f32 %v10039_v45, %v8500_v12  ;;  %v10091_v21 = vadd.f32 %v10090_v18, %v10038_v54 }
 0x87e   :  { %v10041_v61 = vpop.f32.mrf.mxu0  ;;  %v10094_v27 = vpop.f32.mrf.mxu1 }
 0x87f   :  { %v10042_v8 = vadd.f32 %v10041_v61, %v8504_v29  ;;  %v10093_v28 = vadd.f32 %v10092_v20, %v10040_v2 }
 0x880   :  { %v10045_v23 = vpop.f32.mrf.mxu0  ;;  %v10098_v53 = vpop.f32.mrf.mxu1 }
 0x881   :  { %v10046_v42 = vadd.f32 %v10045_v23, %v8500_v12  ;;  %v10095_v11 = vadd.f32 %v10094_v27, %v10042_v8 }
 0x882   :  { %v10047_v51 = vpop.f32.mrf.mxu0  ;;  %v10100_v62 = vpop.f32.mrf.mxu1 }
 0x883   :  { %v10048_v49 = vadd.f32 %v10047_v51, %v8504_v29  ;;  %v10099_v1 = vadd.f32 %v10098_v53, %v10046_v42 }
 0x884   :  { %v10049_v17 = vpop.f32.mrf.mxu0  ;;  %v10102_v3 = vpop.f32.mrf.mxu1 }
 0x885   :  { %v10050_v63 = vadd.f32 %v10049_v17, %v8500_v12  ;;  %v10101_v33 = vadd.f32 %v10100_v62, %v10048_v49 }
 0x886   :  { %v10051_v39 = vpop.f32.mrf.mxu0  ;;  %v10104_v40 = vpop.f32.mrf.mxu1 }
 0x887   :  { %v10052_v34 = vadd.f32 %v10051_v39, %v8504_v29  ;;  %v10103_v46 = vadd.f32 %v10102_v3, %v10050_v63 }
 0x889   :  { %v10105_v45 = vadd.f32 %v10104_v40, %v10052_v34 }
 0x8b9   :  { %v10141_v50 = vpop.f32.mrf.mxu0  ;;  %v10194_v9 = vpop.f32.mrf.mxu1 }
 0x8ba   :  { %v10142_v19 = vadd.f32 %v10141_v50, %v10089_v43 }
 0x8bb   :  { %v10143_v15 = vpop.f32.mrf.mxu0  ;;  %v10196_v37 = vpop.f32.mrf.mxu1 }
 0x8bc   :  { %v10195_v48 = vadd.f32 %v10194_v9, %v10142_v19  ;;  %v10144_v31 = vadd.f32 %v10143_v15, %v10091_v21 }
 0x8bd   :  { %v10145_v35 = vpop.f32.mrf.mxu0  ;;  %v10198_v14 = vpop.f32.mrf.mxu1 }
 0x8be   :  { %v10391_v47 = vmul.f32 %v18123_v0, %v10195_v48  ;;  %v10197_v26 = vadd.f32 %v10196_v37, %v10144_v31  ;;  %v10146_v52 = vadd.f32 %v10145_v35, %v10093_v28 }
 0x8bf   :  { %v10147_v36 = vpop.f32.mrf.mxu0  ;;  %v10200_v38 = vpop.f32.mrf.mxu1 }
 0x8c0   :  { %10407 = vst [vmem:[#allocation7 + $0x70] sm:$0xff] %v10391_v47  ;;  %v10392_v6 = vmul.f32 %v18139_v59, %v10197_v26  ;;  %v10199_v24 = vadd.f32 %v10198_v14, %v10146_v52  ;;  %v10148_v58 = vadd.f32 %v10147_v36, %v10095_v11 }
 0x8c1   :  { %v10151_v56 = vpop.f32.mrf.mxu0  ;;  %v10204_v13 = vpop.f32.mrf.mxu1 }
 0x8c2   :  { %10408 = vst [vmem:[#allocation7 + $0x78] sm:$0xff] %v10392_v6  ;;  %v10395_v32 = vmul.f32 %v18144_v16, %v10199_v24  ;;  %v10201_v30 = vadd.f32 %v10200_v38, %v10148_v58  ;;  %v10152_v0 = vadd.f32 %v10151_v56, %v10099_v1 }
 0x8c3   :  { %v10153_v57 = vpop.f32.mrf.mxu0  ;;  %v10206_v55 = vpop.f32.mrf.mxu1 }
 0x8c4   :  { %10411 = vst [vmem:[#allocation7 + $0xf0] sm:$0xff] %v10395_v32  ;;  %v10396_v4 = vmul.f32 %v18160_v25, %v10201_v30  ;;  %v10205_v44 = vadd.f32 %v10204_v13, %v10152_v0  ;;  %v10154_v60 = vadd.f32 %v10153_v57, %v10101_v33 }
 0x8c5   :  { %v10155_v59 = vpop.f32.mrf.mxu0  ;;  %v10208_v18 = vpop.f32.mrf.mxu1 }
 0x8c6   :  { %10412 = vst [vmem:[#allocation7 + $0xf8] sm:$0xff] %v10396_v4  ;;  %v10399_v20 = vmul.f32 %v18168_v5, %v10205_v44  ;;  %v10207_v61 = vadd.f32 %v10206_v55, %v10154_v60  ;;  %v10156_v27 = vadd.f32 %v10155_v59, %v10103_v46 }
 0x8c7   :  { %v10157_v23 = vpop.f32.mrf.mxu0  ;;  %v10210_v62 = vpop.f32.mrf.mxu1 }
 0x8c8   :  { %10415 = vst [vmem:[#allocation7 + $0x170] sm:$0xff] %v10399_v20  ;;  %v10400_v16 = vmul.f32 %v18183_v7, %v10207_v61  ;;  %v10209_v53 = vadd.f32 %v10208_v18, %v10156_v27  ;;  %v10158_v51 = vadd.f32 %v10157_v23, %v10105_v45 }
 0x8ca   :  { %10416 = vst [vmem:[#allocation7 + $0x178] sm:$0xff] %v10400_v16  ;;  %v10403_v25 = vmul.f32 %v18186_v10, %v10209_v53  ;;  %v10211_v12 = vadd.f32 %v10210_v62, %v10158_v51 }
 0x8cc   :  { %10419 = vst [vmem:[#allocation7 + $0x1f0] sm:$0xff] %v10403_v25  ;;  %v10404_v29 = vmul.f32 %v18201_v41, %v10211_v12 }
 0x8ce   :  { %10420 = vst [vmem:[#allocation7 + $0x1f8] sm:$0xff] %v10404_v29 }
 0x8cf   :  { %13322 = shalt.err (!%p13319_p0)
}
 0x8d0   :  { %10456 = dma.vmem_to_hbm [thread:$0]  %s10451_s16, 8192, %s18389_s17, [#allocation6], %s13341_s11, %s13341_s11, %s13342_s5  }
 0x8d1   :  { %13331 = dma.done.wait [#allocation4], 8192  }
 0x8d2   :  { %13332 = vsyncadd [#allocation4], 4294959104 }
 0x8d3   :  { %13333 = dma.done.wait [#allocation6], 10240  }
 0x8d4   :  { %13334 = vsyncadd [#allocation6], 4294957056 }
 0x8d5   :  { %10466 = vsyncpa [#allocation4], 1 }
 0x8d6   :  { %10467 = vsyncpa [#allocation6], 1 }

</bundles_post_ra>
